<compile_context>
chip_gen: v5e
topology: v5e:2x2
jax: 0.10.0
libtpu: 0.0.40
codegen_flags: <defaults>
</compile_context>

<pallas_src>
import jax
import jax.numpy as jnp
from jax.experimental import pallas as pl
from jax.experimental.pallas import tpu as pltpu


_CHUNK = 128  # rows of the flattened conv-output (M) dim per accumulator chunk


def _layer_geometry(h, w):
    """Spatial geometry of Conv2d(k=3, s=1, p=2) -> MaxPool2d(2, 2)."""
    hp, wp = h + 4, w + 4            # zero-padded input
    hc, wc = hp - 2, wp - 2          # conv output ("valid" on the padded input)
    ho, wo = hc // 2, wc // 2        # floor max-pool
    return dict(H=h, W=w, Hp=hp, Wp=wp, Hc=hc, Wc=wc, Ho=ho, Wo=wo, M=hc * wp)


# ----------------------------------------------------------------------------
# Fused kernel: whole network for one sample per grid step
# ----------------------------------------------------------------------------
def _make_fused_kernel(geoms, cout, out_dim):
    num_layers = len(geoms)

    def kernel(*refs):
        x_ref = refs[0]                                   # (1, H0*W0, Cin0)
        wb_refs = refs[1:1 + 2 * num_layers]              # (w_l, b_l) pairs
        fc_w_ref = refs[1 + 2 * num_layers]               # (C, D)
        fc_b_ref = refs[2 + 2 * num_layers]               # (1, D)
        o_ref = refs[3 + 2 * num_layers]                  # (1, 1, D)
        xp_refs = refs[4 + 2 * num_layers:4 + 3 * num_layers]  # padded act bufs
        conv_ref = refs[4 + 3 * num_layers]               # (max_M, C)

        # ---- zero the padded activation buffers (provides the conv halo) ----
        for xp in xp_refs:
            xp[...] = jnp.zeros_like(xp)

        # ---- scatter the flattened (H*W, Cin) input into layer-0 interior ----
        g0 = geoms[0]
        for h in range(g0["H"]):
            xp_refs[0][pl.ds((h + 2) * g0["Wp"] + 2, g0["W"]), :] = (
                x_ref[0, pl.ds(h * g0["W"], g0["W"]), :])

        gmax = None
        for l in range(num_layers):
            g = geoms[l]
            Wp, M, Ho, Wo = g["Wp"], g["M"], g["Ho"], g["Wo"]
            w_ref = wb_refs[2 * l]        # (9, Cin, Cout), taps flattened dy*3+dx
            b_ref = wb_refs[2 * l + 1]    # (1, Cout)
            xp = xp_refs[l]

            # --- conv3x3 + bias + ReLU: 9 shifted-slab matmuls, M chunked ---
            # Rows m = hc*Wp + wc; tap (dy,dx) for output row m reads padded
            # row m + dy*Wp + dx, i.e. one contiguous slab per tap.  Columns
            # wc >= Wc are garbage but never read by the pooling stage.
            for c0 in range(0, M, _CHUNK):
                clen = min(_CHUNK, M - c0)
                acc = jnp.zeros((clen, cout), jnp.float32)
                for dy in range(3):
                    for dx in range(3):
                        slab = xp[pl.ds(dy * Wp + dx + c0, clen), :]  # (clen, Cin)
                        acc = acc + jnp.dot(slab, w_ref[dy * 3 + dx],
                                            preferred_element_type=jnp.float32)
                conv_ref[pl.ds(c0, clen), :] = jnp.maximum(acc + b_ref[...], 0.0)

            # --- 2x2/2 max-pool via strided reads; write next layer interior ---
            last = l == num_layers - 1
            wp_next = None if last else geoms[l + 1]["Wp"]
            for oh in range(Ho):
                base = 2 * oh * Wp
                p00 = conv_ref[pl.ds(base, Wo, stride=2), :]
                p01 = conv_ref[pl.ds(base + 1, Wo, stride=2), :]
                p10 = conv_ref[pl.ds(base + Wp, Wo, stride=2), :]
                p11 = conv_ref[pl.ds(base + Wp + 1, Wo, stride=2), :]
                pooled = jnp.maximum(jnp.maximum(p00, p01),
                                     jnp.maximum(p10, p11))            # (Wo, C)
                if not last:
                    dst = (oh + 2) * wp_next + 2
                    xp_refs[l + 1][pl.ds(dst, Wo), :] = pooled
                else:
                    rmax = jnp.max(pooled, axis=0, keepdims=True)       # (1, C)
                    gmax = rmax if gmax is None else jnp.maximum(gmax, rmax)

        # ---- head: global max (accumulated above) -> Linear -> tanh ----
        y = jnp.dot(gmax, fc_w_ref[...],
                    preferred_element_type=jnp.float32) + fc_b_ref[...]
        o_ref[0] = jnp.tanh(y)                                          # (1, D)

    return kernel


# ----------------------------------------------------------------------------
# Forward wrapper (single pallas_call; wrapper only does layout glue)
# ----------------------------------------------------------------------------
def board_encoder_forward(x_nchw, params):
    """x_nchw: (N, Cin, H, W) -> (N, out_dim); matches BaseBoardEncoder.forward."""
    x = jnp.transpose(x_nchw, (0, 2, 3, 1)).astype(jnp.float32)   # NCHW -> NHWC
    n, h0, w0, cin0 = x.shape
    layers = params["layers"]
    num_layers = len(layers)
    cout = layers[0][0].shape[-1]
    out_dim = params["fc_w"].shape[-1]

    geoms, cins = [], []
    h, w, cin = h0, w0, cin0
    for _ in range(num_layers):
        g = _layer_geometry(h, w)
        geoms.append(g)
        cins.append(cin)
        h, w, cin = g["Ho"], g["Wo"], cout

    x_flat = x.reshape(n, h0 * w0, cin0)          # row-flattened NHWC (free)

    in_specs = [pl.BlockSpec((1, h0 * w0, cin0), lambda i: (i, 0, 0))]
    args = [x_flat]
    for (w9, b) in layers:
        in_specs.append(pl.BlockSpec(w9.shape, lambda i: (0, 0, 0)))
        in_specs.append(pl.BlockSpec(b.shape, lambda i: (0, 0)))
        args += [w9, b]
    in_specs.append(pl.BlockSpec(params["fc_w"].shape, lambda i: (0, 0)))
    in_specs.append(pl.BlockSpec(params["fc_b"].shape, lambda i: (0, 0)))
    args += [params["fc_w"], params["fc_b"]]

    # Flat padded activation buffer per layer (+8 rows so the (dy=2,dx=2) slab
    # read stays in-bounds; the extra rows only feed never-consumed columns).
    scratch_shapes = [
        pltpu.VMEM((geoms[i]["Hp"] * geoms[i]["Wp"] + 8, cins[i]), jnp.float32)
        for i in range(num_layers)
    ]
    scratch_shapes.append(
        pltpu.VMEM((max(g["M"] for g in geoms), cout), jnp.float32))

    out = pl.pallas_call(
        _make_fused_kernel(geoms, cout, out_dim),
        out_shape=jax.ShapeDtypeStruct((n, 1, out_dim), jnp.float32),
        grid=(n,),
        in_specs=in_specs,
        out_specs=pl.BlockSpec((1, 1, out_dim), lambda i: (i, 0, 0)),
        scratch_shapes=scratch_shapes,
        compiler_params=pltpu.CompilerParams(
            dimension_semantics=("parallel",)),
    )(*args)
    return out.reshape(n, out_dim)


# ----------------------------------------------------------------------------
# Deterministic parameter init (shapes follow BaseBoardEncoder.init_params)
# ----------------------------------------------------------------------------
def init_params(key, in_channel, num_channels, num_layers, out_dim):
    layers = []
    cin = in_channel
    for _ in range(num_layers):
        key, kw, kb = jax.random.split(key, 3)
        fan_in = float(9 * cin)
        w9 = jax.random.normal(kw, (9, cin, num_channels), jnp.float32) / jnp.sqrt(fan_in)
        b = 0.01 * jax.random.normal(kb, (1, num_channels), jnp.float32)
        layers.append((w9, b))
        cin = num_channels
    key, kw, kb = jax.random.split(key, 3)
    fc_w = jax.random.normal(kw, (num_channels, out_dim), jnp.float32) / jnp.sqrt(
        float(num_channels))
    fc_b = 0.01 * jax.random.normal(kb, (1, out_dim), jnp.float32)
    return {"layers": layers, "fc_w": fc_w, "fc_b": fc_b}


# ----------------------------------------------------------------------------
# Pure-JAX reference (mirrors the PyTorch forward) for correctness check
# ----------------------------------------------------------------------------
def reference_forward(x_nchw, params):
    x = jnp.transpose(x_nchw, (0, 2, 3, 1)).astype(jnp.float32)
    for (w9, b) in params["layers"]:
        cin, cout = w9.shape[1], w9.shape[2]
        w = w9.reshape(3, 3, cin, cout)
        y = jax.lax.conv_general_dilated(
            x, w, window_strides=(1, 1), padding=((2, 2), (2, 2)),
            dimension_numbers=("NHWC", "HWIO", "NHWC"))
        y = jnp.maximum(y + b.reshape(1, 1, 1, cout), 0.0)
        x = jax.lax.reduce_window(y, -jnp.inf, jax.lax.max,
                                  (1, 2, 2, 1), (1, 2, 2, 1), "VALID")
    pooled = jnp.max(x, axis=(1, 2))                     # global max-pool + squeeze
    return jnp.tanh(pooled @ params["fc_w"] + params["fc_b"])


if __name__ == "__main__":
    # Small shapes consistent with the module (batch=2, in_channel=4, board=16,
    # num_channels=32, num_layers=4, out_dim=32).
    batch, in_channel, board_size = 2, 4, 16
    num_channels, num_layers, out_dim = 32, 4, 32

    key = jax.random.PRNGKey(0)
    key, kparams, kx = jax.random.split(key, 3)
    params = init_params(kparams, in_channel, num_channels, num_layers, out_dim)
    x = jax.random.normal(kx, (batch, in_channel, board_size, board_size),
                          jnp.float32)

    fwd = jax.jit(board_encoder_forward)
    out = jax.block_until_ready(fwd(x, params))

    ref = reference_forward(x, params)
    assert out.shape == (batch, out_dim), out.shape
    assert jnp.allclose(out, ref, atol=1e-4, rtol=1e-4), float(
        jnp.max(jnp.abs(out - ref)))
    print("KERNEL_OK")
</pallas_src>

<mosaic_0001>
module attributes {stable_mosaic.version = 11 : i64} {
  func.func @kernel(%arg0: i32, %arg1: memref<1x256x4xf32, #tpu.memory_space<vmem>>, %arg2: memref<9x4x32xf32, #tpu.memory_space<vmem>>, %arg3: memref<1x32xf32, #tpu.memory_space<vmem>>, %arg4: memref<9x32x32xf32, #tpu.memory_space<vmem>>, %arg5: memref<1x32xf32, #tpu.memory_space<vmem>>, %arg6: memref<9x32x32xf32, #tpu.memory_space<vmem>>, %arg7: memref<1x32xf32, #tpu.memory_space<vmem>>, %arg8: memref<9x32x32xf32, #tpu.memory_space<vmem>>, %arg9: memref<1x32xf32, #tpu.memory_space<vmem>>, %arg10: memref<32x32xf32, #tpu.memory_space<vmem>>, %arg11: memref<1x32xf32, #tpu.memory_space<vmem>>, %arg12: memref<1x1x32xf32, #tpu.memory_space<vmem>>, %arg13: memref<408x4xf32, #tpu.memory_space<vmem>>, %arg14: memref<177x32xf32, #tpu.memory_space<vmem>>, %arg15: memref<89x32xf32, #tpu.memory_space<vmem>>, %arg16: memref<57x32xf32, #tpu.memory_space<vmem>>, %arg17: memref<360x32xf32, #tpu.memory_space<vmem>>) attributes {dimension_semantics = [#tpu.dimension_semantics<parallel>], iteration_bounds = array<i64: 2>, scalar_prefetch = 0 : i64, scratch_operands = 5 : i64, tpu.core_type = #tpu.core_type<tc>, window_params = [{transform_indices = @transform_0, window_bounds = array<i64: 1, 256, 4>}, {pipeline_mode = #tpu.pipeline_mode<synchronous>, transform_indices = @transform_1, window_bounds = array<i64: 9, 4, 32>}, {pipeline_mode = #tpu.pipeline_mode<synchronous>, transform_indices = @transform_2, window_bounds = array<i64: 1, 32>}, {pipeline_mode = #tpu.pipeline_mode<synchronous>, transform_indices = @transform_3, window_bounds = array<i64: 9, 32, 32>}, {pipeline_mode = #tpu.pipeline_mode<synchronous>, transform_indices = @transform_4, window_bounds = array<i64: 1, 32>}, {pipeline_mode = #tpu.pipeline_mode<synchronous>, transform_indices = @transform_5, window_bounds = array<i64: 9, 32, 32>}, {pipeline_mode = #tpu.pipeline_mode<synchronous>, transform_indices = @transform_6, window_bounds = array<i64: 1, 32>}, {pipeline_mode = #tpu.pipeline_mode<synchronous>, transform_indices = @transform_7, window_bounds = array<i64: 9, 32, 32>}, {pipeline_mode = #tpu.pipeline_mode<synchronous>, transform_indices = @transform_8, window_bounds = array<i64: 1, 32>}, {pipeline_mode = #tpu.pipeline_mode<synchronous>, transform_indices = @transform_9, window_bounds = array<i64: 32, 32>}, {pipeline_mode = #tpu.pipeline_mode<synchronous>, transform_indices = @transform_10, window_bounds = array<i64: 1, 32>}, {transform_indices = @transform_11, window_bounds = array<i64: 1, 1, 32>}]} {
    %cst = arith.constant 0.000000e+00 : f32
    %0 = vector.broadcast %cst : f32 to vector<408x4xf32>
    %c0 = arith.constant 0 : index
    %c0_0 = arith.constant 0 : index
    %1 = vector.load %arg13[%c0, %c0_0] : memref<408x4xf32, #tpu.memory_space<vmem>>, vector<408x4xf32>
    tpu.vector_store %arg13[%c0, %c0_0], %0 {strides = array<i32>} : memref<408x4xf32, #tpu.memory_space<vmem>>, vector<408x4xf32>,
    %cst_1 = arith.constant 0.000000e+00 : f32
    %2 = vector.broadcast %cst_1 : f32 to vector<177x32xf32>
    %c0_2 = arith.constant 0 : index
    %c0_3 = arith.constant 0 : index
    %3 = vector.load %arg14[%c0_2, %c0_3] : memref<177x32xf32, #tpu.memory_space<vmem>>, vector<177x32xf32>
    tpu.vector_store %arg14[%c0_2, %c0_3], %2 {strides = array<i32>} : memref<177x32xf32, #tpu.memory_space<vmem>>, vector<177x32xf32>,
    %cst_4 = arith.constant 0.000000e+00 : f32
    %4 = vector.broadcast %cst_4 : f32 to vector<89x32xf32>
    %c0_5 = arith.constant 0 : index
    %c0_6 = arith.constant 0 : index
    %5 = vector.load %arg15[%c0_5, %c0_6] : memref<89x32xf32, #tpu.memory_space<vmem>>, vector<89x32xf32>
    tpu.vector_store %arg15[%c0_5, %c0_6], %4 {strides = array<i32>} : memref<89x32xf32, #tpu.memory_space<vmem>>, vector<89x32xf32>,
    %cst_7 = arith.constant 0.000000e+00 : f32
    %6 = vector.broadcast %cst_7 : f32 to vector<57x32xf32>
    %c0_8 = arith.constant 0 : index
    %c0_9 = arith.constant 0 : index
    %7 = vector.load %arg16[%c0_8, %c0_9] : memref<57x32xf32, #tpu.memory_space<vmem>>, vector<57x32xf32>
    tpu.vector_store %arg16[%c0_8, %c0_9], %6 {strides = array<i32>} : memref<57x32xf32, #tpu.memory_space<vmem>>, vector<57x32xf32>,
    %c0_10 = arith.constant 0 : index
    %c0_11 = arith.constant 0 : index
    %c0_12 = arith.constant 0 : index
    %8 = vector.load %arg1[%c0_10, %c0_11, %c0_12] : memref<1x256x4xf32, #tpu.memory_space<vmem>>, vector<1x16x4xf32>
    %9 = vector.shape_cast %8 : vector<1x16x4xf32> to vector<16x4xf32>
    %c42 = arith.constant 42 : index
    %c0_13 = arith.constant 0 : index
    %10 = vector.load %arg13[%c42, %c0_13] : memref<408x4xf32, #tpu.memory_space<vmem>>, vector<16x4xf32>
    tpu.vector_store %arg13[%c42, %c0_13], %9 {strides = array<i32>} : memref<408x4xf32, #tpu.memory_space<vmem>>, vector<16x4xf32>,
    %c0_14 = arith.constant 0 : index
    %c16 = arith.constant 16 : index
    %c0_15 = arith.constant 0 : index
    %11 = vector.load %arg1[%c0_14, %c16, %c0_15] : memref<1x256x4xf32, #tpu.memory_space<vmem>>, vector<1x16x4xf32>
    %12 = vector.shape_cast %11 : vector<1x16x4xf32> to vector<16x4xf32>
    %c62 = arith.constant 62 : index
    %c0_16 = arith.constant 0 : index
    %13 = vector.load %arg13[%c62, %c0_16] : memref<408x4xf32, #tpu.memory_space<vmem>>, vector<16x4xf32>
    tpu.vector_store %arg13[%c62, %c0_16], %12 {strides = array<i32>} : memref<408x4xf32, #tpu.memory_space<vmem>>, vector<16x4xf32>,
    %c0_17 = arith.constant 0 : index
    %c32 = arith.constant 32 : index
    %c0_18 = arith.constant 0 : index
    %14 = vector.load %arg1[%c0_17, %c32, %c0_18] : memref<1x256x4xf32, #tpu.memory_space<vmem>>, vector<1x16x4xf32>
    %15 = vector.shape_cast %14 : vector<1x16x4xf32> to vector<16x4xf32>
    %c82 = arith.constant 82 : index
    %c0_19 = arith.constant 0 : index
    %16 = vector.load %arg13[%c82, %c0_19] : memref<408x4xf32, #tpu.memory_space<vmem>>, vector<16x4xf32>
    tpu.vector_store %arg13[%c82, %c0_19], %15 {strides = array<i32>} : memref<408x4xf32, #tpu.memory_space<vmem>>, vector<16x4xf32>,
    %c0_20 = arith.constant 0 : index
    %c48 = arith.constant 48 : index
    %c0_21 = arith.constant 0 : index
    %17 = vector.load %arg1[%c0_20, %c48, %c0_21] : memref<1x256x4xf32, #tpu.memory_space<vmem>>, vector<1x16x4xf32>
    %18 = vector.shape_cast %17 : vector<1x16x4xf32> to vector<16x4xf32>
    %c102 = arith.constant 102 : index
    %c0_22 = arith.constant 0 : index
    %19 = vector.load %arg13[%c102, %c0_22] : memref<408x4xf32, #tpu.memory_space<vmem>>, vector<16x4xf32>
    tpu.vector_store %arg13[%c102, %c0_22], %18 {strides = array<i32>} : memref<408x4xf32, #tpu.memory_space<vmem>>, vector<16x4xf32>,
    %c0_23 = arith.constant 0 : index
    %c64 = arith.constant 64 : index
    %c0_24 = arith.constant 0 : index
    %20 = vector.load %arg1[%c0_23, %c64, %c0_24] : memref<1x256x4xf32, #tpu.memory_space<vmem>>, vector<1x16x4xf32>
    %21 = vector.shape_cast %20 : vector<1x16x4xf32> to vector<16x4xf32>
    %c122 = arith.constant 122 : index
    %c0_25 = arith.constant 0 : index
    %22 = vector.load %arg13[%c122, %c0_25] : memref<408x4xf32, #tpu.memory_space<vmem>>, vector<16x4xf32>
    tpu.vector_store %arg13[%c122, %c0_25], %21 {strides = array<i32>} : memref<408x4xf32, #tpu.memory_space<vmem>>, vector<16x4xf32>,
    %c0_26 = arith.constant 0 : index
    %c80 = arith.constant 80 : index
    %c0_27 = arith.constant 0 : index
    %23 = vector.load %arg1[%c0_26, %c80, %c0_27] : memref<1x256x4xf32, #tpu.memory_space<vmem>>, vector<1x16x4xf32>
    %24 = vector.shape_cast %23 : vector<1x16x4xf32> to vector<16x4xf32>
    %c142 = arith.constant 142 : index
    %c0_28 = arith.constant 0 : index
    %25 = vector.load %arg13[%c142, %c0_28] : memref<408x4xf32, #tpu.memory_space<vmem>>, vector<16x4xf32>
    tpu.vector_store %arg13[%c142, %c0_28], %24 {strides = array<i32>} : memref<408x4xf32, #tpu.memory_space<vmem>>, vector<16x4xf32>,
    %c0_29 = arith.constant 0 : index
    %c96 = arith.constant 96 : index
    %c0_30 = arith.constant 0 : index
    %26 = vector.load %arg1[%c0_29, %c96, %c0_30] : memref<1x256x4xf32, #tpu.memory_space<vmem>>, vector<1x16x4xf32>
    %27 = vector.shape_cast %26 : vector<1x16x4xf32> to vector<16x4xf32>
    %c162 = arith.constant 162 : index
    %c0_31 = arith.constant 0 : index
    %28 = vector.load %arg13[%c162, %c0_31] : memref<408x4xf32, #tpu.memory_space<vmem>>, vector<16x4xf32>
    tpu.vector_store %arg13[%c162, %c0_31], %27 {strides = array<i32>} : memref<408x4xf32, #tpu.memory_space<vmem>>, vector<16x4xf32>,
    %c0_32 = arith.constant 0 : index
    %c112 = arith.constant 112 : index
    %c0_33 = arith.constant 0 : index
    %29 = vector.load %arg1[%c0_32, %c112, %c0_33] : memref<1x256x4xf32, #tpu.memory_space<vmem>>, vector<1x16x4xf32>
    %30 = vector.shape_cast %29 : vector<1x16x4xf32> to vector<16x4xf32>
    %c182 = arith.constant 182 : index
    %c0_34 = arith.constant 0 : index
    %31 = vector.load %arg13[%c182, %c0_34] : memref<408x4xf32, #tpu.memory_space<vmem>>, vector<16x4xf32>
    tpu.vector_store %arg13[%c182, %c0_34], %30 {strides = array<i32>} : memref<408x4xf32, #tpu.memory_space<vmem>>, vector<16x4xf32>,
    %c0_35 = arith.constant 0 : index
    %c128 = arith.constant 128 : index
    %c0_36 = arith.constant 0 : index
    %32 = vector.load %arg1[%c0_35, %c128, %c0_36] : memref<1x256x4xf32, #tpu.memory_space<vmem>>, vector<1x16x4xf32>
    %33 = vector.shape_cast %32 : vector<1x16x4xf32> to vector<16x4xf32>
    %c202 = arith.constant 202 : index
    %c0_37 = arith.constant 0 : index
    %34 = vector.load %arg13[%c202, %c0_37] : memref<408x4xf32, #tpu.memory_space<vmem>>, vector<16x4xf32>
    tpu.vector_store %arg13[%c202, %c0_37], %33 {strides = array<i32>} : memref<408x4xf32, #tpu.memory_space<vmem>>, vector<16x4xf32>,
    %c0_38 = arith.constant 0 : index
    %c144 = arith.constant 144 : index
    %c0_39 = arith.constant 0 : index
    %35 = vector.load %arg1[%c0_38, %c144, %c0_39] : memref<1x256x4xf32, #tpu.memory_space<vmem>>, vector<1x16x4xf32>
    %36 = vector.shape_cast %35 : vector<1x16x4xf32> to vector<16x4xf32>
    %c222 = arith.constant 222 : index
    %c0_40 = arith.constant 0 : index
    %37 = vector.load %arg13[%c222, %c0_40] : memref<408x4xf32, #tpu.memory_space<vmem>>, vector<16x4xf32>
    tpu.vector_store %arg13[%c222, %c0_40], %36 {strides = array<i32>} : memref<408x4xf32, #tpu.memory_space<vmem>>, vector<16x4xf32>,
    %c0_41 = arith.constant 0 : index
    %c160 = arith.constant 160 : index
    %c0_42 = arith.constant 0 : index
    %38 = vector.load %arg1[%c0_41, %c160, %c0_42] : memref<1x256x4xf32, #tpu.memory_space<vmem>>, vector<1x16x4xf32>
    %39 = vector.shape_cast %38 : vector<1x16x4xf32> to vector<16x4xf32>
    %c242 = arith.constant 242 : index
    %c0_43 = arith.constant 0 : index
    %40 = vector.load %arg13[%c242, %c0_43] : memref<408x4xf32, #tpu.memory_space<vmem>>, vector<16x4xf32>
    tpu.vector_store %arg13[%c242, %c0_43], %39 {strides = array<i32>} : memref<408x4xf32, #tpu.memory_space<vmem>>, vector<16x4xf32>,
    %c0_44 = arith.constant 0 : index
    %c176 = arith.constant 176 : index
    %c0_45 = arith.constant 0 : index
    %41 = vector.load %arg1[%c0_44, %c176, %c0_45] : memref<1x256x4xf32, #tpu.memory_space<vmem>>, vector<1x16x4xf32>
    %42 = vector.shape_cast %41 : vector<1x16x4xf32> to vector<16x4xf32>
    %c262 = arith.constant 262 : index
    %c0_46 = arith.constant 0 : index
    %43 = vector.load %arg13[%c262, %c0_46] : memref<408x4xf32, #tpu.memory_space<vmem>>, vector<16x4xf32>
    tpu.vector_store %arg13[%c262, %c0_46], %42 {strides = array<i32>} : memref<408x4xf32, #tpu.memory_space<vmem>>, vector<16x4xf32>,
    %c0_47 = arith.constant 0 : index
    %c192 = arith.constant 192 : index
    %c0_48 = arith.constant 0 : index
    %44 = vector.load %arg1[%c0_47, %c192, %c0_48] : memref<1x256x4xf32, #tpu.memory_space<vmem>>, vector<1x16x4xf32>
    %45 = vector.shape_cast %44 : vector<1x16x4xf32> to vector<16x4xf32>
    %c282 = arith.constant 282 : index
    %c0_49 = arith.constant 0 : index
    %46 = vector.load %arg13[%c282, %c0_49] : memref<408x4xf32, #tpu.memory_space<vmem>>, vector<16x4xf32>
    tpu.vector_store %arg13[%c282, %c0_49], %45 {strides = array<i32>} : memref<408x4xf32, #tpu.memory_space<vmem>>, vector<16x4xf32>,
    %c0_50 = arith.constant 0 : index
    %c208 = arith.constant 208 : index
    %c0_51 = arith.constant 0 : index
    %47 = vector.load %arg1[%c0_50, %c208, %c0_51] : memref<1x256x4xf32, #tpu.memory_space<vmem>>, vector<1x16x4xf32>
    %48 = vector.shape_cast %47 : vector<1x16x4xf32> to vector<16x4xf32>
    %c302 = arith.constant 302 : index
    %c0_52 = arith.constant 0 : index
    %49 = vector.load %arg13[%c302, %c0_52] : memref<408x4xf32, #tpu.memory_space<vmem>>, vector<16x4xf32>
    tpu.vector_store %arg13[%c302, %c0_52], %48 {strides = array<i32>} : memref<408x4xf32, #tpu.memory_space<vmem>>, vector<16x4xf32>,
    %c0_53 = arith.constant 0 : index
    %c224 = arith.constant 224 : index
    %c0_54 = arith.constant 0 : index
    %50 = vector.load %arg1[%c0_53, %c224, %c0_54] : memref<1x256x4xf32, #tpu.memory_space<vmem>>, vector<1x16x4xf32>
    %51 = vector.shape_cast %50 : vector<1x16x4xf32> to vector<16x4xf32>
    %c322 = arith.constant 322 : index
    %c0_55 = arith.constant 0 : index
    %52 = vector.load %arg13[%c322, %c0_55] : memref<408x4xf32, #tpu.memory_space<vmem>>, vector<16x4xf32>
    tpu.vector_store %arg13[%c322, %c0_55], %51 {strides = array<i32>} : memref<408x4xf32, #tpu.memory_space<vmem>>, vector<16x4xf32>,
    %c0_56 = arith.constant 0 : index
    %c240 = arith.constant 240 : index
    %c0_57 = arith.constant 0 : index
    %53 = vector.load %arg1[%c0_56, %c240, %c0_57] : memref<1x256x4xf32, #tpu.memory_space<vmem>>, vector<1x16x4xf32>
    %54 = vector.shape_cast %53 : vector<1x16x4xf32> to vector<16x4xf32>
    %c342 = arith.constant 342 : index
    %c0_58 = arith.constant 0 : index
    %55 = vector.load %arg13[%c342, %c0_58] : memref<408x4xf32, #tpu.memory_space<vmem>>, vector<16x4xf32>
    tpu.vector_store %arg13[%c342, %c0_58], %54 {strides = array<i32>} : memref<408x4xf32, #tpu.memory_space<vmem>>, vector<16x4xf32>,
    %cst_59 = arith.constant 0.000000e+00 : f32
    %56 = vector.broadcast %cst_59 : f32 to vector<128x32xf32>
    %c0_60 = arith.constant 0 : index
    %c0_61 = arith.constant 0 : index
    %57 = vector.load %arg13[%c0_60, %c0_61] : memref<408x4xf32, #tpu.memory_space<vmem>>, vector<128x4xf32>
    %c0_62 = arith.constant 0 : index
    %c0_63 = arith.constant 0 : index
    %c0_64 = arith.constant 0 : index
    %58 = vector.load %arg2[%c0_62, %c0_63, %c0_64] : memref<9x4x32xf32, #tpu.memory_space<vmem>>, vector<1x4x32xf32>
    %59 = vector.shape_cast %58 : vector<1x4x32xf32> to vector<4x32xf32>
    %cst_65 = arith.constant dense<0.000000e+00> : vector<128x32xf32>
    %60 = tpu.matmul %57, %59, %cst_65 {dimension_numbers = #tpu.dot_dimension_numbers<[1], [0], [0], [1], [0, 0, 1, 1], [], []>} : vector<128x4xf32>, vector<4x32xf32>, vector<128x32xf32> -> vector<128x32xf32>
    %61 = arith.addf %56, %60 : vector<128x32xf32>
    %c1 = arith.constant 1 : index
    %c0_66 = arith.constant 0 : index
    %62 = vector.load %arg13[%c1, %c0_66] : memref<408x4xf32, #tpu.memory_space<vmem>>, vector<128x4xf32>
    %c1_67 = arith.constant 1 : index
    %c0_68 = arith.constant 0 : index
    %c0_69 = arith.constant 0 : index
    %63 = vector.load %arg2[%c1_67, %c0_68, %c0_69] : memref<9x4x32xf32, #tpu.memory_space<vmem>>, vector<1x4x32xf32>
    %64 = vector.shape_cast %63 : vector<1x4x32xf32> to vector<4x32xf32>
    %cst_70 = arith.constant dense<0.000000e+00> : vector<128x32xf32>
    %65 = tpu.matmul %62, %64, %cst_70 {dimension_numbers = #tpu.dot_dimension_numbers<[1], [0], [0], [1], [0, 0, 1, 1], [], []>} : vector<128x4xf32>, vector<4x32xf32>, vector<128x32xf32> -> vector<128x32xf32>
    %66 = arith.addf %61, %65 : vector<128x32xf32>
    %c2 = arith.constant 2 : index
    %c0_71 = arith.constant 0 : index
    %67 = vector.load %arg13[%c2, %c0_71] : memref<408x4xf32, #tpu.memory_space<vmem>>, vector<128x4xf32>
    %c2_72 = arith.constant 2 : index
    %c0_73 = arith.constant 0 : index
    %c0_74 = arith.constant 0 : index
    %68 = vector.load %arg2[%c2_72, %c0_73, %c0_74] : memref<9x4x32xf32, #tpu.memory_space<vmem>>, vector<1x4x32xf32>
    %69 = vector.shape_cast %68 : vector<1x4x32xf32> to vector<4x32xf32>
    %cst_75 = arith.constant dense<0.000000e+00> : vector<128x32xf32>
    %70 = tpu.matmul %67, %69, %cst_75 {dimension_numbers = #tpu.dot_dimension_numbers<[1], [0], [0], [1], [0, 0, 1, 1], [], []>} : vector<128x4xf32>, vector<4x32xf32>, vector<128x32xf32> -> vector<128x32xf32>
    %71 = arith.addf %66, %70 : vector<128x32xf32>
    %c20 = arith.constant 20 : index
    %c0_76 = arith.constant 0 : index
    %72 = vector.load %arg13[%c20, %c0_76] : memref<408x4xf32, #tpu.memory_space<vmem>>, vector<128x4xf32>
    %c3 = arith.constant 3 : index
    %c0_77 = arith.constant 0 : index
    %c0_78 = arith.constant 0 : index
    %73 = vector.load %arg2[%c3, %c0_77, %c0_78] : memref<9x4x32xf32, #tpu.memory_space<vmem>>, vector<1x4x32xf32>
    %74 = vector.shape_cast %73 : vector<1x4x32xf32> to vector<4x32xf32>
    %cst_79 = arith.constant dense<0.000000e+00> : vector<128x32xf32>
    %75 = tpu.matmul %72, %74, %cst_79 {dimension_numbers = #tpu.dot_dimension_numbers<[1], [0], [0], [1], [0, 0, 1, 1], [], []>} : vector<128x4xf32>, vector<4x32xf32>, vector<128x32xf32> -> vector<128x32xf32>
    %76 = arith.addf %71, %75 : vector<128x32xf32>
    %c21 = arith.constant 21 : index
    %c0_80 = arith.constant 0 : index
    %77 = vector.load %arg13[%c21, %c0_80] : memref<408x4xf32, #tpu.memory_space<vmem>>, vector<128x4xf32>
    %c4 = arith.constant 4 : index
    %c0_81 = arith.constant 0 : index
    %c0_82 = arith.constant 0 : index
    %78 = vector.load %arg2[%c4, %c0_81, %c0_82] : memref<9x4x32xf32, #tpu.memory_space<vmem>>, vector<1x4x32xf32>
    %79 = vector.shape_cast %78 : vector<1x4x32xf32> to vector<4x32xf32>
    %cst_83 = arith.constant dense<0.000000e+00> : vector<128x32xf32>
    %80 = tpu.matmul %77, %79, %cst_83 {dimension_numbers = #tpu.dot_dimension_numbers<[1], [0], [0], [1], [0, 0, 1, 1], [], []>} : vector<128x4xf32>, vector<4x32xf32>, vector<128x32xf32> -> vector<128x32xf32>
    %81 = arith.addf %76, %80 : vector<128x32xf32>
    %c22 = arith.constant 22 : index
    %c0_84 = arith.constant 0 : index
    %82 = vector.load %arg13[%c22, %c0_84] : memref<408x4xf32, #tpu.memory_space<vmem>>, vector<128x4xf32>
    %c5 = arith.constant 5 : index
    %c0_85 = arith.constant 0 : index
    %c0_86 = arith.constant 0 : index
    %83 = vector.load %arg2[%c5, %c0_85, %c0_86] : memref<9x4x32xf32, #tpu.memory_space<vmem>>, vector<1x4x32xf32>
    %84 = vector.shape_cast %83 : vector<1x4x32xf32> to vector<4x32xf32>
    %cst_87 = arith.constant dense<0.000000e+00> : vector<128x32xf32>
    %85 = tpu.matmul %82, %84, %cst_87 {dimension_numbers = #tpu.dot_dimension_numbers<[1], [0], [0], [1], [0, 0, 1, 1], [], []>} : vector<128x4xf32>, vector<4x32xf32>, vector<128x32xf32> -> vector<128x32xf32>
    %86 = arith.addf %81, %85 : vector<128x32xf32>
    %c40 = arith.constant 40 : index
    %c0_88 = arith.constant 0 : index
    %87 = vector.load %arg13[%c40, %c0_88] : memref<408x4xf32, #tpu.memory_space<vmem>>, vector<128x4xf32>
    %c6 = arith.constant 6 : index
    %c0_89 = arith.constant 0 : index
    %c0_90 = arith.constant 0 : index
    %88 = vector.load %arg2[%c6, %c0_89, %c0_90] : memref<9x4x32xf32, #tpu.memory_space<vmem>>, vector<1x4x32xf32>
    %89 = vector.shape_cast %88 : vector<1x4x32xf32> to vector<4x32xf32>
    %cst_91 = arith.constant dense<0.000000e+00> : vector<128x32xf32>
    %90 = tpu.matmul %87, %89, %cst_91 {dimension_numbers = #tpu.dot_dimension_numbers<[1], [0], [0], [1], [0, 0, 1, 1], [], []>} : vector<128x4xf32>, vector<4x32xf32>, vector<128x32xf32> -> vector<128x32xf32>
    %91 = arith.addf %86, %90 : vector<128x32xf32>
    %c41 = arith.constant 41 : index
    %c0_92 = arith.constant 0 : index
    %92 = vector.load %arg13[%c41, %c0_92] : memref<408x4xf32, #tpu.memory_space<vmem>>, vector<128x4xf32>
    %c7 = arith.constant 7 : index
    %c0_93 = arith.constant 0 : index
    %c0_94 = arith.constant 0 : index
    %93 = vector.load %arg2[%c7, %c0_93, %c0_94] : memref<9x4x32xf32, #tpu.memory_space<vmem>>, vector<1x4x32xf32>
    %94 = vector.shape_cast %93 : vector<1x4x32xf32> to vector<4x32xf32>
    %cst_95 = arith.constant dense<0.000000e+00> : vector<128x32xf32>
    %95 = tpu.matmul %92, %94, %cst_95 {dimension_numbers = #tpu.dot_dimension_numbers<[1], [0], [0], [1], [0, 0, 1, 1], [], []>} : vector<128x4xf32>, vector<4x32xf32>, vector<128x32xf32> -> vector<128x32xf32>
    %96 = arith.addf %91, %95 : vector<128x32xf32>
    %c42_96 = arith.constant 42 : index
    %c0_97 = arith.constant 0 : index
    %97 = vector.load %arg13[%c42_96, %c0_97] : memref<408x4xf32, #tpu.memory_space<vmem>>, vector<128x4xf32>
    %c8 = arith.constant 8 : index
    %c0_98 = arith.constant 0 : index
    %c0_99 = arith.constant 0 : index
    %98 = vector.load %arg2[%c8, %c0_98, %c0_99] : memref<9x4x32xf32, #tpu.memory_space<vmem>>, vector<1x4x32xf32>
    %99 = vector.shape_cast %98 : vector<1x4x32xf32> to vector<4x32xf32>
    %cst_100 = arith.constant dense<0.000000e+00> : vector<128x32xf32>
    %100 = tpu.matmul %97, %99, %cst_100 {dimension_numbers = #tpu.dot_dimension_numbers<[1], [0], [0], [1], [0, 0, 1, 1], [], []>} : vector<128x4xf32>, vector<4x32xf32>, vector<128x32xf32> -> vector<128x32xf32>
    %101 = arith.addf %96, %100 : vector<128x32xf32>
    %c0_101 = arith.constant 0 : index
    %c0_102 = arith.constant 0 : index
    %102 = vector.load %arg3[%c0_101, %c0_102] : memref<1x32xf32, #tpu.memory_space<vmem>>, vector<1x32xf32>
    %103 = vector.broadcast %102 : vector<1x32xf32> to vector<128x32xf32>
    %104 = arith.addf %101, %103 : vector<128x32xf32>
    %cst_103 = arith.constant 0.000000e+00 : f32
    %105 = vector.broadcast %cst_103 : f32 to vector<128x32xf32>
    %106 = arith.maximumf %104, %105 : vector<128x32xf32>
    %c0_104 = arith.constant 0 : index
    %c0_105 = arith.constant 0 : index
    %107 = vector.load %arg17[%c0_104, %c0_105] : memref<360x32xf32, #tpu.memory_space<vmem>>, vector<128x32xf32>
    tpu.vector_store %arg17[%c0_104, %c0_105], %106 {strides = array<i32>} : memref<360x32xf32, #tpu.memory_space<vmem>>, vector<128x32xf32>,
    %cst_106 = arith.constant 0.000000e+00 : f32
    %108 = vector.broadcast %cst_106 : f32 to vector<128x32xf32>
    %c128_107 = arith.constant 128 : index
    %c0_108 = arith.constant 0 : index
    %109 = vector.load %arg13[%c128_107, %c0_108] : memref<408x4xf32, #tpu.memory_space<vmem>>, vector<128x4xf32>
    %c0_109 = arith.constant 0 : index
    %c0_110 = arith.constant 0 : index
    %c0_111 = arith.constant 0 : index
    %110 = vector.load %arg2[%c0_109, %c0_110, %c0_111] : memref<9x4x32xf32, #tpu.memory_space<vmem>>, vector<1x4x32xf32>
    %111 = vector.shape_cast %110 : vector<1x4x32xf32> to vector<4x32xf32>
    %cst_112 = arith.constant dense<0.000000e+00> : vector<128x32xf32>
    %112 = tpu.matmul %109, %111, %cst_112 {dimension_numbers = #tpu.dot_dimension_numbers<[1], [0], [0], [1], [0, 0, 1, 1], [], []>} : vector<128x4xf32>, vector<4x32xf32>, vector<128x32xf32> -> vector<128x32xf32>
    %113 = arith.addf %108, %112 : vector<128x32xf32>
    %c129 = arith.constant 129 : index
    %c0_113 = arith.constant 0 : index
    %114 = vector.load %arg13[%c129, %c0_113] : memref<408x4xf32, #tpu.memory_space<vmem>>, vector<128x4xf32>
    %c1_114 = arith.constant 1 : index
    %c0_115 = arith.constant 0 : index
    %c0_116 = arith.constant 0 : index
    %115 = vector.load %arg2[%c1_114, %c0_115, %c0_116] : memref<9x4x32xf32, #tpu.memory_space<vmem>>, vector<1x4x32xf32>
    %116 = vector.shape_cast %115 : vector<1x4x32xf32> to vector<4x32xf32>
    %cst_117 = arith.constant dense<0.000000e+00> : vector<128x32xf32>
    %117 = tpu.matmul %114, %116, %cst_117 {dimension_numbers = #tpu.dot_dimension_numbers<[1], [0], [0], [1], [0, 0, 1, 1], [], []>} : vector<128x4xf32>, vector<4x32xf32>, vector<128x32xf32> -> vector<128x32xf32>
    %118 = arith.addf %113, %117 : vector<128x32xf32>
    %c130 = arith.constant 130 : index
    %c0_118 = arith.constant 0 : index
    %119 = vector.load %arg13[%c130, %c0_118] : memref<408x4xf32, #tpu.memory_space<vmem>>, vector<128x4xf32>
    %c2_119 = arith.constant 2 : index
    %c0_120 = arith.constant 0 : index
    %c0_121 = arith.constant 0 : index
    %120 = vector.load %arg2[%c2_119, %c0_120, %c0_121] : memref<9x4x32xf32, #tpu.memory_space<vmem>>, vector<1x4x32xf32>
    %121 = vector.shape_cast %120 : vector<1x4x32xf32> to vector<4x32xf32>
    %cst_122 = arith.constant dense<0.000000e+00> : vector<128x32xf32>
    %122 = tpu.matmul %119, %121, %cst_122 {dimension_numbers = #tpu.dot_dimension_numbers<[1], [0], [0], [1], [0, 0, 1, 1], [], []>} : vector<128x4xf32>, vector<4x32xf32>, vector<128x32xf32> -> vector<128x32xf32>
    %123 = arith.addf %118, %122 : vector<128x32xf32>
    %c148 = arith.constant 148 : index
    %c0_123 = arith.constant 0 : index
    %124 = vector.load %arg13[%c148, %c0_123] : memref<408x4xf32, #tpu.memory_space<vmem>>, vector<128x4xf32>
    %c3_124 = arith.constant 3 : index
    %c0_125 = arith.constant 0 : index
    %c0_126 = arith.constant 0 : index
    %125 = vector.load %arg2[%c3_124, %c0_125, %c0_126] : memref<9x4x32xf32, #tpu.memory_space<vmem>>, vector<1x4x32xf32>
    %126 = vector.shape_cast %125 : vector<1x4x32xf32> to vector<4x32xf32>
    %cst_127 = arith.constant dense<0.000000e+00> : vector<128x32xf32>
    %127 = tpu.matmul %124, %126, %cst_127 {dimension_numbers = #tpu.dot_dimension_numbers<[1], [0], [0], [1], [0, 0, 1, 1], [], []>} : vector<128x4xf32>, vector<4x32xf32>, vector<128x32xf32> -> vector<128x32xf32>
    %128 = arith.addf %123, %127 : vector<128x32xf32>
    %c149 = arith.constant 149 : index
    %c0_128 = arith.constant 0 : index
    %129 = vector.load %arg13[%c149, %c0_128] : memref<408x4xf32, #tpu.memory_space<vmem>>, vector<128x4xf32>
    %c4_129 = arith.constant 4 : index
    %c0_130 = arith.constant 0 : index
    %c0_131 = arith.constant 0 : index
    %130 = vector.load %arg2[%c4_129, %c0_130, %c0_131] : memref<9x4x32xf32, #tpu.memory_space<vmem>>, vector<1x4x32xf32>
    %131 = vector.shape_cast %130 : vector<1x4x32xf32> to vector<4x32xf32>
    %cst_132 = arith.constant dense<0.000000e+00> : vector<128x32xf32>
    %132 = tpu.matmul %129, %131, %cst_132 {dimension_numbers = #tpu.dot_dimension_numbers<[1], [0], [0], [1], [0, 0, 1, 1], [], []>} : vector<128x4xf32>, vector<4x32xf32>, vector<128x32xf32> -> vector<128x32xf32>
    %133 = arith.addf %128, %132 : vector<128x32xf32>
    %c150 = arith.constant 150 : index
    %c0_133 = arith.constant 0 : index
    %134 = vector.load %arg13[%c150, %c0_133] : memref<408x4xf32, #tpu.memory_space<vmem>>, vector<128x4xf32>
    %c5_134 = arith.constant 5 : index
    %c0_135 = arith.constant 0 : index
    %c0_136 = arith.constant 0 : index
    %135 = vector.load %arg2[%c5_134, %c0_135, %c0_136] : memref<9x4x32xf32, #tpu.memory_space<vmem>>, vector<1x4x32xf32>
    %136 = vector.shape_cast %135 : vector<1x4x32xf32> to vector<4x32xf32>
    %cst_137 = arith.constant dense<0.000000e+00> : vector<128x32xf32>
    %137 = tpu.matmul %134, %136, %cst_137 {dimension_numbers = #tpu.dot_dimension_numbers<[1], [0], [0], [1], [0, 0, 1, 1], [], []>} : vector<128x4xf32>, vector<4x32xf32>, vector<128x32xf32> -> vector<128x32xf32>
    %138 = arith.addf %133, %137 : vector<128x32xf32>
    %c168 = arith.constant 168 : index
    %c0_138 = arith.constant 0 : index
    %139 = vector.load %arg13[%c168, %c0_138] : memref<408x4xf32, #tpu.memory_space<vmem>>, vector<128x4xf32>
    %c6_139 = arith.constant 6 : index
    %c0_140 = arith.constant 0 : index
    %c0_141 = arith.constant 0 : index
    %140 = vector.load %arg2[%c6_139, %c0_140, %c0_141] : memref<9x4x32xf32, #tpu.memory_space<vmem>>, vector<1x4x32xf32>
    %141 = vector.shape_cast %140 : vector<1x4x32xf32> to vector<4x32xf32>
    %cst_142 = arith.constant dense<0.000000e+00> : vector<128x32xf32>
    %142 = tpu.matmul %139, %141, %cst_142 {dimension_numbers = #tpu.dot_dimension_numbers<[1], [0], [0], [1], [0, 0, 1, 1], [], []>} : vector<128x4xf32>, vector<4x32xf32>, vector<128x32xf32> -> vector<128x32xf32>
    %143 = arith.addf %138, %142 : vector<128x32xf32>
    %c169 = arith.constant 169 : index
    %c0_143 = arith.constant 0 : index
    %144 = vector.load %arg13[%c169, %c0_143] : memref<408x4xf32, #tpu.memory_space<vmem>>, vector<128x4xf32>
    %c7_144 = arith.constant 7 : index
    %c0_145 = arith.constant 0 : index
    %c0_146 = arith.constant 0 : index
    %145 = vector.load %arg2[%c7_144, %c0_145, %c0_146] : memref<9x4x32xf32, #tpu.memory_space<vmem>>, vector<1x4x32xf32>
    %146 = vector.shape_cast %145 : vector<1x4x32xf32> to vector<4x32xf32>
    %cst_147 = arith.constant dense<0.000000e+00> : vector<128x32xf32>
    %147 = tpu.matmul %144, %146, %cst_147 {dimension_numbers = #tpu.dot_dimension_numbers<[1], [0], [0], [1], [0, 0, 1, 1], [], []>} : vector<128x4xf32>, vector<4x32xf32>, vector<128x32xf32> -> vector<128x32xf32>
    %148 = arith.addf %143, %147 : vector<128x32xf32>
    %c170 = arith.constant 170 : index
    %c0_148 = arith.constant 0 : index
    %149 = vector.load %arg13[%c170, %c0_148] : memref<408x4xf32, #tpu.memory_space<vmem>>, vector<128x4xf32>
    %c8_149 = arith.constant 8 : index
    %c0_150 = arith.constant 0 : index
    %c0_151 = arith.constant 0 : index
    %150 = vector.load %arg2[%c8_149, %c0_150, %c0_151] : memref<9x4x32xf32, #tpu.memory_space<vmem>>, vector<1x4x32xf32>
    %151 = vector.shape_cast %150 : vector<1x4x32xf32> to vector<4x32xf32>
    %cst_152 = arith.constant dense<0.000000e+00> : vector<128x32xf32>
    %152 = tpu.matmul %149, %151, %cst_152 {dimension_numbers = #tpu.dot_dimension_numbers<[1], [0], [0], [1], [0, 0, 1, 1], [], []>} : vector<128x4xf32>, vector<4x32xf32>, vector<128x32xf32> -> vector<128x32xf32>
    %153 = arith.addf %148, %152 : vector<128x32xf32>
    %c0_153 = arith.constant 0 : index
    %c0_154 = arith.constant 0 : index
    %154 = vector.load %arg3[%c0_153, %c0_154] : memref<1x32xf32, #tpu.memory_space<vmem>>, vector<1x32xf32>
    %155 = vector.broadcast %154 : vector<1x32xf32> to vector<128x32xf32>
    %156 = arith.addf %153, %155 : vector<128x32xf32>
    %cst_155 = arith.constant 0.000000e+00 : f32
    %157 = vector.broadcast %cst_155 : f32 to vector<128x32xf32>
    %158 = arith.maximumf %156, %157 : vector<128x32xf32>
    %c128_156 = arith.constant 128 : index
    %c0_157 = arith.constant 0 : index
    %159 = vector.load %arg17[%c128_156, %c0_157] : memref<360x32xf32, #tpu.memory_space<vmem>>, vector<128x32xf32>
    tpu.vector_store %arg17[%c128_156, %c0_157], %158 {strides = array<i32>} : memref<360x32xf32, #tpu.memory_space<vmem>>, vector<128x32xf32>,
    %cst_158 = arith.constant 0.000000e+00 : f32
    %160 = vector.broadcast %cst_158 : f32 to vector<104x32xf32>
    %c256 = arith.constant 256 : index
    %c0_159 = arith.constant 0 : index
    %161 = vector.load %arg13[%c256, %c0_159] : memref<408x4xf32, #tpu.memory_space<vmem>>, vector<104x4xf32>
    %c0_160 = arith.constant 0 : index
    %c0_161 = arith.constant 0 : index
    %c0_162 = arith.constant 0 : index
    %162 = vector.load %arg2[%c0_160, %c0_161, %c0_162] : memref<9x4x32xf32, #tpu.memory_space<vmem>>, vector<1x4x32xf32>
    %163 = vector.shape_cast %162 : vector<1x4x32xf32> to vector<4x32xf32>
    %cst_163 = arith.constant dense<0.000000e+00> : vector<104x32xf32>
    %164 = tpu.matmul %161, %163, %cst_163 {dimension_numbers = #tpu.dot_dimension_numbers<[1], [0], [0], [1], [0, 0, 1, 1], [], []>} : vector<104x4xf32>, vector<4x32xf32>, vector<104x32xf32> -> vector<104x32xf32>
    %165 = arith.addf %160, %164 : vector<104x32xf32>
    %c257 = arith.constant 257 : index
    %c0_164 = arith.constant 0 : index
    %166 = vector.load %arg13[%c257, %c0_164] : memref<408x4xf32, #tpu.memory_space<vmem>>, vector<104x4xf32>
    %c1_165 = arith.constant 1 : index
    %c0_166 = arith.constant 0 : index
    %c0_167 = arith.constant 0 : index
    %167 = vector.load %arg2[%c1_165, %c0_166, %c0_167] : memref<9x4x32xf32, #tpu.memory_space<vmem>>, vector<1x4x32xf32>
    %168 = vector.shape_cast %167 : vector<1x4x32xf32> to vector<4x32xf32>
    %cst_168 = arith.constant dense<0.000000e+00> : vector<104x32xf32>
    %169 = tpu.matmul %166, %168, %cst_168 {dimension_numbers = #tpu.dot_dimension_numbers<[1], [0], [0], [1], [0, 0, 1, 1], [], []>} : vector<104x4xf32>, vector<4x32xf32>, vector<104x32xf32> -> vector<104x32xf32>
    %170 = arith.addf %165, %169 : vector<104x32xf32>
    %c258 = arith.constant 258 : index
    %c0_169 = arith.constant 0 : index
    %171 = vector.load %arg13[%c258, %c0_169] : memref<408x4xf32, #tpu.memory_space<vmem>>, vector<104x4xf32>
    %c2_170 = arith.constant 2 : index
    %c0_171 = arith.constant 0 : index
    %c0_172 = arith.constant 0 : index
    %172 = vector.load %arg2[%c2_170, %c0_171, %c0_172] : memref<9x4x32xf32, #tpu.memory_space<vmem>>, vector<1x4x32xf32>
    %173 = vector.shape_cast %172 : vector<1x4x32xf32> to vector<4x32xf32>
    %cst_173 = arith.constant dense<0.000000e+00> : vector<104x32xf32>
    %174 = tpu.matmul %171, %173, %cst_173 {dimension_numbers = #tpu.dot_dimension_numbers<[1], [0], [0], [1], [0, 0, 1, 1], [], []>} : vector<104x4xf32>, vector<4x32xf32>, vector<104x32xf32> -> vector<104x32xf32>
    %175 = arith.addf %170, %174 : vector<104x32xf32>
    %c276 = arith.constant 276 : index
    %c0_174 = arith.constant 0 : index
    %176 = vector.load %arg13[%c276, %c0_174] : memref<408x4xf32, #tpu.memory_space<vmem>>, vector<104x4xf32>
    %c3_175 = arith.constant 3 : index
    %c0_176 = arith.constant 0 : index
    %c0_177 = arith.constant 0 : index
    %177 = vector.load %arg2[%c3_175, %c0_176, %c0_177] : memref<9x4x32xf32, #tpu.memory_space<vmem>>, vector<1x4x32xf32>
    %178 = vector.shape_cast %177 : vector<1x4x32xf32> to vector<4x32xf32>
    %cst_178 = arith.constant dense<0.000000e+00> : vector<104x32xf32>
    %179 = tpu.matmul %176, %178, %cst_178 {dimension_numbers = #tpu.dot_dimension_numbers<[1], [0], [0], [1], [0, 0, 1, 1], [], []>} : vector<104x4xf32>, vector<4x32xf32>, vector<104x32xf32> -> vector<104x32xf32>
    %180 = arith.addf %175, %179 : vector<104x32xf32>
    %c277 = arith.constant 277 : index
    %c0_179 = arith.constant 0 : index
    %181 = vector.load %arg13[%c277, %c0_179] : memref<408x4xf32, #tpu.memory_space<vmem>>, vector<104x4xf32>
    %c4_180 = arith.constant 4 : index
    %c0_181 = arith.constant 0 : index
    %c0_182 = arith.constant 0 : index
    %182 = vector.load %arg2[%c4_180, %c0_181, %c0_182] : memref<9x4x32xf32, #tpu.memory_space<vmem>>, vector<1x4x32xf32>
    %183 = vector.shape_cast %182 : vector<1x4x32xf32> to vector<4x32xf32>
    %cst_183 = arith.constant dense<0.000000e+00> : vector<104x32xf32>
    %184 = tpu.matmul %181, %183, %cst_183 {dimension_numbers = #tpu.dot_dimension_numbers<[1], [0], [0], [1], [0, 0, 1, 1], [], []>} : vector<104x4xf32>, vector<4x32xf32>, vector<104x32xf32> -> vector<104x32xf32>
    %185 = arith.addf %180, %184 : vector<104x32xf32>
    %c278 = arith.constant 278 : index
    %c0_184 = arith.constant 0 : index
    %186 = vector.load %arg13[%c278, %c0_184] : memref<408x4xf32, #tpu.memory_space<vmem>>, vector<104x4xf32>
    %c5_185 = arith.constant 5 : index
    %c0_186 = arith.constant 0 : index
    %c0_187 = arith.constant 0 : index
    %187 = vector.load %arg2[%c5_185, %c0_186, %c0_187] : memref<9x4x32xf32, #tpu.memory_space<vmem>>, vector<1x4x32xf32>
    %188 = vector.shape_cast %187 : vector<1x4x32xf32> to vector<4x32xf32>
    %cst_188 = arith.constant dense<0.000000e+00> : vector<104x32xf32>
    %189 = tpu.matmul %186, %188, %cst_188 {dimension_numbers = #tpu.dot_dimension_numbers<[1], [0], [0], [1], [0, 0, 1, 1], [], []>} : vector<104x4xf32>, vector<4x32xf32>, vector<104x32xf32> -> vector<104x32xf32>
    %190 = arith.addf %185, %189 : vector<104x32xf32>
    %c296 = arith.constant 296 : index
    %c0_189 = arith.constant 0 : index
    %191 = vector.load %arg13[%c296, %c0_189] : memref<408x4xf32, #tpu.memory_space<vmem>>, vector<104x4xf32>
    %c6_190 = arith.constant 6 : index
    %c0_191 = arith.constant 0 : index
    %c0_192 = arith.constant 0 : index
    %192 = vector.load %arg2[%c6_190, %c0_191, %c0_192] : memref<9x4x32xf32, #tpu.memory_space<vmem>>, vector<1x4x32xf32>
    %193 = vector.shape_cast %192 : vector<1x4x32xf32> to vector<4x32xf32>
    %cst_193 = arith.constant dense<0.000000e+00> : vector<104x32xf32>
    %194 = tpu.matmul %191, %193, %cst_193 {dimension_numbers = #tpu.dot_dimension_numbers<[1], [0], [0], [1], [0, 0, 1, 1], [], []>} : vector<104x4xf32>, vector<4x32xf32>, vector<104x32xf32> -> vector<104x32xf32>
    %195 = arith.addf %190, %194 : vector<104x32xf32>
    %c297 = arith.constant 297 : index
    %c0_194 = arith.constant 0 : index
    %196 = vector.load %arg13[%c297, %c0_194] : memref<408x4xf32, #tpu.memory_space<vmem>>, vector<104x4xf32>
    %c7_195 = arith.constant 7 : index
    %c0_196 = arith.constant 0 : index
    %c0_197 = arith.constant 0 : index
    %197 = vector.load %arg2[%c7_195, %c0_196, %c0_197] : memref<9x4x32xf32, #tpu.memory_space<vmem>>, vector<1x4x32xf32>
    %198 = vector.shape_cast %197 : vector<1x4x32xf32> to vector<4x32xf32>
    %cst_198 = arith.constant dense<0.000000e+00> : vector<104x32xf32>
    %199 = tpu.matmul %196, %198, %cst_198 {dimension_numbers = #tpu.dot_dimension_numbers<[1], [0], [0], [1], [0, 0, 1, 1], [], []>} : vector<104x4xf32>, vector<4x32xf32>, vector<104x32xf32> -> vector<104x32xf32>
    %200 = arith.addf %195, %199 : vector<104x32xf32>
    %c298 = arith.constant 298 : index
    %c0_199 = arith.constant 0 : index
    %201 = vector.load %arg13[%c298, %c0_199] : memref<408x4xf32, #tpu.memory_space<vmem>>, vector<104x4xf32>
    %c8_200 = arith.constant 8 : index
    %c0_201 = arith.constant 0 : index
    %c0_202 = arith.constant 0 : index
    %202 = vector.load %arg2[%c8_200, %c0_201, %c0_202] : memref<9x4x32xf32, #tpu.memory_space<vmem>>, vector<1x4x32xf32>
    %203 = vector.shape_cast %202 : vector<1x4x32xf32> to vector<4x32xf32>
    %cst_203 = arith.constant dense<0.000000e+00> : vector<104x32xf32>
    %204 = tpu.matmul %201, %203, %cst_203 {dimension_numbers = #tpu.dot_dimension_numbers<[1], [0], [0], [1], [0, 0, 1, 1], [], []>} : vector<104x4xf32>, vector<4x32xf32>, vector<104x32xf32> -> vector<104x32xf32>
    %205 = arith.addf %200, %204 : vector<104x32xf32>
    %c0_204 = arith.constant 0 : index
    %c0_205 = arith.constant 0 : index
    %206 = vector.load %arg3[%c0_204, %c0_205] : memref<1x32xf32, #tpu.memory_space<vmem>>, vector<1x32xf32>
    %207 = vector.broadcast %206 : vector<1x32xf32> to vector<104x32xf32>
    %208 = arith.addf %205, %207 : vector<104x32xf32>
    %cst_206 = arith.constant 0.000000e+00 : f32
    %209 = vector.broadcast %cst_206 : f32 to vector<104x32xf32>
    %210 = arith.maximumf %208, %209 : vector<104x32xf32>
    %c256_207 = arith.constant 256 : index
    %c0_208 = arith.constant 0 : index
    %211 = vector.load %arg17[%c256_207, %c0_208] : memref<360x32xf32, #tpu.memory_space<vmem>>, vector<104x32xf32>
    tpu.vector_store %arg17[%c256_207, %c0_208], %210 {strides = array<i32>} : memref<360x32xf32, #tpu.memory_space<vmem>>, vector<104x32xf32>,
    %c0_209 = arith.constant 0 : index
    %c0_210 = arith.constant 0 : index
    %212 = tpu.strided_load %arg17[%c0_209, %c0_210] {strides = array<i32: 2, 1>} : memref<360x32xf32, #tpu.memory_space<vmem>>, vector<9x32xf32>
    %c1_211 = arith.constant 1 : index
    %c0_212 = arith.constant 0 : index
    %213 = tpu.strided_load %arg17[%c1_211, %c0_212] {strides = array<i32: 2, 1>} : memref<360x32xf32, #tpu.memory_space<vmem>>, vector<9x32xf32>
    %c20_213 = arith.constant 20 : index
    %c0_214 = arith.constant 0 : index
    %214 = tpu.strided_load %arg17[%c20_213, %c0_214] {strides = array<i32: 2, 1>} : memref<360x32xf32, #tpu.memory_space<vmem>>, vector<9x32xf32>
    %c21_215 = arith.constant 21 : index
    %c0_216 = arith.constant 0 : index
    %215 = tpu.strided_load %arg17[%c21_215, %c0_216] {strides = array<i32: 2, 1>} : memref<360x32xf32, #tpu.memory_space<vmem>>, vector<9x32xf32>
    %216 = arith.maximumf %212, %213 : vector<9x32xf32>
    %217 = arith.maximumf %214, %215 : vector<9x32xf32>
    %218 = arith.maximumf %216, %217 : vector<9x32xf32>
    %c28 = arith.constant 28 : index
    %c0_217 = arith.constant 0 : index
    %219 = vector.load %arg14[%c28, %c0_217] : memref<177x32xf32, #tpu.memory_space<vmem>>, vector<9x32xf32>
    tpu.vector_store %arg14[%c28, %c0_217], %218 {strides = array<i32>} : memref<177x32xf32, #tpu.memory_space<vmem>>, vector<9x32xf32>,
    %c40_218 = arith.constant 40 : index
    %c0_219 = arith.constant 0 : index
    %220 = tpu.strided_load %arg17[%c40_218, %c0_219] {strides = array<i32: 2, 1>} : memref<360x32xf32, #tpu.memory_space<vmem>>, vector<9x32xf32>
    %c41_220 = arith.constant 41 : index
    %c0_221 = arith.constant 0 : index
    %221 = tpu.strided_load %arg17[%c41_220, %c0_221] {strides = array<i32: 2, 1>} : memref<360x32xf32, #tpu.memory_space<vmem>>, vector<9x32xf32>
    %c60 = arith.constant 60 : index
    %c0_222 = arith.constant 0 : index
    %222 = tpu.strided_load %arg17[%c60, %c0_222] {strides = array<i32: 2, 1>} : memref<360x32xf32, #tpu.memory_space<vmem>>, vector<9x32xf32>
    %c61 = arith.constant 61 : index
    %c0_223 = arith.constant 0 : index
    %223 = tpu.strided_load %arg17[%c61, %c0_223] {strides = array<i32: 2, 1>} : memref<360x32xf32, #tpu.memory_space<vmem>>, vector<9x32xf32>
    %224 = arith.maximumf %220, %221 : vector<9x32xf32>
    %225 = arith.maximumf %222, %223 : vector<9x32xf32>
    %226 = arith.maximumf %224, %225 : vector<9x32xf32>
    %c41_224 = arith.constant 41 : index
    %c0_225 = arith.constant 0 : index
    %227 = vector.load %arg14[%c41_224, %c0_225] : memref<177x32xf32, #tpu.memory_space<vmem>>, vector<9x32xf32>
    tpu.vector_store %arg14[%c41_224, %c0_225], %226 {strides = array<i32>} : memref<177x32xf32, #tpu.memory_space<vmem>>, vector<9x32xf32>,
    %c80_226 = arith.constant 80 : index
    %c0_227 = arith.constant 0 : index
    %228 = tpu.strided_load %arg17[%c80_226, %c0_227] {strides = array<i32: 2, 1>} : memref<360x32xf32, #tpu.memory_space<vmem>>, vector<9x32xf32>
    %c81 = arith.constant 81 : index
    %c0_228 = arith.constant 0 : index
    %229 = tpu.strided_load %arg17[%c81, %c0_228] {strides = array<i32: 2, 1>} : memref<360x32xf32, #tpu.memory_space<vmem>>, vector<9x32xf32>
    %c100 = arith.constant 100 : index
    %c0_229 = arith.constant 0 : index
    %230 = tpu.strided_load %arg17[%c100, %c0_229] {strides = array<i32: 2, 1>} : memref<360x32xf32, #tpu.memory_space<vmem>>, vector<9x32xf32>
    %c101 = arith.constant 101 : index
    %c0_230 = arith.constant 0 : index
    %231 = tpu.strided_load %arg17[%c101, %c0_230] {strides = array<i32: 2, 1>} : memref<360x32xf32, #tpu.memory_space<vmem>>, vector<9x32xf32>
    %232 = arith.maximumf %228, %229 : vector<9x32xf32>
    %233 = arith.maximumf %230, %231 : vector<9x32xf32>
    %234 = arith.maximumf %232, %233 : vector<9x32xf32>
    %c54 = arith.constant 54 : index
    %c0_231 = arith.constant 0 : index
    %235 = vector.load %arg14[%c54, %c0_231] : memref<177x32xf32, #tpu.memory_space<vmem>>, vector<9x32xf32>
    tpu.vector_store %arg14[%c54, %c0_231], %234 {strides = array<i32>} : memref<177x32xf32, #tpu.memory_space<vmem>>, vector<9x32xf32>,
    %c120 = arith.constant 120 : index
    %c0_232 = arith.constant 0 : index
    %236 = tpu.strided_load %arg17[%c120, %c0_232] {strides = array<i32: 2, 1>} : memref<360x32xf32, #tpu.memory_space<vmem>>, vector<9x32xf32>
    %c121 = arith.constant 121 : index
    %c0_233 = arith.constant 0 : index
    %237 = tpu.strided_load %arg17[%c121, %c0_233] {strides = array<i32: 2, 1>} : memref<360x32xf32, #tpu.memory_space<vmem>>, vector<9x32xf32>
    %c140 = arith.constant 140 : index
    %c0_234 = arith.constant 0 : index
    %238 = tpu.strided_load %arg17[%c140, %c0_234] {strides = array<i32: 2, 1>} : memref<360x32xf32, #tpu.memory_space<vmem>>, vector<9x32xf32>
    %c141 = arith.constant 141 : index
    %c0_235 = arith.constant 0 : index
    %239 = tpu.strided_load %arg17[%c141, %c0_235] {strides = array<i32: 2, 1>} : memref<360x32xf32, #tpu.memory_space<vmem>>, vector<9x32xf32>
    %240 = arith.maximumf %236, %237 : vector<9x32xf32>
    %241 = arith.maximumf %238, %239 : vector<9x32xf32>
    %242 = arith.maximumf %240, %241 : vector<9x32xf32>
    %c67 = arith.constant 67 : index
    %c0_236 = arith.constant 0 : index
    %243 = vector.load %arg14[%c67, %c0_236] : memref<177x32xf32, #tpu.memory_space<vmem>>, vector<9x32xf32>
    tpu.vector_store %arg14[%c67, %c0_236], %242 {strides = array<i32>} : memref<177x32xf32, #tpu.memory_space<vmem>>, vector<9x32xf32>,
    %c160_237 = arith.constant 160 : index
    %c0_238 = arith.constant 0 : index
    %244 = tpu.strided_load %arg17[%c160_237, %c0_238] {strides = array<i32: 2, 1>} : memref<360x32xf32, #tpu.memory_space<vmem>>, vector<9x32xf32>
    %c161 = arith.constant 161 : index
    %c0_239 = arith.constant 0 : index
    %245 = tpu.strided_load %arg17[%c161, %c0_239] {strides = array<i32: 2, 1>} : memref<360x32xf32, #tpu.memory_space<vmem>>, vector<9x32xf32>
    %c180 = arith.constant 180 : index
    %c0_240 = arith.constant 0 : index
    %246 = tpu.strided_load %arg17[%c180, %c0_240] {strides = array<i32: 2, 1>} : memref<360x32xf32, #tpu.memory_space<vmem>>, vector<9x32xf32>
    %c181 = arith.constant 181 : index
    %c0_241 = arith.constant 0 : index
    %247 = tpu.strided_load %arg17[%c181, %c0_241] {strides = array<i32: 2, 1>} : memref<360x32xf32, #tpu.memory_space<vmem>>, vector<9x32xf32>
    %248 = arith.maximumf %244, %245 : vector<9x32xf32>
    %249 = arith.maximumf %246, %247 : vector<9x32xf32>
    %250 = arith.maximumf %248, %249 : vector<9x32xf32>
    %c80_242 = arith.constant 80 : index
    %c0_243 = arith.constant 0 : index
    %251 = vector.load %arg14[%c80_242, %c0_243] : memref<177x32xf32, #tpu.memory_space<vmem>>, vector<9x32xf32>
    tpu.vector_store %arg14[%c80_242, %c0_243], %250 {strides = array<i32>} : memref<177x32xf32, #tpu.memory_space<vmem>>, vector<9x32xf32>,
    %c200 = arith.constant 200 : index
    %c0_244 = arith.constant 0 : index
    %252 = tpu.strided_load %arg17[%c200, %c0_244] {strides = array<i32: 2, 1>} : memref<360x32xf32, #tpu.memory_space<vmem>>, vector<9x32xf32>
    %c201 = arith.constant 201 : index
    %c0_245 = arith.constant 0 : index
    %253 = tpu.strided_load %arg17[%c201, %c0_245] {strides = array<i32: 2, 1>} : memref<360x32xf32, #tpu.memory_space<vmem>>, vector<9x32xf32>
    %c220 = arith.constant 220 : index
    %c0_246 = arith.constant 0 : index
    %254 = tpu.strided_load %arg17[%c220, %c0_246] {strides = array<i32: 2, 1>} : memref<360x32xf32, #tpu.memory_space<vmem>>, vector<9x32xf32>
    %c221 = arith.constant 221 : index
    %c0_247 = arith.constant 0 : index
    %255 = tpu.strided_load %arg17[%c221, %c0_247] {strides = array<i32: 2, 1>} : memref<360x32xf32, #tpu.memory_space<vmem>>, vector<9x32xf32>
    %256 = arith.maximumf %252, %253 : vector<9x32xf32>
    %257 = arith.maximumf %254, %255 : vector<9x32xf32>
    %258 = arith.maximumf %256, %257 : vector<9x32xf32>
    %c93 = arith.constant 93 : index
    %c0_248 = arith.constant 0 : index
    %259 = vector.load %arg14[%c93, %c0_248] : memref<177x32xf32, #tpu.memory_space<vmem>>, vector<9x32xf32>
    tpu.vector_store %arg14[%c93, %c0_248], %258 {strides = array<i32>} : memref<177x32xf32, #tpu.memory_space<vmem>>, vector<9x32xf32>,
    %c240_249 = arith.constant 240 : index
    %c0_250 = arith.constant 0 : index
    %260 = tpu.strided_load %arg17[%c240_249, %c0_250] {strides = array<i32: 2, 1>} : memref<360x32xf32, #tpu.memory_space<vmem>>, vector<9x32xf32>
    %c241 = arith.constant 241 : index
    %c0_251 = arith.constant 0 : index
    %261 = tpu.strided_load %arg17[%c241, %c0_251] {strides = array<i32: 2, 1>} : memref<360x32xf32, #tpu.memory_space<vmem>>, vector<9x32xf32>
    %c260 = arith.constant 260 : index
    %c0_252 = arith.constant 0 : index
    %262 = tpu.strided_load %arg17[%c260, %c0_252] {strides = array<i32: 2, 1>} : memref<360x32xf32, #tpu.memory_space<vmem>>, vector<9x32xf32>
    %c261 = arith.constant 261 : index
    %c0_253 = arith.constant 0 : index
    %263 = tpu.strided_load %arg17[%c261, %c0_253] {strides = array<i32: 2, 1>} : memref<360x32xf32, #tpu.memory_space<vmem>>, vector<9x32xf32>
    %264 = arith.maximumf %260, %261 : vector<9x32xf32>
    %265 = arith.maximumf %262, %263 : vector<9x32xf32>
    %266 = arith.maximumf %264, %265 : vector<9x32xf32>
    %c106 = arith.constant 106 : index
    %c0_254 = arith.constant 0 : index
    %267 = vector.load %arg14[%c106, %c0_254] : memref<177x32xf32, #tpu.memory_space<vmem>>, vector<9x32xf32>
    tpu.vector_store %arg14[%c106, %c0_254], %266 {strides = array<i32>} : memref<177x32xf32, #tpu.memory_space<vmem>>, vector<9x32xf32>,
    %c280 = arith.constant 280 : index
    %c0_255 = arith.constant 0 : index
    %268 = tpu.strided_load %arg17[%c280, %c0_255] {strides = array<i32: 2, 1>} : memref<360x32xf32, #tpu.memory_space<vmem>>, vector<9x32xf32>
    %c281 = arith.constant 281 : index
    %c0_256 = arith.constant 0 : index
    %269 = tpu.strided_load %arg17[%c281, %c0_256] {strides = array<i32: 2, 1>} : memref<360x32xf32, #tpu.memory_space<vmem>>, vector<9x32xf32>
    %c300 = arith.constant 300 : index
    %c0_257 = arith.constant 0 : index
    %270 = tpu.strided_load %arg17[%c300, %c0_257] {strides = array<i32: 2, 1>} : memref<360x32xf32, #tpu.memory_space<vmem>>, vector<9x32xf32>
    %c301 = arith.constant 301 : index
    %c0_258 = arith.constant 0 : index
    %271 = tpu.strided_load %arg17[%c301, %c0_258] {strides = array<i32: 2, 1>} : memref<360x32xf32, #tpu.memory_space<vmem>>, vector<9x32xf32>
    %272 = arith.maximumf %268, %269 : vector<9x32xf32>
    %273 = arith.maximumf %270, %271 : vector<9x32xf32>
    %274 = arith.maximumf %272, %273 : vector<9x32xf32>
    %c119 = arith.constant 119 : index
    %c0_259 = arith.constant 0 : index
    %275 = vector.load %arg14[%c119, %c0_259] : memref<177x32xf32, #tpu.memory_space<vmem>>, vector<9x32xf32>
    tpu.vector_store %arg14[%c119, %c0_259], %274 {strides = array<i32>} : memref<177x32xf32, #tpu.memory_space<vmem>>, vector<9x32xf32>,
    %c320 = arith.constant 320 : index
    %c0_260 = arith.constant 0 : index
    %276 = tpu.strided_load %arg17[%c320, %c0_260] {strides = array<i32: 2, 1>} : memref<360x32xf32, #tpu.memory_space<vmem>>, vector<9x32xf32>
    %c321 = arith.constant 321 : index
    %c0_261 = arith.constant 0 : index
    %277 = tpu.strided_load %arg17[%c321, %c0_261] {strides = array<i32: 2, 1>} : memref<360x32xf32, #tpu.memory_space<vmem>>, vector<9x32xf32>
    %c340 = arith.constant 340 : index
    %c0_262 = arith.constant 0 : index
    %278 = tpu.strided_load %arg17[%c340, %c0_262] {strides = array<i32: 2, 1>} : memref<360x32xf32, #tpu.memory_space<vmem>>, vector<9x32xf32>
    %c341 = arith.constant 341 : index
    %c0_263 = arith.constant 0 : index
    %279 = tpu.strided_load %arg17[%c341, %c0_263] {strides = array<i32: 2, 1>} : memref<360x32xf32, #tpu.memory_space<vmem>>, vector<9x32xf32>
    %280 = arith.maximumf %276, %277 : vector<9x32xf32>
    %281 = arith.maximumf %278, %279 : vector<9x32xf32>
    %282 = arith.maximumf %280, %281 : vector<9x32xf32>
    %c132 = arith.constant 132 : index
    %c0_264 = arith.constant 0 : index
    %283 = vector.load %arg14[%c132, %c0_264] : memref<177x32xf32, #tpu.memory_space<vmem>>, vector<9x32xf32>
    tpu.vector_store %arg14[%c132, %c0_264], %282 {strides = array<i32>} : memref<177x32xf32, #tpu.memory_space<vmem>>, vector<9x32xf32>,
    %cst_265 = arith.constant 0.000000e+00 : f32
    %284 = vector.broadcast %cst_265 : f32 to vector<128x32xf32>
    %c0_266 = arith.constant 0 : index
    %c0_267 = arith.constant 0 : index
    %285 = vector.load %arg14[%c0_266, %c0_267] : memref<177x32xf32, #tpu.memory_space<vmem>>, vector<128x32xf32>
    %c0_268 = arith.constant 0 : index
    %c0_269 = arith.constant 0 : index
    %c0_270 = arith.constant 0 : index
    %286 = vector.load %arg4[%c0_268, %c0_269, %c0_270] : memref<9x32x32xf32, #tpu.memory_space<vmem>>, vector<1x32x32xf32>
    %287 = vector.shape_cast %286 : vector<1x32x32xf32> to vector<32x32xf32>
    %cst_271 = arith.constant dense<0.000000e+00> : vector<128x32xf32>
    %288 = tpu.matmul %285, %287, %cst_271 {dimension_numbers = #tpu.dot_dimension_numbers<[1], [0], [0], [1], [0, 0, 1, 1], [], []>} : vector<128x32xf32>, vector<32x32xf32>, vector<128x32xf32> -> vector<128x32xf32>
    %289 = arith.addf %284, %288 : vector<128x32xf32>
    %c1_272 = arith.constant 1 : index
    %c0_273 = arith.constant 0 : index
    %290 = vector.load %arg14[%c1_272, %c0_273] : memref<177x32xf32, #tpu.memory_space<vmem>>, vector<128x32xf32>
    %c1_274 = arith.constant 1 : index
    %c0_275 = arith.constant 0 : index
    %c0_276 = arith.constant 0 : index
    %291 = vector.load %arg4[%c1_274, %c0_275, %c0_276] : memref<9x32x32xf32, #tpu.memory_space<vmem>>, vector<1x32x32xf32>
    %292 = vector.shape_cast %291 : vector<1x32x32xf32> to vector<32x32xf32>
    %cst_277 = arith.constant dense<0.000000e+00> : vector<128x32xf32>
    %293 = tpu.matmul %290, %292, %cst_277 {dimension_numbers = #tpu.dot_dimension_numbers<[1], [0], [0], [1], [0, 0, 1, 1], [], []>} : vector<128x32xf32>, vector<32x32xf32>, vector<128x32xf32> -> vector<128x32xf32>
    %294 = arith.addf %289, %293 : vector<128x32xf32>
    %c2_278 = arith.constant 2 : index
    %c0_279 = arith.constant 0 : index
    %295 = vector.load %arg14[%c2_278, %c0_279] : memref<177x32xf32, #tpu.memory_space<vmem>>, vector<128x32xf32>
    %c2_280 = arith.constant 2 : index
    %c0_281 = arith.constant 0 : index
    %c0_282 = arith.constant 0 : index
    %296 = vector.load %arg4[%c2_280, %c0_281, %c0_282] : memref<9x32x32xf32, #tpu.memory_space<vmem>>, vector<1x32x32xf32>
    %297 = vector.shape_cast %296 : vector<1x32x32xf32> to vector<32x32xf32>
    %cst_283 = arith.constant dense<0.000000e+00> : vector<128x32xf32>
    %298 = tpu.matmul %295, %297, %cst_283 {dimension_numbers = #tpu.dot_dimension_numbers<[1], [0], [0], [1], [0, 0, 1, 1], [], []>} : vector<128x32xf32>, vector<32x32xf32>, vector<128x32xf32> -> vector<128x32xf32>
    %299 = arith.addf %294, %298 : vector<128x32xf32>
    %c13 = arith.constant 13 : index
    %c0_284 = arith.constant 0 : index
    %300 = vector.load %arg14[%c13, %c0_284] : memref<177x32xf32, #tpu.memory_space<vmem>>, vector<128x32xf32>
    %c3_285 = arith.constant 3 : index
    %c0_286 = arith.constant 0 : index
    %c0_287 = arith.constant 0 : index
    %301 = vector.load %arg4[%c3_285, %c0_286, %c0_287] : memref<9x32x32xf32, #tpu.memory_space<vmem>>, vector<1x32x32xf32>
    %302 = vector.shape_cast %301 : vector<1x32x32xf32> to vector<32x32xf32>
    %cst_288 = arith.constant dense<0.000000e+00> : vector<128x32xf32>
    %303 = tpu.matmul %300, %302, %cst_288 {dimension_numbers = #tpu.dot_dimension_numbers<[1], [0], [0], [1], [0, 0, 1, 1], [], []>} : vector<128x32xf32>, vector<32x32xf32>, vector<128x32xf32> -> vector<128x32xf32>
    %304 = arith.addf %299, %303 : vector<128x32xf32>
    %c14 = arith.constant 14 : index
    %c0_289 = arith.constant 0 : index
    %305 = vector.load %arg14[%c14, %c0_289] : memref<177x32xf32, #tpu.memory_space<vmem>>, vector<128x32xf32>
    %c4_290 = arith.constant 4 : index
    %c0_291 = arith.constant 0 : index
    %c0_292 = arith.constant 0 : index
    %306 = vector.load %arg4[%c4_290, %c0_291, %c0_292] : memref<9x32x32xf32, #tpu.memory_space<vmem>>, vector<1x32x32xf32>
    %307 = vector.shape_cast %306 : vector<1x32x32xf32> to vector<32x32xf32>
    %cst_293 = arith.constant dense<0.000000e+00> : vector<128x32xf32>
    %308 = tpu.matmul %305, %307, %cst_293 {dimension_numbers = #tpu.dot_dimension_numbers<[1], [0], [0], [1], [0, 0, 1, 1], [], []>} : vector<128x32xf32>, vector<32x32xf32>, vector<128x32xf32> -> vector<128x32xf32>
    %309 = arith.addf %304, %308 : vector<128x32xf32>
    %c15 = arith.constant 15 : index
    %c0_294 = arith.constant 0 : index
    %310 = vector.load %arg14[%c15, %c0_294] : memref<177x32xf32, #tpu.memory_space<vmem>>, vector<128x32xf32>
    %c5_295 = arith.constant 5 : index
    %c0_296 = arith.constant 0 : index
    %c0_297 = arith.constant 0 : index
    %311 = vector.load %arg4[%c5_295, %c0_296, %c0_297] : memref<9x32x32xf32, #tpu.memory_space<vmem>>, vector<1x32x32xf32>
    %312 = vector.shape_cast %311 : vector<1x32x32xf32> to vector<32x32xf32>
    %cst_298 = arith.constant dense<0.000000e+00> : vector<128x32xf32>
    %313 = tpu.matmul %310, %312, %cst_298 {dimension_numbers = #tpu.dot_dimension_numbers<[1], [0], [0], [1], [0, 0, 1, 1], [], []>} : vector<128x32xf32>, vector<32x32xf32>, vector<128x32xf32> -> vector<128x32xf32>
    %314 = arith.addf %309, %313 : vector<128x32xf32>
    %c26 = arith.constant 26 : index
    %c0_299 = arith.constant 0 : index
    %315 = vector.load %arg14[%c26, %c0_299] : memref<177x32xf32, #tpu.memory_space<vmem>>, vector<128x32xf32>
    %c6_300 = arith.constant 6 : index
    %c0_301 = arith.constant 0 : index
    %c0_302 = arith.constant 0 : index
    %316 = vector.load %arg4[%c6_300, %c0_301, %c0_302] : memref<9x32x32xf32, #tpu.memory_space<vmem>>, vector<1x32x32xf32>
    %317 = vector.shape_cast %316 : vector<1x32x32xf32> to vector<32x32xf32>
    %cst_303 = arith.constant dense<0.000000e+00> : vector<128x32xf32>
    %318 = tpu.matmul %315, %317, %cst_303 {dimension_numbers = #tpu.dot_dimension_numbers<[1], [0], [0], [1], [0, 0, 1, 1], [], []>} : vector<128x32xf32>, vector<32x32xf32>, vector<128x32xf32> -> vector<128x32xf32>
    %319 = arith.addf %314, %318 : vector<128x32xf32>
    %c27 = arith.constant 27 : index
    %c0_304 = arith.constant 0 : index
    %320 = vector.load %arg14[%c27, %c0_304] : memref<177x32xf32, #tpu.memory_space<vmem>>, vector<128x32xf32>
    %c7_305 = arith.constant 7 : index
    %c0_306 = arith.constant 0 : index
    %c0_307 = arith.constant 0 : index
    %321 = vector.load %arg4[%c7_305, %c0_306, %c0_307] : memref<9x32x32xf32, #tpu.memory_space<vmem>>, vector<1x32x32xf32>
    %322 = vector.shape_cast %321 : vector<1x32x32xf32> to vector<32x32xf32>
    %cst_308 = arith.constant dense<0.000000e+00> : vector<128x32xf32>
    %323 = tpu.matmul %320, %322, %cst_308 {dimension_numbers = #tpu.dot_dimension_numbers<[1], [0], [0], [1], [0, 0, 1, 1], [], []>} : vector<128x32xf32>, vector<32x32xf32>, vector<128x32xf32> -> vector<128x32xf32>
    %324 = arith.addf %319, %323 : vector<128x32xf32>
    %c28_309 = arith.constant 28 : index
    %c0_310 = arith.constant 0 : index
    %325 = vector.load %arg14[%c28_309, %c0_310] : memref<177x32xf32, #tpu.memory_space<vmem>>, vector<128x32xf32>
    %c8_311 = arith.constant 8 : index
    %c0_312 = arith.constant 0 : index
    %c0_313 = arith.constant 0 : index
    %326 = vector.load %arg4[%c8_311, %c0_312, %c0_313] : memref<9x32x32xf32, #tpu.memory_space<vmem>>, vector<1x32x32xf32>
    %327 = vector.shape_cast %326 : vector<1x32x32xf32> to vector<32x32xf32>
    %cst_314 = arith.constant dense<0.000000e+00> : vector<128x32xf32>
    %328 = tpu.matmul %325, %327, %cst_314 {dimension_numbers = #tpu.dot_dimension_numbers<[1], [0], [0], [1], [0, 0, 1, 1], [], []>} : vector<128x32xf32>, vector<32x32xf32>, vector<128x32xf32> -> vector<128x32xf32>
    %329 = arith.addf %324, %328 : vector<128x32xf32>
    %c0_315 = arith.constant 0 : index
    %c0_316 = arith.constant 0 : index
    %330 = vector.load %arg5[%c0_315, %c0_316] : memref<1x32xf32, #tpu.memory_space<vmem>>, vector<1x32xf32>
    %331 = vector.broadcast %330 : vector<1x32xf32> to vector<128x32xf32>
    %332 = arith.addf %329, %331 : vector<128x32xf32>
    %cst_317 = arith.constant 0.000000e+00 : f32
    %333 = vector.broadcast %cst_317 : f32 to vector<128x32xf32>
    %334 = arith.maximumf %332, %333 : vector<128x32xf32>
    %c0_318 = arith.constant 0 : index
    %c0_319 = arith.constant 0 : index
    %335 = vector.load %arg17[%c0_318, %c0_319] : memref<360x32xf32, #tpu.memory_space<vmem>>, vector<128x32xf32>
    tpu.vector_store %arg17[%c0_318, %c0_319], %334 {strides = array<i32>} : memref<360x32xf32, #tpu.memory_space<vmem>>, vector<128x32xf32>,
    %cst_320 = arith.constant 0.000000e+00 : f32
    %336 = vector.broadcast %cst_320 : f32 to vector<15x32xf32>
    %c128_321 = arith.constant 128 : index
    %c0_322 = arith.constant 0 : index
    %337 = vector.load %arg14[%c128_321, %c0_322] : memref<177x32xf32, #tpu.memory_space<vmem>>, vector<15x32xf32>
    %c0_323 = arith.constant 0 : index
    %c0_324 = arith.constant 0 : index
    %c0_325 = arith.constant 0 : index
    %338 = vector.load %arg4[%c0_323, %c0_324, %c0_325] : memref<9x32x32xf32, #tpu.memory_space<vmem>>, vector<1x32x32xf32>
    %339 = vector.shape_cast %338 : vector<1x32x32xf32> to vector<32x32xf32>
    %cst_326 = arith.constant dense<0.000000e+00> : vector<15x32xf32>
    %340 = tpu.matmul %337, %339, %cst_326 {dimension_numbers = #tpu.dot_dimension_numbers<[1], [0], [0], [1], [0, 0, 1, 1], [], []>} : vector<15x32xf32>, vector<32x32xf32>, vector<15x32xf32> -> vector<15x32xf32>
    %341 = arith.addf %336, %340 : vector<15x32xf32>
    %c129_327 = arith.constant 129 : index
    %c0_328 = arith.constant 0 : index
    %342 = vector.load %arg14[%c129_327, %c0_328] : memref<177x32xf32, #tpu.memory_space<vmem>>, vector<15x32xf32>
    %c1_329 = arith.constant 1 : index
    %c0_330 = arith.constant 0 : index
    %c0_331 = arith.constant 0 : index
    %343 = vector.load %arg4[%c1_329, %c0_330, %c0_331] : memref<9x32x32xf32, #tpu.memory_space<vmem>>, vector<1x32x32xf32>
    %344 = vector.shape_cast %343 : vector<1x32x32xf32> to vector<32x32xf32>
    %cst_332 = arith.constant dense<0.000000e+00> : vector<15x32xf32>
    %345 = tpu.matmul %342, %344, %cst_332 {dimension_numbers = #tpu.dot_dimension_numbers<[1], [0], [0], [1], [0, 0, 1, 1], [], []>} : vector<15x32xf32>, vector<32x32xf32>, vector<15x32xf32> -> vector<15x32xf32>
    %346 = arith.addf %341, %345 : vector<15x32xf32>
    %c130_333 = arith.constant 130 : index
    %c0_334 = arith.constant 0 : index
    %347 = vector.load %arg14[%c130_333, %c0_334] : memref<177x32xf32, #tpu.memory_space<vmem>>, vector<15x32xf32>
    %c2_335 = arith.constant 2 : index
    %c0_336 = arith.constant 0 : index
    %c0_337 = arith.constant 0 : index
    %348 = vector.load %arg4[%c2_335, %c0_336, %c0_337] : memref<9x32x32xf32, #tpu.memory_space<vmem>>, vector<1x32x32xf32>
    %349 = vector.shape_cast %348 : vector<1x32x32xf32> to vector<32x32xf32>
    %cst_338 = arith.constant dense<0.000000e+00> : vector<15x32xf32>
    %350 = tpu.matmul %347, %349, %cst_338 {dimension_numbers = #tpu.dot_dimension_numbers<[1], [0], [0], [1], [0, 0, 1, 1], [], []>} : vector<15x32xf32>, vector<32x32xf32>, vector<15x32xf32> -> vector<15x32xf32>
    %351 = arith.addf %346, %350 : vector<15x32xf32>
    %c141_339 = arith.constant 141 : index
    %c0_340 = arith.constant 0 : index
    %352 = vector.load %arg14[%c141_339, %c0_340] : memref<177x32xf32, #tpu.memory_space<vmem>>, vector<15x32xf32>
    %c3_341 = arith.constant 3 : index
    %c0_342 = arith.constant 0 : index
    %c0_343 = arith.constant 0 : index
    %353 = vector.load %arg4[%c3_341, %c0_342, %c0_343] : memref<9x32x32xf32, #tpu.memory_space<vmem>>, vector<1x32x32xf32>
    %354 = vector.shape_cast %353 : vector<1x32x32xf32> to vector<32x32xf32>
    %cst_344 = arith.constant dense<0.000000e+00> : vector<15x32xf32>
    %355 = tpu.matmul %352, %354, %cst_344 {dimension_numbers = #tpu.dot_dimension_numbers<[1], [0], [0], [1], [0, 0, 1, 1], [], []>} : vector<15x32xf32>, vector<32x32xf32>, vector<15x32xf32> -> vector<15x32xf32>
    %356 = arith.addf %351, %355 : vector<15x32xf32>
    %c142_345 = arith.constant 142 : index
    %c0_346 = arith.constant 0 : index
    %357 = vector.load %arg14[%c142_345, %c0_346] : memref<177x32xf32, #tpu.memory_space<vmem>>, vector<15x32xf32>
    %c4_347 = arith.constant 4 : index
    %c0_348 = arith.constant 0 : index
    %c0_349 = arith.constant 0 : index
    %358 = vector.load %arg4[%c4_347, %c0_348, %c0_349] : memref<9x32x32xf32, #tpu.memory_space<vmem>>, vector<1x32x32xf32>
    %359 = vector.shape_cast %358 : vector<1x32x32xf32> to vector<32x32xf32>
    %cst_350 = arith.constant dense<0.000000e+00> : vector<15x32xf32>
    %360 = tpu.matmul %357, %359, %cst_350 {dimension_numbers = #tpu.dot_dimension_numbers<[1], [0], [0], [1], [0, 0, 1, 1], [], []>} : vector<15x32xf32>, vector<32x32xf32>, vector<15x32xf32> -> vector<15x32xf32>
    %361 = arith.addf %356, %360 : vector<15x32xf32>
    %c143 = arith.constant 143 : index
    %c0_351 = arith.constant 0 : index
    %362 = vector.load %arg14[%c143, %c0_351] : memref<177x32xf32, #tpu.memory_space<vmem>>, vector<15x32xf32>
    %c5_352 = arith.constant 5 : index
    %c0_353 = arith.constant 0 : index
    %c0_354 = arith.constant 0 : index
    %363 = vector.load %arg4[%c5_352, %c0_353, %c0_354] : memref<9x32x32xf32, #tpu.memory_space<vmem>>, vector<1x32x32xf32>
    %364 = vector.shape_cast %363 : vector<1x32x32xf32> to vector<32x32xf32>
    %cst_355 = arith.constant dense<0.000000e+00> : vector<15x32xf32>
    %365 = tpu.matmul %362, %364, %cst_355 {dimension_numbers = #tpu.dot_dimension_numbers<[1], [0], [0], [1], [0, 0, 1, 1], [], []>} : vector<15x32xf32>, vector<32x32xf32>, vector<15x32xf32> -> vector<15x32xf32>
    %366 = arith.addf %361, %365 : vector<15x32xf32>
    %c154 = arith.constant 154 : index
    %c0_356 = arith.constant 0 : index
    %367 = vector.load %arg14[%c154, %c0_356] : memref<177x32xf32, #tpu.memory_space<vmem>>, vector<15x32xf32>
    %c6_357 = arith.constant 6 : index
    %c0_358 = arith.constant 0 : index
    %c0_359 = arith.constant 0 : index
    %368 = vector.load %arg4[%c6_357, %c0_358, %c0_359] : memref<9x32x32xf32, #tpu.memory_space<vmem>>, vector<1x32x32xf32>
    %369 = vector.shape_cast %368 : vector<1x32x32xf32> to vector<32x32xf32>
    %cst_360 = arith.constant dense<0.000000e+00> : vector<15x32xf32>
    %370 = tpu.matmul %367, %369, %cst_360 {dimension_numbers = #tpu.dot_dimension_numbers<[1], [0], [0], [1], [0, 0, 1, 1], [], []>} : vector<15x32xf32>, vector<32x32xf32>, vector<15x32xf32> -> vector<15x32xf32>
    %371 = arith.addf %366, %370 : vector<15x32xf32>
    %c155 = arith.constant 155 : index
    %c0_361 = arith.constant 0 : index
    %372 = vector.load %arg14[%c155, %c0_361] : memref<177x32xf32, #tpu.memory_space<vmem>>, vector<15x32xf32>
    %c7_362 = arith.constant 7 : index
    %c0_363 = arith.constant 0 : index
    %c0_364 = arith.constant 0 : index
    %373 = vector.load %arg4[%c7_362, %c0_363, %c0_364] : memref<9x32x32xf32, #tpu.memory_space<vmem>>, vector<1x32x32xf32>
    %374 = vector.shape_cast %373 : vector<1x32x32xf32> to vector<32x32xf32>
    %cst_365 = arith.constant dense<0.000000e+00> : vector<15x32xf32>
    %375 = tpu.matmul %372, %374, %cst_365 {dimension_numbers = #tpu.dot_dimension_numbers<[1], [0], [0], [1], [0, 0, 1, 1], [], []>} : vector<15x32xf32>, vector<32x32xf32>, vector<15x32xf32> -> vector<15x32xf32>
    %376 = arith.addf %371, %375 : vector<15x32xf32>
    %c156 = arith.constant 156 : index
    %c0_366 = arith.constant 0 : index
    %377 = vector.load %arg14[%c156, %c0_366] : memref<177x32xf32, #tpu.memory_space<vmem>>, vector<15x32xf32>
    %c8_367 = arith.constant 8 : index
    %c0_368 = arith.constant 0 : index
    %c0_369 = arith.constant 0 : index
    %378 = vector.load %arg4[%c8_367, %c0_368, %c0_369] : memref<9x32x32xf32, #tpu.memory_space<vmem>>, vector<1x32x32xf32>
    %379 = vector.shape_cast %378 : vector<1x32x32xf32> to vector<32x32xf32>
    %cst_370 = arith.constant dense<0.000000e+00> : vector<15x32xf32>
    %380 = tpu.matmul %377, %379, %cst_370 {dimension_numbers = #tpu.dot_dimension_numbers<[1], [0], [0], [1], [0, 0, 1, 1], [], []>} : vector<15x32xf32>, vector<32x32xf32>, vector<15x32xf32> -> vector<15x32xf32>
    %381 = arith.addf %376, %380 : vector<15x32xf32>
    %c0_371 = arith.constant 0 : index
    %c0_372 = arith.constant 0 : index
    %382 = vector.load %arg5[%c0_371, %c0_372] : memref<1x32xf32, #tpu.memory_space<vmem>>, vector<1x32xf32>
    %383 = vector.broadcast %382 : vector<1x32xf32> to vector<15x32xf32>
    %384 = arith.addf %381, %383 : vector<15x32xf32>
    %cst_373 = arith.constant 0.000000e+00 : f32
    %385 = vector.broadcast %cst_373 : f32 to vector<15x32xf32>
    %386 = arith.maximumf %384, %385 : vector<15x32xf32>
    %c128_374 = arith.constant 128 : index
    %c0_375 = arith.constant 0 : index
    %387 = vector.load %arg17[%c128_374, %c0_375] : memref<360x32xf32, #tpu.memory_space<vmem>>, vector<15x32xf32>
    tpu.vector_store %arg17[%c128_374, %c0_375], %386 {strides = array<i32>} : memref<360x32xf32, #tpu.memory_space<vmem>>, vector<15x32xf32>,
    %c0_376 = arith.constant 0 : index
    %c0_377 = arith.constant 0 : index
    %388 = tpu.strided_load %arg17[%c0_376, %c0_377] {strides = array<i32: 2, 1>} : memref<360x32xf32, #tpu.memory_space<vmem>>, vector<5x32xf32>
    %c1_378 = arith.constant 1 : index
    %c0_379 = arith.constant 0 : index
    %389 = tpu.strided_load %arg17[%c1_378, %c0_379] {strides = array<i32: 2, 1>} : memref<360x32xf32, #tpu.memory_space<vmem>>, vector<5x32xf32>
    %c13_380 = arith.constant 13 : index
    %c0_381 = arith.constant 0 : index
    %390 = tpu.strided_load %arg17[%c13_380, %c0_381] {strides = array<i32: 2, 1>} : memref<360x32xf32, #tpu.memory_space<vmem>>, vector<5x32xf32>
    %c14_382 = arith.constant 14 : index
    %c0_383 = arith.constant 0 : index
    %391 = tpu.strided_load %arg17[%c14_382, %c0_383] {strides = array<i32: 2, 1>} : memref<360x32xf32, #tpu.memory_space<vmem>>, vector<5x32xf32>
    %392 = arith.maximumf %388, %389 : vector<5x32xf32>
    %393 = arith.maximumf %390, %391 : vector<5x32xf32>
    %394 = arith.maximumf %392, %393 : vector<5x32xf32>
    %c20_384 = arith.constant 20 : index
    %c0_385 = arith.constant 0 : index
    %395 = vector.load %arg15[%c20_384, %c0_385] : memref<89x32xf32, #tpu.memory_space<vmem>>, vector<5x32xf32>
    tpu.vector_store %arg15[%c20_384, %c0_385], %394 {strides = array<i32>} : memref<89x32xf32, #tpu.memory_space<vmem>>, vector<5x32xf32>,
    %c26_386 = arith.constant 26 : index
    %c0_387 = arith.constant 0 : index
    %396 = tpu.strided_load %arg17[%c26_386, %c0_387] {strides = array<i32: 2, 1>} : memref<360x32xf32, #tpu.memory_space<vmem>>, vector<5x32xf32>
    %c27_388 = arith.constant 27 : index
    %c0_389 = arith.constant 0 : index
    %397 = tpu.strided_load %arg17[%c27_388, %c0_389] {strides = array<i32: 2, 1>} : memref<360x32xf32, #tpu.memory_space<vmem>>, vector<5x32xf32>
    %c39 = arith.constant 39 : index
    %c0_390 = arith.constant 0 : index
    %398 = tpu.strided_load %arg17[%c39, %c0_390] {strides = array<i32: 2, 1>} : memref<360x32xf32, #tpu.memory_space<vmem>>, vector<5x32xf32>
    %c40_391 = arith.constant 40 : index
    %c0_392 = arith.constant 0 : index
    %399 = tpu.strided_load %arg17[%c40_391, %c0_392] {strides = array<i32: 2, 1>} : memref<360x32xf32, #tpu.memory_space<vmem>>, vector<5x32xf32>
    %400 = arith.maximumf %396, %397 : vector<5x32xf32>
    %401 = arith.maximumf %398, %399 : vector<5x32xf32>
    %402 = arith.maximumf %400, %401 : vector<5x32xf32>
    %c29 = arith.constant 29 : index
    %c0_393 = arith.constant 0 : index
    %403 = vector.load %arg15[%c29, %c0_393] : memref<89x32xf32, #tpu.memory_space<vmem>>, vector<5x32xf32>
    tpu.vector_store %arg15[%c29, %c0_393], %402 {strides = array<i32>} : memref<89x32xf32, #tpu.memory_space<vmem>>, vector<5x32xf32>,
    %c52 = arith.constant 52 : index
    %c0_394 = arith.constant 0 : index
    %404 = tpu.strided_load %arg17[%c52, %c0_394] {strides = array<i32: 2, 1>} : memref<360x32xf32, #tpu.memory_space<vmem>>, vector<5x32xf32>
    %c53 = arith.constant 53 : index
    %c0_395 = arith.constant 0 : index
    %405 = tpu.strided_load %arg17[%c53, %c0_395] {strides = array<i32: 2, 1>} : memref<360x32xf32, #tpu.memory_space<vmem>>, vector<5x32xf32>
    %c65 = arith.constant 65 : index
    %c0_396 = arith.constant 0 : index
    %406 = tpu.strided_load %arg17[%c65, %c0_396] {strides = array<i32: 2, 1>} : memref<360x32xf32, #tpu.memory_space<vmem>>, vector<5x32xf32>
    %c66 = arith.constant 66 : index
    %c0_397 = arith.constant 0 : index
    %407 = tpu.strided_load %arg17[%c66, %c0_397] {strides = array<i32: 2, 1>} : memref<360x32xf32, #tpu.memory_space<vmem>>, vector<5x32xf32>
    %408 = arith.maximumf %404, %405 : vector<5x32xf32>
    %409 = arith.maximumf %406, %407 : vector<5x32xf32>
    %410 = arith.maximumf %408, %409 : vector<5x32xf32>
    %c38 = arith.constant 38 : index
    %c0_398 = arith.constant 0 : index
    %411 = vector.load %arg15[%c38, %c0_398] : memref<89x32xf32, #tpu.memory_space<vmem>>, vector<5x32xf32>
    tpu.vector_store %arg15[%c38, %c0_398], %410 {strides = array<i32>} : memref<89x32xf32, #tpu.memory_space<vmem>>, vector<5x32xf32>,
    %c78 = arith.constant 78 : index
    %c0_399 = arith.constant 0 : index
    %412 = tpu.strided_load %arg17[%c78, %c0_399] {strides = array<i32: 2, 1>} : memref<360x32xf32, #tpu.memory_space<vmem>>, vector<5x32xf32>
    %c79 = arith.constant 79 : index
    %c0_400 = arith.constant 0 : index
    %413 = tpu.strided_load %arg17[%c79, %c0_400] {strides = array<i32: 2, 1>} : memref<360x32xf32, #tpu.memory_space<vmem>>, vector<5x32xf32>
    %c91 = arith.constant 91 : index
    %c0_401 = arith.constant 0 : index
    %414 = tpu.strided_load %arg17[%c91, %c0_401] {strides = array<i32: 2, 1>} : memref<360x32xf32, #tpu.memory_space<vmem>>, vector<5x32xf32>
    %c92 = arith.constant 92 : index
    %c0_402 = arith.constant 0 : index
    %415 = tpu.strided_load %arg17[%c92, %c0_402] {strides = array<i32: 2, 1>} : memref<360x32xf32, #tpu.memory_space<vmem>>, vector<5x32xf32>
    %416 = arith.maximumf %412, %413 : vector<5x32xf32>
    %417 = arith.maximumf %414, %415 : vector<5x32xf32>
    %418 = arith.maximumf %416, %417 : vector<5x32xf32>
    %c47 = arith.constant 47 : index
    %c0_403 = arith.constant 0 : index
    %419 = vector.load %arg15[%c47, %c0_403] : memref<89x32xf32, #tpu.memory_space<vmem>>, vector<5x32xf32>
    tpu.vector_store %arg15[%c47, %c0_403], %418 {strides = array<i32>} : memref<89x32xf32, #tpu.memory_space<vmem>>, vector<5x32xf32>,
    %c104 = arith.constant 104 : index
    %c0_404 = arith.constant 0 : index
    %420 = tpu.strided_load %arg17[%c104, %c0_404] {strides = array<i32: 2, 1>} : memref<360x32xf32, #tpu.memory_space<vmem>>, vector<5x32xf32>
    %c105 = arith.constant 105 : index
    %c0_405 = arith.constant 0 : index
    %421 = tpu.strided_load %arg17[%c105, %c0_405] {strides = array<i32: 2, 1>} : memref<360x32xf32, #tpu.memory_space<vmem>>, vector<5x32xf32>
    %c117 = arith.constant 117 : index
    %c0_406 = arith.constant 0 : index
    %422 = tpu.strided_load %arg17[%c117, %c0_406] {strides = array<i32: 2, 1>} : memref<360x32xf32, #tpu.memory_space<vmem>>, vector<5x32xf32>
    %c118 = arith.constant 118 : index
    %c0_407 = arith.constant 0 : index
    %423 = tpu.strided_load %arg17[%c118, %c0_407] {strides = array<i32: 2, 1>} : memref<360x32xf32, #tpu.memory_space<vmem>>, vector<5x32xf32>
    %424 = arith.maximumf %420, %421 : vector<5x32xf32>
    %425 = arith.maximumf %422, %423 : vector<5x32xf32>
    %426 = arith.maximumf %424, %425 : vector<5x32xf32>
    %c56 = arith.constant 56 : index
    %c0_408 = arith.constant 0 : index
    %427 = vector.load %arg15[%c56, %c0_408] : memref<89x32xf32, #tpu.memory_space<vmem>>, vector<5x32xf32>
    tpu.vector_store %arg15[%c56, %c0_408], %426 {strides = array<i32>} : memref<89x32xf32, #tpu.memory_space<vmem>>, vector<5x32xf32>,
    %cst_409 = arith.constant 0.000000e+00 : f32
    %428 = vector.broadcast %cst_409 : f32 to vector<63x32xf32>
    %c0_410 = arith.constant 0 : index
    %c0_411 = arith.constant 0 : index
    %429 = vector.load %arg15[%c0_410, %c0_411] : memref<89x32xf32, #tpu.memory_space<vmem>>, vector<63x32xf32>
    %c0_412 = arith.constant 0 : index
    %c0_413 = arith.constant 0 : index
    %c0_414 = arith.constant 0 : index
    %430 = vector.load %arg6[%c0_412, %c0_413, %c0_414] : memref<9x32x32xf32, #tpu.memory_space<vmem>>, vector<1x32x32xf32>
    %431 = vector.shape_cast %430 : vector<1x32x32xf32> to vector<32x32xf32>
    %cst_415 = arith.constant dense<0.000000e+00> : vector<63x32xf32>
    %432 = tpu.matmul %429, %431, %cst_415 {dimension_numbers = #tpu.dot_dimension_numbers<[1], [0], [0], [1], [0, 0, 1, 1], [], []>} : vector<63x32xf32>, vector<32x32xf32>, vector<63x32xf32> -> vector<63x32xf32>
    %433 = arith.addf %428, %432 : vector<63x32xf32>
    %c1_416 = arith.constant 1 : index
    %c0_417 = arith.constant 0 : index
    %434 = vector.load %arg15[%c1_416, %c0_417] : memref<89x32xf32, #tpu.memory_space<vmem>>, vector<63x32xf32>
    %c1_418 = arith.constant 1 : index
    %c0_419 = arith.constant 0 : index
    %c0_420 = arith.constant 0 : index
    %435 = vector.load %arg6[%c1_418, %c0_419, %c0_420] : memref<9x32x32xf32, #tpu.memory_space<vmem>>, vector<1x32x32xf32>
    %436 = vector.shape_cast %435 : vector<1x32x32xf32> to vector<32x32xf32>
    %cst_421 = arith.constant dense<0.000000e+00> : vector<63x32xf32>
    %437 = tpu.matmul %434, %436, %cst_421 {dimension_numbers = #tpu.dot_dimension_numbers<[1], [0], [0], [1], [0, 0, 1, 1], [], []>} : vector<63x32xf32>, vector<32x32xf32>, vector<63x32xf32> -> vector<63x32xf32>
    %438 = arith.addf %433, %437 : vector<63x32xf32>
    %c2_422 = arith.constant 2 : index
    %c0_423 = arith.constant 0 : index
    %439 = vector.load %arg15[%c2_422, %c0_423] : memref<89x32xf32, #tpu.memory_space<vmem>>, vector<63x32xf32>
    %c2_424 = arith.constant 2 : index
    %c0_425 = arith.constant 0 : index
    %c0_426 = arith.constant 0 : index
    %440 = vector.load %arg6[%c2_424, %c0_425, %c0_426] : memref<9x32x32xf32, #tpu.memory_space<vmem>>, vector<1x32x32xf32>
    %441 = vector.shape_cast %440 : vector<1x32x32xf32> to vector<32x32xf32>
    %cst_427 = arith.constant dense<0.000000e+00> : vector<63x32xf32>
    %442 = tpu.matmul %439, %441, %cst_427 {dimension_numbers = #tpu.dot_dimension_numbers<[1], [0], [0], [1], [0, 0, 1, 1], [], []>} : vector<63x32xf32>, vector<32x32xf32>, vector<63x32xf32> -> vector<63x32xf32>
    %443 = arith.addf %438, %442 : vector<63x32xf32>
    %c9 = arith.constant 9 : index
    %c0_428 = arith.constant 0 : index
    %444 = vector.load %arg15[%c9, %c0_428] : memref<89x32xf32, #tpu.memory_space<vmem>>, vector<63x32xf32>
    %c3_429 = arith.constant 3 : index
    %c0_430 = arith.constant 0 : index
    %c0_431 = arith.constant 0 : index
    %445 = vector.load %arg6[%c3_429, %c0_430, %c0_431] : memref<9x32x32xf32, #tpu.memory_space<vmem>>, vector<1x32x32xf32>
    %446 = vector.shape_cast %445 : vector<1x32x32xf32> to vector<32x32xf32>
    %cst_432 = arith.constant dense<0.000000e+00> : vector<63x32xf32>
    %447 = tpu.matmul %444, %446, %cst_432 {dimension_numbers = #tpu.dot_dimension_numbers<[1], [0], [0], [1], [0, 0, 1, 1], [], []>} : vector<63x32xf32>, vector<32x32xf32>, vector<63x32xf32> -> vector<63x32xf32>
    %448 = arith.addf %443, %447 : vector<63x32xf32>
    %c10 = arith.constant 10 : index
    %c0_433 = arith.constant 0 : index
    %449 = vector.load %arg15[%c10, %c0_433] : memref<89x32xf32, #tpu.memory_space<vmem>>, vector<63x32xf32>
    %c4_434 = arith.constant 4 : index
    %c0_435 = arith.constant 0 : index
    %c0_436 = arith.constant 0 : index
    %450 = vector.load %arg6[%c4_434, %c0_435, %c0_436] : memref<9x32x32xf32, #tpu.memory_space<vmem>>, vector<1x32x32xf32>
    %451 = vector.shape_cast %450 : vector<1x32x32xf32> to vector<32x32xf32>
    %cst_437 = arith.constant dense<0.000000e+00> : vector<63x32xf32>
    %452 = tpu.matmul %449, %451, %cst_437 {dimension_numbers = #tpu.dot_dimension_numbers<[1], [0], [0], [1], [0, 0, 1, 1], [], []>} : vector<63x32xf32>, vector<32x32xf32>, vector<63x32xf32> -> vector<63x32xf32>
    %453 = arith.addf %448, %452 : vector<63x32xf32>
    %c11 = arith.constant 11 : index
    %c0_438 = arith.constant 0 : index
    %454 = vector.load %arg15[%c11, %c0_438] : memref<89x32xf32, #tpu.memory_space<vmem>>, vector<63x32xf32>
    %c5_439 = arith.constant 5 : index
    %c0_440 = arith.constant 0 : index
    %c0_441 = arith.constant 0 : index
    %455 = vector.load %arg6[%c5_439, %c0_440, %c0_441] : memref<9x32x32xf32, #tpu.memory_space<vmem>>, vector<1x32x32xf32>
    %456 = vector.shape_cast %455 : vector<1x32x32xf32> to vector<32x32xf32>
    %cst_442 = arith.constant dense<0.000000e+00> : vector<63x32xf32>
    %457 = tpu.matmul %454, %456, %cst_442 {dimension_numbers = #tpu.dot_dimension_numbers<[1], [0], [0], [1], [0, 0, 1, 1], [], []>} : vector<63x32xf32>, vector<32x32xf32>, vector<63x32xf32> -> vector<63x32xf32>
    %458 = arith.addf %453, %457 : vector<63x32xf32>
    %c18 = arith.constant 18 : index
    %c0_443 = arith.constant 0 : index
    %459 = vector.load %arg15[%c18, %c0_443] : memref<89x32xf32, #tpu.memory_space<vmem>>, vector<63x32xf32>
    %c6_444 = arith.constant 6 : index
    %c0_445 = arith.constant 0 : index
    %c0_446 = arith.constant 0 : index
    %460 = vector.load %arg6[%c6_444, %c0_445, %c0_446] : memref<9x32x32xf32, #tpu.memory_space<vmem>>, vector<1x32x32xf32>
    %461 = vector.shape_cast %460 : vector<1x32x32xf32> to vector<32x32xf32>
    %cst_447 = arith.constant dense<0.000000e+00> : vector<63x32xf32>
    %462 = tpu.matmul %459, %461, %cst_447 {dimension_numbers = #tpu.dot_dimension_numbers<[1], [0], [0], [1], [0, 0, 1, 1], [], []>} : vector<63x32xf32>, vector<32x32xf32>, vector<63x32xf32> -> vector<63x32xf32>
    %463 = arith.addf %458, %462 : vector<63x32xf32>
    %c19 = arith.constant 19 : index
    %c0_448 = arith.constant 0 : index
    %464 = vector.load %arg15[%c19, %c0_448] : memref<89x32xf32, #tpu.memory_space<vmem>>, vector<63x32xf32>
    %c7_449 = arith.constant 7 : index
    %c0_450 = arith.constant 0 : index
    %c0_451 = arith.constant 0 : index
    %465 = vector.load %arg6[%c7_449, %c0_450, %c0_451] : memref<9x32x32xf32, #tpu.memory_space<vmem>>, vector<1x32x32xf32>
    %466 = vector.shape_cast %465 : vector<1x32x32xf32> to vector<32x32xf32>
    %cst_452 = arith.constant dense<0.000000e+00> : vector<63x32xf32>
    %467 = tpu.matmul %464, %466, %cst_452 {dimension_numbers = #tpu.dot_dimension_numbers<[1], [0], [0], [1], [0, 0, 1, 1], [], []>} : vector<63x32xf32>, vector<32x32xf32>, vector<63x32xf32> -> vector<63x32xf32>
    %468 = arith.addf %463, %467 : vector<63x32xf32>
    %c20_453 = arith.constant 20 : index
    %c0_454 = arith.constant 0 : index
    %469 = vector.load %arg15[%c20_453, %c0_454] : memref<89x32xf32, #tpu.memory_space<vmem>>, vector<63x32xf32>
    %c8_455 = arith.constant 8 : index
    %c0_456 = arith.constant 0 : index
    %c0_457 = arith.constant 0 : index
    %470 = vector.load %arg6[%c8_455, %c0_456, %c0_457] : memref<9x32x32xf32, #tpu.memory_space<vmem>>, vector<1x32x32xf32>
    %471 = vector.shape_cast %470 : vector<1x32x32xf32> to vector<32x32xf32>
    %cst_458 = arith.constant dense<0.000000e+00> : vector<63x32xf32>
    %472 = tpu.matmul %469, %471, %cst_458 {dimension_numbers = #tpu.dot_dimension_numbers<[1], [0], [0], [1], [0, 0, 1, 1], [], []>} : vector<63x32xf32>, vector<32x32xf32>, vector<63x32xf32> -> vector<63x32xf32>
    %473 = arith.addf %468, %472 : vector<63x32xf32>
    %c0_459 = arith.constant 0 : index
    %c0_460 = arith.constant 0 : index
    %474 = vector.load %arg7[%c0_459, %c0_460] : memref<1x32xf32, #tpu.memory_space<vmem>>, vector<1x32xf32>
    %475 = vector.broadcast %474 : vector<1x32xf32> to vector<63x32xf32>
    %476 = arith.addf %473, %475 : vector<63x32xf32>
    %cst_461 = arith.constant 0.000000e+00 : f32
    %477 = vector.broadcast %cst_461 : f32 to vector<63x32xf32>
    %478 = arith.maximumf %476, %477 : vector<63x32xf32>
    %c0_462 = arith.constant 0 : index
    %c0_463 = arith.constant 0 : index
    %479 = vector.load %arg17[%c0_462, %c0_463] : memref<360x32xf32, #tpu.memory_space<vmem>>, vector<63x32xf32>
    tpu.vector_store %arg17[%c0_462, %c0_463], %478 {strides = array<i32>} : memref<360x32xf32, #tpu.memory_space<vmem>>, vector<63x32xf32>,
    %c0_464 = arith.constant 0 : index
    %c0_465 = arith.constant 0 : index
    %480 = tpu.strided_load %arg17[%c0_464, %c0_465] {strides = array<i32: 2, 1>} : memref<360x32xf32, #tpu.memory_space<vmem>>, vector<3x32xf32>
    %c1_466 = arith.constant 1 : index
    %c0_467 = arith.constant 0 : index
    %481 = tpu.strided_load %arg17[%c1_466, %c0_467] {strides = array<i32: 2, 1>} : memref<360x32xf32, #tpu.memory_space<vmem>>, vector<3x32xf32>
    %c9_468 = arith.constant 9 : index
    %c0_469 = arith.constant 0 : index
    %482 = tpu.strided_load %arg17[%c9_468, %c0_469] {strides = array<i32: 2, 1>} : memref<360x32xf32, #tpu.memory_space<vmem>>, vector<3x32xf32>
    %c10_470 = arith.constant 10 : index
    %c0_471 = arith.constant 0 : index
    %483 = tpu.strided_load %arg17[%c10_470, %c0_471] {strides = array<i32: 2, 1>} : memref<360x32xf32, #tpu.memory_space<vmem>>, vector<3x32xf32>
    %484 = arith.maximumf %480, %481 : vector<3x32xf32>
    %485 = arith.maximumf %482, %483 : vector<3x32xf32>
    %486 = arith.maximumf %484, %485 : vector<3x32xf32>
    %c16_472 = arith.constant 16 : index
    %c0_473 = arith.constant 0 : index
    %487 = vector.load %arg16[%c16_472, %c0_473] : memref<57x32xf32, #tpu.memory_space<vmem>>, vector<3x32xf32>
    tpu.vector_store %arg16[%c16_472, %c0_473], %486 {strides = array<i32>} : memref<57x32xf32, #tpu.memory_space<vmem>>, vector<3x32xf32>,
    %c18_474 = arith.constant 18 : index
    %c0_475 = arith.constant 0 : index
    %488 = tpu.strided_load %arg17[%c18_474, %c0_475] {strides = array<i32: 2, 1>} : memref<360x32xf32, #tpu.memory_space<vmem>>, vector<3x32xf32>
    %c19_476 = arith.constant 19 : index
    %c0_477 = arith.constant 0 : index
    %489 = tpu.strided_load %arg17[%c19_476, %c0_477] {strides = array<i32: 2, 1>} : memref<360x32xf32, #tpu.memory_space<vmem>>, vector<3x32xf32>
    %c27_478 = arith.constant 27 : index
    %c0_479 = arith.constant 0 : index
    %490 = tpu.strided_load %arg17[%c27_478, %c0_479] {strides = array<i32: 2, 1>} : memref<360x32xf32, #tpu.memory_space<vmem>>, vector<3x32xf32>
    %c28_480 = arith.constant 28 : index
    %c0_481 = arith.constant 0 : index
    %491 = tpu.strided_load %arg17[%c28_480, %c0_481] {strides = array<i32: 2, 1>} : memref<360x32xf32, #tpu.memory_space<vmem>>, vector<3x32xf32>
    %492 = arith.maximumf %488, %489 : vector<3x32xf32>
    %493 = arith.maximumf %490, %491 : vector<3x32xf32>
    %494 = arith.maximumf %492, %493 : vector<3x32xf32>
    %c23 = arith.constant 23 : index
    %c0_482 = arith.constant 0 : index
    %495 = vector.load %arg16[%c23, %c0_482] : memref<57x32xf32, #tpu.memory_space<vmem>>, vector<3x32xf32>
    tpu.vector_store %arg16[%c23, %c0_482], %494 {strides = array<i32>} : memref<57x32xf32, #tpu.memory_space<vmem>>, vector<3x32xf32>,
    %c36 = arith.constant 36 : index
    %c0_483 = arith.constant 0 : index
    %496 = tpu.strided_load %arg17[%c36, %c0_483] {strides = array<i32: 2, 1>} : memref<360x32xf32, #tpu.memory_space<vmem>>, vector<3x32xf32>
    %c37 = arith.constant 37 : index
    %c0_484 = arith.constant 0 : index
    %497 = tpu.strided_load %arg17[%c37, %c0_484] {strides = array<i32: 2, 1>} : memref<360x32xf32, #tpu.memory_space<vmem>>, vector<3x32xf32>
    %c45 = arith.constant 45 : index
    %c0_485 = arith.constant 0 : index
    %498 = tpu.strided_load %arg17[%c45, %c0_485] {strides = array<i32: 2, 1>} : memref<360x32xf32, #tpu.memory_space<vmem>>, vector<3x32xf32>
    %c46 = arith.constant 46 : index
    %c0_486 = arith.constant 0 : index
    %499 = tpu.strided_load %arg17[%c46, %c0_486] {strides = array<i32: 2, 1>} : memref<360x32xf32, #tpu.memory_space<vmem>>, vector<3x32xf32>
    %500 = arith.maximumf %496, %497 : vector<3x32xf32>
    %501 = arith.maximumf %498, %499 : vector<3x32xf32>
    %502 = arith.maximumf %500, %501 : vector<3x32xf32>
    %c30 = arith.constant 30 : index
    %c0_487 = arith.constant 0 : index
    %503 = vector.load %arg16[%c30, %c0_487] : memref<57x32xf32, #tpu.memory_space<vmem>>, vector<3x32xf32>
    tpu.vector_store %arg16[%c30, %c0_487], %502 {strides = array<i32>} : memref<57x32xf32, #tpu.memory_space<vmem>>, vector<3x32xf32>,
    %cst_488 = arith.constant 0.000000e+00 : f32
    %504 = vector.broadcast %cst_488 : f32 to vector<35x32xf32>
    %c0_489 = arith.constant 0 : index
    %c0_490 = arith.constant 0 : index
    %505 = vector.load %arg16[%c0_489, %c0_490] : memref<57x32xf32, #tpu.memory_space<vmem>>, vector<35x32xf32>
    %c0_491 = arith.constant 0 : index
    %c0_492 = arith.constant 0 : index
    %c0_493 = arith.constant 0 : index
    %506 = vector.load %arg8[%c0_491, %c0_492, %c0_493] : memref<9x32x32xf32, #tpu.memory_space<vmem>>, vector<1x32x32xf32>
    %507 = vector.shape_cast %506 : vector<1x32x32xf32> to vector<32x32xf32>
    %cst_494 = arith.constant dense<0.000000e+00> : vector<35x32xf32>
    %508 = tpu.matmul %505, %507, %cst_494 {dimension_numbers = #tpu.dot_dimension_numbers<[1], [0], [0], [1], [0, 0, 1, 1], [], []>} : vector<35x32xf32>, vector<32x32xf32>, vector<35x32xf32> -> vector<35x32xf32>
    %509 = arith.addf %504, %508 : vector<35x32xf32>
    %c1_495 = arith.constant 1 : index
    %c0_496 = arith.constant 0 : index
    %510 = vector.load %arg16[%c1_495, %c0_496] : memref<57x32xf32, #tpu.memory_space<vmem>>, vector<35x32xf32>
    %c1_497 = arith.constant 1 : index
    %c0_498 = arith.constant 0 : index
    %c0_499 = arith.constant 0 : index
    %511 = vector.load %arg8[%c1_497, %c0_498, %c0_499] : memref<9x32x32xf32, #tpu.memory_space<vmem>>, vector<1x32x32xf32>
    %512 = vector.shape_cast %511 : vector<1x32x32xf32> to vector<32x32xf32>
    %cst_500 = arith.constant dense<0.000000e+00> : vector<35x32xf32>
    %513 = tpu.matmul %510, %512, %cst_500 {dimension_numbers = #tpu.dot_dimension_numbers<[1], [0], [0], [1], [0, 0, 1, 1], [], []>} : vector<35x32xf32>, vector<32x32xf32>, vector<35x32xf32> -> vector<35x32xf32>
    %514 = arith.addf %509, %513 : vector<35x32xf32>
    %c2_501 = arith.constant 2 : index
    %c0_502 = arith.constant 0 : index
    %515 = vector.load %arg16[%c2_501, %c0_502] : memref<57x32xf32, #tpu.memory_space<vmem>>, vector<35x32xf32>
    %c2_503 = arith.constant 2 : index
    %c0_504 = arith.constant 0 : index
    %c0_505 = arith.constant 0 : index
    %516 = vector.load %arg8[%c2_503, %c0_504, %c0_505] : memref<9x32x32xf32, #tpu.memory_space<vmem>>, vector<1x32x32xf32>
    %517 = vector.shape_cast %516 : vector<1x32x32xf32> to vector<32x32xf32>
    %cst_506 = arith.constant dense<0.000000e+00> : vector<35x32xf32>
    %518 = tpu.matmul %515, %517, %cst_506 {dimension_numbers = #tpu.dot_dimension_numbers<[1], [0], [0], [1], [0, 0, 1, 1], [], []>} : vector<35x32xf32>, vector<32x32xf32>, vector<35x32xf32> -> vector<35x32xf32>
    %519 = arith.addf %514, %518 : vector<35x32xf32>
    %c7_507 = arith.constant 7 : index
    %c0_508 = arith.constant 0 : index
    %520 = vector.load %arg16[%c7_507, %c0_508] : memref<57x32xf32, #tpu.memory_space<vmem>>, vector<35x32xf32>
    %c3_509 = arith.constant 3 : index
    %c0_510 = arith.constant 0 : index
    %c0_511 = arith.constant 0 : index
    %521 = vector.load %arg8[%c3_509, %c0_510, %c0_511] : memref<9x32x32xf32, #tpu.memory_space<vmem>>, vector<1x32x32xf32>
    %522 = vector.shape_cast %521 : vector<1x32x32xf32> to vector<32x32xf32>
    %cst_512 = arith.constant dense<0.000000e+00> : vector<35x32xf32>
    %523 = tpu.matmul %520, %522, %cst_512 {dimension_numbers = #tpu.dot_dimension_numbers<[1], [0], [0], [1], [0, 0, 1, 1], [], []>} : vector<35x32xf32>, vector<32x32xf32>, vector<35x32xf32> -> vector<35x32xf32>
    %524 = arith.addf %519, %523 : vector<35x32xf32>
    %c8_513 = arith.constant 8 : index
    %c0_514 = arith.constant 0 : index
    %525 = vector.load %arg16[%c8_513, %c0_514] : memref<57x32xf32, #tpu.memory_space<vmem>>, vector<35x32xf32>
    %c4_515 = arith.constant 4 : index
    %c0_516 = arith.constant 0 : index
    %c0_517 = arith.constant 0 : index
    %526 = vector.load %arg8[%c4_515, %c0_516, %c0_517] : memref<9x32x32xf32, #tpu.memory_space<vmem>>, vector<1x32x32xf32>
    %527 = vector.shape_cast %526 : vector<1x32x32xf32> to vector<32x32xf32>
    %cst_518 = arith.constant dense<0.000000e+00> : vector<35x32xf32>
    %528 = tpu.matmul %525, %527, %cst_518 {dimension_numbers = #tpu.dot_dimension_numbers<[1], [0], [0], [1], [0, 0, 1, 1], [], []>} : vector<35x32xf32>, vector<32x32xf32>, vector<35x32xf32> -> vector<35x32xf32>
    %529 = arith.addf %524, %528 : vector<35x32xf32>
    %c9_519 = arith.constant 9 : index
    %c0_520 = arith.constant 0 : index
    %530 = vector.load %arg16[%c9_519, %c0_520] : memref<57x32xf32, #tpu.memory_space<vmem>>, vector<35x32xf32>
    %c5_521 = arith.constant 5 : index
    %c0_522 = arith.constant 0 : index
    %c0_523 = arith.constant 0 : index
    %531 = vector.load %arg8[%c5_521, %c0_522, %c0_523] : memref<9x32x32xf32, #tpu.memory_space<vmem>>, vector<1x32x32xf32>
    %532 = vector.shape_cast %531 : vector<1x32x32xf32> to vector<32x32xf32>
    %cst_524 = arith.constant dense<0.000000e+00> : vector<35x32xf32>
    %533 = tpu.matmul %530, %532, %cst_524 {dimension_numbers = #tpu.dot_dimension_numbers<[1], [0], [0], [1], [0, 0, 1, 1], [], []>} : vector<35x32xf32>, vector<32x32xf32>, vector<35x32xf32> -> vector<35x32xf32>
    %534 = arith.addf %529, %533 : vector<35x32xf32>
    %c14_525 = arith.constant 14 : index
    %c0_526 = arith.constant 0 : index
    %535 = vector.load %arg16[%c14_525, %c0_526] : memref<57x32xf32, #tpu.memory_space<vmem>>, vector<35x32xf32>
    %c6_527 = arith.constant 6 : index
    %c0_528 = arith.constant 0 : index
    %c0_529 = arith.constant 0 : index
    %536 = vector.load %arg8[%c6_527, %c0_528, %c0_529] : memref<9x32x32xf32, #tpu.memory_space<vmem>>, vector<1x32x32xf32>
    %537 = vector.shape_cast %536 : vector<1x32x32xf32> to vector<32x32xf32>
    %cst_530 = arith.constant dense<0.000000e+00> : vector<35x32xf32>
    %538 = tpu.matmul %535, %537, %cst_530 {dimension_numbers = #tpu.dot_dimension_numbers<[1], [0], [0], [1], [0, 0, 1, 1], [], []>} : vector<35x32xf32>, vector<32x32xf32>, vector<35x32xf32> -> vector<35x32xf32>
    %539 = arith.addf %534, %538 : vector<35x32xf32>
    %c15_531 = arith.constant 15 : index
    %c0_532 = arith.constant 0 : index
    %540 = vector.load %arg16[%c15_531, %c0_532] : memref<57x32xf32, #tpu.memory_space<vmem>>, vector<35x32xf32>
    %c7_533 = arith.constant 7 : index
    %c0_534 = arith.constant 0 : index
    %c0_535 = arith.constant 0 : index
    %541 = vector.load %arg8[%c7_533, %c0_534, %c0_535] : memref<9x32x32xf32, #tpu.memory_space<vmem>>, vector<1x32x32xf32>
    %542 = vector.shape_cast %541 : vector<1x32x32xf32> to vector<32x32xf32>
    %cst_536 = arith.constant dense<0.000000e+00> : vector<35x32xf32>
    %543 = tpu.matmul %540, %542, %cst_536 {dimension_numbers = #tpu.dot_dimension_numbers<[1], [0], [0], [1], [0, 0, 1, 1], [], []>} : vector<35x32xf32>, vector<32x32xf32>, vector<35x32xf32> -> vector<35x32xf32>
    %544 = arith.addf %539, %543 : vector<35x32xf32>
    %c16_537 = arith.constant 16 : index
    %c0_538 = arith.constant 0 : index
    %545 = vector.load %arg16[%c16_537, %c0_538] : memref<57x32xf32, #tpu.memory_space<vmem>>, vector<35x32xf32>
    %c8_539 = arith.constant 8 : index
    %c0_540 = arith.constant 0 : index
    %c0_541 = arith.constant 0 : index
    %546 = vector.load %arg8[%c8_539, %c0_540, %c0_541] : memref<9x32x32xf32, #tpu.memory_space<vmem>>, vector<1x32x32xf32>
    %547 = vector.shape_cast %546 : vector<1x32x32xf32> to vector<32x32xf32>
    %cst_542 = arith.constant dense<0.000000e+00> : vector<35x32xf32>
    %548 = tpu.matmul %545, %547, %cst_542 {dimension_numbers = #tpu.dot_dimension_numbers<[1], [0], [0], [1], [0, 0, 1, 1], [], []>} : vector<35x32xf32>, vector<32x32xf32>, vector<35x32xf32> -> vector<35x32xf32>
    %549 = arith.addf %544, %548 : vector<35x32xf32>
    %c0_543 = arith.constant 0 : index
    %c0_544 = arith.constant 0 : index
    %550 = vector.load %arg9[%c0_543, %c0_544] : memref<1x32xf32, #tpu.memory_space<vmem>>, vector<1x32xf32>
    %551 = vector.broadcast %550 : vector<1x32xf32> to vector<35x32xf32>
    %552 = arith.addf %549, %551 : vector<35x32xf32>
    %cst_545 = arith.constant 0.000000e+00 : f32
    %553 = vector.broadcast %cst_545 : f32 to vector<35x32xf32>
    %554 = arith.maximumf %552, %553 : vector<35x32xf32>
    %c0_546 = arith.constant 0 : index
    %c0_547 = arith.constant 0 : index
    %555 = vector.load %arg17[%c0_546, %c0_547] : memref<360x32xf32, #tpu.memory_space<vmem>>, vector<35x32xf32>
    tpu.vector_store %arg17[%c0_546, %c0_547], %554 {strides = array<i32>} : memref<360x32xf32, #tpu.memory_space<vmem>>, vector<35x32xf32>,
    %c0_548 = arith.constant 0 : index
    %c0_549 = arith.constant 0 : index
    %556 = tpu.strided_load %arg17[%c0_548, %c0_549] {strides = array<i32: 2, 1>} : memref<360x32xf32, #tpu.memory_space<vmem>>, vector<2x32xf32>
    %c1_550 = arith.constant 1 : index
    %c0_551 = arith.constant 0 : index
    %557 = tpu.strided_load %arg17[%c1_550, %c0_551] {strides = array<i32: 2, 1>} : memref<360x32xf32, #tpu.memory_space<vmem>>, vector<2x32xf32>
    %c7_552 = arith.constant 7 : index
    %c0_553 = arith.constant 0 : index
    %558 = tpu.strided_load %arg17[%c7_552, %c0_553] {strides = array<i32: 2, 1>} : memref<360x32xf32, #tpu.memory_space<vmem>>, vector<2x32xf32>
    %c8_554 = arith.constant 8 : index
    %c0_555 = arith.constant 0 : index
    %559 = tpu.strided_load %arg17[%c8_554, %c0_555] {strides = array<i32: 2, 1>} : memref<360x32xf32, #tpu.memory_space<vmem>>, vector<2x32xf32>
    %560 = arith.maximumf %556, %557 : vector<2x32xf32>
    %561 = arith.maximumf %558, %559 : vector<2x32xf32>
    %562 = arith.maximumf %560, %561 : vector<2x32xf32>
    %cst_556 = arith.constant dense<0xFF800000> : vector<32xf32>
    %563 = vector.multi_reduction <maximumf>, %562, %cst_556 [0] : vector<2x32xf32> to vector<32xf32>
    %564 = vector.shape_cast %563 : vector<32xf32> to vector<1x32xf32>
    %c14_557 = arith.constant 14 : index
    %c0_558 = arith.constant 0 : index
    %565 = tpu.strided_load %arg17[%c14_557, %c0_558] {strides = array<i32: 2, 1>} : memref<360x32xf32, #tpu.memory_space<vmem>>, vector<2x32xf32>
    %c15_559 = arith.constant 15 : index
    %c0_560 = arith.constant 0 : index
    %566 = tpu.strided_load %arg17[%c15_559, %c0_560] {strides = array<i32: 2, 1>} : memref<360x32xf32, #tpu.memory_space<vmem>>, vector<2x32xf32>
    %c21_561 = arith.constant 21 : index
    %c0_562 = arith.constant 0 : index
    %567 = tpu.strided_load %arg17[%c21_561, %c0_562] {strides = array<i32: 2, 1>} : memref<360x32xf32, #tpu.memory_space<vmem>>, vector<2x32xf32>
    %c22_563 = arith.constant 22 : index
    %c0_564 = arith.constant 0 : index
    %568 = tpu.strided_load %arg17[%c22_563, %c0_564] {strides = array<i32: 2, 1>} : memref<360x32xf32, #tpu.memory_space<vmem>>, vector<2x32xf32>
    %569 = arith.maximumf %565, %566 : vector<2x32xf32>
    %570 = arith.maximumf %567, %568 : vector<2x32xf32>
    %571 = arith.maximumf %569, %570 : vector<2x32xf32>
    %cst_565 = arith.constant dense<0xFF800000> : vector<32xf32>
    %572 = vector.multi_reduction <maximumf>, %571, %cst_565 [0] : vector<2x32xf32> to vector<32xf32>
    %573 = vector.shape_cast %572 : vector<32xf32> to vector<1x32xf32>
    %574 = arith.maximumf %564, %573 : vector<1x32xf32>
    %c0_566 = arith.constant 0 : index
    %c0_567 = arith.constant 0 : index
    %575 = vector.load %arg10[%c0_566, %c0_567] : memref<32x32xf32, #tpu.memory_space<vmem>>, vector<32x32xf32>
    %cst_568 = arith.constant dense<0.000000e+00> : vector<1x32xf32>
    %576 = tpu.matmul %574, %575, %cst_568 {dimension_numbers = #tpu.dot_dimension_numbers<[1], [0], [0], [1], [0, 0, 1, 1], [], []>} : vector<1x32xf32>, vector<32x32xf32>, vector<1x32xf32> -> vector<1x32xf32>
    %c0_569 = arith.constant 0 : index
    %c0_570 = arith.constant 0 : index
    %577 = vector.load %arg11[%c0_569, %c0_570] : memref<1x32xf32, #tpu.memory_space<vmem>>, vector<1x32xf32>
    %578 = arith.addf %576, %577 : vector<1x32xf32>
    %579 = math.tanh %578 : vector<1x32xf32>
    %c0_571 = arith.constant 0 : index
    %c0_572 = arith.constant 0 : index
    %c0_573 = arith.constant 0 : index
    %580 = vector.load %arg12[%c0_571, %c0_572, %c0_573] : memref<1x1x32xf32, #tpu.memory_space<vmem>>, vector<1x1x32xf32>
    %581 = vector.shape_cast %580 : vector<1x1x32xf32> to vector<1x32xf32>
    %582 = vector.shape_cast %579 : vector<1x32xf32> to vector<1x1x32xf32>
    tpu.vector_store %arg12[%c0_571, %c0_572, %c0_573], %582 {strides = array<i32>} : memref<1x1x32xf32, #tpu.memory_space<vmem>>, vector<1x1x32xf32>,
    return
  }
  func.func @transform_0(%arg0: i32) -> (i32, i32, i32) {
    %c0_i32 = arith.constant 0 : i32
    %c0_i32_0 = arith.constant 0 : i32
    %c0_i32_1 = arith.constant 0 : i32
    return %arg0, %c0_i32, %c0_i32_0 : i32, i32, i32
  }
  func.func @transform_1(%arg0: i32) -> (i32, i32, i32) {
    %c0_i32 = arith.constant 0 : i32
    %c0_i32_0 = arith.constant 0 : i32
    %c0_i32_1 = arith.constant 0 : i32
    %c0_i32_2 = arith.constant 0 : i32
    return %c0_i32, %c0_i32_0, %c0_i32_1 : i32, i32, i32
  }
  func.func @transform_2(%arg0: i32) -> (i32, i32) {
    %c0_i32 = arith.constant 0 : i32
    %c0_i32_0 = arith.constant 0 : i32
    %c0_i32_1 = arith.constant 0 : i32
    return %c0_i32, %c0_i32_0 : i32, i32
  }
  func.func @transform_3(%arg0: i32) -> (i32, i32, i32) {
    %c0_i32 = arith.constant 0 : i32
    %c0_i32_0 = arith.constant 0 : i32
    %c0_i32_1 = arith.constant 0 : i32
    %c0_i32_2 = arith.constant 0 : i32
    return %c0_i32, %c0_i32_0, %c0_i32_1 : i32, i32, i32
  }
  func.func @transform_4(%arg0: i32) -> (i32, i32) {
    %c0_i32 = arith.constant 0 : i32
    %c0_i32_0 = arith.constant 0 : i32
    %c0_i32_1 = arith.constant 0 : i32
    return %c0_i32, %c0_i32_0 : i32, i32
  }
  func.func @transform_5(%arg0: i32) -> (i32, i32, i32) {
    %c0_i32 = arith.constant 0 : i32
    %c0_i32_0 = arith.constant 0 : i32
    %c0_i32_1 = arith.constant 0 : i32
    %c0_i32_2 = arith.constant 0 : i32
    return %c0_i32, %c0_i32_0, %c0_i32_1 : i32, i32, i32
  }
  func.func @transform_6(%arg0: i32) -> (i32, i32) {
    %c0_i32 = arith.constant 0 : i32
    %c0_i32_0 = arith.constant 0 : i32
    %c0_i32_1 = arith.constant 0 : i32
    return %c0_i32, %c0_i32_0 : i32, i32
  }
  func.func @transform_7(%arg0: i32) -> (i32, i32, i32) {
    %c0_i32 = arith.constant 0 : i32
    %c0_i32_0 = arith.constant 0 : i32
    %c0_i32_1 = arith.constant 0 : i32
    %c0_i32_2 = arith.constant 0 : i32
    return %c0_i32, %c0_i32_0, %c0_i32_1 : i32, i32, i32
  }
  func.func @transform_8(%arg0: i32) -> (i32, i32) {
    %c0_i32 = arith.constant 0 : i32
    %c0_i32_0 = arith.constant 0 : i32
    %c0_i32_1 = arith.constant 0 : i32
    return %c0_i32, %c0_i32_0 : i32, i32
  }
  func.func @transform_9(%arg0: i32) -> (i32, i32) {
    %c0_i32 = arith.constant 0 : i32
    %c0_i32_0 = arith.constant 0 : i32
    %c0_i32_1 = arith.constant 0 : i32
    return %c0_i32, %c0_i32_0 : i32, i32
  }
  func.func @transform_10(%arg0: i32) -> (i32, i32) {
    %c0_i32 = arith.constant 0 : i32
    %c0_i32_0 = arith.constant 0 : i32
    %c0_i32_1 = arith.constant 0 : i32
    return %c0_i32, %c0_i32_0 : i32, i32
  }
  func.func @transform_11(%arg0: i32) -> (i32, i32, i32) {
    %c0_i32 = arith.constant 0 : i32
    %c0_i32_0 = arith.constant 0 : i32
    %c0_i32_1 = arith.constant 0 : i32
    return %arg0, %c0_i32, %c0_i32_0 : i32, i32, i32
  }
}

</mosaic_0001>

<bundles_post_ra>
// kernel: board_encoder_forward.1
= control target key start
LH: loop header
LB: loop body
LE: loop exit
PB: predicated region body
PF: predicated region fallthrough
CT: control target
= control target key end

     0   :  { %16 = vsyncpa [#allocation8], 0  ;;  %s12464_s0 = inlined_call_operand.vmem [shape: f32[2,256,4], index: 0, kind: input, shape index: {}]   ;;  %s12465_s1 = inlined_call_operand.vmem [shape: f32[9,4,32], index: 1, kind: input, shape index: {}]   ;;  %s12466_s2 = inlined_call_operand.vmem [shape: f32[1,32], index: 2, kind: input, shape index: {}]   ;;  %s12467_s3 = inlined_call_operand.vmem [shape: f32[9,32,32], index: 3, kind: input, shape index: {}]   ;;  %s12468_s4 = inlined_call_operand.vmem [shape: f32[1,32], index: 4, kind: input, shape index: {}]   ;;  %s12469_s5 = inlined_call_operand.vmem [shape: f32[9,32,32], index: 5, kind: input, shape index: {}]   ;;  %s12470_s6 = inlined_call_operand.vmem [shape: f32[1,32], index: 6, kind: input, shape index: {}]   ;;  %s12471_s7 = inlined_call_operand.hbm [shape: f32[9,32,32], index: 7, kind: input, shape index: {}]   ;;  %s12472_s8 = inlined_call_operand.vmem [shape: f32[1,32], index: 8, kind: input, shape index: {}]   ;;  %s12473_s9 = inlined_call_operand.hbm [shape: f32[32,32], index: 9, kind: input, shape index: {}]   ;;  %s12474_s10 = inlined_call_operand.vmem [shape: f32[1,32], index: 10, kind: input, shape index: {}]   ;;  %s12475_s11 = inlined_call_operand.hbm [shape: f32[2,1,32], index: 11, kind: output, shape index: {}]  }
   0x1   :  { %17 = vsyncpa [#allocation11], 0 }
   0x2   :  { %18 = vsyncpa [#allocation9], 0 }
   0x3   :  { %20 = vsyncpa [#allocation9 + $0x1], 0  ;;  %s9089_s17 = smov 0   ;;  %s9091_s18 = smov 0  }
   0x4   :  { %s9093_s19 = smov 0   ;;  %s9095_s20 = smov 0  }
   0x5 LB: > { %12481 = sst [smem:[#allocation16_spill]] %s9018_s19  ;;  %s9110_s21 = sadd.s32 4294967295, %s9022_s20   ;;  %s9022_s20 = sphi %s9095_s20, %s12594_s20   ;;  %s9018_s19 = sphi %s9093_s19, %s12591_s19   ;;  %s9014_s18 = sphi %s9091_s18, %s12593_s18   ;;  %s9010_s17 = sphi %s9089_s17, %s12592_s17  }
   0x6   : > { %s7970_s22 = sadd.s32 4294967294, %s9022_s20   ;;  %s9114_s23 = sadd.s32 1, %s9022_s20  }
   0x7   : > { %s269_s24 = sadd.s32 1, %s9018_s19  ;;  %s266_s25 = ssub.s32 %s9022_s20, %s9114_s23 }
   0x8   : > { %p279_p0 = scmp.ne.s32.totalorder %s9018_s19, %s9014_s18  ;;  %p267_p1 = scmp.eq.s32.totalorder %s266_s25, 0 }
   0x9   : > { %p280_p2 = scmp.eq.s32.totalorder %s9110_s21, 1  ;;  %p285_p3 = scmp.ne.s32.totalorder %s9014_s18, %s9010_s17 }
   0xa   : > { %p286_p4 = scmp.eq.s32.totalorder %s7970_s22, 1  ;;  %p7971_p7 = scmp.ge.s32.totalorder %s9022_s20, 1 }
   0xb   : > { %s9125_s26 = scalar_select %p267_p1, %s9018_s19, %s269_s24  }
   0xc   : > { %p9127_p5 = por %p280_p2, %p279_p0  ;;  %p9131_p6 = por %p286_p4, %p285_p3 }
   0xd   : > { %12482 = sst [smem:[#allocation17_spill]] %s9125_s26  ;;  %p293_p8 = scmp.lt.s32.totalorder %s9022_s20, 3 }
   0xe   : > { %p8841_p9 = scmp.eq.s32.totalorder %s9110_s21, 0  ;;  %s322_s13 = sshll.u32 %s12471_s7, 4  ;;  %s323_s13 = int_to_ptr.hbm [resolvable:$true] %s322_s13 }
   0xf   : > { %p9138_p10 = pnand %p7971_p7, %p293_p8  ;;  %s9024_s14 = smov [#allocation7]  }
  0x10   : > { %s324_s15 = sshll.u32 %s9024_s14, 4  ;;  %s339_s24 = sshll.u32 %s12473_s9, 4  ;;  %s325_s15 = int_to_ptr.vmem [resolvable:$true] %s324_s15  ;;  %s340_s24 = int_to_ptr.hbm [resolvable:$true] %s339_s24 }
  0x11   : > { %p8830_p11 = pneg %p9138_p10  ;;  %s9025_s25 = smov 128  }
  0x12   : > { %s9026_s26 = smov 8   ;;  %s9027_s19 = smov [#allocation10]  }
  0x13   : > { %p8831_p12 = pnand %p8841_p9, %p8830_p11  ;;  %s341_s30 = sshll.u32 %s9027_s19, 4  ;;  %s342_s30 = int_to_ptr.vmem [resolvable:$true] %s341_s30 }
  0x14   : > { %368 = sbr.rel (%p9138_p10) target bundleno = 2097 (0x831), region = 64 }
  0x15   : > { %8833 = dma.hbm_to_vmem [thread:$0]  (!%p8831_p12), %s323_s13, 4608, %s325_s15, [#allocation8], %s9025_s25, %s9025_s25, %s9026_s26  }
  0x16   : > { %8836 = dma.hbm_to_vmem [thread:$0]  (!%p8831_p12), %s340_s24, 512, %s342_s30, [#allocation11], %s9025_s25, %s9025_s25, %s9026_s26  }
  0x19   : > { %8997 = dma.done.wait (%p8841_p9), [#allocation8], 4608  }
  0x1a   : > { %8999 = vsyncadd (%p8841_p9), [#allocation8], 4294962688 }
  0x1b   : > { %9001 = dma.done.wait (%p8841_p9), [#allocation11], 512  }
  0x1c   : > { %9003 = vsyncadd (%p8841_p9), [#allocation11], 4294966784  ;;  %vm418_vm0 = vcmask 31744   ;;  %v9028_v0 = vmov 0.0   ;;  %vm662_vm1 = vcmask 1043456   ;;  %p413_p13 = scmp.lt.s32.totalorder %s9110_s21, 1  ;;  %s7889_s22 = scalar_lea.hbm %s12475_s11, %s9110_s21 }
  0x1d   : > { %419 = vst.msk [vmem:[#allocation2] sm:$0xff] %vm418_vm0, %v9028_v0  ;;  %v7980_v1 = vld [vmem:[%s12465_s1 + $0x4] sm:$0xf]  ;;  %v8015_v2 = vld [vmem:[%s12465_s1 + $0x8] sm:$0xf]  ;;  %vm470_vm2 = vcmask 261120  }
  0x1e   : > { %420 = vst.msk [vmem:[#allocation2 + $0x8] sm:$0xff] %vm418_vm0, %v9028_v0  ;;  %v8033_v3 = vld [vmem:[%s12465_s1 + $0xc] sm:$0xf]  ;;  %7981 = vmatpush.msk.msra.mxu0 %vm662_vm1, %v7980_v1  ;;  %8016 = vmatpush.msk.msra.mxu2 %vm662_vm1, %v8015_v2  ;;  %v8051_v7 = vld [vmem:[%s12465_s1 + $0x10] sm:$0xf]  ;;  %s414_s29 = scalar_select %p413_p13, %s9110_s21, 1 }
  0x1f   : > { %421 = vst.msk [vmem:[#allocation2 + $0x10] sm:$0xff] %vm418_vm0, %v9028_v0  ;;  %8034 = vmatpush.msk.msra.mxu3 %vm662_vm1, %v8033_v3  ;;  %8815 = vmatpush.msk.msra.mxu1 %vm662_vm1, %v7980_v1  ;;  %v8087_v8 = vld [vmem:[%s12465_s1 + $0x18] sm:$0xf]  ;;  %v8105_v12 = vld [vmem:[%s12465_s1 + $0x1c] sm:$0xf]  ;;  %vm493_vm3 = vcmask 253952  }
  0x20   : > { %422 = vst.msk [vmem:[#allocation2 + $0x18] sm:$0xff] %vm418_vm0, %v9028_v0  ;;  %8052 = vmatpush.msk.msrb.mxu0 %vm662_vm1, %v8051_v7  ;;  %8088 = vmatpush.msk.msrb.mxu2 %vm662_vm1, %v8087_v8  ;;  %v595_v13 = vld [vmem:[%s12465_s1] sm:$0xf]  ;;  %s8814_s12 = sshll.u32 %s414_s29, 8  ;;  %v8069_v57 = vld [vmem:[%s12465_s1 + $0x14] sm:$0xf] }
  0x21   : > { %423 = vst.msk [vmem:[#allocation2 + $0x20] sm:$0xff] %vm418_vm0, %v9028_v0  ;;  %7998 = vmatpush.msk.msrb.mxu1 %vm662_vm1, %v595_v13  ;;  %8106 = vmatpush.msk.msrb.mxu3 %vm662_vm1, %v8105_v12  ;;  %s9298_s15 = scalar_lea.vmem %s12464_s0, %s8814_s12  ;;  %v8123_v13 = vld [vmem:[%s12465_s1 + $0x20] sm:$0xf]  ;;  %vm6385_vm4 = vcmask 258048   ;;  %vm6374_vm5 = vcmask 260096   ;;  %vm7227_vm6 = vcmask 256000  }
  0x22   : > { %424 = vst.msk [vmem:[#allocation2 + $0x28] sm:$0xff] %vm418_vm0, %v9028_v0  ;;  %v531_v18 = vld [vmem:[%s9298_s15 + $0x40] sm:$0xff]  ;;  %v516_v20 = vld [vmem:[%s9298_s15 + $0x8] sm:$0xff]  ;;  %v519_v23 = vld [vmem:[%s9298_s15 + $0x10] sm:$0xff]  ;;  %vm7825_vm7 = vcmask 254976   ;;  %s411_s14 = sand.u32 1, %s9014_s18  }
  0x23   : > { %425 = vst.msk [vmem:[#allocation2 + $0x30] sm:$0xff] %vm418_vm0, %v9028_v0  ;;  %v515_v19 = vld [vmem:[%s9298_s15] sm:$0xff]  ;;  %v520_v28 = vld [vmem:[%s9298_s15 + $0x18] sm:$0xff]  ;;  %v524_v38 = vld [vmem:[%s9298_s15 + $0x28] sm:$0xff]  ;;  %s412_s24 = scalar_lea.vmem [#allocation12], %s411_s14  ;;  %s7893_s30 = sshll.u32 %s7889_s22, 4  ;;  %s7894_s30 = int_to_ptr.hbm [resolvable:$true] %s7893_s30 }
  0x24   : > { %426 = vst.msk [vmem:[#allocation2 + $0x38] sm:$0xff] %vm418_vm0, %v9028_v0  ;;  %v579_v29 = vld [vmem:[#allocation2] sm:$0xff]  ;;  %v527_v47 = vld [vmem:[%s9298_s15 + $0x30] sm:$0xff]  ;;  %v528_v52 = vld [vmem:[%s9298_s15 + $0x38] sm:$0xff]  ;;  %s7891_s25 = sshll.u32 %s412_s24, 4  ;;  %s7881_s19 = scalar_lea.sflag [#allocation9], %s411_s14  ;;  %s7892_s25 = int_to_ptr.vmem [resolvable:$true] %s7891_s25 }
  0x25   : > { %v596_v4 = vld [vmem:[#allocation2 + $0x1] sm:$0xff]  ;;  %427 = vst.msk [vmem:[#allocation2 + $0x40] sm:$0xff] %vm418_vm0, %v9028_v0  ;;  %v535_v8 = vld [vmem:[%s9298_s15 + $0x50] sm:$0xff]  ;;  %s8966_s26 = sshra.s32 %s7894_s30, 4  ;;  %s8972_s21 = scalar_lea.hbm %s12475_s11, 2  ;;  %s8967_s26 = int_to_ptr.hbm [resolvable:$true] %s8966_s26 }
  0x26   : > { %v847_v5 = vld [vmem:[#allocation2 + $0x2] sm:$0xff]  ;;  %7982 = vmatmul.msk.f32.vlgmr.msra.gmra.mxu0 %vm418_vm0, %v596_v4  ;;  %428 = vst.msk [vmem:[#allocation2 + $0x48] sm:$0xff] %vm418_vm0, %v9028_v0  ;;  %v848_v10 = vld [vmem:[#allocation2 + $0xa] sm:$0xff]  ;;  %s8968_s29 = scalar_lea.hbm %s8967_s26, 1  ;;  %p8973_p3 = scmp.lt.s32.totalorder %s8967_s26, %s12475_s11 }
  0x27   : > { %8017 = vmatmul.msk.f32.vlgmr.msra.gmra.mxu2 %vm418_vm0, %v847_v5  ;;  %v997_v6 = vld [vmem:[#allocation2 + $0x14] sm:$0xff]  ;;  %429 = vst.msk [vmem:[#allocation2 + $0x50] sm:$0xff] %vm418_vm0, %v9028_v0  ;;  %v597_v9 = vld [vmem:[#allocation2 + $0x9] sm:$0xff]  ;;  %v523_v33 = vld [vmem:[%s9298_s15 + $0x20] sm:$0xff]  ;;  %8124 = vmatpush.msk.msra.mxu0 %vm662_vm1, %v8123_v13  ;;  %p8969_p0 = scmp.ne.s32.totalorder %s8967_s26, %s8968_s29  ;;  %p8974_p4 = scmp.lt.s32.totalorder %s8972_s21, %s8968_s29 }
  0x28   : > { %8035 = vmatmul.msk.f32.vlgmr.msra.gmra.mxu3 %vm418_vm0, %v997_v6  ;;  %430 = vst.msk [vmem:[#allocation2 + $0x58] sm:$0xff] %vm418_vm0, %v9028_v0  ;;  %v998_v11 = vld [vmem:[#allocation2 + $0x1c] sm:$0xff]  ;;  %v598_v14 = vld [vmem:[#allocation2 + $0x11] sm:$0xff]  ;;  %v580_v34 = vld [vmem:[#allocation2 + $0x8] sm:$0xff] }
  0x29   : > { %431 = vst.msk [vmem:[#allocation2 + $0x60] sm:$0xff] %vm418_vm0, %v9028_v0  ;;  %v849_v15 = vld [vmem:[#allocation2 + $0x12] sm:$0xff]  ;;  %v850_v17 = vld [vmem:[#allocation2 + $0x1a] sm:$0xff]  ;;  %v851_v22 = vld [vmem:[#allocation2 + $0x22] sm:$0xff]  ;;  %p8970_p1 = pnand %p8969_p0, %p9127_p5  ;;  %p8975_p7 = por %p8974_p4, %p8973_p3 }
  0x2a   : > { %432 = vst.msk [vmem:[#allocation2 + $0x68] sm:$0xff] %vm418_vm0, %v9028_v0  ;;  %v599_v16 = vld [vmem:[#allocation2 + $0x19] sm:$0xff]  ;;  %v600_v21 = vld [vmem:[#allocation2 + $0x21] sm:$0xff]  ;;  %v581_v39 = vld [vmem:[#allocation2 + $0x10] sm:$0xff] }
  0x2b   : > { %433 = vst.msk [vmem:[#allocation2 + $0x70] sm:$0xff] %vm418_vm0, %v9028_v0  ;;  %v582_v43 = vld [vmem:[#allocation2 + $0x18] sm:$0xff]  ;;  %v583_v48 = vld [vmem:[#allocation2 + $0x20] sm:$0xff]  ;;  %v532_v62 = vld [vmem:[%s9298_s15 + $0x48] sm:$0xff]  ;;  %p8971_p2 = pneg %p8970_p1 }
  0x2c   : > { %434 = vst.msk [vmem:[#allocation2 + $0x78] sm:$0xff] %vm418_vm0, %v9028_v0  ;;  %v1147_v12 = vld [vmem:[#allocation2 + $0x15] sm:$0xff] }
  0x2d   : > { %435 = vst.msk [vmem:[#allocation2 + $0x80] sm:$0xff] %vm418_vm0, %v9028_v0  ;;  %p8976_p8 = pnand %p8975_p7, %p8971_p2 }
  0x2e   : > { %436 = vst.msk [vmem:[#allocation2 + $0x88] sm:$0xff] %vm418_vm0, %v9028_v0  ;;  %7983 = vmatmul.msk.f32.gmra.mxu0 %vm418_vm0, %v597_v9 }
  0x2f   : > { %437 = vst.msk [vmem:[#allocation2 + $0x90] sm:$0xff] %vm418_vm0, %v9028_v0  ;;  %8018 = vmatmul.msk.f32.gmra.mxu2 %vm418_vm0, %v848_v10 }
  0x30   : > { %438 = vst.msk [vmem:[#allocation2 + $0x98] sm:$0xff] %vm418_vm0, %v9028_v0  ;;  %8036 = vmatmul.msk.f32.gmra.mxu3 %vm418_vm0, %v998_v11 }
  0x31   : > { %439 = vst.msk [vmem:[#allocation2 + $0xa0] sm:$0xff] %vm418_vm0, %v9028_v0 }
  0x32   : > { %440 = vst.msk [vmem:[#allocation2 + $0xa8] sm:$0xff] %vm418_vm0, %v9028_v0 }
  0x33   : > { %441 = vst.msk [vmem:[#allocation2 + $0xb0] sm:$0xff] %vm418_vm0, %v9028_v0 }
  0x34   : > { %442 = vst.msk [vmem:[#allocation2 + $0xb8] sm:$0xff] %vm418_vm0, %v9028_v0 }
  0x35   : > { %443 = vst.msk [vmem:[#allocation2 + $0xc0] sm:$0xff] %vm418_vm0, %v9028_v0 }
  0x36   : > { %444 = vst.msk [vmem:[#allocation2 + $0xc8] sm:$0xff] %vm418_vm0, %v9028_v0  ;;  %7984 = vmatmul.msk.f32.gmra.mxu0 %vm418_vm0, %v598_v14 }
  0x37   : > { %445 = vst.msk [vmem:[#allocation2 + $0xd0] sm:$0xff] %vm418_vm0, %v9028_v0  ;;  %8019 = vmatmul.msk.f32.gmra.mxu2 %vm418_vm0, %v849_v15 }
  0x38   : > { %446 = vst.msk [vmem:[#allocation2 + $0xd8] sm:$0xff] %vm418_vm0, %v9028_v0 }
  0x39   : > { %447 = vst.msk [vmem:[#allocation2 + $0xe0] sm:$0xff] %vm418_vm0, %v9028_v0 }
  0x3a   : > { %448 = vst.msk [vmem:[#allocation2 + $0xe8] sm:$0xff] %vm418_vm0, %v9028_v0 }
  0x3b   : > { %449 = vst.msk [vmem:[#allocation2 + $0xf0] sm:$0xff] %vm418_vm0, %v9028_v0 }
  0x3c   : > { %450 = vst.msk [vmem:[#allocation2 + $0xf8] sm:$0xff] %vm418_vm0, %v9028_v0 }
  0x3d   : > { %451 = vst.msk [vmem:[#allocation2 + $0x100] sm:$0xff] %vm418_vm0, %v9028_v0 }
  0x3e   : > { %452 = vst.msk [vmem:[#allocation2 + $0x108] sm:$0xff] %vm418_vm0, %v9028_v0  ;;  %7985 = vmatmul.msk.f32.gmra.mxu0 %vm418_vm0, %v599_v16 }
  0x3f   : > { %453 = vst.msk [vmem:[#allocation2 + $0x110] sm:$0xff] %vm418_vm0, %v9028_v0  ;;  %8020 = vmatmul.msk.f32.gmra.mxu2 %vm418_vm0, %v850_v17  ;;  %v1148_v17 = vld [vmem:[#allocation2 + $0x1d] sm:$0xff] }
  0x40   : > { %454 = vst.msk [vmem:[#allocation2 + $0x118] sm:$0xff] %vm418_vm0, %v9028_v0 }
  0x41   : > { %455 = vst.msk [vmem:[#allocation2 + $0x120] sm:$0xff] %vm418_vm0, %v9028_v0 }
  0x42   : > { %456 = vst.msk [vmem:[#allocation2 + $0x128] sm:$0xff] %vm418_vm0, %v9028_v0 }
  0x43   : > { %457 = vst.msk [vmem:[#allocation2 + $0x130] sm:$0xff] %vm418_vm0, %v9028_v0 }
  0x44   : > { %458 = vst.msk [vmem:[#allocation2 + $0x138] sm:$0xff] %vm418_vm0, %v9028_v0 }
  0x45   : > { %459 = vst.msk [vmem:[#allocation2 + $0x140] sm:$0xff] %vm418_vm0, %v9028_v0 }
  0x46   : > { %460 = vst.msk [vmem:[#allocation2 + $0x148] sm:$0xff] %vm418_vm0, %v9028_v0  ;;  %7986 = vmatmul.msk.f32.gmra.mxu0 %vm418_vm0, %v600_v21 }
  0x47   : > { %461 = vst.msk [vmem:[#allocation2 + $0x150] sm:$0xff] %vm418_vm0, %v9028_v0  ;;  %8021 = vmatmul.msk.f32.gmra.mxu2 %vm418_vm0, %v851_v22 }
  0x48   : > { %462 = vst.msk [vmem:[#allocation2 + $0x158] sm:$0xff] %vm418_vm0, %v9028_v0 }
  0x49   : > { %463 = vst.msk [vmem:[#allocation2 + $0x160] sm:$0xff] %vm418_vm0, %v9028_v0 }
  0x4a   : > { %464 = vst.msk [vmem:[#allocation2 + $0x168] sm:$0xff] %vm418_vm0, %v9028_v0 }
  0x4b   : > { %465 = vst.msk [vmem:[#allocation2 + $0x170] sm:$0xff] %vm418_vm0, %v9028_v0 }
  0x4c   : > { %466 = vst.msk [vmem:[#allocation2 + $0x178] sm:$0xff] %vm418_vm0, %v9028_v0 }
  0x4d   : > { %467 = vst.msk [vmem:[#allocation2 + $0x180] sm:$0xff] %vm418_vm0, %v9028_v0 }
  0x4e   : > { %468 = vst.msk [vmem:[#allocation2 + $0x188] sm:$0xff] %vm418_vm0, %v9028_v0 }
  0x4f   : > { %469 = vst.msk [vmem:[#allocation2 + $0x190] sm:$0xff] %vm418_vm0, %v9028_v0 }
  0x50   : > { %533 = vst.msk [vmem:[#allocation2 + $0x7a] sm:$0xff] %vm418_vm0, %v531_v18 }
  0x51   : > { %517 = vst.msk [vmem:[#allocation2 + $0x2a] sm:$0xff] %vm418_vm0, %v515_v19 }
  0x52   : > { %518 = vst.msk [vmem:[#allocation2 + $0x32] sm:$0xff] %vm418_vm0, %v516_v20  ;;  %v1965_v20 = vld [vmem:[%s12465_s1] sm:$0xf] }
  0x53   : > { %521 = vst.msk [vmem:[#allocation2 + $0x3e] sm:$0xff] %vm418_vm0, %v519_v23  ;;  %8159 = vmatpush.msk.msra.mxu2 %vm662_vm1, %v1965_v20 }
  0x54   : > { %522 = vst.msk [vmem:[#allocation2 + $0x46] sm:$0xff] %vm418_vm0, %v520_v28 }
  0x55   : > { %525 = vst.msk [vmem:[#allocation2 + $0x52] sm:$0xff] %vm418_vm0, %v523_v33 }
  0x56   : > { %526 = vst.msk [vmem:[#allocation2 + $0x5a] sm:$0xff] %vm418_vm0, %v524_v38 }
  0x57   : > { %v9320_v24 = vld [vmem:[#allocation2 + $0x79] sm:$0xff]  ;;  %529 = vst.msk [vmem:[#allocation2 + $0x66] sm:$0xff] %vm418_vm0, %v527_v47 }
  0x58   : > { %7997 = vmatmul.msk.f32.vlgmr.msra.gmra.mxu1 %vm418_vm0, %v9320_v24  ;;  %v999_v25 = vld [vmem:[#allocation2 + $0x24] sm:$0xff]  ;;  %530 = vst.msk [vmem:[#allocation2 + $0x6e] sm:$0xff] %vm418_vm0, %v528_v52  ;;  %v9442_v11 = vld [vmem:[#allocation2 + $0x7a] sm:$0xff] }
  0x59   : > { %v9324_v26 = vld [vmem:[#allocation2 + $0x29] sm:$0xff]  ;;  %8037 = vmatmul.msk.f32.gmra.mxu3 %vm418_vm0, %v999_v25  ;;  %v9336_v31 = vld [vmem:[#allocation2 + $0x31] sm:$0xff]  ;;  %8070 = vmatpush.msk.msra.mxu1 %vm662_vm1, %v8069_v57  ;;  %534 = vst.msk [vmem:[#allocation2 + $0x82] sm:$0xff] %vm418_vm0, %v532_v62 }
  0x5a   : > { %v9326_v27 = vld [vmem:[#allocation2 + $0x2a] sm:$0xff]  ;;  %7987 = vmatmul.msk.f32.gmra.mxu0 %vm418_vm0, %v9324_v26  ;;  %v9338_v32 = vld [vmem:[#allocation2 + $0x32] sm:$0xff]  ;;  %v9350_v37 = vld [vmem:[#allocation2 + $0x3a] sm:$0xff]  ;;  %537 = vst.msk [vmem:[#allocation2 + $0x8e] sm:$0xff] %vm418_vm0, %v535_v8 }
  0x5b   : > { %8022 = vmatmul.msk.f32.gmra.mxu2 %vm418_vm0, %v9326_v27  ;;  %v1000_v30 = vld [vmem:[#allocation2 + $0x2c] sm:$0xff]  ;;  %v1001_v35 = vld [vmem:[#allocation2 + $0x34] sm:$0xff]  ;;  %v1002_v40 = vld [vmem:[#allocation2 + $0x3c] sm:$0xff]  ;;  %471 = vst.msk [vmem:[#allocation3] sm:$0xff] %vm470_vm2, %v9028_v0 }
  0x5c   : > { %v9348_v36 = vld [vmem:[#allocation2 + $0x39] sm:$0xff]  ;;  %v9360_v41 = vld [vmem:[#allocation2 + $0x41] sm:$0xff]  ;;  %v9370_v45 = vld [vmem:[#allocation2 + $0x49] sm:$0xff]  ;;  %472 = vst.msk [vmem:[#allocation3 + $0x8] sm:$0xff] %vm470_vm2, %v9028_v0 }
  0x5d   : > { %v9362_v42 = vld [vmem:[#allocation2 + $0x42] sm:$0xff]  ;;  %v9372_v46 = vld [vmem:[#allocation2 + $0x4a] sm:$0xff]  ;;  %v9384_v51 = vld [vmem:[#allocation2 + $0x52] sm:$0xff]  ;;  %473 = vst.msk [vmem:[#allocation3 + $0x10] sm:$0xff] %vm470_vm2, %v9028_v0 }
  0x5e   : > { %v1003_v44 = vld [vmem:[#allocation2 + $0x44] sm:$0xff]  ;;  %v1004_v49 = vld [vmem:[#allocation2 + $0x4c] sm:$0xff]  ;;  %v1005_v54 = vld [vmem:[#allocation2 + $0x54] sm:$0xff]  ;;  %474 = vst.msk [vmem:[#allocation3 + $0x18] sm:$0xff] %vm470_vm2, %v9028_v0 }
  0x5f   : > { %v9382_v50 = vld [vmem:[#allocation2 + $0x51] sm:$0xff]  ;;  %v584_v53 = vld [vmem:[#allocation2 + $0x28] sm:$0xff]  ;;  %v9394_v55 = vld [vmem:[#allocation2 + $0x59] sm:$0xff]  ;;  %475 = vst.msk [vmem:[#allocation3 + $0x20] sm:$0xff] %vm470_vm2, %v9028_v0 }
  0x60   : > { %7999 = vmatmul.msk.f32.vlgmr.msrb.gmra.mxu1 %vm418_vm0, %v579_v29  ;;  %v9396_v56 = vld [vmem:[#allocation2 + $0x5a] sm:$0xff]  ;;  %v585_v58 = vld [vmem:[#allocation2 + $0x30] sm:$0xff]  ;;  %v9410_v61 = vld [vmem:[#allocation2 + $0x62] sm:$0xff]  ;;  %476 = vst.msk [vmem:[#allocation3 + $0x28] sm:$0xff] %vm470_vm2, %v9028_v0 }
  0x61   : > { %8038 = vmatmul.msk.f32.gmra.mxu3 %vm418_vm0, %v1000_v30  ;;  %v1006_v59 = vld [vmem:[#allocation2 + $0x5c] sm:$0xff]  ;;  %v1007_v1 = vld [vmem:[#allocation2 + $0x64] sm:$0xff]  ;;  %v1008_v5 = vld [vmem:[#allocation2 + $0x6c] sm:$0xff]  ;;  %477 = vst.msk [vmem:[#allocation3 + $0x30] sm:$0xff] %vm470_vm2, %v9028_v0 }
  0x62   : > { %7988 = vmatmul.msk.f32.gmra.mxu0 %vm418_vm0, %v9336_v31  ;;  %v9408_v60 = vld [vmem:[#allocation2 + $0x61] sm:$0xff]  ;;  %v586_v63 = vld [vmem:[#allocation2 + $0x38] sm:$0xff]  ;;  %v9420_v2 = vld [vmem:[#allocation2 + $0x69] sm:$0xff]  ;;  %478 = vst.msk [vmem:[#allocation3 + $0x38] sm:$0xff] %vm470_vm2, %v9028_v0 }
  0x63   : > { %8023 = vmatmul.msk.f32.gmra.mxu2 %vm418_vm0, %v9338_v32  ;;  %v9422_v3 = vld [vmem:[#allocation2 + $0x6a] sm:$0xff]  ;;  %v587_v4 = vld [vmem:[#allocation2 + $0x40] sm:$0xff]  ;;  %v9432_v7 = vld [vmem:[#allocation2 + $0x72] sm:$0xff]  ;;  %479 = vst.msk [vmem:[#allocation3 + $0x40] sm:$0xff] %vm470_vm2, %v9028_v0 }
  0x64   : > { %v9430_v6 = vld [vmem:[#allocation2 + $0x71] sm:$0xff]  ;;  %v588_v9 = vld [vmem:[#allocation2 + $0x48] sm:$0xff]  ;;  %v1010_v16 = vld [vmem:[#allocation2 + $0x7c] sm:$0xff]  ;;  %480 = vst.msk [vmem:[#allocation3 + $0x48] sm:$0xff] %vm470_vm2, %v9028_v0 }
  0x65   : > { %v1009_v10 = vld [vmem:[#allocation2 + $0x74] sm:$0xff]  ;;  %v1011_v21 = vld [vmem:[#allocation2 + $0x84] sm:$0xff]  ;;  %v1012_v30 = vld [vmem:[#allocation2 + $0x8c] sm:$0xff]  ;;  %481 = vst.msk [vmem:[#allocation3 + $0x50] sm:$0xff] %vm470_vm2, %v9028_v0 }
  0x66   : > { %v589_v15 = vld [vmem:[#allocation2 + $0x50] sm:$0xff]  ;;  %v590_v19 = vld [vmem:[#allocation2 + $0x58] sm:$0xff]  ;;  %v1149_v23 = vld [vmem:[#allocation2 + $0x25] sm:$0xff]  ;;  %482 = vst.msk [vmem:[#allocation3 + $0x58] sm:$0xff] %vm470_vm2, %v9028_v0 }
  0x67   : > { %v8176_v25 = vld [vmem:[%s12465_s1 + $0x8] sm:$0xf]  ;;  %v591_v29 = vld [vmem:[#allocation2 + $0x60] sm:$0xff]  ;;  %v9481_v47 = vld [vmem:[#allocation2 + $0x70] sm:$0xff]  ;;  %483 = vst.msk [vmem:[#allocation3 + $0x60] sm:$0xff] %vm470_vm2, %v9028_v0 }
  0x68   : > { %8000 = vmatmul.msk.f32.gmra.mxu1 %vm418_vm0, %v580_v34  ;;  %8177 = vmatpush.msk.msra.mxu3 %vm662_vm1, %v8176_v25  ;;  %v1150_v34 = vld [vmem:[#allocation2 + $0x2d] sm:$0xff]  ;;  %v1297_v62 = vld [vmem:[#allocation2 + $0x16] sm:$0xff]  ;;  %484 = vst.msk [vmem:[#allocation3 + $0x68] sm:$0xff] %vm470_vm2, %v9028_v0 }
  0x69   : > { %8039 = vmatmul.msk.f32.gmra.mxu3 %vm418_vm0, %v1001_v35  ;;  %v592_v38 = vld [vmem:[#allocation2 + $0x68] sm:$0xff]  ;;  %v1156_v25 = vld [vmem:[#allocation2 + $0x5d] sm:$0xff]  ;;  %485 = vst.msk [vmem:[#allocation3 + $0x70] sm:$0xff] %vm470_vm2, %v9028_v0 }
  0x6a   : > { %7989 = vmatmul.msk.f32.gmra.mxu0 %vm418_vm0, %v9348_v36  ;;  %v1154_v8 = vld [vmem:[#allocation2 + $0x4d] sm:$0xff]  ;;  %486 = vst.msk [vmem:[#allocation3 + $0x78] sm:$0xff] %vm470_vm2, %v9028_v0 }
  0x6b   : > { %8024 = vmatmul.msk.f32.gmra.mxu2 %vm418_vm0, %v9350_v37  ;;  %487 = vst.msk [vmem:[#allocation3 + $0x80] sm:$0xff] %vm470_vm2, %v9028_v0 }
  0x6c   : > { %488 = vst.msk [vmem:[#allocation3 + $0x88] sm:$0xff] %vm470_vm2, %v9028_v0 }
  0x6d   : > { %489 = vst.msk [vmem:[#allocation3 + $0x90] sm:$0xff] %vm470_vm2, %v9028_v0 }
  0x6e   : > { %490 = vst.msk [vmem:[#allocation3 + $0x98] sm:$0xff] %vm470_vm2, %v9028_v0 }
  0x6f   : > { %491 = vst.msk [vmem:[#allocation3 + $0xa0] sm:$0xff] %vm470_vm2, %v9028_v0 }
  0x70   : > { %8001 = vmatmul.msk.f32.gmra.mxu1 %vm418_vm0, %v581_v39  ;;  %492 = vst.msk [vmem:[#allocation3 + $0xa8] sm:$0xff] %vm470_vm2, %v9028_v0 }
  0x71   : > { %8040 = vmatmul.msk.f32.gmra.mxu3 %vm418_vm0, %v1002_v40  ;;  %495 = vst.msk [vmem:[#allocation4] sm:$0xff] %vm470_vm2, %v9028_v0 }
  0x72   : > { %7990 = vmatmul.msk.f32.gmra.mxu0 %vm418_vm0, %v9360_v41  ;;  %496 = vst.msk [vmem:[#allocation4 + $0x8] sm:$0xff] %vm470_vm2, %v9028_v0 }
  0x73   : > { %8025 = vmatmul.msk.f32.gmra.mxu2 %vm418_vm0, %v9362_v42  ;;  %497 = vst.msk [vmem:[#allocation4 + $0x10] sm:$0xff] %vm470_vm2, %v9028_v0 }
  0x74   : > { %498 = vst.msk [vmem:[#allocation4 + $0x18] sm:$0xff] %vm470_vm2, %v9028_v0 }
  0x75   : > { %499 = vst.msk [vmem:[#allocation4 + $0x20] sm:$0xff] %vm470_vm2, %v9028_v0 }
  0x76   : > { %500 = vst.msk [vmem:[#allocation4 + $0x28] sm:$0xff] %vm470_vm2, %v9028_v0 }
  0x77   : > { %501 = vst.msk [vmem:[#allocation4 + $0x30] sm:$0xff] %vm470_vm2, %v9028_v0 }
  0x78   : > { %8002 = vmatmul.msk.f32.gmra.mxu1 %vm418_vm0, %v582_v43  ;;  %v1151_v43 = vld [vmem:[#allocation2 + $0x35] sm:$0xff]  ;;  %502 = vst.msk [vmem:[#allocation4 + $0x38] sm:$0xff] %vm470_vm2, %v9028_v0 }
  0x79   : > { %8041 = vmatmul.msk.f32.gmra.mxu3 %vm418_vm0, %v1003_v44  ;;  %503 = vst.msk [vmem:[#allocation4 + $0x40] sm:$0xff] %vm470_vm2, %v9028_v0 }
  0x7a   : > { %7991 = vmatmul.msk.f32.gmra.mxu0 %vm418_vm0, %v9370_v45  ;;  %504 = vst.msk [vmem:[#allocation4 + $0x48] sm:$0xff] %vm470_vm2, %v9028_v0 }
  0x7b   : > { %8026 = vmatmul.msk.f32.gmra.mxu2 %vm418_vm0, %v9372_v46  ;;  %505 = vst.msk [vmem:[#allocation4 + $0x50] sm:$0xff] %vm470_vm2, %v9028_v0 }
  0x7c   : > { %507 = vst.msk [vmem:[#allocation5] sm:$0xff] %vm470_vm2, %v9028_v0 }
  0x7d   : > { %508 = vst.msk [vmem:[#allocation5 + $0x8] sm:$0xff] %vm470_vm2, %v9028_v0 }
  0x7e   : > { %509 = vst.msk [vmem:[#allocation5 + $0x10] sm:$0xff] %vm470_vm2, %v9028_v0 }
  0x7f   : > { %510 = vst.msk [vmem:[#allocation5 + $0x18] sm:$0xff] %vm470_vm2, %v9028_v0 }
  0x80   : > { %8003 = vmatmul.msk.f32.gmra.mxu1 %vm418_vm0, %v583_v48  ;;  %511 = vst.msk [vmem:[#allocation5 + $0x20] sm:$0xff] %vm470_vm2, %v9028_v0 }
  0x81   : > { %8042 = vmatmul.msk.f32.gmra.mxu3 %vm418_vm0, %v1004_v49  ;;  %v1152_v49 = vld [vmem:[#allocation2 + $0x3d] sm:$0xff]  ;;  %512 = vst.msk [vmem:[#allocation5 + $0x28] sm:$0xff] %vm470_vm2, %v9028_v0 }
  0x82   : > { %7992 = vmatmul.msk.f32.gmra.mxu0 %vm418_vm0, %v9382_v50  ;;  %513 = vst.msk [vmem:[#allocation5 + $0x30] sm:$0xff] %vm470_vm2, %v9028_v0 }
  0x83   : > { %8027 = vmatmul.msk.f32.gmra.mxu2 %vm418_vm0, %v9384_v51 }
  0x88   : > { %8004 = vmatmul.msk.f32.gmra.mxu1 %vm418_vm0, %v584_v53 }
  0x89   : > { %8043 = vmatmul.msk.f32.gmra.mxu3 %vm418_vm0, %v1005_v54  ;;  %v9495_v54 = vld [vmem:[#allocation2 + $0x78] sm:$0xff] }
  0x8a   : > { %7993 = vmatmul.msk.f32.gmra.mxu0 %vm418_vm0, %v9394_v55 }
  0x8b   : > { %8028 = vmatmul.msk.f32.gmra.mxu2 %vm418_vm0, %v9396_v56 }
  0x90   : > { %8005 = vmatmul.msk.f32.gmra.mxu1 %vm418_vm0, %v585_v58 }
  0x91   : > { %8044 = vmatmul.msk.f32.gmra.mxu3 %vm418_vm0, %v1006_v59 }
  0x92   : > { %7994 = vmatmul.msk.f32.gmra.mxu0 %vm418_vm0, %v9408_v60 }
  0x93   : > { %8029 = vmatmul.msk.f32.gmra.mxu2 %vm418_vm0, %v9410_v61 }
  0x98   : > { %8006 = vmatmul.msk.f32.gmra.mxu1 %vm418_vm0, %v586_v63 }
  0x99   : > { %8045 = vmatmul.msk.f32.gmra.mxu3 %vm418_vm0, %v1007_v1 }
  0x9a   : > { %7995 = vmatmul.msk.f32.gmra.mxu0 %vm418_vm0, %v9420_v2 }
  0x9b   : > { %8030 = vmatmul.msk.f32.gmra.mxu2 %vm418_vm0, %v9422_v3 }
  0xa0   : > { %8007 = vmatmul.msk.f32.gmra.mxu1 %vm418_vm0, %v587_v4 }
  0xa1   : > { %8046 = vmatmul.msk.f32.gmra.mxu3 %vm418_vm0, %v1008_v5 }
  0xa2   : > { %7996 = vmatmul.msk.f32.gmra.mxu0 %vm418_vm0, %v9430_v6 }
  0xa3   : > { %8031 = vmatmul.msk.f32.gmra.mxu2 %vm418_vm0, %v9432_v7  ;;  %v683_v14 = vpop.f32.mrf.mxu0 }
  0xa8   : > { %8008 = vmatmul.msk.f32.gmra.mxu1 %vm418_vm0, %v588_v9 }
  0xa9   : > { %8047 = vmatmul.msk.f32.gmra.mxu3 %vm418_vm0, %v1009_v10  ;;  %v1298_v10 = vld [vmem:[#allocation2 + $0x1e] sm:$0xff] }
  0xaa   : > { %8053 = vmatmul.msk.f32.vlgmr.msrb.gmra.mxu0 %vm418_vm0, %v1147_v12  ;;  %v933_v18 = vpop.f32.mrf.mxu2 }
  0xab   : > { %8032 = vmatmul.msk.f32.gmra.mxu2 %vm418_vm0, %v9442_v11  ;;  %v686_v22 = vpop.f32.mrf.mxu0  ;;  %v9475_v40 = vpop.f32.mrf.mxu3 }
  0xb0   : > { %8009 = vmatmul.msk.f32.gmra.mxu1 %vm418_vm0, %v589_v15 }
  0xb1   : > { %8048 = vmatmul.msk.f32.gmra.mxu3 %vm418_vm0, %v1010_v16  ;;  %v1155_v16 = vld [vmem:[#allocation2 + $0x55] sm:$0xff] }
  0xb2   : > { %8054 = vmatmul.msk.f32.gmra.mxu0 %vm418_vm0, %v1148_v17  ;;  %v936_v28 = vpop.f32.mrf.mxu2 }
  0xb3   : > { %8089 = vmatmul.msk.f32.vlgmr.msrb.gmra.mxu2 %vm418_vm0, %v584_v53  ;;  %v689_v33 = vpop.f32.mrf.mxu0  ;;  %v1086_v52 = vpop.f32.mrf.mxu3 }
  0xb8   : > { %8010 = vmatmul.msk.f32.gmra.mxu1 %vm418_vm0, %v590_v19 }
  0xb9   : > { %8049 = vmatmul.msk.f32.gmra.mxu3 %vm418_vm0, %v1011_v21 }
  0xba   : > { %8055 = vmatmul.msk.f32.gmra.mxu0 %vm418_vm0, %v1149_v23  ;;  %v939_v35 = vpop.f32.mrf.mxu2 }
  0xbb   : > { %8090 = vmatmul.msk.f32.gmra.mxu2 %vm418_vm0, %v585_v58  ;;  %v9472_v39 = vpop.f32.mrf.mxu0  ;;  %v1153_v58 = vld [vmem:[#allocation2 + $0x45] sm:$0xff] }
  0xc0   : > { %8011 = vmatmul.msk.f32.gmra.mxu1 %vm418_vm0, %v591_v29 }
  0xc1   : > { %8050 = vmatmul.msk.f32.gmra.mxu3 %vm418_vm0, %v1012_v30  ;;  %v1300_v30 = vld [vmem:[#allocation2 + $0x2e] sm:$0xff] }
  0xc2   : > { %8056 = vmatmul.msk.f32.gmra.mxu0 %vm418_vm0, %v1150_v34  ;;  %v942_v44 = vpop.f32.mrf.mxu2 }
  0xc3   : > { %8091 = vmatmul.msk.f32.gmra.mxu2 %vm418_vm0, %v586_v63  ;;  %v9483_v48 = vpop.f32.mrf.mxu0 }
  0xc8   : > { %8012 = vmatmul.msk.f32.gmra.mxu1 %vm418_vm0, %v592_v38 }
  0xc9   : > { %8107 = vmatmul.msk.f32.vlgmr.msrb.gmra.mxu3 %vm418_vm0, %v9324_v26 }
  0xca   : > { %8057 = vmatmul.msk.f32.gmra.mxu0 %vm418_vm0, %v1151_v43  ;;  %v9491_v26 = vpop.f32.mrf.mxu2 }
  0xcb   : > { %8092 = vmatmul.msk.f32.gmra.mxu2 %vm418_vm0, %v587_v4 }
  0xd0   : > { %8013 = vmatmul.msk.f32.gmra.mxu1 %vm418_vm0, %v9481_v47 }
  0xd1   : > { %8108 = vmatmul.msk.f32.gmra.mxu3 %vm418_vm0, %v9336_v31 }
  0xd2   : > { %8058 = vmatmul.msk.f32.gmra.mxu0 %vm418_vm0, %v1152_v49  ;;  %v1157_v49 = vld [vmem:[#allocation2 + $0x65] sm:$0xff] }
  0xd3   : > { %8093 = vmatmul.msk.f32.gmra.mxu2 %vm418_vm0, %v588_v9 }
  0xd5   : > { %v9493_v53 = vpop.f32.mrf.mxu1 }
  0xd7   : > { %v9497_v57 = vpop.f32.mrf.mxu0 }
  0xd8   : > { %8014 = vmatmul.msk.f32.gmra.mxu1 %vm418_vm0, %v9495_v54 }
  0xd9   : > { %8109 = vmatmul.msk.f32.gmra.mxu3 %vm418_vm0, %v9348_v36 }
  0xda   : > { %8059 = vmatmul.msk.f32.gmra.mxu0 %vm418_vm0, %v1153_v58  ;;  %v1301_v58 = vld [vmem:[#allocation2 + $0x36] sm:$0xff] }
  0xdb   : > { %8094 = vmatmul.msk.f32.gmra.mxu2 %vm418_vm0, %v589_v15 }
  0xdc   : > { %v1089_v31 = vpop.f32.mrf.mxu3 }
  0xdd   : > { %v799_v59 = vpop.f32.mrf.mxu1 }
  0xde   : > { %v9505_v63 = vpop.f32.mrf.mxu2  ;;  %v800_v1 = vadd.f32 %v799_v59, %v683_v14 }
  0xdf   : > { %v9507_v4 = vpop.f32.mrf.mxu0 }
  0xe0   : > { %v9509_v5 = vadd.f32 %v933_v18, %v800_v1  ;;  %8071 = vmatmul.msk.f32.vlgmr.msra.gmra.mxu1 %vm418_vm0, %v1297_v62 }
  0xe1   : > { %8110 = vmatmul.msk.f32.gmra.mxu3 %vm418_vm0, %v9360_v41 }
  0xe2   : > { %8060 = vmatmul.msk.f32.gmra.mxu0 %vm418_vm0, %v1154_v8 }
  0xe3   : > { %8095 = vmatmul.msk.f32.gmra.mxu2 %vm418_vm0, %v590_v19  ;;  %v1299_v19 = vld [vmem:[#allocation2 + $0x26] sm:$0xff] }
  0xe4   : > { %v1092_v36 = vpop.f32.mrf.mxu3 }
  0xe5   : > { %v802_v9 = vpop.f32.mrf.mxu1 }
  0xe6   : > { %v9516_v12 = vpop.f32.mrf.mxu2  ;;  %v803_v13 = vadd.f32 %v802_v9, %v686_v22 }
  0xe7   : > { %v9518_v14 = vpop.f32.mrf.mxu0 }
  0xe8   : > { %v982_v15 = vadd.f32 %v936_v28, %v803_v13  ;;  %8072 = vmatmul.msk.f32.gmra.mxu1 %vm418_vm0, %v1298_v10  ;;  %v9572_v10 = vld [vmem:[#allocation2 + $0x80] sm:$0xff] }
  0xe9   : > { %8111 = vmatmul.msk.f32.gmra.mxu3 %vm418_vm0, %v9370_v45 }
  0xea   : > { %8061 = vmatmul.msk.f32.gmra.mxu0 %vm418_vm0, %v1155_v16  ;;  %v9525_v41 = vadd.f32 %v1086_v52, %v982_v15  ;;  %v1303_v15 = vld [vmem:[#allocation2 + $0x46] sm:$0xff] }
  0xeb   : > { %8096 = vmatmul.msk.f32.gmra.mxu2 %vm418_vm0, %v591_v29 }
  0xec   : > { %v1095_v17 = vpop.f32.mrf.mxu3 }
  0xed   : > { %v805_v18 = vpop.f32.mrf.mxu1 }
  0xee   : > { %v9527_v20 = vpop.f32.mrf.mxu2  ;;  %v806_v21 = vadd.f32 %v805_v18, %v689_v33 }
  0xef   : > { %v9529_v22 = vpop.f32.mrf.mxu0 }
  0xf0   : > { %v983_v23 = vadd.f32 %v939_v35, %v806_v21  ;;  %8073 = vmatmul.msk.f32.gmra.mxu1 %vm418_vm0, %v1299_v19  ;;  %v1160_v19 = vld [vmem:[#allocation2 + $0x7d] sm:$0xff]  ;;  %v9592_v21 = vld [vmem:[#allocation2 + $0x88] sm:$0xff] }
  0xf1   : > { %8112 = vmatmul.msk.f32.gmra.mxu3 %vm418_vm0, %v9382_v50 }
  0xf2   : > { %8062 = vmatmul.msk.f32.gmra.mxu0 %vm418_vm0, %v1156_v25  ;;  %v9536_v45 = vadd.f32 %v1089_v31, %v983_v23  ;;  %v536_v23 = vld [vmem:[%s9298_s15 + $0x58] sm:$0xff] }
  0xf3   : > { %8097 = vmatmul.msk.f32.gmra.mxu2 %vm418_vm0, %v592_v38  ;;  %538 = vst.msk [vmem:[#allocation2 + $0x96] sm:$0xff] %vm418_vm0, %v536_v23  ;;  %v1307_v23 = vld [vmem:[#allocation2 + $0x66] sm:$0xff] }
  0xf4   : > { %v1098_v28 = vpop.f32.mrf.mxu3 }
  0xf5   : > { %v808_v29 = vpop.f32.mrf.mxu1 }
  0xf6   : > { %v9538_v34 = vpop.f32.mrf.mxu2  ;;  %v809_v33 = vadd.f32 %v808_v29, %v9472_v39 }
  0xf7   : > { %v9541_v35 = vpop.f32.mrf.mxu0 }
  0xf8   : > { %v984_v43 = vadd.f32 %v942_v44, %v809_v33  ;;  %8074 = vmatmul.msk.f32.gmra.mxu1 %vm418_vm0, %v1300_v30 }
  0xf9   : > { %8113 = vmatmul.msk.f32.gmra.mxu3 %vm418_vm0, %v9394_v55  ;;  %v1158_v55 = vld [vmem:[#allocation2 + $0x6d] sm:$0xff] }
  0xfa   : > { %8063 = vmatmul.msk.f32.gmra.mxu0 %vm418_vm0, %v1157_v49  ;;  %v9549_v50 = vadd.f32 %v1092_v36, %v984_v43  ;;  %v1161_v43 = vld [vmem:[#allocation2 + $0x85] sm:$0xff]  ;;  %v9613_v49 = vld [vmem:[#allocation2 + $0x90] sm:$0xff] }
  0xfb   : > { %8098 = vmatmul.msk.f32.gmra.mxu2 %vm418_vm0, %v9481_v47 }
  0xfc   : > { %v1101_v38 = vpop.f32.mrf.mxu3 }
  0xfd   : > { %v811_v52 = vpop.f32.mrf.mxu1 }
  0xfe   : > { %v9551_v39 = vpop.f32.mrf.mxu2  ;;  %v812_v44 = vadd.f32 %v811_v52, %v9483_v48  ;;  %v1302_v48 = vld [vmem:[#allocation2 + $0x3e] sm:$0xff] }
  0xff   : > { %v9554_v31 = vpop.f32.mrf.mxu0 }
 0x100   : > { %v985_v59 = vadd.f32 %v9491_v26, %v812_v44  ;;  %8075 = vmatmul.msk.f32.gmra.mxu1 %vm418_vm0, %v1301_v58  ;;  %v1305_v58 = vld [vmem:[#allocation2 + $0x56] sm:$0xff] }
 0x101   : > { %8114 = vmatmul.msk.f32.gmra.mxu3 %vm418_vm0, %v9408_v60  ;;  %v1159_v60 = vld [vmem:[#allocation2 + $0x75] sm:$0xff] }
 0x102   : > { %8064 = vmatmul.msk.f32.gmra.mxu0 %vm418_vm0, %v1158_v55  ;;  %v9563_v47 = vadd.f32 %v1095_v17, %v985_v59  ;;  %v9622_v59 = vld [vmem:[#allocation2 + $0x81] sm:$0xff] }
 0x103   : > { %8099 = vmatmul.msk.f32.gmra.mxu2 %vm418_vm0, %v9495_v54  ;;  %v8141_v54 = vld [vmem:[%s12465_s1 + $0x4] sm:$0xf] }
 0x104   : > { %v1104_v62 = vpop.f32.mrf.mxu3  ;;  %8142 = vmatpush.msk.msrb.mxu1 %vm662_vm1, %v8141_v54 }
 0x105   : > { %v814_v1 = vpop.f32.mrf.mxu1 }
 0x106   : > { %v9565_v8 = vpop.f32.mrf.mxu2  ;;  %v815_v26 = vadd.f32 %v814_v1, %v9497_v57  ;;  %v1162_v1 = vld [vmem:[#allocation2 + $0x8d] sm:$0xff] }
 0x107   : > { %v9568_v36 = vpop.f32.mrf.mxu0 }
 0x108   : > { %v986_v9 = vadd.f32 %v9505_v63, %v815_v26  ;;  %8076 = vmatmul.msk.f32.gmra.mxu1 %vm418_vm0, %v1302_v48  ;;  %v9628_v48 = vld [vmem:[#allocation2 + $0x98] sm:$0xff] }
 0x109   : > { %8115 = vmatmul.msk.f32.gmra.mxu3 %vm418_vm0, %v9420_v2 }
 0x10a   : > { %8065 = vmatmul.msk.f32.gmra.mxu0 %vm418_vm0, %v1159_v60  ;;  %v9583_v57 = vadd.f32 %v1098_v28, %v986_v9  ;;  %v1304_v28 = vld [vmem:[#allocation2 + $0x4e] sm:$0xff]  ;;  %v1306_v9 = vld [vmem:[#allocation2 + $0x5e] sm:$0xff] }
 0x10b   : > { %8100 = vmatmul.msk.f32.gmra.mxu2 %vm418_vm0, %v9572_v10 }
 0x10c   : > { %v1107_v63 = vpop.f32.mrf.mxu3 }
 0x10d   : > { %v817_v13 = vpop.f32.mrf.mxu1 }
 0x10e   : > { %v9585_v16 = vpop.f32.mrf.mxu2  ;;  %v818_v2 = vadd.f32 %v817_v13, %v9507_v4  ;;  %v9642_v13 = vld [vmem:[#allocation2 + $0x89] sm:$0xff] }
 0x10f   : > { %v9588_v17 = vpop.f32.mrf.mxu0 }
 0x110   : > { %v987_v18 = vadd.f32 %v9516_v12, %v818_v2  ;;  %8077 = vmatmul.msk.f32.gmra.mxu1 %vm418_vm0, %v1303_v15 }
 0x111   : > { %8116 = vmatmul.msk.f32.gmra.mxu3 %vm418_vm0, %v9430_v6 }
 0x112   : > { %8066 = vmatmul.msk.f32.gmra.mxu0 %vm418_vm0, %v1160_v19  ;;  %v9601_v4 = vadd.f32 %v1101_v38, %v987_v18 }
 0x113   : > { %8101 = vmatmul.msk.f32.gmra.mxu2 %vm418_vm0, %v9592_v21 }
 0x114   : > { %v1110_v25 = vpop.f32.mrf.mxu3 }
 0x115   : > { %v820_v12 = vpop.f32.mrf.mxu1 }
 0x116   : > { %v9603_v29 = vpop.f32.mrf.mxu2  ;;  %v821_v30 = vadd.f32 %v820_v12, %v9518_v14 }
 0x117   : > { %v9606_v33 = vpop.f32.mrf.mxu0 }
 0x118   : > { %v988_v6 = vadd.f32 %v9527_v20, %v821_v30  ;;  %8078 = vmatmul.msk.f32.gmra.mxu1 %vm418_vm0, %v1304_v28  ;;  %v9665_v30 = vld [vmem:[#allocation2 + $0x91] sm:$0xff] }
 0x119   : > { %8117 = vmatmul.msk.f32.gmra.mxu3 %vm418_vm0, %v9320_v24 }
 0x11a   : > { %8067 = vmatmul.msk.f32.gmra.mxu0 %vm418_vm0, %v1161_v43  ;;  %v9617_v38 = vadd.f32 %v1104_v62, %v988_v6  ;;  %v539_v62 = vld [vmem:[%s9298_s15 + $0x60] sm:$0xff] }
 0x11b   : > { %8102 = vmatmul.msk.f32.gmra.mxu2 %vm418_vm0, %v9613_v49  ;;  %541 = vst.msk [vmem:[#allocation2 + $0xa2] sm:$0xff] %vm418_vm0, %v539_v62  ;;  %v1309_v62 = vld [vmem:[#allocation2 + $0x76] sm:$0xff] }
 0x11c   : > { %v1113_v14 = vpop.f32.mrf.mxu3 }
 0x11d   : > { %v823_v52 = vpop.f32.mrf.mxu1 }
 0x11e   : > { %v9619_v20 = vpop.f32.mrf.mxu2  ;;  %v824_v44 = vadd.f32 %v823_v52, %v9529_v22  ;;  %v1308_v52 = vld [vmem:[#allocation2 + $0x6e] sm:$0xff] }
 0x11f   : > { %v9624_v24 = vpop.f32.mrf.mxu0 }
 0x120   : > { %v989_v55 = vadd.f32 %v9538_v34, %v824_v44  ;;  %8079 = vmatmul.msk.f32.gmra.mxu1 %vm418_vm0, %v1305_v58  ;;  %v9682_v44 = vld [vmem:[#allocation2 + $0x99] sm:$0xff] }
 0x121   : > { %8118 = vmatmul.msk.f32.gmra.mxu3 %vm418_vm0, %v9622_v59 }
 0x122   : > { %8068 = vmatmul.msk.f32.gmra.mxu0 %vm418_vm0, %v1162_v1  ;;  %v9637_v22 = vadd.f32 %v1107_v63, %v989_v55  ;;  %v8194_v63 = vld [vmem:[%s12465_s1 + $0xc] sm:$0xf]  ;;  %v9653_v18 = vld [vmem:[#allocation2 + $0xa0] sm:$0xff] }
 0x123   : > { %8103 = vmatmul.msk.f32.gmra.mxu2 %vm418_vm0, %v9628_v48  ;;  %8195 = vmatpush.msk.msrb.mxu0 %vm662_vm1, %v8194_v63  ;;  %v1310_v63 = vld [vmem:[#allocation2 + $0x7e] sm:$0xff] }
 0x124   : > { %v1116_v26 = vpop.f32.mrf.mxu3 }
 0x125   : > { %v826_v34 = vpop.f32.mrf.mxu1 }
 0x126   : > { %v9639_v60 = vpop.f32.mrf.mxu2  ;;  %v827_v54 = vadd.f32 %v826_v34, %v9541_v35 }
 0x127   : > { %v9644_v15 = vpop.f32.mrf.mxu0 }
 0x128   : > { %v990_v2 = vadd.f32 %v9551_v39, %v827_v54  ;;  %8080 = vmatmul.msk.f32.gmra.mxu1 %vm418_vm0, %v1306_v9  ;;  %v9707_v54 = vld [vmem:[#allocation2 + $0xa1] sm:$0xff] }
 0x129   : > { %8119 = vmatmul.msk.f32.gmra.mxu3 %vm418_vm0, %v9642_v13 }
 0x12a   : > { %8125 = vmatmul.msk.f32.vlgmr.msra.gmra.mxu0 %vm418_vm0, %v9326_v27  ;;  %v9660_v35 = vadd.f32 %v1110_v25, %v990_v2 }
 0x12b   : > { %8104 = vmatmul.msk.f32.gmra.mxu2 %vm418_vm0, %v9653_v18 }
 0x12c   : > { %v1119_v39 = vpop.f32.mrf.mxu3 }
 0x12d   : > { %v829_v19 = vpop.f32.mrf.mxu1 }
 0x12e   : > { %v9662_v12 = vpop.f32.mrf.mxu2  ;;  %v830_v28 = vadd.f32 %v829_v19, %v9554_v31 }
 0x12f   : > { %v9667_v6 = vpop.f32.mrf.mxu0 }
 0x130   : > { %v991_v27 = vadd.f32 %v9565_v8, %v830_v28  ;;  %8081 = vmatmul.msk.f32.gmra.mxu1 %vm418_vm0, %v1307_v23  ;;  %v9724_v23 = vld [vmem:[#allocation2 + $0x82] sm:$0xff] }
 0x131   : > { %8120 = vmatmul.msk.f32.gmra.mxu3 %vm418_vm0, %v9665_v30 }
 0x132   : > { %8126 = vmatmul.msk.f32.gmra.mxu0 %vm418_vm0, %v9338_v32  ;;  %v9677_v25 = vadd.f32 %v1113_v14, %v991_v27  ;;  %v8230_v32 = vld [vmem:[%s12465_s1 + $0x14] sm:$0xf] }
 0x133   : > { %8160 = vmatmul.msk.f32.vlgmr.msra.gmra.mxu2 %vm418_vm0, %v9572_v10  ;;  %v8248_v10 = vld [vmem:[%s12465_s1 + $0x18] sm:$0xf] }
 0x134   : > { %v1122_v31 = vpop.f32.mrf.mxu3  ;;  %8231 = vmatpush.msk.msrb.mxu2 %vm662_vm1, %v8230_v32  ;;  %8249 = vmatpush.msk.msrb.mxu3 %vm662_vm1, %v8248_v10 }
 0x135   : > { %v832_v43 = vpop.f32.mrf.mxu1 }
 0x136   : > { %v9679_v58 = vpop.f32.mrf.mxu2  ;;  %v833_v8 = vadd.f32 %v832_v43, %v9568_v36 }
 0x137   : > { %v9684_v55 = vpop.f32.mrf.mxu0 }
 0x138   : > { %v992_v1 = vadd.f32 %v9585_v16, %v833_v8  ;;  %8082 = vmatmul.msk.f32.gmra.mxu1 %vm418_vm0, %v1308_v52  ;;  %v9741_v52 = vld [vmem:[#allocation2 + $0x8a] sm:$0xff] }
 0x139   : > { %8121 = vmatmul.msk.f32.gmra.mxu3 %vm418_vm0, %v9682_v44 }
 0x13a   : > { %8127 = vmatmul.msk.f32.gmra.mxu0 %vm418_vm0, %v9350_v37  ;;  %v9701_v36 = vadd.f32 %v1116_v26, %v992_v1 }
 0x13b   : > { %8161 = vmatmul.msk.f32.gmra.mxu2 %vm418_vm0, %v9592_v21 }
 0x13c   : > { %v1125_v16 = vpop.f32.mrf.mxu3 }
 0x13d   : > { %v835_v14 = vpop.f32.mrf.mxu1 }
 0x13e   : > { %v9704_v34 = vpop.f32.mrf.mxu2  ;;  %v836_v9 = vadd.f32 %v835_v14, %v9588_v17  ;;  %v9760_v14 = vld [vmem:[#allocation2 + $0x92] sm:$0xff] }
 0x13f   : > { %v9709_v2 = vpop.f32.mrf.mxu0 }
 0x140   : > { %v993_v37 = vadd.f32 %v9603_v29, %v836_v9  ;;  %8083 = vmatmul.msk.f32.gmra.mxu1 %vm418_vm0, %v1309_v62 }
 0x141   : > { %8122 = vmatmul.msk.f32.gmra.mxu3 %vm418_vm0, %v9707_v54 }
 0x142   : > { %8128 = vmatmul.msk.f32.gmra.mxu0 %vm418_vm0, %v9362_v42  ;;  %v9719_v21 = vadd.f32 %v1119_v39, %v993_v37  ;;  %v1311_v39 = vld [vmem:[#allocation2 + $0x86] sm:$0xff] }
 0x143   : > { %8162 = vmatmul.msk.f32.gmra.mxu2 %vm418_vm0, %v9613_v49 }
 0x144   : > { %v1128_v17 = vpop.f32.mrf.mxu3 }
 0x145   : > { %v838_v26 = vpop.f32.mrf.mxu1 }
 0x146   : > { %v9721_v19 = vpop.f32.mrf.mxu2  ;;  %v839_v29 = vadd.f32 %v838_v26, %v9606_v33 }
 0x147   : > { %v9726_v28 = vpop.f32.mrf.mxu0 }
 0x148   : > { %v994_v27 = vadd.f32 %v9619_v20, %v839_v29  ;;  %8084 = vmatmul.msk.f32.gmra.mxu1 %vm418_vm0, %v1310_v63 }
 0x149   : > { %8178 = vmatmul.msk.f32.vlgmr.msra.gmra.mxu3 %vm418_vm0, %v9724_v23 }
 0x14a   : > { %8129 = vmatmul.msk.f32.gmra.mxu0 %vm418_vm0, %v9372_v46  ;;  %v9736_v42 = vadd.f32 %v1122_v31, %v994_v27  ;;  %v540_v46 = vld [vmem:[%s9298_s15 + $0x68] sm:$0xff]  ;;  %v9783_v27 = vld [vmem:[#allocation2 + $0x9a] sm:$0xff] }
 0x14b   : > { %8163 = vmatmul.msk.f32.gmra.mxu2 %vm418_vm0, %v9628_v48  ;;  %542 = vst.msk [vmem:[#allocation2 + $0xaa] sm:$0xff] %vm418_vm0, %v540_v46 }
 0x14c   : > { %v1683_v33 = vpop.f32.mrf.mxu3 }
 0x14d   : > { %v841_v49 = vpop.f32.mrf.mxu1 }
 0x14e   : > { %v9738_v43 = vpop.f32.mrf.mxu2  ;;  %v842_v20 = vadd.f32 %v841_v49, %v9624_v24 }
 0x14f   : > { %v9743_v8 = vpop.f32.mrf.mxu0 }
 0x150   : > { %v995_v1 = vadd.f32 %v9639_v60, %v842_v20  ;;  %8085 = vmatmul.msk.f32.gmra.mxu1 %vm418_vm0, %v1311_v39  ;;  %v1312_v60 = vld [vmem:[#allocation2 + $0x8e] sm:$0xff] }
 0x151   : > { %8179 = vmatmul.msk.f32.gmra.mxu3 %vm418_vm0, %v9741_v52 }
 0x152   : > { %8130 = vmatmul.msk.f32.gmra.mxu0 %vm418_vm0, %v9384_v51  ;;  %v9755_v24 = vadd.f32 %v1125_v16, %v995_v1  ;;  %v9766_v51 = vld [vmem:[#allocation2 + $0xa8] sm:$0xff] }
 0x153   : > { %8164 = vmatmul.msk.f32.gmra.mxu2 %vm418_vm0, %v9653_v18  ;;  %v543_v18 = vld [vmem:[%s9298_s15 + $0x70] sm:$0xff]  ;;  %v9806_v1 = vld [vmem:[#allocation2 + $0xa2] sm:$0xff] }
 0x154   : > { %v1686_v48 = vpop.f32.mrf.mxu3  ;;  %545 = vst.msk [vmem:[#allocation2 + $0xb6] sm:$0xff] %vm418_vm0, %v543_v18 }
 0x155   : > { %v844_v31 = vpop.f32.mrf.mxu1 }
 0x156   : > { %v9757_v32 = vpop.f32.mrf.mxu2  ;;  %v845_v10 = vadd.f32 %v844_v31, %v9493_v53  ;;  %v1131_v53 = vadd.f32 %v9475_v40, %v9509_v5  ;;  %v544_v5 = vld [vmem:[%s9298_s15 + $0x78] sm:$0xff] }
 0x157   : > { %v9762_v62 = vpop.f32.mrf.mxu0  ;;  %546 = vst.msk [vmem:[#allocation2 + $0xbe] sm:$0xff] %vm418_vm0, %v544_v5 }
 0x158   : > { %v996_v9 = vadd.f32 %v9662_v12, %v845_v10  ;;  %8086 = vmatmul.msk.f32.gmra.mxu1 %vm418_vm0, %v1312_v60  ;;  %v1281_v16 = vadd.f32 %v9644_v15, %v1131_v53  ;;  %v2220_v10 = vld [vmem:[#allocation2 + $0xaa] sm:$0xff] }
 0x159   : > { %8180 = vmatmul.msk.f32.gmra.mxu3 %vm418_vm0, %v9760_v14 }
 0x15a   : > { %8131 = vmatmul.msk.f32.gmra.mxu0 %vm418_vm0, %v9396_v56  ;;  %v9778_v12 = vadd.f32 %v1128_v17, %v996_v9 }
 0x15b   : > { %8165 = vmatmul.msk.f32.gmra.mxu2 %vm418_vm0, %v9766_v51  ;;  %v9790_v56 = vld [vmem:[#allocation2 + $0xb0] sm:$0xff] }
 0x15c   : > { %v1689_v37 = vpop.f32.mrf.mxu3 }
 0x15d   : > { %v1383_v26 = vpop.f32.mrf.mxu1 }
 0x15e   : > { %v9781_v63 = vpop.f32.mrf.mxu2  ;;  %v1431_v29 = vadd.f32 %v1383_v26, %v1281_v16  ;;  %v2221_v26 = vld [vmem:[#allocation2 + $0xb2] sm:$0xff] }
 0x15f   : > { %v9785_v49 = vpop.f32.mrf.mxu0 }
 0x160   : > { %v1581_v40 = vadd.f32 %v9679_v58, %v1431_v29  ;;  %8143 = vmatmul.msk.f32.vlgmr.msrb.gmra.mxu1 %vm418_vm0, %v9622_v59  ;;  %v1282_v58 = vadd.f32 %v9667_v6, %v9525_v41  ;;  %v1283_v6 = vadd.f32 %v9684_v55, %v9536_v45  ;;  %v1284_v55 = vadd.f32 %v9709_v2, %v9549_v50 }
 0x161   : > { %8181 = vmatmul.msk.f32.gmra.mxu3 %vm418_vm0, %v9783_v27  ;;  %v1285_v2 = vadd.f32 %v9726_v28, %v9563_v47  ;;  %v1286_v28 = vadd.f32 %v9743_v8, %v9583_v57  ;;  %v552_v57 = vld [vmem:[%s9298_s15 + $0x98] sm:$0xff] }
 0x162   : > { %8132 = vmatmul.msk.f32.gmra.mxu0 %vm418_vm0, %v9410_v61  ;;  %v9800_v15 = vadd.f32 %v1683_v33, %v1581_v40  ;;  %v9813_v61 = vld [vmem:[#allocation2 + $0xb8] sm:$0xff]  ;;  %554 = vst.msk [vmem:[#allocation2 + $0xe6] sm:$0xff] %vm418_vm0, %v552_v57 }
 0x163   : > { %8166 = vmatmul.msk.f32.gmra.mxu2 %vm418_vm0, %v9790_v56 }
 0x164   : > { %v1692_v59 = vpop.f32.mrf.mxu3 }
 0x165   : > { %v1386_v17 = vpop.f32.mrf.mxu1 }
 0x166   : > { %v9804_v39 = vpop.f32.mrf.mxu2  ;;  %v1432_v20 = vadd.f32 %v1386_v17, %v1282_v58  ;;  %v2222_v17 = vld [vmem:[#allocation2 + $0xba] sm:$0xff] }
 0x167   : > { %v9808_v46 = vpop.f32.mrf.mxu0 }
 0x168   : > { %v1582_v31 = vadd.f32 %v9704_v34, %v1432_v20  ;;  %8144 = vmatmul.msk.f32.gmra.mxu1 %vm418_vm0, %v9642_v13 }
 0x169   : > { %8182 = vmatmul.msk.f32.gmra.mxu3 %vm418_vm0, %v9806_v1 }
 0x16a   : > { %8133 = vmatmul.msk.f32.gmra.mxu0 %vm418_vm0, %v9422_v3  ;;  %v9821_v41 = vadd.f32 %v1686_v48, %v1582_v31  ;;  %v9832_v3 = vld [vmem:[#allocation2 + $0xc0] sm:$0xff] }
 0x16b   : > { %8167 = vmatmul.msk.f32.gmra.mxu2 %vm418_vm0, %v9813_v61  ;;  %v547_v48 = vld [vmem:[%s9298_s15 + $0x80] sm:$0xff] }
 0x16c   : > { %v1695_v34 = vpop.f32.mrf.mxu3  ;;  %549 = vst.msk [vmem:[#allocation2 + $0xca] sm:$0xff] %vm418_vm0, %v547_v48 }
 0x16d   : > { %v1389_v33 = vpop.f32.mrf.mxu1 }
 0x16e   : > { %v9825_v13 = vpop.f32.mrf.mxu2  ;;  %v1433_v60 = vadd.f32 %v1389_v33, %v1283_v6  ;;  %v1971_v6 = vld [vmem:[#allocation2 + $0xa9] sm:$0xff] }
 0x16f   : > { %v9827_v9 = vpop.f32.mrf.mxu0 }
 0x170   : > { %v1583_v18 = vadd.f32 %v9721_v19, %v1433_v60  ;;  %8145 = vmatmul.msk.f32.gmra.mxu1 %vm418_vm0, %v9665_v30 }
 0x171   : > { %8183 = vmatmul.msk.f32.gmra.mxu3 %vm418_vm0, %v2220_v10  ;;  %v2223_v10 = vld [vmem:[#allocation2 + $0xc2] sm:$0xff] }
 0x172   : > { %8134 = vmatmul.msk.f32.gmra.mxu0 %vm418_vm0, %v9432_v7  ;;  %v9841_v45 = vadd.f32 %v1689_v37, %v1583_v18  ;;  %v548_v37 = vld [vmem:[%s9298_s15 + $0x88] sm:$0xff] }
 0x173   : > { %8168 = vmatmul.msk.f32.gmra.mxu2 %vm418_vm0, %v9832_v3  ;;  %v9852_v7 = vld [vmem:[#allocation2 + $0xc8] sm:$0xff]  ;;  %550 = vst.msk [vmem:[#allocation2 + $0xd2] sm:$0xff] %vm418_vm0, %v548_v37 }
 0x174   : > { %v1698_v30 = vpop.f32.mrf.mxu3  ;;  %v2224_v37 = vld [vmem:[#allocation2 + $0xca] sm:$0xff] }
 0x175   : > { %v1392_v19 = vpop.f32.mrf.mxu1 }
 0x176   : > { %v9845_v53 = vpop.f32.mrf.mxu2  ;;  %v1434_v16 = vadd.f32 %v1392_v19, %v1284_v55 }
 0x177   : > { %v9847_v29 = vpop.f32.mrf.mxu0 }
 0x178   : > { %v1584_v40 = vadd.f32 %v9738_v43, %v1434_v16  ;;  %8146 = vmatmul.msk.f32.gmra.mxu1 %vm418_vm0, %v9682_v44  ;;  %v1972_v16 = vld [vmem:[#allocation2 + $0xb1] sm:$0xff] }
 0x179   : > { %8184 = vmatmul.msk.f32.gmra.mxu3 %vm418_vm0, %v2221_v26 }
 0x17a   : > { %8135 = vmatmul.msk.f32.gmra.mxu0 %vm418_vm0, %v9442_v11  ;;  %v9861_v50 = vadd.f32 %v1692_v59, %v1584_v40  ;;  %v9872_v11 = vld [vmem:[#allocation2 + $0xd0] sm:$0xff] }
 0x17b   : > { %8169 = vmatmul.msk.f32.gmra.mxu2 %vm418_vm0, %v9852_v7  ;;  %v551_v59 = vld [vmem:[%s9298_s15 + $0x90] sm:$0xff] }
 0x17c   : > { %v1701_v44 = vpop.f32.mrf.mxu3  ;;  %553 = vst.msk [vmem:[#allocation2 + $0xde] sm:$0xff] %vm418_vm0, %v551_v59  ;;  %v2225_v59 = vld [vmem:[#allocation2 + $0xd2] sm:$0xff] }
 0x17d   : > { %v1395_v43 = vpop.f32.mrf.mxu1 }
 0x17e   : > { %v9865_v5 = vpop.f32.mrf.mxu2  ;;  %v1435_v58 = vadd.f32 %v1395_v43, %v1285_v2 }
 0x17f   : > { %v9867_v20 = vpop.f32.mrf.mxu0 }
 0x180   : > { %v1585_v31 = vadd.f32 %v9757_v32, %v1435_v58  ;;  %8147 = vmatmul.msk.f32.gmra.mxu1 %vm418_vm0, %v9707_v54  ;;  %v1973_v58 = vld [vmem:[#allocation2 + $0xb9] sm:$0xff] }
 0x181   : > { %8185 = vmatmul.msk.f32.gmra.mxu3 %vm418_vm0, %v2222_v17 }
 0x182   : > { %8136 = vmatmul.msk.f32.gmra.mxu0 %vm418_vm0, %v9724_v23  ;;  %v9881_v47 = vadd.f32 %v1695_v34, %v1585_v31  ;;  %v8212_v34 = vld [vmem:[%s12465_s1 + $0x10] sm:$0xf] }
 0x183   : > { %8170 = vmatmul.msk.f32.gmra.mxu2 %vm418_vm0, %v9872_v11  ;;  %v9891_v48 = vld [vmem:[#allocation2 + $0xd8] sm:$0xff]  ;;  %8213 = vmatpush.msk.msra.mxu1 %vm662_vm1, %v8212_v34 }
 0x184   : > { %v1704_v54 = vpop.f32.mrf.mxu3  ;;  %v2226_v34 = vld [vmem:[#allocation2 + $0xda] sm:$0xff] }
 0x185   : > { %v1398_v32 = vpop.f32.mrf.mxu1 }
 0x186   : > { %v9885_v33 = vpop.f32.mrf.mxu2  ;;  %v1436_v60 = vadd.f32 %v1398_v32, %v1286_v28 }
 0x187   : > { %v9887_v18 = vpop.f32.mrf.mxu0 }
 0x188   : > { %v1586_v23 = vadd.f32 %v9781_v63, %v1436_v60  ;;  %8148 = vmatmul.msk.f32.gmra.mxu1 %vm418_vm0, %v1971_v6  ;;  %v1287_v63 = vadd.f32 %v9762_v62, %v9601_v4  ;;  %v1288_v62 = vadd.f32 %v9785_v49, %v9617_v38  ;;  %v1289_v49 = vadd.f32 %v9808_v46, %v9637_v22  ;;  %v1974_v60 = vld [vmem:[#allocation2 + $0xc1] sm:$0xff] }
 0x189   : > { %8186 = vmatmul.msk.f32.gmra.mxu3 %vm418_vm0, %v2223_v10  ;;  %v1290_v46 = vadd.f32 %v9827_v9, %v9660_v35  ;;  %v2364_v9 = vld [vmem:[#allocation2 + $0x94] sm:$0xff] }
 0x18a   : > { %8137 = vmatmul.msk.f32.gmra.mxu0 %vm418_vm0, %v9741_v52  ;;  %v9904_v8 = vadd.f32 %v1698_v30, %v1586_v23  ;;  %v9915_v30 = vld [vmem:[#allocation2 + $0xe0] sm:$0xff] }
 0x18b   : > { %8171 = vmatmul.msk.f32.gmra.mxu2 %vm418_vm0, %v9891_v48 }
 0x18c   : > { %v1707_v55 = vpop.f32.mrf.mxu3 }
 0x18d   : > { %v1401_v19 = vpop.f32.mrf.mxu1 }
 0x18e   : > { %v9908_v26 = vpop.f32.mrf.mxu2  ;;  %v1437_v40 = vadd.f32 %v1401_v19, %v1287_v63 }
 0x18f   : > { %v9910_v2 = vpop.f32.mrf.mxu0 }
 0x190   : > { %v1587_v52 = vadd.f32 %v9804_v39, %v1437_v40  ;;  %8149 = vmatmul.msk.f32.gmra.mxu1 %vm418_vm0, %v1972_v16  ;;  %v1975_v16 = vld [vmem:[#allocation2 + $0xc9] sm:$0xff] }
 0x191   : > { %8187 = vmatmul.msk.f32.gmra.mxu3 %vm418_vm0, %v2224_v37 }
 0x192   : > { %8138 = vmatmul.msk.f32.gmra.mxu0 %vm418_vm0, %v9760_v14  ;;  %v9921_v4 = vadd.f32 %v1701_v44, %v1587_v52  ;;  %v9931_v14 = vld [vmem:[#allocation2 + $0xe8] sm:$0xff]  ;;  %v555_v44 = vld [vmem:[%s9298_s15 + $0xa0] sm:$0xff] }
 0x193   : > { %8172 = vmatmul.msk.f32.gmra.mxu2 %vm418_vm0, %v9915_v30  ;;  %557 = vst.msk [vmem:[#allocation2 + $0xf2] sm:$0xff] %vm418_vm0, %v555_v44  ;;  %v2227_v52 = vld [vmem:[#allocation2 + $0xe2] sm:$0xff]  ;;  %v1976_v44 = vld [vmem:[#allocation2 + $0xd1] sm:$0xff] }
 0x194   : > { %v1710_v43 = vpop.f32.mrf.mxu3 }
 0x195   : > { %v1404_v39 = vpop.f32.mrf.mxu1 }
 0x196   : > { %v9925_v17 = vpop.f32.mrf.mxu2  ;;  %v1438_v31 = vadd.f32 %v1404_v39, %v1288_v62 }
 0x197   : > { %v9927_v28 = vpop.f32.mrf.mxu0 }
 0x198   : > { %v1588_v32 = vadd.f32 %v9825_v13, %v1438_v31  ;;  %8150 = vmatmul.msk.f32.gmra.mxu1 %vm418_vm0, %v1973_v58  ;;  %v1291_v31 = vadd.f32 %v9847_v29, %v9677_v25  ;;  %v2365_v29 = vld [vmem:[#allocation2 + $0x9c] sm:$0xff] }
 0x199   : > { %8188 = vmatmul.msk.f32.gmra.mxu3 %vm418_vm0, %v2225_v59 }
 0x19a   : > { %8139 = vmatmul.msk.f32.gmra.mxu0 %vm418_vm0, %v9783_v27  ;;  %v9940_v38 = vadd.f32 %v1704_v54, %v1588_v32  ;;  %v9952_v63 = vld [vmem:[#allocation2 + $0xf0] sm:$0xff]  ;;  %v556_v54 = vld [vmem:[%s9298_s15 + $0xa8] sm:$0xff] }
 0x19b   : > { %8173 = vmatmul.msk.f32.gmra.mxu2 %vm418_vm0, %v9931_v14  ;;  %558 = vst.msk [vmem:[#allocation2 + $0xfa] sm:$0xff] %vm418_vm0, %v556_v54 }
 0x19c   : > { %v9944_v13 = vpop.f32.mrf.mxu3 }
 0x19d   : > { %v1407_v6 = vpop.f32.mrf.mxu1 }
 0x19e   : > { %v9946_v10 = vpop.f32.mrf.mxu2  ;;  %v1439_v23 = vadd.f32 %v1407_v6, %v1289_v49  ;;  %v2228_v6 = vld [vmem:[#allocation2 + $0xea] sm:$0xff] }
 0x19f   : > { %v9948_v57 = vpop.f32.mrf.mxu0 }
 0x1a0   : > { %v1589_v27 = vadd.f32 %v9845_v53, %v1439_v23  ;;  %8151 = vmatmul.msk.f32.gmra.mxu1 %vm418_vm0, %v1974_v60  ;;  %v2662_v23 = vld [vmem:[#allocation2 + $0x96] sm:$0xff]  ;;  %v1296_v0 = vadd.f32 %v9948_v57, %v9778_v12  ;;  %v2370_v57 = vld [vmem:[#allocation2 + $0xc4] sm:$0xff] }
 0x1a1   : > { %8189 = vmatmul.msk.f32.gmra.mxu3 %vm418_vm0, %v2226_v34  ;;  %v8266_v34 = vld [vmem:[%s12465_s1 + $0x1c] sm:$0xf] }
 0x1a2   : > { %8140 = vmatmul.msk.f32.gmra.mxu0 %vm418_vm0, %v9806_v1  ;;  %v9961_v22 = vadd.f32 %v1707_v55, %v1589_v27  ;;  %v9973_v1 = vld [vmem:[%s12466_s2] ss:$0 sm:$0xff]  ;;  %v9977_v35 = vld [vmem:[#allocation2 + $0xf8] sm:$0xff]  ;;  %v1292_v27 = vadd.f32 %v9867_v20, %v9701_v36 }
 0x1a3   : > { %8174 = vmatmul.msk.f32.gmra.mxu2 %vm418_vm0, %v9952_v63  ;;  %8267 = vmatpush.msk.msra.mxu0 %vm662_vm1, %v8266_v34  ;;  %v10103_v34 = vld [vmem:[#allocation2 + $0xe9] sm:$0xff] }
 0x1a4   : > { %v9965_v53 = vpop.f32.mrf.mxu3 }
 0x1a5   : > { %v1410_v19 = vpop.f32.mrf.mxu1 }
 0x1a6   : > { %v9967_v40 = vpop.f32.mrf.mxu2  ;;  %v1440_v37 = vadd.f32 %v1410_v19, %v1290_v46  ;;  %v1977_v19 = vld [vmem:[#allocation2 + $0xd9] sm:$0xff] }
 0x1a7   : > { %v1833_v62 = vpop.f32.mrf.mxu0 }
 0x1a8   : > { %v1881_v39 = vadd.f32 %v1833_v62, %v9800_v15  ;;  %v1590_v55 = vadd.f32 %v9865_v5, %v1440_v37  ;;  %8152 = vmatmul.msk.f32.gmra.mxu1 %vm418_vm0, %v1975_v16  ;;  %v2229_v37 = vld [vmem:[#allocation2 + $0xf2] sm:$0xff]  ;;  %v2663_v62 = vld [vmem:[#allocation2 + $0x9e] sm:$0xff] }
 0x1a9   : > { %8190 = vmatmul.msk.f32.gmra.mxu3 %vm418_vm0, %v2227_v52  ;;  %v2366_v52 = vld [vmem:[#allocation2 + $0xa4] sm:$0xff] }
 0x1aa   : > { %v1901_v58 = vadd.f32 %v9973_v1, %v1881_v39  ;;  %8196 = vmatmul.msk.f32.vlgmr.msrb.gmra.mxu0 %vm418_vm0, %v2364_v9  ;;  %v9988_v15 = vadd.f32 %v1710_v43, %v1590_v55  ;;  %v3323_v55 = vld [vmem:[%s12465_s1] sm:$0xf]  ;;  %v1293_v9 = vadd.f32 %v9887_v18, %v9719_v21 }
 0x1ab   : > { %8175 = vmatmul.msk.f32.gmra.mxu2 %vm418_vm0, %v9977_v35  ;;  %8317 = vmatpush.msk.msra.mxu3 %vm662_vm1, %v3323_v55  ;;  %v2230_v21 = vld [vmem:[#allocation2 + $0xfa] sm:$0xff] }
 0x1ac   : > { %v1917_v5 = vmax.f32 %v1901_v58, 0.0  ;;  %v9994_v59 = vpop.f32.mrf.mxu3 }
 0x1ad   : > { %v1413_v32 = vpop.f32.mrf.mxu1 }
 0x1ae   : > { %1933 = vst.msk [vmem:[#allocation6] sm:$0xff] %vm470_vm2, %v1917_v5  ;;  %v9999_v49 = vpop.f32.mrf.mxu2  ;;  %v1441_v43 = vadd.f32 %v1413_v32, %v1291_v31  ;;  %v1978_v5 = vld [vmem:[#allocation2 + $0xe1] sm:$0xff] }
 0x1af   : > { %v10003_v60 = vpop.f32.mrf.mxu0 }
 0x1b0   : > { %v1591_v25 = vadd.f32 %v9885_v33, %v1441_v43  ;;  %8153 = vmatmul.msk.f32.gmra.mxu1 %vm418_vm0, %v1976_v44  ;;  %v2367_v43 = vld [vmem:[#allocation2 + $0xac] sm:$0xff] }
 0x1b1   : > { %8191 = vmatmul.msk.f32.gmra.mxu3 %vm418_vm0, %v2228_v6  ;;  %v2664_v6 = vld [vmem:[#allocation2 + $0xa6] sm:$0xff] }
 0x1b2   : > { %v10022_v33 = vadd.f32 %v9944_v13, %v1591_v25  ;;  %8197 = vmatmul.msk.f32.gmra.mxu0 %vm418_vm0, %v2365_v29 }
 0x1b3   : > { %8232 = vmatmul.msk.f32.vlgmr.msrb.gmra.mxu2 %vm418_vm0, %v2662_v23 }
 0x1b4   : > { %v10029_v54 = vpop.f32.mrf.mxu3 }
 0x1b5   : > { %v1416_v46 = vpop.f32.mrf.mxu1 }
 0x1b6   : > { %v10035_v13 = vpop.f32.mrf.mxu2  ;;  %v1442_v16 = vadd.f32 %v1416_v46, %v1292_v27 }
 0x1b7   : > { %v1839_v36 = vpop.f32.mrf.mxu0 }
 0x1b8   : > { %v1592_v20 = vadd.f32 %v9908_v26, %v1442_v16  ;;  %8154 = vmatmul.msk.f32.gmra.mxu1 %vm418_vm0, %v1977_v19  ;;  %v8302_v26 = vld [vmem:[%s12465_s1 + $0x4] sm:$0xf] }
 0x1b9   : > { %8192 = vmatmul.msk.f32.gmra.mxu3 %vm418_vm0, %v2229_v37  ;;  %8303 = vmatpush.msk.msra.mxu2 %vm662_vm1, %v8302_v26  ;;  %v2368_v37 = vld [vmem:[#allocation2 + $0xb4] sm:$0xff] }
 0x1ba   : > { %v10052_v39 = vadd.f32 %v9965_v53, %v1592_v20  ;;  %8198 = vmatmul.msk.f32.gmra.mxu0 %vm418_vm0, %v2366_v52  ;;  %v2665_v20 = vld [vmem:[#allocation2 + $0xae] sm:$0xff] }
 0x1bb   : > { %8233 = vmatmul.msk.f32.gmra.mxu2 %vm418_vm0, %v2663_v62 }
 0x1bc   : > { %v10065_v58 = vpop.f32.mrf.mxu3 }
 0x1bd   : > { %v1419_v53 = vpop.f32.mrf.mxu1 }
 0x1be   : > { %v10073_v31 = vpop.f32.mrf.mxu2  ;;  %v1443_v32 = vadd.f32 %v1419_v53, %v1293_v9 }
 0x1bf   : > { %v1842_v18 = vpop.f32.mrf.mxu0 }
 0x1c0   : > { %v1593_v44 = vadd.f32 %v9925_v17, %v1443_v32  ;;  %8155 = vmatmul.msk.f32.gmra.mxu1 %vm418_vm0, %v1978_v5  ;;  %v1294_v17 = vadd.f32 %v9910_v2, %v9736_v42  ;;  %v1882_v42 = vadd.f32 %v10003_v60, %v9821_v41  ;;  %v1883_v2 = vadd.f32 %v1839_v36, %v9841_v45  ;;  %v10145_v36 = vld [vmem:[#allocation2 + $0xf1] sm:$0xff]  ;;  %v2369_v32 = vld [vmem:[#allocation2 + $0xbc] sm:$0xff] }
 0x1c1   : > { %8193 = vmatmul.msk.f32.gmra.mxu3 %vm418_vm0, %v2230_v21  ;;  %v1884_v16 = vadd.f32 %v1842_v18, %v9861_v50  ;;  %v2666_v21 = vld [vmem:[#allocation2 + $0xb6] sm:$0xff] }
 0x1c2   : > { %v10090_v25 = vadd.f32 %v9994_v59, %v1593_v44  ;;  %8199 = vmatmul.msk.f32.gmra.mxu0 %vm418_vm0, %v2367_v43  ;;  %v1902_v45 = vadd.f32 %v9973_v1, %v1882_v42  ;;  %v1903_v50 = vadd.f32 %v9973_v1, %v1883_v2  ;;  %v2667_v42 = vld [vmem:[#allocation2 + $0xbe] sm:$0xff] }
 0x1c3   : > { %8234 = vmatmul.msk.f32.gmra.mxu2 %vm418_vm0, %v2664_v6  ;;  %v1904_v60 = vadd.f32 %v9973_v1, %v1884_v16  ;;  %v10177_v6 = vld [vmem:[#allocation2 + $0xf9] sm:$0xff] }
 0x1c4   : > { %v10099_v29 = vpop.f32.mrf.mxu3  ;;  %v1919_v26 = vmax.f32 %v1903_v50, 0.0 }
 0x1c5   : > { %v1422_v23 = vpop.f32.mrf.mxu1  ;;  %v1920_v53 = vmax.f32 %v1904_v60, 0.0 }
 0x1c6   : > { %v10105_v59 = vpop.f32.mrf.mxu2  ;;  %v1444_v27 = vadd.f32 %v1422_v23, %v1294_v17  ;;  %1935 = vst.msk [vmem:[#allocation6 + $0x10] sm:$0xff] %vm470_vm2, %v1919_v26 }
 0x1c7   : > { %v1845_v46 = vpop.f32.mrf.mxu0  ;;  %1936 = vst.msk [vmem:[#allocation6 + $0x18] sm:$0xff] %vm470_vm2, %v1920_v53  ;;  %v2371_v53 = vld [vmem:[#allocation2 + $0xcc] sm:$0xff] }
 0x1c8   : > { %v1594_v19 = vadd.f32 %v9946_v10, %v1444_v27  ;;  %8156 = vmatmul.msk.f32.gmra.mxu1 %vm418_vm0, %v10103_v34  ;;  %v1885_v41 = vadd.f32 %v1845_v46, %v9881_v47 }
 0x1c9   : > { %8250 = vmatmul.msk.f32.vlgmr.msrb.gmra.mxu3 %vm418_vm0, %v9766_v51  ;;  %v1295_v51 = vadd.f32 %v9927_v28, %v9755_v24  ;;  %v1918_v28 = vmax.f32 %v1902_v45, 0.0 }
 0x1ca   : > { %v10130_v10 = vadd.f32 %v10029_v54, %v1594_v19  ;;  %8200 = vmatmul.msk.f32.gmra.mxu0 %vm418_vm0, %v2368_v37  ;;  %v1905_v52 = vadd.f32 %v9973_v1, %v1885_v41 }
 0x1cb   : > { %8235 = vmatmul.msk.f32.gmra.mxu2 %vm418_vm0, %v2665_v20  ;;  %1934 = vst.msk [vmem:[#allocation6 + $0x8] sm:$0xff] %vm470_vm2, %v1918_v28 }
 0x1cc   : > { %v10140_v47 = vpop.f32.mrf.mxu3  ;;  %v1921_v18 = vmax.f32 %v1905_v52, 0.0 }
 0x1cd   : > { %v1425_v54 = vpop.f32.mrf.mxu1  ;;  %v4454_v19 = vld [vmem:[#allocation6 + $0x10] ss:$2 sm:$0x1] }
 0x1ce   : > { %v10148_v62 = vpop.f32.mrf.mxu2  ;;  %v1445_v24 = vadd.f32 %v1425_v54, %v1295_v51  ;;  %1937 = vst.msk [vmem:[#allocation6 + $0x20] sm:$0xff] %vm470_vm2, %v1921_v18  ;;  %v2513_v51 = vld [vmem:[#allocation2 + $0x95] sm:$0xff] }
 0x1cf   : > { %v1848_v55 = vpop.f32.mrf.mxu0 }
 0x1d0   : > { %v1595_v9 = vadd.f32 %v9967_v40, %v1445_v24  ;;  %8157 = vmatmul.msk.f32.gmra.mxu1 %vm418_vm0, %v10145_v36  ;;  %v1886_v5 = vadd.f32 %v1848_v55, %v9904_v8 }
 0x1d1   : > { %8251 = vmatmul.msk.f32.gmra.mxu3 %vm418_vm0, %v9790_v56 }
 0x1d2   : > { %v1906_v44 = vadd.f32 %v9973_v1, %v1886_v5  ;;  %v10168_v40 = vadd.f32 %v10065_v58, %v1595_v9  ;;  %8201 = vmatmul.msk.f32.gmra.mxu0 %vm418_vm0, %v2369_v32  ;;  %v4452_v2 = vld [vmem:[#allocation6] ss:$2 sm:$0xff]  ;;  %v4456_v46 = vld [vmem:[#allocation6 + $0x1] ss:$2 sm:$0xff]  ;;  %v2668_v5 = vld [vmem:[#allocation2 + $0xc6] sm:$0xff] }
 0x1d3   : > { %8236 = vmatmul.msk.f32.gmra.mxu2 %vm418_vm0, %v2666_v21 }
 0x1d4   : > { %v10174_v8 = vpop.f32.mrf.mxu3  ;;  %v1922_v56 = vmax.f32 %v1906_v44, 0.0 }
 0x1d5   : > { %v1428_v43 = vpop.f32.mrf.mxu1  ;;  %v4460_v20 = vld [vmem:[#allocation6 + $0x14] ss:$2 sm:$0xff]  ;;  %v4462_v41 = vld [vmem:[#allocation6 + $0x24] ss:$2 sm:$0x1] }
 0x1d6   : > { %v10180_v17 = vpop.f32.mrf.mxu2  ;;  %v1446_v58 = vadd.f32 %v1428_v43, %v1296_v0  ;;  %1938 = vst.msk [vmem:[#allocation6 + $0x28] sm:$0xff] %vm470_vm2, %v1922_v56  ;;  %v4466_v60 = vld [vmem:[#allocation6 + $0x25] ss:$2 sm:$0x1] }
 0x1d7   : > { %v1851_v23 = vpop.f32.mrf.mxu0  ;;  %v4470_v24 = vmax.f32 %v4462_v41, %v4466_v60  ;;  %v2374_v60 = vld [vmem:[#allocation2 + $0xe4] sm:$0xff] }
 0x1d8   : > { %v1596_v27 = vadd.f32 %v9999_v49, %v1446_v58  ;;  %8158 = vmatmul.msk.f32.gmra.mxu1 %vm418_vm0, %v10177_v6  ;;  %v1887_v12 = vadd.f32 %v1851_v23, %v9921_v4  ;;  %v4458_v49 = vld [vmem:[#allocation6 + $0x11] ss:$2 sm:$0x1]  ;;  %v2372_v23 = vld [vmem:[#allocation2 + $0xd4] sm:$0xff] }
 0x1d9   : > { %8252 = vmatmul.msk.f32.gmra.mxu3 %vm418_vm0, %v9813_v61  ;;  %v4464_v61 = vld [vmem:[#allocation6 + $0x15] ss:$2 sm:$0xff]  ;;  %v4468_v26 = vmax.f32 %v4454_v19, %v4458_v49  ;;  %v2670_v49 = vld [vmem:[#allocation2 + $0xd6] sm:$0xff] }
 0x1da   : > { %v1907_v16 = vadd.f32 %v9973_v1, %v1887_v12  ;;  %v10192_v37 = vadd.f32 %v10099_v29, %v1596_v27  ;;  %8202 = vmatmul.msk.f32.gmra.mxu0 %vm418_vm0, %v2370_v57  ;;  %v4467_v29 = vmax.f32 %v4452_v2, %v4456_v46  ;;  %v4469_v28 = vmax.f32 %v4460_v20, %v4464_v61  ;;  %v2669_v27 = vld [vmem:[#allocation2 + $0xce] sm:$0xff]  ;;  %v2515_v46 = vld [vmem:[#allocation2 + $0xa5] sm:$0xff] }
 0x1db   : > { %8237 = vmatmul.msk.f32.gmra.mxu2 %vm418_vm0, %v2667_v42 }
 0x1dc   : > { %v2306_v4 = vpop.f32.mrf.mxu3  ;;  %v1923_v45 = vmax.f32 %v1907_v16, 0.0  ;;  %v4471_v21 = vmax.f32 %v4467_v29, %v4469_v28  ;;  %v2373_v16 = vld [vmem:[#allocation2 + $0xdc] sm:$0xff] }
 0x1dd   : > { %v2051_v50 = vpop.f32.mrf.mxu1 }
 0x1de   : > { %v10195_v54 = vpop.f32.mrf.mxu2  ;;  %v2168_v52 = vadd.f32 %v10035_v13, %v2051_v50  ;;  %1939 = vst.msk [vmem:[#allocation6 + $0x30] sm:$0xff] %vm470_vm2, %v1923_v45  ;;  %v4472_v13 = vmax.f32 %v4468_v26, %v4470_v24 }
 0x1df   : > { %v1854_v55 = vpop.f32.mrf.mxu0  ;;  %4473 = vst.msk [vmem:[#allocation3 + $0x1c] sm:$0xff] %vm470_vm2, %v4471_v21 }
 0x1e0   : > { %8214 = vmatmul.msk.f32.vlgmr.msra.gmra.mxu1 %vm418_vm0, %v2513_v51  ;;  %v1888_v9 = vadd.f32 %v1854_v55, %v9940_v38  ;;  %v10202_v32 = vadd.f32 %v10140_v47, %v2168_v52  ;;  %4474 = vst.msk [vmem:[#allocation3 + $0x24] sm:$0x1] %vm493_vm3, %v4472_v13  ;;  %v2514_v47 = vld [vmem:[#allocation2 + $0x9d] sm:$0xff]  ;;  %v2516_v51 = vld [vmem:[#allocation2 + $0xad] sm:$0xff] }
 0x1e1   : > { %8253 = vmatmul.msk.f32.gmra.mxu3 %vm418_vm0, %v9832_v3  ;;  %v2671_v52 = vld [vmem:[#allocation2 + $0xde] sm:$0xff] }
 0x1e2   : > { %v1908_v18 = vadd.f32 %v9973_v1, %v1888_v9  ;;  %8203 = vmatmul.msk.f32.gmra.mxu0 %vm418_vm0, %v2371_v53 }
 0x1e3   : > { %8238 = vmatmul.msk.f32.gmra.mxu2 %vm418_vm0, %v2668_v5  ;;  %v2517_v5 = vld [vmem:[#allocation2 + $0xb5] sm:$0xff] }
 0x1e4   : > { %v2309_v38 = vpop.f32.mrf.mxu3  ;;  %v1924_v44 = vmax.f32 %v1908_v18, 0.0 }
 0x1e5   : > { %v2054_v0 = vpop.f32.mrf.mxu1  ;;  %v4476_v28 = vld [vmem:[#allocation6 + $0x28] ss:$2 sm:$0xff]  ;;  %v4480_v26 = vld [vmem:[#allocation6 + $0x29] ss:$2 sm:$0xff] }
 0x1e6   : > { %v10211_v56 = vpop.f32.mrf.mxu2  ;;  %v2171_v43 = vadd.f32 %v10073_v31, %v2054_v0  ;;  %1940 = vst.msk [vmem:[#allocation6 + $0x38] sm:$0xff] %vm470_vm2, %v1924_v44  ;;  %v4491_v0 = vmax.f32 %v4476_v28, %v4480_v26  ;;  %v2674_v26 = vld [vmem:[#allocation2 + $0xf6] sm:$0xff] }
 0x1e7   : > { %v1857_v3 = vpop.f32.mrf.mxu0 }
 0x1e8   : > { %8215 = vmatmul.msk.f32.gmra.mxu1 %vm418_vm0, %v2514_v47  ;;  %v1889_v58 = vadd.f32 %v1857_v3, %v9961_v22  ;;  %v10218_v12 = vadd.f32 %v10174_v8, %v2171_v43 }
 0x1e9   : > { %8254 = vmatmul.msk.f32.gmra.mxu3 %vm418_vm0, %v9852_v7 }
 0x1ea   : > { %v1909_v57 = vadd.f32 %v9973_v1, %v1889_v58  ;;  %8204 = vmatmul.msk.f32.gmra.mxu0 %vm418_vm0, %v2372_v23 }
 0x1eb   : > { %8239 = vmatmul.msk.f32.gmra.mxu2 %vm418_vm0, %v2669_v27  ;;  %v2375_v27 = vld [vmem:[#allocation2 + $0xec] sm:$0xff] }
 0x1ec   : > { %v2312_v31 = vpop.f32.mrf.mxu3  ;;  %v1925_v42 = vmax.f32 %v1909_v57, 0.0  ;;  %v2672_v57 = vld [vmem:[#allocation2 + $0xe6] sm:$0xff] }
 0x1ed   : > { %v2057_v2 = vpop.f32.mrf.mxu1  ;;  %v4482_v55 = vld [vmem:[#allocation6 + $0x39] ss:$2 sm:$0x1] }
 0x1ee   : > { %v10225_v19 = vpop.f32.mrf.mxu2  ;;  %v2174_v22 = vadd.f32 %v10105_v59, %v2057_v2  ;;  %1941 = vst.msk [vmem:[#allocation6 + $0x40] sm:$0xff] %vm470_vm2, %v1925_v42  ;;  %v559_v42 = vld [vmem:[%s9298_s15 + $0xb0] sm:$0xff] }
 0x1ef   : > { %v1860_v8 = vpop.f32.mrf.mxu0  ;;  %561 = vst.msk [vmem:[#allocation2 + $0x106] sm:$0xff] %vm418_vm0, %v559_v42 }
 0x1f0   : > { %8216 = vmatmul.msk.f32.gmra.mxu1 %vm418_vm0, %v2515_v46  ;;  %v1890_v7 = vadd.f32 %v1860_v8, %v9988_v15  ;;  %v10231_v20 = vadd.f32 %v2306_v4, %v2174_v22 }
 0x1f1   : > { %8255 = vmatmul.msk.f32.gmra.mxu3 %vm418_vm0, %v9872_v11 }
 0x1f2   : > { %v1910_v41 = vadd.f32 %v9973_v1, %v1890_v7  ;;  %8205 = vmatmul.msk.f32.gmra.mxu0 %vm418_vm0, %v2373_v16  ;;  %v2518_v7 = vld [vmem:[#allocation2 + $0xbd] sm:$0xff] }
 0x1f3   : > { %8240 = vmatmul.msk.f32.gmra.mxu2 %vm418_vm0, %v2670_v49 }
 0x1f4   : > { %v10238_v59 = vpop.f32.mrf.mxu3  ;;  %v1926_v45 = vmax.f32 %v1910_v41, 0.0 }
 0x1f5   : > { %v2060_v50 = vpop.f32.mrf.mxu1 }
 0x1f6   : > { %v10240_v61 = vpop.f32.mrf.mxu2  ;;  %v2177_v15 = vadd.f32 %v10148_v62, %v2060_v50  ;;  %1942 = vst.msk [vmem:[#allocation6 + $0x48] sm:$0xff] %vm470_vm2, %v1926_v45  ;;  %v4478_v62 = vld [vmem:[#allocation6 + $0x38] ss:$2 sm:$0x1]  ;;  %v2376_v45 = vld [vmem:[#allocation2 + $0xf4] sm:$0xff] }
 0x1f7   : > { %v1863_v4 = vpop.f32.mrf.mxu0  ;;  %v4492_v47 = vmax.f32 %v4478_v62, %v4482_v55  ;;  %v2673_v50 = vld [vmem:[#allocation2 + $0xee] sm:$0xff]  ;;  %v2377_v62 = vld [vmem:[#allocation2 + $0xfc] sm:$0xff] }
 0x1f8   : > { %8217 = vmatmul.msk.f32.gmra.mxu1 %vm418_vm0, %v2516_v51  ;;  %v1891_v11 = vadd.f32 %v1863_v4, %v10022_v33  ;;  %v10246_v24 = vadd.f32 %v2309_v38, %v2177_v15  ;;  %v8284_v15 = vld [vmem:[%s12465_s1 + $0x20] sm:$0xf] }
 0x1f9   : > { %8256 = vmatmul.msk.f32.gmra.mxu3 %vm418_vm0, %v9891_v48  ;;  %8285 = vmatpush.msk.msrb.mxu1 %vm662_vm1, %v8284_v15 }
 0x1fa   : > { %v1911_v29 = vadd.f32 %v9973_v1, %v1891_v11  ;;  %8206 = vmatmul.msk.f32.gmra.mxu0 %vm418_vm0, %v2374_v60  ;;  %v2519_v60 = vld [vmem:[#allocation2 + $0xc5] sm:$0xff] }
 0x1fb   : > { %8241 = vmatmul.msk.f32.gmra.mxu2 %vm418_vm0, %v2671_v52 }
 0x1fc   : > { %v10253_v9 = vpop.f32.mrf.mxu3  ;;  %v1927_v33 = vmax.f32 %v1911_v29, 0.0 }
 0x1fd   : > { %v2063_v53 = vpop.f32.mrf.mxu1  ;;  %v4484_v21 = vld [vmem:[#allocation6 + $0x3c] ss:$2 sm:$0xff]  ;;  %v4486_v13 = vld [vmem:[#allocation6 + $0x4c] ss:$2 sm:$0x1] }
 0x1fe   : > { %v10255_v18 = vpop.f32.mrf.mxu2  ;;  %v2180_v48 = vadd.f32 %v10180_v17, %v2063_v53  ;;  %v4488_v38 = vld [vmem:[#allocation6 + $0x3d] ss:$2 sm:$0xff]  ;;  %v4490_v44 = vld [vmem:[#allocation6 + $0x4d] ss:$2 sm:$0x1]  ;;  %1943 = vst.msk [vmem:[#allocation6 + $0x50] sm:$0xff] %vm470_vm2, %v1927_v33 }
 0x1ff   : > { %v4493_v43 = vmax.f32 %v4484_v21, %v4488_v38  ;;  %v4494_v3 = vmax.f32 %v4486_v13, %v4490_v44  ;;  %v1866_v58 = vpop.f32.mrf.mxu0  ;;  %v2675_v38 = vld [vmem:[#allocation2 + $0xfe] sm:$0xff] }
 0x200   : > { %8218 = vmatmul.msk.f32.gmra.mxu1 %vm418_vm0, %v2517_v5  ;;  %v1892_v23 = vadd.f32 %v1866_v58, %v10052_v39  ;;  %v10262_v2 = vadd.f32 %v2312_v31, %v2180_v48  ;;  %v2378_v48 = vld [vmem:[#allocation2 + $0x104] sm:$0xff] }
 0x201   : > { %8257 = vmatmul.msk.f32.gmra.mxu3 %vm418_vm0, %v9915_v30  ;;  %v4495_v17 = vmax.f32 %v4491_v0, %v4493_v43  ;;  %v4496_v46 = vmax.f32 %v4492_v47, %v4494_v3  ;;  %v563_v0 = vld [vmem:[%s9298_s15 + $0xc0] sm:$0xff]  ;;  %v2521_v3 = vld [vmem:[#allocation2 + $0xd5] sm:$0xff] }
 0x202   : > { %v1912_v22 = vadd.f32 %v9973_v1, %v1892_v23  ;;  %8207 = vmatmul.msk.f32.gmra.mxu0 %vm418_vm0, %v2375_v27  ;;  %565 = vst.msk [vmem:[#allocation2 + $0x11a] sm:$0xff] %vm418_vm0, %v563_v0  ;;  %v10372_v0 = vld [vmem:[#allocation2 + $0x101] sm:$0xff] }
 0x203   : > { %8242 = vmatmul.msk.f32.gmra.mxu2 %vm418_vm0, %v2672_v57  ;;  %4497 = vst.msk [vmem:[#allocation3 + $0x29] sm:$0xff] %vm470_vm2, %v4495_v17  ;;  %v2676_v17 = vld [vmem:[#allocation2 + $0x106] sm:$0xff] }
 0x204   : > { %v2321_v39 = vpop.f32.mrf.mxu3  ;;  %v1928_v8 = vmax.f32 %v1912_v22, 0.0  ;;  %4498 = vst.msk [vmem:[#allocation3 + $0x31] sm:$0x1] %vm493_vm3, %v4496_v46  ;;  %v564_v46 = vld [vmem:[%s9298_s15 + $0xc8] sm:$0xff] }
 0x205   : > { %v2066_v31 = vpop.f32.mrf.mxu1  ;;  %566 = vst.msk [vmem:[#allocation2 + $0x122] sm:$0xff] %vm418_vm0, %v564_v46  ;;  %v8346_v46 = vld [vmem:[%s12465_s1 + $0xc] sm:$0xf] }
 0x206   : > { %v10272_v30 = vpop.f32.mrf.mxu2  ;;  %v2183_v16 = vadd.f32 %v10195_v54, %v2066_v31  ;;  %1944 = vst.msk [vmem:[#allocation6 + $0x58] sm:$0xff] %vm470_vm2, %v1928_v8  ;;  %v560_v54 = vld [vmem:[%s9298_s15 + $0xb8] sm:$0xff]  ;;  %8347 = vmatpush.msk.msrb.mxu3 %vm662_vm1, %v8346_v46 }
 0x207   : > { %v1869_v49 = vpop.f32.mrf.mxu0  ;;  %562 = vst.msk [vmem:[#allocation2 + $0x10e] sm:$0xff] %vm418_vm0, %v560_v54  ;;  %v2522_v31 = vld [vmem:[#allocation2 + $0xdd] sm:$0xff] }
 0x208   : > { %8219 = vmatmul.msk.f32.gmra.mxu1 %vm418_vm0, %v2518_v7  ;;  %v1893_v41 = vadd.f32 %v1869_v49, %v10090_v25  ;;  %v10279_v51 = vadd.f32 %v10238_v59, %v2183_v16 }
 0x209   : > { %8258 = vmatmul.msk.f32.gmra.mxu3 %vm418_vm0, %v9931_v14 }
 0x20a   : > { %v1913_v4 = vadd.f32 %v9973_v1, %v1893_v41  ;;  %8208 = vmatmul.msk.f32.gmra.mxu0 %vm418_vm0, %v2376_v45 }
 0x20b   : > { %8243 = vmatmul.msk.f32.gmra.mxu2 %vm418_vm0, %v2673_v50 }
 0x20c   : > { %v2324_v25 = vpop.f32.mrf.mxu3  ;;  %v1929_v59 = vmax.f32 %v1913_v4, 0.0 }
 0x20d   : > { %v2069_v11 = vpop.f32.mrf.mxu1 }
 0x20e   : > { %v10292_v14 = vpop.f32.mrf.mxu2  ;;  %v2186_v52 = vadd.f32 %v10211_v56, %v2069_v11  ;;  %1945 = vst.msk [vmem:[#allocation6 + $0x60] sm:$0xff] %vm470_vm2, %v1929_v59  ;;  %v2379_v42 = vld [vmem:[#allocation2 + $0x10c] sm:$0xff] }
 0x20f   : > { %v1872_v29 = vpop.f32.mrf.mxu0  ;;  %v10342_v45 = vld [vmem:[#allocation2 + $0x108] sm:$0xff] }
 0x210   : > { %8220 = vmatmul.msk.f32.gmra.mxu1 %vm418_vm0, %v2519_v60  ;;  %v1894_v28 = vadd.f32 %v1872_v29, %v10130_v10  ;;  %v10299_v55 = vadd.f32 %v10253_v9, %v2186_v52  ;;  %v2520_v10 = vld [vmem:[#allocation2 + $0xcd] sm:$0xff] }
 0x211   : > { %8259 = vmatmul.msk.f32.gmra.mxu3 %vm418_vm0, %v9952_v63 }
 0x212   : > { %v1914_v33 = vadd.f32 %v9973_v1, %v1894_v28  ;;  %8209 = vmatmul.msk.f32.gmra.mxu0 %vm418_vm0, %v2377_v62  ;;  %v2677_v28 = vld [vmem:[#allocation2 + $0x10e] sm:$0xff] }
 0x213   : > { %8244 = vmatmul.msk.f32.gmra.mxu2 %vm418_vm0, %v2674_v26  ;;  %v2960_v62 = vld [vmem:[#allocation2 + $0xa9] sm:$0xff] }
 0x214   : > { %v10306_v56 = vpop.f32.mrf.mxu3  ;;  %v1930_v53 = vmax.f32 %v1914_v33, 0.0  ;;  %v8361_v33 = vld [vmem:[%s12465_s1 + $0x10] sm:$0xf] }
 0x215   : > { %v2072_v5 = vpop.f32.mrf.mxu1  ;;  %v4502_v8 = vld [vmem:[#allocation6 + $0x60] ss:$2 sm:$0x1]  ;;  %v4506_v7 = vld [vmem:[#allocation6 + $0x61] ss:$2 sm:$0x1]  ;;  %8362 = vmatpush.msk.msrb.mxu0 %vm662_vm1, %v8361_v33 }
 0x216   : > { %v10308_v21 = vpop.f32.mrf.mxu2  ;;  %v2189_v9 = vadd.f32 %v10225_v19, %v2072_v5  ;;  %1946 = vst.msk [vmem:[#allocation6 + $0x68] sm:$0xff] %vm470_vm2, %v1930_v53  ;;  %v4516_v11 = vmax.f32 %v4502_v8, %v4506_v7  ;;  %v2525_v8 = vld [vmem:[#allocation2 + $0xf5] sm:$0xff]  ;;  %v10410_v7 = vld [vmem:[#allocation2 + $0x120] sm:$0xff] }
 0x217   : > { %v1875_v13 = vpop.f32.mrf.mxu0 }
 0x218   : > { %8221 = vmatmul.msk.f32.gmra.mxu1 %vm418_vm0, %v2520_v10  ;;  %v1895_v63 = vadd.f32 %v1875_v13, %v10168_v40  ;;  %v10314_v44 = vadd.f32 %v2321_v39, %v2189_v9  ;;  %v4500_v39 = vld [vmem:[#allocation6 + $0x50] ss:$2 sm:$0xff] }
 0x219   : > { %8260 = vmatmul.msk.f32.gmra.mxu3 %vm418_vm0, %v9977_v35  ;;  %v10328_v35 = vld [vmem:[#allocation2 + $0x100] sm:$0xff] }
 0x21a   : > { %v1915_v47 = vadd.f32 %v9973_v1, %v1895_v63  ;;  %8210 = vmatmul.msk.f32.gmra.mxu0 %vm418_vm0, %v2378_v48  ;;  %v2523_v10 = vld [vmem:[#allocation2 + $0xe5] sm:$0xff]  ;;  %v10367_v63 = vld [vmem:[#allocation2 + $0x110] sm:$0xff] }
 0x21b   : > { %8245 = vmatmul.msk.f32.gmra.mxu2 %vm418_vm0, %v2675_v38  ;;  %v2961_v38 = vld [vmem:[#allocation2 + $0xb1] sm:$0xff] }
 0x21c   : > { %v10323_v19 = vpop.f32.mrf.mxu3  ;;  %v1931_v40 = vmax.f32 %v1915_v47, 0.0 }
 0x21d   : > { %v2075_v43 = vpop.f32.mrf.mxu1 }
 0x21e   : > { %v10325_v58 = vpop.f32.mrf.mxu2  ;;  %v2192_v23 = vadd.f32 %v10240_v61, %v2075_v43  ;;  %1947 = vst.msk [vmem:[#allocation6 + $0x70] sm:$0xff] %vm470_vm2, %v1931_v40  ;;  %v2524_v43 = vld [vmem:[#allocation2 + $0xed] sm:$0xff] }
 0x21f   : > { %v1878_v27 = vpop.f32.mrf.mxu0 }
 0x220   : > { %8222 = vmatmul.msk.f32.gmra.mxu1 %vm418_vm0, %v2521_v3  ;;  %v1896_v57 = vadd.f32 %v1878_v27, %v10192_v37  ;;  %v10334_v22 = vadd.f32 %v2324_v25, %v2192_v23  ;;  %v4504_v37 = vld [vmem:[#allocation6 + $0x51] ss:$2 sm:$0xff]  ;;  %v10385_v27 = vld [vmem:[#allocation2 + $0x118] sm:$0xff] }
 0x221   : > { %8261 = vmatmul.msk.f32.gmra.mxu3 %vm418_vm0, %v10328_v35  ;;  %v4515_v59 = vmax.f32 %v4500_v39, %v4504_v37 }
 0x222   : > { %v1916_v61 = vadd.f32 %v9973_v1, %v1896_v57  ;;  %8211 = vmatmul.msk.f32.gmra.mxu0 %vm418_vm0, %v2379_v42  ;;  %v2962_v42 = vld [vmem:[#allocation2 + $0xb9] sm:$0xff] }
 0x223   : > { %8246 = vmatmul.msk.f32.gmra.mxu2 %vm418_vm0, %v2676_v17  ;;  %v10394_v17 = vld [vmem:[#allocation2 + $0x109] sm:$0xff] }
 0x224   : > { %v2333_v16 = vpop.f32.mrf.mxu3  ;;  %v1932_v49 = vmax.f32 %v1916_v61, 0.0 }
 0x225   : > { %v2078_v41 = vpop.f32.mrf.mxu1  ;;  %v4508_v50 = vld [vmem:[#allocation6 + $0x64] ss:$2 sm:$0xff]  ;;  %v4510_v15 = vld [vmem:[#allocation6 + $0x74] ss:$2 sm:$0x1] }
 0x226   : > { %v10344_v54 = vpop.f32.mrf.mxu2  ;;  %v2195_v1 = vadd.f32 %v10255_v18, %v2078_v41  ;;  %v4512_v4 = vld [vmem:[#allocation6 + $0x65] ss:$2 sm:$0xff]  ;;  %v4514_v25 = vld [vmem:[#allocation6 + $0x75] ss:$2 sm:$0x1]  ;;  %1948 = vst.msk [vmem:[#allocation6 + $0x78] sm:$0xff] %vm470_vm2, %v1932_v49 }
 0x227   : > { %v4517_v60 = vmax.f32 %v4508_v50, %v4512_v4  ;;  %v4518_v52 = vmax.f32 %v4510_v15, %v4514_v25  ;;  %v10348_v29 = vpop.f32.mrf.mxu0  ;;  %v2963_v49 = vld [vmem:[#allocation2 + $0xc1] sm:$0xff]  ;;  %v10415_v41 = vld [vmem:[#allocation2 + $0x111] sm:$0xff] }
 0x228   : > { %8223 = vmatmul.msk.f32.gmra.mxu1 %vm418_vm0, %v2522_v31  ;;  %v10352_v26 = vadd.f32 %v10306_v56, %v2195_v1  ;;  %v2526_v1 = vld [vmem:[#allocation2 + $0xfd] sm:$0xff] }
 0x229   : > { %8262 = vmatmul.msk.f32.gmra.mxu3 %vm418_vm0, %v10342_v45  ;;  %v4519_v18 = vmax.f32 %v4515_v59, %v4517_v60  ;;  %v4520_v53 = vmax.f32 %v4516_v11, %v4518_v52  ;;  %v2964_v11 = vld [vmem:[#allocation2 + $0xc9] sm:$0xff]  ;;  %v10430_v60 = vld [vmem:[#allocation2 + $0x119] sm:$0xff] }
 0x22a   : > { %8268 = vmatmul.msk.f32.vlgmr.msra.gmra.mxu0 %vm418_vm0, %v2960_v62  ;;  %v2527_v62 = vld [vmem:[#allocation2 + $0x105] sm:$0xff] }
 0x22b   : > { %8247 = vmatmul.msk.f32.gmra.mxu2 %vm418_vm0, %v2677_v28  ;;  %4521 = vst.msk [vmem:[#allocation3 + $0x36] sm:$0xff] %vm470_vm2, %v4519_v18 }
 0x22c   : > { %v2336_v5 = vpop.f32.mrf.mxu3  ;;  %4522 = vst.msk [vmem:[#allocation3 + $0x3e] sm:$0x1] %vm493_vm3, %v4520_v53 }
 0x22d   : > { %v2081_v56 = vpop.f32.mrf.mxu1 }
 0x22e   : > { %v10364_v9 = vpop.f32.mrf.mxu2  ;;  %v2198_v13 = vadd.f32 %v10272_v30, %v2081_v56  ;;  %v10445_v56 = vld [vmem:[#allocation2 + $0x121] sm:$0xff] }
 0x22f   : > { %v10370_v48 = vpop.f32.mrf.mxu0 }
 0x230   : > { %8224 = vmatmul.msk.f32.gmra.mxu1 %vm418_vm0, %v2523_v10  ;;  %v10375_v47 = vadd.f32 %v10323_v19, %v2198_v13  ;;  %v8331_v19 = vld [vmem:[%s12465_s1 + $0x8] sm:$0xf] }
 0x231   : > { %8263 = vmatmul.msk.f32.gmra.mxu3 %vm418_vm0, %v10367_v63  ;;  %8332 = vmatpush.msk.msrb.mxu2 %vm662_vm1, %v8331_v19 }
 0x232   : > { %8269 = vmatmul.msk.f32.gmra.mxu0 %vm418_vm0, %v2961_v38  ;;  %v2528_v38 = vld [vmem:[#allocation2 + $0x10d] sm:$0xff] }
 0x233   : > { %8304 = vmatmul.msk.f32.vlgmr.msra.gmra.mxu2 %vm418_vm0, %v10372_v0 }
 0x234   : > { %v2339_v30 = vpop.f32.mrf.mxu3 }
 0x235   : > { %v2084_v40 = vpop.f32.mrf.mxu1 }
 0x236   : > { %v10382_v3 = vpop.f32.mrf.mxu2  ;;  %v2201_v23 = vadd.f32 %v10292_v14, %v2084_v40 }
 0x237   : > { %v10392_v57 = vpop.f32.mrf.mxu0 }
 0x238   : > { %8225 = vmatmul.msk.f32.gmra.mxu1 %vm418_vm0, %v2524_v43  ;;  %v10399_v14 = vadd.f32 %v2333_v16, %v2201_v23  ;;  %v2966_v23 = vld [vmem:[#allocation2 + $0xd9] sm:$0xff] }
 0x239   : > { %8264 = vmatmul.msk.f32.gmra.mxu3 %vm418_vm0, %v10385_v27 }
 0x23a   : > { %8270 = vmatmul.msk.f32.gmra.mxu0 %vm418_vm0, %v2962_v42  ;;  %v568_v42 = vld [vmem:[%s9298_s15 + $0xd8] sm:$0xff] }
 0x23b   : > { %8305 = vmatmul.msk.f32.gmra.mxu2 %vm418_vm0, %v10394_v17  ;;  %570 = vst.msk [vmem:[#allocation2 + $0x136] sm:$0xff] %vm418_vm0, %v568_v42 }
 0x23c   : > { %v2342_v61 = vpop.f32.mrf.mxu3 }
 0x23d   : > { %v2087_v39 = vpop.f32.mrf.mxu1 }
 0x23e   : > { %v10407_v31 = vpop.f32.mrf.mxu2  ;;  %v2204_v37 = vadd.f32 %v10308_v21, %v2087_v39  ;;  %v3109_v39 = vld [vmem:[#allocation2 + $0xaa] sm:$0xff] }
 0x23f   : > { %v10413_v16 = vpop.f32.mrf.mxu0 }
 0x240   : > { %8226 = vmatmul.msk.f32.gmra.mxu1 %vm418_vm0, %v2525_v8  ;;  %v10417_v50 = vadd.f32 %v2336_v5, %v2204_v37  ;;  %v2965_v5 = vld [vmem:[#allocation2 + $0xd1] sm:$0xff] }
 0x241   : > { %8265 = vmatmul.msk.f32.gmra.mxu3 %vm418_vm0, %v10410_v7 }
 0x242   : > { %8271 = vmatmul.msk.f32.gmra.mxu0 %vm418_vm0, %v2963_v49 }
 0x243   : > { %8306 = vmatmul.msk.f32.gmra.mxu2 %vm418_vm0, %v10415_v41 }
 0x244   : > { %v2345_v21 = vpop.f32.mrf.mxu3 }
 0x245   : > { %v2090_v15 = vpop.f32.mrf.mxu1 }
 0x246   : > { %v10424_v4 = vpop.f32.mrf.mxu2  ;;  %v2207_v25 = vadd.f32 %v10325_v58, %v2090_v15 }
 0x247   : > { %v10428_v59 = vpop.f32.mrf.mxu0 }
 0x248   : > { %8227 = vmatmul.msk.f32.gmra.mxu1 %vm418_vm0, %v2526_v1  ;;  %v10432_v52 = vadd.f32 %v2339_v30, %v2207_v25  ;;  %v3110_v25 = vld [vmem:[#allocation2 + $0xb2] sm:$0xff] }
 0x249   : > { %8318 = vmatmul.msk.f32.vlgmr.msra.gmra.mxu3 %vm418_vm0, %v10328_v35  ;;  %v567_v35 = vld [vmem:[%s9298_s15 + $0xd0] sm:$0xff] }
 0x24a   : > { %8272 = vmatmul.msk.f32.gmra.mxu0 %vm418_vm0, %v2964_v11  ;;  %569 = vst.msk [vmem:[#allocation2 + $0x12e] sm:$0xff] %vm418_vm0, %v567_v35  ;;  %v3111_v35 = vld [vmem:[#allocation2 + $0xba] sm:$0xff] }
 0x24b   : > { %8307 = vmatmul.msk.f32.gmra.mxu2 %vm418_vm0, %v10430_v60 }
 0x24c   : > { %v2896_v28 = vpop.f32.mrf.mxu3 }
 0x24d   : > { %v2093_v58 = vpop.f32.mrf.mxu1 }
 0x24e   : > { %v10439_v18 = vpop.f32.mrf.mxu2  ;;  %v2210_v33 = vadd.f32 %v10344_v54, %v2093_v58 }
 0x24f   : > { %v10443_v53 = vpop.f32.mrf.mxu0 }
 0x250   : > { %8228 = vmatmul.msk.f32.gmra.mxu1 %vm418_vm0, %v2527_v62  ;;  %v10448_v10 = vadd.f32 %v2342_v61, %v2210_v33  ;;  %v10498_v33 = vld [vmem:[#allocation2 + $0x139] sm:$0xff] }
 0x251   : > { %8319 = vmatmul.msk.f32.gmra.mxu3 %vm418_vm0, %v10342_v45  ;;  %v10462_v45 = vld [vmem:[#allocation2 + $0x129] sm:$0xff]  ;;  %v10483_v15 = vld [vmem:[#allocation2 + $0x131] sm:$0xff] }
 0x252   : > { %8273 = vmatmul.msk.f32.gmra.mxu0 %vm418_vm0, %v2965_v5 }
 0x253   : > { %8308 = vmatmul.msk.f32.gmra.mxu2 %vm418_vm0, %v10445_v56 }
 0x254   : > { %v2899_v54 = vpop.f32.mrf.mxu3 }
 0x255   : > { %v2096_v13 = vpop.f32.mrf.mxu1 }
 0x256   : > { %v10456_v30 = vpop.f32.mrf.mxu2  ;;  %v2213_v40 = vadd.f32 %v10364_v9, %v2096_v13  ;;  %v2497_v9 = vadd.f32 %v10348_v29, %v10202_v32  ;;  %v2498_v29 = vadd.f32 %v10370_v48, %v10218_v12  ;;  %v2499_v48 = vadd.f32 %v10392_v57, %v10231_v20 }
 0x257   : > { %v10460_v43 = vpop.f32.mrf.mxu0  ;;  %v2500_v57 = vadd.f32 %v10413_v16, %v10246_v24  ;;  %v2501_v16 = vadd.f32 %v10428_v59, %v10262_v2  ;;  %v2502_v59 = vadd.f32 %v10443_v53, %v10279_v51  ;;  %v8376_v51 = vld [vmem:[%s12465_s1 + $0x14] sm:$0xf] }
 0x258   : > { %8229 = vmatmul.msk.f32.gmra.mxu1 %vm418_vm0, %v2528_v38  ;;  %v10464_v19 = vadd.f32 %v2345_v21, %v2213_v40  ;;  %v2967_v21 = vld [vmem:[#allocation2 + $0xe1] sm:$0xff]  ;;  %v2503_v53 = vadd.f32 %v10460_v43, %v10299_v55 }
 0x259   : > { %8320 = vmatmul.msk.f32.gmra.mxu3 %vm418_vm0, %v10367_v63  ;;  %v10514_v38 = vld [vmem:[#allocation2 + $0x128] sm:$0xff]  ;;  %8377 = vmatpush.msk.msra.mxu1 %vm662_vm1, %v8376_v51 }
 0x25a   : > { %8274 = vmatmul.msk.f32.gmra.mxu0 %vm418_vm0, %v2966_v23 }
 0x25b   : > { %8309 = vmatmul.msk.f32.gmra.mxu2 %vm418_vm0, %v10462_v45 }
 0x25c   : > { %v2902_v46 = vpop.f32.mrf.mxu3 }
 0x25d   : > { %v2598_v61 = vpop.f32.mrf.mxu1 }
 0x25e   : > { %v10475_v8 = vpop.f32.mrf.mxu2  ;;  %v2646_v37 = vadd.f32 %v2598_v61, %v2497_v9  ;;  %v3112_v9 = vld [vmem:[#allocation2 + $0xc2] sm:$0xff] }
 0x25f   : > { %v10479_v63 = vpop.f32.mrf.mxu0 }
 0x260   : > { %v2795_v49 = vadd.f32 %v10382_v3, %v2646_v37  ;;  %8286 = vmatmul.msk.f32.vlgmr.msrb.gmra.mxu1 %vm418_vm0, %v3109_v39  ;;  %v10536_v37 = vld [vmem:[#allocation2 + $0x130] sm:$0xff] }
 0x261   : > { %8321 = vmatmul.msk.f32.gmra.mxu3 %vm418_vm0, %v10385_v27 }
 0x262   : > { %v10487_v32 = vadd.f32 %v2896_v28, %v2795_v49  ;;  %8275 = vmatmul.msk.f32.gmra.mxu0 %vm418_vm0, %v2967_v21  ;;  %v571_v28 = vld [vmem:[%s9298_s15 + $0xe0] sm:$0xff] }
 0x263   : > { %8310 = vmatmul.msk.f32.gmra.mxu2 %vm418_vm0, %v10483_v15  ;;  %573 = vst.msk [vmem:[#allocation2 + $0x142] sm:$0xff] %vm418_vm0, %v571_v28 }
 0x264   : > { %v2905_v3 = vpop.f32.mrf.mxu3 }
 0x265   : > { %v2601_v1 = vpop.f32.mrf.mxu1 }
 0x266   : > { %v10492_v11 = vpop.f32.mrf.mxu2  ;;  %v2647_v58 = vadd.f32 %v2601_v1, %v2498_v29  ;;  %v3113_v1 = vld [vmem:[#allocation2 + $0xca] sm:$0xff] }
 0x267   : > { %v10496_v62 = vpop.f32.mrf.mxu0 }
 0x268   : > { %v2796_v27 = vadd.f32 %v10407_v31, %v2647_v58  ;;  %8287 = vmatmul.msk.f32.gmra.mxu1 %vm418_vm0, %v3110_v25 }
 0x269   : > { %8322 = vmatmul.msk.f32.gmra.mxu3 %vm418_vm0, %v10410_v7 }
 0x26a   : > { %v10506_v12 = vadd.f32 %v2899_v54, %v2796_v27  ;;  %8276 = vmatmul.msk.f32.gmra.mxu0 %vm418_vm0, %v10103_v34  ;;  %v10520_v23 = vld [vmem:[#allocation2 + $0x141] sm:$0xff]  ;;  %v10558_v27 = vld [vmem:[#allocation2 + $0x138] sm:$0xff] }
 0x26b   : > { %8311 = vmatmul.msk.f32.gmra.mxu2 %vm418_vm0, %v10498_v33  ;;  %v572_v34 = vld [vmem:[%s9298_s15 + $0xe8] sm:$0xff] }
 0x26c   : > { %v2908_v31 = vpop.f32.mrf.mxu3  ;;  %574 = vst.msk [vmem:[#allocation2 + $0x14a] sm:$0xff] %vm418_vm0, %v572_v34  ;;  %v10580_v34 = vld [vmem:[#allocation2 + $0x140] sm:$0xff] }
 0x26d   : > { %v2604_v5 = vpop.f32.mrf.mxu1 }
 0x26e   : > { %v10512_v13 = vpop.f32.mrf.mxu2  ;;  %v2648_v7 = vadd.f32 %v2604_v5, %v2499_v48 }
 0x26f   : > { %v10518_v54 = vpop.f32.mrf.mxu0 }
 0x270   : > { %v2797_v40 = vadd.f32 %v10424_v4, %v2648_v7  ;;  %8288 = vmatmul.msk.f32.gmra.mxu1 %vm418_vm0, %v3111_v35  ;;  %v3114_v35 = vld [vmem:[#allocation2 + $0xd2] sm:$0xff] }
 0x271   : > { %8323 = vmatmul.msk.f32.gmra.mxu3 %vm418_vm0, %v10514_v38 }
 0x272   : > { %v10528_v20 = vadd.f32 %v2902_v46, %v2797_v40  ;;  %8277 = vmatmul.msk.f32.gmra.mxu0 %vm418_vm0, %v10145_v36  ;;  %v575_v36 = vld [vmem:[%s9298_s15 + $0xf0] sm:$0xff] }
 0x273   : > { %8312 = vmatmul.msk.f32.gmra.mxu2 %vm418_vm0, %v10520_v23  ;;  %v10542_v21 = vld [vmem:[#allocation2 + $0x149] sm:$0xff]  ;;  %577 = vst.msk [vmem:[#allocation2 + $0x156] sm:$0xff] %vm418_vm0, %v575_v36 }
 0x274   : > { %v2911_v4 = vpop.f32.mrf.mxu3 }
 0x275   : > { %v2607_v42 = vpop.f32.mrf.mxu1 }
 0x276   : > { %v10534_v61 = vpop.f32.mrf.mxu2  ;;  %v2649_v39 = vadd.f32 %v2607_v42, %v2500_v57 }
 0x277   : > { %v10540_v46 = vpop.f32.mrf.mxu0 }
 0x278   : > { %v2798_v49 = vadd.f32 %v10439_v18, %v2649_v39  ;;  %8289 = vmatmul.msk.f32.gmra.mxu1 %vm418_vm0, %v3112_v9  ;;  %v3115_v39 = vld [vmem:[#allocation2 + $0xda] sm:$0xff] }
 0x279   : > { %8324 = vmatmul.msk.f32.gmra.mxu3 %vm418_vm0, %v10536_v37 }
 0x27a   : > { %v10550_v24 = vadd.f32 %v2905_v3, %v2798_v49  ;;  %8278 = vmatmul.msk.f32.gmra.mxu0 %vm418_vm0, %v10177_v6  ;;  %v10564_v48 = vld [vmem:[#allocation2 + $0x151] sm:$0xff] }
 0x27b   : > { %8313 = vmatmul.msk.f32.gmra.mxu2 %vm418_vm0, %v10542_v21  ;;  %v576_v6 = vld [vmem:[%s9298_s15 + $0xf8] sm:$0xff] }
 0x27c   : > { %v2914_v18 = vpop.f32.mrf.mxu3  ;;  %578 = vst.msk [vmem:[#allocation2 + $0x15e] sm:$0xff] %vm418_vm0, %v576_v6 }
 0x27d   : > { %v2610_v29 = vpop.f32.mrf.mxu1 }
 0x27e   : > { %v10556_v25 = vpop.f32.mrf.mxu2  ;;  %v2650_v58 = vadd.f32 %v2610_v29, %v2501_v16  ;;  %v10604_v16 = vld [vmem:[#allocation2 + $0x148] sm:$0xff] }
 0x27f   : > { %v10562_v3 = vpop.f32.mrf.mxu0 }
 0x280   : > { %v2799_v28 = vadd.f32 %v10456_v30, %v2650_v58  ;;  %8290 = vmatmul.msk.f32.gmra.mxu1 %vm418_vm0, %v3113_v1  ;;  %v3116_v58 = vld [vmem:[#allocation2 + $0xe2] sm:$0xff] }
 0x281   : > { %8325 = vmatmul.msk.f32.gmra.mxu3 %vm418_vm0, %v10558_v27 }
 0x282   : > { %v10572_v2 = vadd.f32 %v2908_v31, %v2799_v28  ;;  %8279 = vmatmul.msk.f32.gmra.mxu0 %vm418_vm0, %v10372_v0 }
 0x283   : > { %8314 = vmatmul.msk.f32.gmra.mxu2 %vm418_vm0, %v10564_v48  ;;  %v10586_v42 = vld [vmem:[#allocation2 + $0x159] sm:$0xff]  ;;  %v10610_v1 = vld [vmem:[#allocation2 + $0x161] sm:$0xff] }
 0x284   : > { %v2917_v30 = vpop.f32.mrf.mxu3  ;;  %12486 = vst [vmem:[#allocation18_spill] sm:$0xff] %v10586_v42 }
 0x285   : > { %v2613_v5 = vpop.f32.mrf.mxu1  ;;  %12487 = vst [vmem:[#allocation19_spill] sm:$0xff] %v10610_v1 }
 0x286   : > { %v10578_v7 = vpop.f32.mrf.mxu2  ;;  %v2651_v40 = vadd.f32 %v2613_v5, %v2502_v59  ;;  %v10624_v59 = vld [vmem:[#allocation2 + $0x150] sm:$0xff]  ;;  %v10626_v5 = vld [vmem:[#allocation2 + $0x102] sm:$0xff] }
 0x287   : > { %v10584_v31 = vpop.f32.mrf.mxu0 }
 0x288   : > { %v2800_v57 = vadd.f32 %v10475_v8, %v2651_v40  ;;  %8291 = vmatmul.msk.f32.gmra.mxu1 %vm418_vm0, %v3114_v35  ;;  %v3117_v40 = vld [vmem:[#allocation2 + $0xea] sm:$0xff] }
 0x289   : > { %8326 = vmatmul.msk.f32.gmra.mxu3 %vm418_vm0, %v10580_v34 }
 0x28a   : > { %v10596_v0 = vadd.f32 %v2911_v4, %v2800_v57  ;;  %8280 = vmatmul.msk.f32.gmra.mxu0 %vm418_vm0, %v10394_v17  ;;  %v2504_v17 = vadd.f32 %v10479_v63, %v10314_v44 }
 0x28b   : > { %8315 = vmatmul.msk.f32.gmra.mxu2 %vm418_vm0, %v10586_v42 }
 0x28c   : > { %v2920_v8 = vpop.f32.mrf.mxu3 }
 0x28d   : > { %v2616_v9 = vpop.f32.mrf.mxu1 }
 0x28e   : > { %v10602_v49 = vpop.f32.mrf.mxu2  ;;  %v2652_v36 = vadd.f32 %v2616_v9, %v2503_v53  ;;  %v10644_v53 = vld [vmem:[#allocation2 + $0x158] sm:$0xff]  ;;  %v10646_v9 = vld [vmem:[#allocation2 + $0x10a] sm:$0xff] }
 0x28f   : > { %v10608_v4 = vpop.f32.mrf.mxu0 }
 0x290   : > { %v2801_v29 = vadd.f32 %v10492_v11, %v2652_v36  ;;  %8292 = vmatmul.msk.f32.gmra.mxu1 %vm418_vm0, %v3115_v39 }
 0x291   : > { %8327 = vmatmul.msk.f32.gmra.mxu3 %vm418_vm0, %v10604_v16 }
 0x292   : > { %v10616_v55 = vadd.f32 %v2914_v18, %v2801_v29  ;;  %8281 = vmatmul.msk.f32.gmra.mxu0 %vm418_vm0, %v10415_v41  ;;  %v2505_v41 = vadd.f32 %v10496_v62, %v10334_v22  ;;  %v8391_v22 = vld [vmem:[%s12465_s1 + $0x18] sm:$0xf] }
 0x293   : > { %8316 = vmatmul.msk.f32.gmra.mxu2 %vm418_vm0, %v10610_v1 }
 0x294   : > { %v2923_v43 = vpop.f32.mrf.mxu3  ;;  %8392 = vmatpush.msk.msra.mxu2 %vm662_vm1, %v8391_v22 }
 0x295   : > { %v2619_v11 = vpop.f32.mrf.mxu1 }
 0x296   : > { %v10622_v28 = vpop.f32.mrf.mxu2  ;;  %v2653_v6 = vadd.f32 %v2619_v11, %v2504_v17  ;;  %v3118_v17 = vld [vmem:[#allocation2 + $0xf2] sm:$0xff] }
 0x297   : > { %v10630_v18 = vpop.f32.mrf.mxu0 }
 0x298   : > { %v2802_v35 = vadd.f32 %v10512_v13, %v2653_v6  ;;  %8293 = vmatmul.msk.f32.gmra.mxu1 %vm418_vm0, %v3116_v58  ;;  %v10672_v6 = vld [vmem:[#allocation2 + $0x160] sm:$0xff] }
 0x299   : > { %8328 = vmatmul.msk.f32.gmra.mxu3 %vm418_vm0, %v10624_v59 }
 0x29a   : > { %v10636_v44 = vadd.f32 %v2917_v30, %v2802_v35  ;;  %8282 = vmatmul.msk.f32.gmra.mxu0 %vm418_vm0, %v10430_v60  ;;  %v8406_v60 = vld [vmem:[%s12465_s1 + $0x1c] sm:$0xf]  ;;  %v10674_v35 = vld [vmem:[#allocation2 + $0x112] sm:$0xff] }
 0x29b   : > { %8333 = vmatmul.msk.f32.vlgmr.msrb.gmra.mxu2 %vm418_vm0, %v10626_v5  ;;  %8407 = vmatpush.msk.msra.mxu3 %vm662_vm1, %v8406_v60  ;;  %v3659_v60 = vld [vmem:[#allocation2 + $0x114] sm:$0xff] }
 0x29c   : > { %v2926_v63 = vpop.f32.mrf.mxu3 }
 0x29d   : > { %v2622_v13 = vpop.f32.mrf.mxu1 }
 0x29e   : > { %v10642_v57 = vpop.f32.mrf.mxu2  ;;  %v2654_v51 = vadd.f32 %v2622_v13, %v2505_v41 }
 0x29f   : > { %v10650_v30 = vpop.f32.mrf.mxu0 }
 0x2a0   : > { %v2803_v39 = vadd.f32 %v10534_v61, %v2654_v51  ;;  %8294 = vmatmul.msk.f32.gmra.mxu1 %vm418_vm0, %v3117_v40  ;;  %v2506_v61 = vadd.f32 %v10518_v54, %v10352_v26  ;;  %v8421_v26 = vld [vmem:[%s12465_s1 + $0x20] sm:$0xf] }
 0x2a1   : > { %8329 = vmatmul.msk.f32.gmra.mxu3 %vm418_vm0, %v10644_v53  ;;  %8422 = vmatpush.msk.msra.mxu0 %vm662_vm1, %v8421_v26  ;;  %v3119_v51 = vld [vmem:[#allocation2 + $0xfa] sm:$0xff] }
 0x2a2   : > { %v10664_v62 = vadd.f32 %v2920_v8, %v2803_v39  ;;  %8283 = vmatmul.msk.f32.gmra.mxu0 %vm418_vm0, %v10445_v56  ;;  %v3784_v56 = vld [vmem:[#allocation2 + $0x115] sm:$0xff] }
 0x2a3   : > { %8334 = vmatmul.msk.f32.gmra.mxu2 %vm418_vm0, %v10646_v9  ;;  %v3660_v26 = vld [vmem:[#allocation2 + $0x11c] sm:$0xff] }
 0x2a4   : > { %v2929_v36 = vpop.f32.mrf.mxu3 }
 0x2a5   : > { %v2625_v29 = vpop.f32.mrf.mxu1 }
 0x2a6   : > { %v10670_v11 = vpop.f32.mrf.mxu2  ;;  %v2655_v58 = vadd.f32 %v2625_v29, %v2506_v61  ;;  %v3123_v61 = vld [vmem:[#allocation2 + $0x11a] sm:$0xff] }
 0x2a7   : > { %v10678_v8 = vpop.f32.mrf.mxu0 }
 0x2a8   : > { %v2804_v41 = vadd.f32 %v10556_v25, %v2655_v58  ;;  %8295 = vmatmul.msk.f32.gmra.mxu1 %vm418_vm0, %v3118_v17  ;;  %v2507_v25 = vadd.f32 %v10540_v46, %v10375_v47  ;;  %v2508_v46 = vadd.f32 %v10562_v3, %v10399_v14  ;;  %v2509_v3 = vadd.f32 %v10584_v31, %v10417_v50 }
 0x2a9   : > { %8330 = vmatmul.msk.f32.gmra.mxu3 %vm418_vm0, %v10672_v6  ;;  %v2510_v31 = vadd.f32 %v10608_v4, %v10432_v52  ;;  %v2511_v4 = vadd.f32 %v10630_v18, %v10448_v10  ;;  %v2512_v18 = vadd.f32 %v10650_v30, %v10464_v19  ;;  %v3093_v30 = vadd.f32 %v10678_v8, %v10487_v32  ;;  %v10796_v32 = vld [vmem:[#allocation2 + $0x14a] sm:$0xff] }
 0x2aa   : > { %v10688_v54 = vadd.f32 %v2923_v43, %v2804_v41  ;;  %8363 = vmatmul.msk.f32.vlgmr.msrb.gmra.mxu0 %vm418_vm0, %v3784_v56  ;;  %v3785_v43 = vld [vmem:[#allocation2 + $0x11d] sm:$0xff]  ;;  %v3791_v8 = vld [vmem:[#allocation2 + $0x14d] sm:$0xff] }
 0x2ab   : > { %8335 = vmatmul.msk.f32.gmra.mxu2 %vm418_vm0, %v10674_v35 }
 0x2ac   : > { %v2932_v13 = vpop.f32.mrf.mxu3 }
 0x2ad   : > { %v2628_v40 = vpop.f32.mrf.mxu1 }
 0x2ae   : > { %v10693_v39 = vpop.f32.mrf.mxu2  ;;  %v2656_v22 = vadd.f32 %v2628_v40, %v2507_v25  ;;  %v10706_v25 = vld [vmem:[#allocation2 + $0x122] sm:$0xff] }
 0x2af   : > { %v10697_v17 = vpop.f32.mrf.mxu0 }
 0x2b0   : > { %v2805_v29 = vadd.f32 %v10578_v7, %v2656_v22  ;;  %8296 = vmatmul.msk.f32.gmra.mxu1 %vm418_vm0, %v3119_v51 }
 0x2b1   : > { %8348 = vmatmul.msk.f32.vlgmr.msrb.gmra.mxu3 %vm418_vm0, %v3659_v60 }
 0x2b2   : > { %v10701_v47 = vadd.f32 %v2926_v63, %v2805_v29  ;;  %8364 = vmatmul.msk.f32.gmra.mxu0 %vm418_vm0, %v3785_v43  ;;  %v3786_v63 = vld [vmem:[#allocation2 + $0x125] sm:$0xff] }
 0x2b3   : > { %8336 = vmatmul.msk.f32.gmra.mxu2 %vm418_vm0, %v3123_v61 }
 0x2b4   : > { %v2935_v58 = vpop.f32.mrf.mxu3 }
 0x2b5   : > { %v2631_v41 = vpop.f32.mrf.mxu1 }
 0x2b6   : > { %v3397_v56 = vpop.f32.mrf.mxu2  ;;  %v2657_v7 = vadd.f32 %v2631_v41, %v2508_v46  ;;  %v10726_v41 = vld [vmem:[#allocation2 + $0x12a] sm:$0xff] }
 0x2b7   : > { %v10711_v51 = vpop.f32.mrf.mxu0 }
 0x2b8   : > { %v2806_v40 = vadd.f32 %v10602_v49, %v2657_v7  ;;  %8297 = vmatmul.msk.f32.gmra.mxu1 %vm418_vm0, %v10626_v5  ;;  %v3661_v5 = vld [vmem:[#allocation2 + $0x124] sm:$0xff] }
 0x2b9   : > { %8349 = vmatmul.msk.f32.gmra.mxu3 %vm418_vm0, %v3660_v26 }
 0x2ba   : > { %v10716_v14 = vadd.f32 %v2929_v36, %v2806_v40  ;;  %8365 = vmatmul.msk.f32.gmra.mxu0 %vm418_vm0, %v3786_v63  ;;  %v3787_v36 = vld [vmem:[#allocation2 + $0x12d] sm:$0xff] }
 0x2bb   : > { %8337 = vmatmul.msk.f32.gmra.mxu2 %vm418_vm0, %v10706_v25  ;;  %v3662_v40 = vld [vmem:[#allocation2 + $0x12c] sm:$0xff] }
 0x2bc   : > { %v2938_v22 = vpop.f32.mrf.mxu3 }
 0x2bd   : > { %v2634_v49 = vpop.f32.mrf.mxu1 }
 0x2be   : > { %v3400_v60 = vpop.f32.mrf.mxu2  ;;  %v2658_v29 = vadd.f32 %v2634_v49, %v2509_v3  ;;  %v10741_v49 = vld [vmem:[#allocation2 + $0x132] sm:$0xff] }
 0x2bf   : > { %v10724_v46 = vpop.f32.mrf.mxu0 }
 0x2c0   : > { %v2807_v43 = vadd.f32 %v10622_v28, %v2658_v29  ;;  %8298 = vmatmul.msk.f32.gmra.mxu1 %vm418_vm0, %v10646_v9 }
 0x2c1   : > { %8350 = vmatmul.msk.f32.gmra.mxu3 %vm418_vm0, %v3661_v5 }
 0x2c2   : > { %v10731_v50 = vadd.f32 %v2932_v13, %v2807_v43  ;;  %8366 = vmatmul.msk.f32.gmra.mxu0 %vm418_vm0, %v3787_v36  ;;  %v3788_v13 = vld [vmem:[#allocation2 + $0x135] sm:$0xff] }
 0x2c3   : > { %8338 = vmatmul.msk.f32.gmra.mxu2 %vm418_vm0, %v10726_v41  ;;  %v3663_v36 = vld [vmem:[#allocation2 + $0x134] sm:$0xff] }
 0x2c4   : > { %v2941_v28 = vpop.f32.mrf.mxu3 }
 0x2c5   : > { %v2637_v7 = vpop.f32.mrf.mxu1 }
 0x2c6   : > { %v3403_v9 = vpop.f32.mrf.mxu2  ;;  %v2659_v26 = vadd.f32 %v2637_v7, %v2510_v31 }
 0x2c7   : > { %v10739_v3 = vpop.f32.mrf.mxu0 }
 0x2c8   : > { %v2808_v63 = vadd.f32 %v10642_v57, %v2659_v26  ;;  %8299 = vmatmul.msk.f32.gmra.mxu1 %vm418_vm0, %v10674_v35  ;;  %v3789_v26 = vld [vmem:[#allocation2 + $0x13d] sm:$0xff] }
 0x2c9   : > { %8351 = vmatmul.msk.f32.gmra.mxu3 %vm418_vm0, %v3662_v40 }
 0x2ca   : > { %v10746_v52 = vadd.f32 %v2935_v58, %v2808_v63  ;;  %8367 = vmatmul.msk.f32.gmra.mxu0 %vm418_vm0, %v3788_v13  ;;  %v10757_v58 = vld [vmem:[#allocation2 + $0x13a] sm:$0xff] }
 0x2cb   : > { %8339 = vmatmul.msk.f32.gmra.mxu2 %vm418_vm0, %v10741_v49  ;;  %v3664_v13 = vld [vmem:[#allocation2 + $0x13c] sm:$0xff] }
 0x2cc   : > { %12488 = vst [vmem:[#allocation20_spill] sm:$0xff] %v10746_v52  ;;  %v3495_v57 = vpop.f32.mrf.mxu3 }
 0x2cd   : > { %v2640_v29 = vpop.f32.mrf.mxu1  ;;  %v10751_v35 = vadd.f32 %v3495_v57, %v3397_v56 }
 0x2ce   : > { %v3406_v5 = vpop.f32.mrf.mxu2  ;;  %v2660_v43 = vadd.f32 %v2640_v29, %v2511_v4  ;;  %v3790_v29 = vld [vmem:[#allocation2 + $0x145] sm:$0xff] }
 0x2cf   : > { %v10755_v7 = vpop.f32.mrf.mxu0 }
 0x2d0   : > { %v2809_v31 = vadd.f32 %v10670_v11, %v2660_v43  ;;  %8300 = vmatmul.msk.f32.gmra.mxu1 %vm418_vm0, %v3123_v61  ;;  %v3909_v43 = vld [vmem:[#allocation2 + $0x116] sm:$0xff] }
 0x2d1   : > { %8352 = vmatmul.msk.f32.gmra.mxu3 %vm418_vm0, %v3663_v36 }
 0x2d2   : > { %v10762_v10 = vadd.f32 %v2938_v22, %v2809_v31  ;;  %8368 = vmatmul.msk.f32.gmra.mxu0 %vm418_vm0, %v3789_v26  ;;  %v10775_v22 = vld [vmem:[#allocation2 + $0x142] sm:$0xff] }
 0x2d3   : > { %8340 = vmatmul.msk.f32.gmra.mxu2 %vm418_vm0, %v10757_v58 }
 0x2d4   : > { %12489 = vst [vmem:[#allocation21_spill] sm:$0xff] %v10762_v10  ;;  %v3498_v11 = vpop.f32.mrf.mxu3 }
 0x2d5   : > { %v2643_v56 = vpop.f32.mrf.mxu1  ;;  %v10767_v61 = vadd.f32 %v3498_v11, %v3400_v60 }
 0x2d6   : > { %v3409_v40 = vpop.f32.mrf.mxu2  ;;  %v2661_v63 = vadd.f32 %v2643_v56, %v2512_v18  ;;  %v3665_v18 = vld [vmem:[#allocation2 + $0x144] sm:$0xff] }
 0x2d7   : > { %v10772_v57 = vpop.f32.mrf.mxu0 }
 0x2d8   : > { %v2810_v4 = vadd.f32 %v10693_v39, %v2661_v63  ;;  %8301 = vmatmul.msk.f32.gmra.mxu1 %vm418_vm0, %v10706_v25  ;;  %v10787_v39 = vld [vmem:[%s12466_s2] ss:$0 sm:$0xff] }
 0x2d9   : > { %8353 = vmatmul.msk.f32.gmra.mxu3 %vm418_vm0, %v3664_v13 }
 0x2da   : > { %v10779_v19 = vadd.f32 %v2941_v28, %v2810_v4  ;;  %8369 = vmatmul.msk.f32.gmra.mxu0 %vm418_vm0, %v3790_v29  ;;  %v3910_v4 = vld [vmem:[#allocation2 + $0x11e] sm:$0xff] }
 0x2db   : > { %8341 = vmatmul.msk.f32.gmra.mxu2 %vm418_vm0, %v10775_v22 }
 0x2dc   : > { %12490 = vst [vmem:[#allocation22_spill] sm:$0xff] %v10779_v19  ;;  %v3501_v25 = vpop.f32.mrf.mxu3 }
 0x2dd   : > { %v3194_v60 = vpop.f32.mrf.mxu1  ;;  %v10789_v36 = vadd.f32 %v3501_v25, %v3403_v9  ;;  %v3094_v9 = vadd.f32 %v10697_v17, %v10506_v12  ;;  %v3792_v12 = vld [vmem:[#allocation2 + $0x155] sm:$0xff] }
 0x2de   : > { %v3412_v31 = vpop.f32.mrf.mxu2  ;;  %v3242_v26 = vadd.f32 %v3194_v60, %v3093_v30  ;;  %v3666_v60 = vld [vmem:[#allocation2 + $0x14c] sm:$0xff] }
 0x2df   : > { %v10793_v11 = vpop.f32.mrf.mxu0 }
 0x2e0   : > { %v3262_v28 = vadd.f32 %v10787_v39, %v3242_v26  ;;  %8378 = vmatmul.msk.f32.vlgmr.msra.gmra.mxu1 %vm418_vm0, %v3909_v43 }
 0x2e1   : > { %8354 = vmatmul.msk.f32.gmra.mxu3 %vm418_vm0, %v3665_v18  ;;  %v10811_v18 = vld [vmem:[#allocation2 + $0x152] sm:$0xff] }
 0x2e2   : > { %v3278_v56 = vmax.f32 %v3262_v28, 0.0  ;;  %8370 = vmatmul.msk.f32.gmra.mxu0 %vm418_vm0, %v3791_v8 }
 0x2e3   : > { %8342 = vmatmul.msk.f32.gmra.mxu2 %vm418_vm0, %v10796_v32 }
 0x2e4   : > { %3294 = vst.msk [vmem:[#allocation6 + $0x80] sm:$0xff] %vm470_vm2, %v3278_v56  ;;  %v3504_v63 = vpop.f32.mrf.mxu3  ;;  %v3911_v56 = vld [vmem:[#allocation2 + $0x126] sm:$0xff] }
 0x2e5   : > { %v3197_v13 = vpop.f32.mrf.mxu1  ;;  %v10804_v29 = vadd.f32 %v3504_v63, %v3406_v5  ;;  %v3095_v5 = vadd.f32 %v10711_v51, %v10528_v20  ;;  %v10828_v20 = vld [vmem:[#allocation2 + $0x15a] sm:$0xff] }
 0x2e6   : > { %v3415_v30 = vpop.f32.mrf.mxu2  ;;  %v3243_v25 = vadd.f32 %v3197_v13, %v3094_v9  ;;  %12491 = vst [vmem:[#allocation23_spill] sm:$0xff] %v10828_v20  ;;  %v3793_v51 = vld [vmem:[#allocation2 + $0x15d] sm:$0xff] }
 0x2e7   : > { %v10808_v26 = vpop.f32.mrf.mxu0 }
 0x2e8   : > { %v3263_v43 = vadd.f32 %v10787_v39, %v3243_v25  ;;  %8379 = vmatmul.msk.f32.gmra.mxu1 %vm418_vm0, %v3910_v4  ;;  %v3667_v4 = vld [vmem:[#allocation2 + $0x154] sm:$0xff] }
 0x2e9   : > { %8355 = vmatmul.msk.f32.gmra.mxu3 %vm418_vm0, %v3666_v60 }
 0x2ea   : > { %v3279_v17 = vmax.f32 %v3263_v43, 0.0  ;;  %8371 = vmatmul.msk.f32.gmra.mxu0 %vm418_vm0, %v3792_v12 }
 0x2eb   : > { %8343 = vmatmul.msk.f32.gmra.mxu2 %vm418_vm0, %v10811_v18  ;;  %v4528_v1 = vld [vmem:[#allocation6 + $0x79] ss:$2 sm:$0xff] }
 0x2ec   : > { %3295 = vst.msk [vmem:[#allocation6 + $0x88] sm:$0xff] %vm470_vm2, %v3279_v17  ;;  %v3507_v28 = vpop.f32.mrf.mxu3 }
 0x2ed   : > { %v3200_v8 = vpop.f32.mrf.mxu1  ;;  %v10819_v9 = vadd.f32 %v3507_v28, %v3409_v40  ;;  %v3096_v40 = vadd.f32 %v10724_v46, %v10550_v24  ;;  %v10845_v24 = vld [vmem:[#allocation2 + $0x162] sm:$0xff] }
 0x2ee   : > { %v10821_v63 = vpop.f32.mrf.mxu2  ;;  %v3244_v13 = vadd.f32 %v3200_v8, %v3095_v5  ;;  %v3912_v5 = vld [vmem:[#allocation2 + $0x12e] sm:$0xff]  ;;  %12493 = vst [vmem:[#allocation25_spill] sm:$0xff] %v10845_v24  ;;  %v3794_v46 = vld [vmem:[#allocation2 + $0x165] sm:$0xff] }
 0x2ef   : > { %v10825_v60 = vpop.f32.mrf.mxu0 }
 0x2f0   : > { %v3264_v25 = vadd.f32 %v10787_v39, %v3244_v13  ;;  %8380 = vmatmul.msk.f32.gmra.mxu1 %vm418_vm0, %v3911_v56  ;;  %v3668_v13 = vld [vmem:[#allocation2 + $0x15c] sm:$0xff] }
 0x2f1   : > { %8356 = vmatmul.msk.f32.gmra.mxu3 %vm418_vm0, %v3667_v4 }
 0x2f2   : > { %v3280_v43 = vmax.f32 %v3264_v25, 0.0  ;;  %8372 = vmatmul.msk.f32.gmra.mxu0 %vm418_vm0, %v3793_v51 }
 0x2f3   : > { %8344 = vmatmul.msk.f32.gmra.mxu2 %vm418_vm0, %v10828_v20 }
 0x2f4   : > { %3296 = vst.msk [vmem:[#allocation6 + $0x90] sm:$0xff] %vm470_vm2, %v3280_v43  ;;  %v3510_v12 = vpop.f32.mrf.mxu3 }
 0x2f5   : > { %v3203_v17 = vpop.f32.mrf.mxu1  ;;  %v10836_v28 = vadd.f32 %v3510_v12, %v3412_v31  ;;  %v3097_v31 = vadd.f32 %v10739_v3, %v10572_v2  ;;  %v3913_v12 = vld [vmem:[#allocation2 + $0x136] sm:$0xff]  ;;  %v3795_v3 = vld [vmem:[#allocation2 + $0x16d] sm:$0xff] }
 0x2f6   : > { %v10838_v8 = vpop.f32.mrf.mxu2  ;;  %v3245_v56 = vadd.f32 %v3203_v17, %v3096_v40  ;;  %v4526_v2 = vld [vmem:[#allocation6 + $0x88] ss:$2 sm:$0x1] }
 0x2f7   : > { %12492 = vst [vmem:[#allocation24_spill] sm:$0xff] %v10836_v28  ;;  %v10842_v25 = vpop.f32.mrf.mxu0  ;;  %v3914_v28 = vld [vmem:[#allocation2 + $0x13e] sm:$0xff] }
 0x2f8   : > { %v3265_v4 = vadd.f32 %v10787_v39, %v3245_v56  ;;  %8381 = vmatmul.msk.f32.gmra.mxu1 %vm418_vm0, %v3912_v5 }
 0x2f9   : > { %8357 = vmatmul.msk.f32.gmra.mxu3 %vm418_vm0, %v3668_v13  ;;  %v3669_v13 = vld [vmem:[#allocation2 + $0x164] sm:$0xff] }
 0x2fa   : > { %v3281_v51 = vmax.f32 %v3265_v4, 0.0  ;;  %8373 = vmatmul.msk.f32.gmra.mxu0 %vm418_vm0, %v3794_v46  ;;  %v4524_v4 = vld [vmem:[#allocation6 + $0x78] ss:$2 sm:$0xff] }
 0x2fb   : > { %8345 = vmatmul.msk.f32.gmra.mxu2 %vm418_vm0, %v10845_v24 }
 0x2fc   : > { %3297 = vst.msk [vmem:[#allocation6 + $0x98] sm:$0xff] %vm470_vm2, %v3281_v51  ;;  %v3513_v43 = vpop.f32.mrf.mxu3  ;;  %v4530_v51 = vld [vmem:[#allocation6 + $0x89] ss:$2 sm:$0x1] }
 0x2fd   : > { %v3206_v40 = vpop.f32.mrf.mxu1  ;;  %v10853_v17 = vadd.f32 %v3513_v43, %v3415_v30  ;;  %v4539_v43 = vmax.f32 %v4524_v4, %v4528_v1 }
 0x2fe   : > { %v10855_v5 = vpop.f32.mrf.mxu2  ;;  %v3246_v56 = vadd.f32 %v3206_v40, %v3097_v31  ;;  %v3098_v40 = vadd.f32 %v10755_v7, %v10596_v0 }
 0x2ff   : > { %12494 = vst [vmem:[#allocation26_spill] sm:$0xff] %v10853_v17  ;;  %v10859_v46 = vpop.f32.mrf.mxu0 }
 0x300   : > { %v3266_v19 = vadd.f32 %v10787_v39, %v3246_v56  ;;  %8382 = vmatmul.msk.f32.gmra.mxu1 %vm418_vm0, %v3913_v12 }
 0x301   : > { %8358 = vmatmul.msk.f32.gmra.mxu3 %vm418_vm0, %v3669_v13  ;;  %v4540_v13 = vmax.f32 %v4526_v2, %v4530_v51 }
 0x302   : > { %v3282_v10 = vmax.f32 %v3266_v19, 0.0  ;;  %8374 = vmatmul.msk.f32.gmra.mxu0 %vm418_vm0, %v3795_v3  ;;  %v3670_v3 = vld [vmem:[#allocation2 + $0x16c] sm:$0xff] }
 0x303   : > { %8393 = vmatmul.msk.f32.vlgmr.msra.gmra.mxu2 %vm418_vm0, %v10514_v38  ;;  %v4532_v30 = vld [vmem:[#allocation6 + $0x8c] ss:$2 sm:$0xff]  ;;  %v4534_v31 = vld [vmem:[#allocation6 + $0x9c] ss:$2 sm:$0x1] }
 0x304   : > { %v4536_v12 = vld [vmem:[#allocation6 + $0x8d] ss:$2 sm:$0xff]  ;;  %v4538_v56 = vld [vmem:[#allocation6 + $0x9d] ss:$2 sm:$0x1]  ;;  %3298 = vst.msk [vmem:[#allocation6 + $0xa0] sm:$0xff] %vm470_vm2, %v3282_v10  ;;  %v3516_v17 = vpop.f32.mrf.mxu3 }
 0x305   : > { %v4541_v24 = vmax.f32 %v4532_v30, %v4536_v12  ;;  %v4542_v42 = vmax.f32 %v4534_v31, %v4538_v56  ;;  %v3209_v19 = vpop.f32.mrf.mxu1  ;;  %v10869_v38 = vadd.f32 %v3516_v17, %v10821_v63  ;;  %v3796_v10 = vld [vmem:[#allocation2 + $0x175] sm:$0xff] }
 0x306   : > { %v3427_v52 = vpop.f32.mrf.mxu2  ;;  %v3247_v20 = vadd.f32 %v3209_v19, %v3098_v40  ;;  %v8439_v17 = vld [vmem:[%s12467_s3 + $0x38] sm:$0xff]  ;;  %v3916_v12 = vld [vmem:[#allocation2 + $0x14e] sm:$0xff] }
 0x307   : > { %v4543_v1 = vmax.f32 %v4539_v43, %v4541_v24  ;;  %v4544_v4 = vmax.f32 %v4540_v13, %v4542_v42  ;;  %v10873_v7 = vpop.f32.mrf.mxu0  ;;  %v3099_v42 = vadd.f32 %v10772_v57, %v10616_v55  ;;  %v3671_v30 = vld [vmem:[#allocation2 + $0x174] sm:$0xff]  ;;  %4768 = vmatpush.msrb.mxu1 %v8439_v17 }
 0x308   : > { %v3267_v0 = vadd.f32 %v10787_v39, %v3247_v20  ;;  %8383 = vmatmul.msk.f32.gmra.mxu1 %vm418_vm0, %v3914_v28  ;;  %v3915_v28 = vld [vmem:[#allocation2 + $0x146] sm:$0xff] }
 0x309   : > { %4545 = vst.msk [vmem:[#allocation3 + $0x43] sm:$0xff] %vm470_vm2, %v4543_v1  ;;  %8359 = vmatmul.msk.f32.gmra.mxu3 %vm418_vm0, %v3670_v3  ;;  %v3917_v1 = vld [vmem:[#allocation2 + $0x156] sm:$0xff] }
 0x30a   : > { %v3283_v2 = vmax.f32 %v3267_v0, 0.0  ;;  %4546 = vst.msk [vmem:[#allocation3 + $0x4b] sm:$0x1] %vm493_vm3, %v4544_v4  ;;  %8375 = vmatmul.msk.f32.gmra.mxu0 %vm418_vm0, %v3796_v10 }
 0x30b   : > { %8394 = vmatmul.msk.f32.gmra.mxu2 %vm418_vm0, %v10536_v37 }
 0x30c   : > { %3299 = vst.msk [vmem:[#allocation6 + $0xa8] sm:$0xff] %vm470_vm2, %v3283_v2  ;;  %v3519_v63 = vpop.f32.mrf.mxu3 }
 0x30d   : > { %v3212_v20 = vpop.f32.mrf.mxu1  ;;  %v10885_v24 = vadd.f32 %v3519_v63, %v10838_v8  ;;  %v3100_v8 = vadd.f32 %v10793_v11, %v10636_v44 }
 0x30e   : > { %v3430_v37 = vpop.f32.mrf.mxu2  ;;  %v3248_v51 = vadd.f32 %v3212_v20, %v3099_v42 }
 0x30f   : > { %v10892_v55 = vpop.f32.mrf.mxu0 }
 0x310   : > { %v3268_v31 = vadd.f32 %v10787_v39, %v3248_v51  ;;  %8384 = vmatmul.msk.f32.gmra.mxu1 %vm418_vm0, %v3915_v28 }
 0x311   : > { %8360 = vmatmul.msk.f32.gmra.mxu3 %vm418_vm0, %v3671_v30 }
 0x312   : > { %v3284_v57 = vmax.f32 %v3268_v31, 0.0  ;;  %8423 = vmatmul.msk.f32.vlgmr.msra.gmra.mxu0 %vm418_vm0, %v10726_v41  ;;  %v3101_v41 = vadd.f32 %v10808_v26, %v10664_v62 }
 0x313   : > { %8395 = vmatmul.msk.f32.gmra.mxu2 %vm418_vm0, %v10558_v27 }
 0x314   : > { %3300 = vst.msk [vmem:[#allocation6 + $0xb0] sm:$0xff] %vm470_vm2, %v3284_v57  ;;  %v3522_v43 = vpop.f32.mrf.mxu3 }
 0x315   : > { %v3215_v40 = vpop.f32.mrf.mxu1  ;;  %v10903_v56 = vadd.f32 %v3522_v43, %v10855_v5  ;;  %v3103_v43 = vadd.f32 %v10842_v25, %v10701_v47 }
 0x316   : > { %v10905_v13 = vpop.f32.mrf.mxu2  ;;  %v3249_v19 = vadd.f32 %v3215_v40, %v3100_v8 }
 0x317   : > { %v10909_v27 = vpop.f32.mrf.mxu0 }
 0x318   : > { %v3269_v3 = vadd.f32 %v10787_v39, %v3249_v19  ;;  %8385 = vmatmul.msk.f32.gmra.mxu1 %vm418_vm0, %v3916_v12 }
 0x319   : > { %8408 = vmatmul.msk.f32.vlgmr.msra.gmra.mxu3 %vm418_vm0, %v10462_v45 }
 0x31a   : > { %v3285_v44 = vmax.f32 %v3269_v3, 0.0  ;;  %8424 = vmatmul.msk.f32.gmra.mxu0 %vm418_vm0, %v10741_v49 }
 0x31b   : > { %8396 = vmatmul.msk.f32.gmra.mxu2 %vm418_vm0, %v10580_v34  ;;  %v4550_v51 = vld [vmem:[#allocation6 + $0xb0] ss:$2 sm:$0x1]  ;;  %v4554_v30 = vld [vmem:[#allocation6 + $0xb1] ss:$2 sm:$0x1] }
 0x31c   : > { %3301 = vst.msk [vmem:[#allocation6 + $0xb8] sm:$0xff] %vm470_vm2, %v3285_v44  ;;  %v3525_v11 = vpop.f32.mrf.mxu3  ;;  %v4564_v19 = vmax.f32 %v4550_v51, %v4554_v30  ;;  %v4687_v51 = vld [vmem:[#allocation3 + $0x1] sm:$0xff] }
 0x31d   : > { %v3218_v5 = vpop.f32.mrf.mxu1  ;;  %v10920_v4 = vadd.f32 %v3525_v11, %v3427_v52  ;;  %v8438_v52 = vld [vmem:[%s12467_s3 + $0x30] sm:$0xff]  ;;  %v3919_v11 = vld [vmem:[#allocation2 + $0x166] sm:$0xff] }
 0x31e   : > { %v3607_v0 = vpop.f32.mrf.mxu2  ;;  %v3250_v10 = vadd.f32 %v3218_v5, %v3101_v41  ;;  %4769 = vmatpush.msrb.mxu1 %v8438_v52  ;;  %v3920_v52 = vld [vmem:[#allocation2 + $0x16e] sm:$0xff] }
 0x31f   : > { %v10923_v45 = vadd.f32 %v3607_v0, %v10751_v35  ;;  %v10927_v49 = vpop.f32.mrf.mxu0  ;;  %v3102_v35 = vadd.f32 %v10825_v60, %v10688_v54  ;;  %v8436_v54 = vld [vmem:[%s12467_s3 + $0x20] sm:$0xff]  ;;  %v4548_v60 = vld [vmem:[#allocation6 + $0xa0] ss:$2 sm:$0xff] }
 0x320   : > { %v3270_v34 = vadd.f32 %v10787_v39, %v3250_v10  ;;  %8386 = vmatmul.msk.f32.gmra.mxu1 %vm418_vm0, %v3917_v1 }
 0x321   : > { %8409 = vmatmul.msk.f32.gmra.mxu3 %vm418_vm0, %v10483_v15  ;;  %v3918_v15 = vld [vmem:[#allocation2 + $0x15e] sm:$0xff] }
 0x322   : > { %v3286_v62 = vmax.f32 %v3270_v34, 0.0  ;;  %8425 = vmatmul.msk.f32.gmra.mxu0 %vm418_vm0, %v10757_v58 }
 0x323   : > { %8397 = vmatmul.msk.f32.gmra.mxu2 %vm418_vm0, %v10604_v16  ;;  %v8437_v16 = vld [vmem:[%s12467_s3 + $0x28] sm:$0xff] }
 0x324   : > { %3302 = vst.msk [vmem:[#allocation6 + $0xc0] sm:$0xff] %vm470_vm2, %v3286_v62  ;;  %v3528_v26 = vpop.f32.mrf.mxu3  ;;  %4770 = vmatpush.msrb.mxu1 %v8437_v16 }
 0x325   : > { %v3221_v2 = vpop.f32.mrf.mxu1  ;;  %v10941_v42 = vadd.f32 %v3528_v26, %v3430_v37  ;;  %v4552_v37 = vld [vmem:[#allocation6 + $0xa1] ss:$2 sm:$0xff] }
 0x326   : > { %v3610_v63 = vpop.f32.mrf.mxu2  ;;  %v3251_v58 = vadd.f32 %v3221_v2, %v3102_v35  ;;  %4771 = vmatpush.msrb.mxu1 %v8436_v54  ;;  %v4563_v8 = vmax.f32 %v4548_v60, %v4552_v37 }
 0x327   : > { %v10947_v20 = vadd.f32 %v3610_v63, %v10767_v61  ;;  %v3857_v17 = vpop.f32.mrf.mxu0  ;;  %v3921_v63 = vld [vmem:[#allocation2 + $0x176] sm:$0xff] }
 0x328   : > { %v3271_v28 = vadd.f32 %v10787_v39, %v3251_v58  ;;  %8387 = vmatmul.msk.f32.gmra.mxu1 %vm418_vm0, %v3918_v15 }
 0x329   : > { %8410 = vmatmul.msk.f32.gmra.mxu3 %vm418_vm0, %v10498_v33 }
 0x32a   : > { %v3287_v61 = vmax.f32 %v3271_v28, 0.0  ;;  %8426 = vmatmul.msk.f32.gmra.mxu0 %vm418_vm0, %v10775_v22  ;;  %v12496_v28 = vld [vmem:[#allocation20_spill] sm:$0xff] }
 0x32b   : > { %8398 = vmatmul.msk.f32.gmra.mxu2 %vm418_vm0, %v10624_v59  ;;  %v4556_v31 = vld [vmem:[#allocation6 + $0xb4] ss:$2 sm:$0xff]  ;;  %v4558_v57 = vld [vmem:[#allocation6 + $0xc4] ss:$2 sm:$0x1] }
 0x32c   : > { %v4560_v40 = vld [vmem:[#allocation6 + $0xb5] ss:$2 sm:$0xff]  ;;  %v4562_v12 = vld [vmem:[#allocation6 + $0xc5] ss:$2 sm:$0x1]  ;;  %3303 = vst.msk [vmem:[#allocation6 + $0xc8] sm:$0xff] %vm470_vm2, %v3287_v61  ;;  %v3531_v33 = vpop.f32.mrf.mxu3 }
 0x32d   : > { %v4565_v3 = vmax.f32 %v4556_v31, %v4560_v40  ;;  %v4566_v44 = vmax.f32 %v4558_v57, %v4562_v12  ;;  %v3224_v41 = vpop.f32.mrf.mxu1  ;;  %v10964_v59 = vadd.f32 %v3531_v33, %v10905_v13  ;;  %v12497_v57 = vld [vmem:[#allocation24_spill] sm:$0xff] }
 0x32e   : > { %v3613_v5 = vpop.f32.mrf.mxu2  ;;  %v3252_v1 = vadd.f32 %v3224_v41, %v3103_v43  ;;  %v4043_v12 = vld [vmem:[#allocation2 + $0x170] sm:$0xff] }
 0x32f   : > { %v3648_v22 = vadd.f32 %v3613_v5, %v10789_v36  ;;  %v4567_v0 = vmax.f32 %v4563_v8, %v4565_v3  ;;  %v4568_v10 = vmax.f32 %v4564_v19, %v4566_v44  ;;  %v3860_v25 = vpop.f32.mrf.mxu0  ;;  %v3104_v36 = vadd.f32 %v10859_v46, %v10716_v14  ;;  %v12499_v19 = vld [vmem:[#allocation25_spill] sm:$0xff]  ;;  %v4688_v5 = vld [vmem:[#allocation3 + $0x9] sm:$0xff] }
 0x330   : > { %v3272_v47 = vadd.f32 %v10787_v39, %v3252_v1  ;;  %8388 = vmatmul.msk.f32.gmra.mxu1 %vm418_vm0, %v3919_v11  ;;  %v12500_v3 = vld [vmem:[#allocation21_spill] sm:$0xff] }
 0x331   : > { %8411 = vmatmul.msk.f32.gmra.mxu3 %vm418_vm0, %v10520_v23  ;;  %4569 = vst.msk [vmem:[#allocation3 + $0x50] sm:$0xff] %vm470_vm2, %v4567_v0  ;;  %v3107_v44 = vadd.f32 %v10909_v27, %v12500_v3  ;;  %v4044_v27 = vld [vmem:[#allocation2 + $0x178] sm:$0xff]  ;;  %v4046_v3 = vld [vmem:[#allocation2 + $0x188] sm:$0xff] }
 0x332   : > { %v3288_v34 = vmax.f32 %v3272_v47, 0.0  ;;  %4570 = vst.msk [vmem:[#allocation3 + $0x58] sm:$0x1] %vm493_vm3, %v4568_v10  ;;  %8427 = vmatmul.msk.f32.gmra.mxu0 %vm418_vm0, %v10796_v32  ;;  %v12501_v10 = vld [vmem:[#allocation26_spill] sm:$0xff] }
 0x333   : > { %8399 = vmatmul.msk.f32.gmra.mxu2 %vm418_vm0, %v10644_v53 }
 0x334   : > { %3304 = vst.msk [vmem:[#allocation6 + $0xd0] sm:$0xff] %vm470_vm2, %v3288_v34  ;;  %v3732_v13 = vpop.f32.mrf.mxu3 }
 0x335   : > { %v3227_v62 = vpop.f32.mrf.mxu1  ;;  %v3771_v23 = vadd.f32 %v3732_v13, %v10923_v45 }
 0x336   : > { %v3616_v35 = vpop.f32.mrf.mxu2  ;;  %v3253_v26 = vadd.f32 %v3227_v62, %v3104_v36  ;;  %v4292_v62 = vld [vmem:[#allocation2 + $0x16a] sm:$0xff] }
 0x337   : > { %v3649_v2 = vadd.f32 %v3616_v35, %v10804_v29  ;;  %v10982_v53 = vadd.f32 %v3857_v17, %v3771_v23  ;;  %v3863_v32 = vpop.f32.mrf.mxu0  ;;  %v3105_v29 = vadd.f32 %v10873_v7, %v10731_v50  ;;  %v4042_v50 = vld [vmem:[#allocation2 + $0x168] sm:$0xff] }
 0x338   : > { %v3273_v15 = vadd.f32 %v10787_v39, %v3253_v26  ;;  %8389 = vmatmul.msk.f32.gmra.mxu1 %vm418_vm0, %v3920_v52  ;;  %v12502_v35 = vld [vmem:[#allocation19_spill] sm:$0xff] }
 0x339   : > { %8412 = vmatmul.msk.f32.gmra.mxu3 %vm418_vm0, %v10542_v21 }
 0x33a   : > { %v3289_v14 = vmax.f32 %v3273_v15, 0.0  ;;  %8428 = vmatmul.msk.f32.gmra.mxu0 %vm418_vm0, %v10811_v18 }
 0x33b   : > { %8400 = vmatmul.msk.f32.gmra.mxu2 %vm418_vm0, %v10672_v6  ;;  %v4572_v34 = vld [vmem:[#allocation6 + $0xc8] ss:$2 sm:$0xff]  ;;  %v4576_v52 = vld [vmem:[#allocation6 + $0xc9] ss:$2 sm:$0xff] }
 0x33c   : > { %3305 = vst.msk [vmem:[#allocation6 + $0xd8] sm:$0xff] %vm470_vm2, %v3289_v14  ;;  %v3735_v46 = vpop.f32.mrf.mxu3  ;;  %v4587_v14 = vmax.f32 %v4572_v34, %v4576_v52  ;;  %v8472_v52 = vld [vmem:[%s12467_s3 + $0x40] sm:$0xff] }
 0x33d   : > { %v3230_v45 = vpop.f32.mrf.mxu1  ;;  %v3772_v16 = vadd.f32 %v3735_v46, %v10947_v20  ;;  %v12495_v20 = vld [vmem:[#allocation23_spill] sm:$0xff] }
 0x33e   : > { %v3619_v58 = vpop.f32.mrf.mxu2  ;;  %v3254_v54 = vadd.f32 %v3230_v45, %v3105_v29  ;;  %v12503_v29 = vld [vmem:[#allocation22_spill] sm:$0xff] }
 0x33f   : > { %v10997_v21 = vadd.f32 %v3619_v58, %v10819_v9  ;;  %v10999_v60 = vadd.f32 %v3860_v25, %v3772_v16  ;;  %v3866_v18 = vpop.f32.mrf.mxu0  ;;  %v3106_v9 = vadd.f32 %v10892_v55, %v12496_v28  ;;  %v12498_v55 = vld [vmem:[#allocation18_spill] sm:$0xff]  ;;  %v3108_v46 = vadd.f32 %v10927_v49, %v12503_v29 }
 0x340   : > { %v3274_v6 = vadd.f32 %v10787_v39, %v3254_v54  ;;  %8390 = vmatmul.msk.f32.gmra.mxu1 %vm418_vm0, %v3921_v63 }
 0x341   : > { %8413 = vmatmul.msk.f32.gmra.mxu3 %vm418_vm0, %v10564_v48 }
 0x342   : > { %v3290_v7 = vmax.f32 %v3274_v6, 0.0  ;;  %8429 = vmatmul.msk.f32.gmra.mxu0 %vm418_vm0, %v12495_v20 }
 0x343   : > { %8401 = vmatmul.msk.f32.gmra.mxu2 %vm418_vm0, %v4042_v50  ;;  %v4574_v23 = vld [vmem:[#allocation6 + $0xd8] ss:$2 sm:$0x1]  ;;  %v4578_v26 = vld [vmem:[#allocation6 + $0xd9] ss:$2 sm:$0x1] }
 0x344   : > { %3306 = vst.msk [vmem:[#allocation6 + $0xe0] sm:$0xff] %vm470_vm2, %v3290_v7  ;;  %v3738_v17 = vpop.f32.mrf.mxu3  ;;  %v4588_v58 = vmax.f32 %v4574_v23, %v4578_v26  ;;  %v4689_v50 = vld [vmem:[#allocation3 + $0x11] sm:$0xff] }
 0x345   : > { %v3233_v37 = vpop.f32.mrf.mxu1  ;;  %v3773_v30 = vadd.f32 %v3738_v17, %v3648_v22  ;;  %v4295_v23 = vld [vmem:[#allocation2 + $0x182] sm:$0xff] }
 0x346   : > { %v3622_v61 = vpop.f32.mrf.mxu2  ;;  %v3255_v31 = vadd.f32 %v3233_v37, %v3106_v9  ;;  %v4167_v9 = vld [vmem:[#allocation2 + $0x169] sm:$0xff] }
 0x347   : > { %v11012_v48 = vadd.f32 %v3622_v61, %v12497_v57  ;;  %v11014_v8 = vadd.f32 %v3863_v32, %v3773_v30  ;;  %v3869_v40 = vpop.f32.mrf.mxu0  ;;  %v4293_v57 = vld [vmem:[#allocation2 + $0x172] sm:$0xff] }
 0x348   : > { %v3275_v43 = vadd.f32 %v10787_v39, %v3255_v31  ;;  %8440 = vmatmul.msk.f32.vlgmr.msrb.gmra.mxu1 %vm470_vm2, %v4687_v51  ;;  %v4045_v31 = vld [vmem:[#allocation2 + $0x180] sm:$0xff] }
 0x349   : > { %8414 = vmatmul.msk.f32.gmra.mxu3 %vm418_vm0, %v12498_v55  ;;  %v4690_v55 = vld [vmem:[#allocation3 + $0x19] sm:$0xff] }
 0x34a   : > { %v3291_v33 = vmax.f32 %v3275_v43, 0.0  ;;  %8430 = vmatmul.msk.f32.gmra.mxu0 %vm418_vm0, %v12499_v19 }
 0x34b   : > { %8402 = vmatmul.msk.f32.gmra.mxu2 %vm418_vm0, %v4043_v12 }
 0x34c   : > { %3307 = vst.msk [vmem:[#allocation6 + $0xe8] sm:$0xff] %vm470_vm2, %v3291_v33  ;;  %v3741_v41 = vpop.f32.mrf.mxu3 }
 0x34d   : > { %v3236_v11 = vpop.f32.mrf.mxu1  ;;  %v3774_v1 = vadd.f32 %v3741_v41, %v3649_v2  ;;  %v4686_v41 = vld [vmem:[%s12467_s3 + $0x18] sm:$0xff] }
 0x34e   : > { %v3625_v22 = vpop.f32.mrf.mxu2  ;;  %v3256_v0 = vadd.f32 %v3236_v11, %v3107_v44  ;;  %v4294_v44 = vld [vmem:[#allocation2 + $0x17a] sm:$0xff]  ;;  %v8474_v11 = vld [vmem:[%s12467_s3 + $0x50] sm:$0xff]  ;;  %4881 = vmatpush.msrb.mxu2 %v4686_v41 }
 0x34f   : > { %v11027_v47 = vadd.f32 %v3625_v22, %v12501_v10  ;;  %v11029_v25 = vadd.f32 %v3866_v18, %v3774_v1  ;;  %v3872_v13 = vpop.f32.mrf.mxu0  ;;  %v4169_v10 = vld [vmem:[#allocation2 + $0x179] sm:$0xff] }
 0x350   : > { %v3276_v36 = vadd.f32 %v10787_v39, %v3256_v0  ;;  %8441 = vmatmul.msk.f32.gmra.mxu1 %vm470_vm2, %v4688_v5 }
 0x351   : > { %8415 = vmatmul.msk.f32.gmra.mxu3 %vm418_vm0, %v12502_v35  ;;  %v4667_v35 = vld [vmem:[#allocation3] sm:$0xff] }
 0x352   : > { %v3292_v2 = vmax.f32 %v3276_v36, 0.0  ;;  %8431 = vmatmul.msk.f32.gmra.mxu0 %vm418_vm0, %v4292_v62  ;;  %v4684_v36 = vld [vmem:[%s12467_s3 + $0x8] sm:$0xff] }
 0x353   : > { %8403 = vmatmul.msk.f32.gmra.mxu2 %vm418_vm0, %v4044_v27  ;;  %v4580_v15 = vld [vmem:[#allocation6 + $0xdc] ss:$2 sm:$0xff]  ;;  %v4582_v32 = vld [vmem:[#allocation6 + $0xec] ss:$2 sm:$0x1] }
 0x354   : > { %v4584_v45 = vld [vmem:[#allocation6 + $0xdd] ss:$2 sm:$0xff]  ;;  %v4586_v63 = vld [vmem:[#allocation6 + $0xed] ss:$2 sm:$0x1]  ;;  %3308 = vst.msk [vmem:[#allocation6 + $0xf0] sm:$0xff] %vm470_vm2, %v3292_v2  ;;  %v3744_v16 = vpop.f32.mrf.mxu3 }
 0x355   : > { %v4589_v54 = vmax.f32 %v4580_v15, %v4584_v45  ;;  %v4590_v6 = vmax.f32 %v4582_v32, %v4586_v63  ;;  %v3239_v18 = vpop.f32.mrf.mxu1  ;;  %v3775_v7 = vadd.f32 %v3744_v16, %v10997_v21  ;;  %v4691_v27 = vld [vmem:[#allocation3 + $0x21] sm:$0xff]  ;;  %v4170_v32 = vld [vmem:[#allocation2 + $0x181] sm:$0xff]  ;;  %v4296_v16 = vld [vmem:[#allocation2 + $0x18a] sm:$0xff] }
 0x356   : > { %v3628_v20 = vpop.f32.mrf.mxu2  ;;  %v3257_v28 = vadd.f32 %v3239_v18, %v3108_v46  ;;  %v4692_v46 = vld [vmem:[#allocation3 + $0x29] sm:$0xff] }
 0x357   : > { %v3653_v17 = vadd.f32 %v3628_v20, %v10869_v38  ;;  %v4591_v37 = vmax.f32 %v4587_v14, %v4589_v54  ;;  %v11042_v51 = vadd.f32 %v3869_v40, %v3775_v7  ;;  %v4592_v49 = vmax.f32 %v4588_v58, %v4590_v6  ;;  %v3875_v61 = vpop.f32.mrf.mxu0  ;;  %v4168_v40 = vld [vmem:[#allocation2 + $0x171] sm:$0xff]  ;;  %v4668_v58 = vld [vmem:[#allocation3 + $0x8] sm:$0xff]  ;;  %v4171_v20 = vld [vmem:[#allocation2 + $0x189] sm:$0xff] }
 0x358   : > { %v3277_v30 = vadd.f32 %v10787_v39, %v3257_v28  ;;  %8442 = vmatmul.msk.f32.gmra.mxu1 %vm470_vm2, %v4689_v50  ;;  %v8515_v54 = vld [vmem:[%s12467_s3 + $0x98] sm:$0xff]  ;;  %v8494_v6 = vld [vmem:[%s12467_s3 + $0x70] sm:$0xff] }
 0x359   : > { %4593 = vst.msk [vmem:[#allocation3 + $0x5d] sm:$0xff] %vm470_vm2, %v4591_v37  ;;  %8416 = vmatmul.msk.f32.gmra.mxu3 %vm418_vm0, %v4167_v9  ;;  %5315 = vmatpush.msra.mxu1 %v8515_v54  ;;  %v8493_v9 = vld [vmem:[%s12467_s3 + $0x68] sm:$0xff]  ;;  %v11160_v54 = vld [vmem:[#allocation3 + $0x1a] sm:$0xff] }
 0x35a   : > { %v3293_v21 = vmax.f32 %v3277_v30, 0.0  ;;  %4594 = vst.msk [vmem:[#allocation3 + $0x65] sm:$0x1] %vm493_vm3, %v4592_v49  ;;  %8432 = vmatmul.msk.f32.gmra.mxu0 %vm418_vm0, %v4293_v57  ;;  %v8492_v30 = vld [vmem:[%s12467_s3 + $0x60] sm:$0xff] }
 0x35b   : > { %8404 = vmatmul.msk.f32.gmra.mxu2 %vm418_vm0, %v4045_v31 }
 0x35c   : > { %3309 = vst.msk [vmem:[#allocation6 + $0xf8] sm:$0xff] %vm470_vm2, %v3293_v21  ;;  %v3747_v38 = vpop.f32.mrf.mxu3 }
 0x35d   : > { %v3776_v39 = vadd.f32 %v3747_v38, %v11012_v48  ;;  %v8475_v48 = vld [vmem:[%s12467_s3 + $0x58] sm:$0xff]  ;;  %v11072_v1 = vpop.f32.mrf.mxu1 }
 0x35e   : > { %v3631_v43 = vpop.f32.mrf.mxu2  ;;  %5015 = vmatpush.msrb.mxu3 %v8475_v48 }
 0x35f   : > { %v3654_v12 = vadd.f32 %v3631_v43, %v10885_v24  ;;  %v11054_v33 = vadd.f32 %v3872_v13, %v3776_v39  ;;  %v3878_v19 = vpop.f32.mrf.mxu0  ;;  %v4685_v24 = vld [vmem:[%s12467_s3 + $0x10] sm:$0xff]  ;;  %v8473_v13 = vld [vmem:[%s12467_s3 + $0x48] sm:$0xff]  ;;  %v4934_v39 = vld [vmem:[#allocation3 + $0x2] sm:$0xff] }
 0x360   : > { %8443 = vmatmul.msk.f32.gmra.mxu1 %vm470_vm2, %v4690_v55  ;;  %5016 = vmatpush.msrb.mxu3 %v8474_v11  ;;  %v4695_v11 = vld [vmem:[#allocation3 + $0x41] sm:$0xff] }
 0x361   : > { %8417 = vmatmul.msk.f32.gmra.mxu3 %vm418_vm0, %v4168_v40  ;;  %4882 = vmatpush.msrb.mxu2 %v4685_v24  ;;  %v4694_v40 = vld [vmem:[#allocation3 + $0x39] sm:$0xff] }
 0x362   : > { %8433 = vmatmul.msk.f32.gmra.mxu0 %vm418_vm0, %v4294_v44  ;;  %5017 = vmatpush.msrb.mxu3 %v8473_v13 }
 0x363   : > { %8405 = vmatmul.msk.f32.gmra.mxu2 %vm418_vm0, %v4046_v3  ;;  %v5085_v3 = vld [vmem:[#allocation3 + $0x15] sm:$0xff] }
 0x364   : > { %v3750_v5 = vpop.f32.mrf.mxu3  ;;  %4883 = vmatpush.msrb.mxu2 %v4684_v36  ;;  %5018 = vmatpush.msrb.mxu3 %v8472_v52  ;;  %v4696_v52 = vld [vmem:[#allocation3 + $0x49] sm:$0xff] }
 0x365   : > { %v3777_v22 = vadd.f32 %v3750_v5, %v11027_v47  ;;  %v11095_v29 = vpop.f32.mrf.mxu1 }
 0x366   : > { %v3634_v0 = vpop.f32.mrf.mxu2 }
 0x367   : > { %v3655_v34 = vadd.f32 %v3634_v0, %v10903_v56  ;;  %v11082_v62 = vadd.f32 %v3875_v61, %v3777_v22  ;;  %v3881_v47 = vpop.f32.mrf.mxu0  ;;  %v4683_v56 = vld [vmem:[%s12467_s3] sm:$0xff]  ;;  %v4669_v61 = vld [vmem:[#allocation3 + $0x10] sm:$0xff]  ;;  %v4671_v0 = vld [vmem:[#allocation3 + $0x20] sm:$0xff] }
 0x368   : > { %8444 = vmatmul.msk.f32.gmra.mxu1 %vm470_vm2, %v4691_v27  ;;  %4884 = vmatpush.msrb.mxu2 %v4683_v56  ;;  %v8514_v56 = vld [vmem:[%s12467_s3 + $0x90] sm:$0xff] }
 0x369   : > { %8418 = vmatmul.msk.f32.gmra.mxu3 %vm418_vm0, %v4169_v10  ;;  %v5086_v10 = vld [vmem:[#allocation3 + $0x1d] sm:$0xff]  ;;  %5316 = vmatpush.msra.mxu1 %v8514_v56 }
 0x36a   : > { %8434 = vmatmul.msk.f32.gmra.mxu0 %vm418_vm0, %v4295_v23 }
 0x36b   : > { %8456 = vmatmul.msk.f32.vlgmr.msrb.gmra.mxu2 %vm470_vm2, %v4667_v35 }
 0x36c   : > { %v3753_v26 = vpop.f32.mrf.mxu3 }
 0x36d   : > { %v3778_v2 = vadd.f32 %v3753_v26, %v3653_v17  ;;  %v4693_v17 = vld [vmem:[#allocation3 + $0x31] sm:$0xff]  ;;  %v11122_v31 = vpop.f32.mrf.mxu1  ;;  %v4672_v26 = vld [vmem:[#allocation3 + $0x28] sm:$0xff] }
 0x36e   : > { %v3637_v15 = vpop.f32.mrf.mxu2 }
 0x36f   : > { %v3656_v14 = vadd.f32 %v3637_v15, %v10920_v4  ;;  %v11097_v45 = vadd.f32 %v3878_v19, %v3778_v2  ;;  %v3884_v63 = vpop.f32.mrf.mxu0  ;;  %v8495_v4 = vld [vmem:[%s12467_s3 + $0x78] sm:$0xff]  ;;  %v4670_v19 = vld [vmem:[#allocation3 + $0x18] sm:$0xff] }
 0x370   : > { %8445 = vmatmul.msk.f32.gmra.mxu1 %vm470_vm2, %v4692_v46  ;;  %5165 = vmatpush.msrb.mxu0 %v8495_v4  ;;  %v5087_v2 = vld [vmem:[#allocation3 + $0x25] sm:$0xff]  ;;  %v4021_v46 = vadd.f32 %v11072_v1, %v10982_v53 }
 0x371   : > { %8419 = vmatmul.msk.f32.gmra.mxu3 %vm418_vm0, %v4170_v32 }
 0x372   : > { %8435 = vmatmul.msk.f32.gmra.mxu0 %vm418_vm0, %v4296_v16  ;;  %v4697_v16 = vld [vmem:[#allocation3 + $0x51] sm:$0xff] }
 0x373   : > { %8457 = vmatmul.msk.f32.gmra.mxu2 %vm470_vm2, %v4668_v58  ;;  %5166 = vmatpush.msrb.mxu0 %v8494_v6 }
 0x374   : > { %v3756_v18 = vpop.f32.mrf.mxu3 }
 0x375   : > { %v3779_v50 = vadd.f32 %v3756_v18, %v3654_v12  ;;  %5167 = vmatpush.msrb.mxu0 %v8493_v9  ;;  %v11133_v44 = vpop.f32.mrf.mxu1  ;;  %v4673_v18 = vld [vmem:[#allocation3 + $0x30] sm:$0xff]  ;;  %v4698_v9 = vld [vmem:[#allocation3 + $0x59] sm:$0xff] }
 0x376   : > { %v3640_v7 = vpop.f32.mrf.mxu2 }
 0x377   : > { %v3657_v28 = vadd.f32 %v3640_v7, %v10941_v42  ;;  %v11116_v37 = vadd.f32 %v3881_v47, %v3779_v50  ;;  %v3887_v49 = vpop.f32.mrf.mxu0  ;;  %v5084_v42 = vld [vmem:[#allocation3 + $0xd] sm:$0xff]  ;;  %5168 = vmatpush.msrb.mxu0 %v8492_v30  ;;  %v11169_v7 = vld [vmem:[%s12466_s2] ss:$0 sm:$0xff] }
 0x378   : > { %8446 = vmatmul.msk.f32.gmra.mxu1 %vm470_vm2, %v4693_v17  ;;  %v4936_v47 = vld [vmem:[#allocation3 + $0x12] sm:$0xff] }
 0x379   : > { %8420 = vmatmul.msk.f32.gmra.mxu3 %vm418_vm0, %v4171_v20  ;;  %v5088_v50 = vld [vmem:[#allocation3 + $0x2d] sm:$0xff] }
 0x37a   : > { %8496 = vmatmul.msk.f32.vlgmr.msrb.gmra.mxu0 %vm470_vm2, %v5084_v42 }
 0x37b   : > { %8458 = vmatmul.msk.f32.gmra.mxu2 %vm470_vm2, %v4669_v61 }
 0x37c   : > { %v3759_v57 = vpop.f32.mrf.mxu3 }
 0x37d   : > { %v3780_v21 = vadd.f32 %v3759_v57, %v3655_v34  ;;  %v11142_v36 = vpop.f32.mrf.mxu1 }
 0x37e   : > { %v3643_v38 = vpop.f32.mrf.mxu2 }
 0x37f   : > { %v3658_v43 = vadd.f32 %v3643_v38, %v10964_v59  ;;  %v11128_v12 = vadd.f32 %v3884_v63, %v3780_v21  ;;  %v3890_v55 = vpop.f32.mrf.mxu0  ;;  %v4935_v59 = vld [vmem:[#allocation3 + $0xa] sm:$0xff]  ;;  %v4674_v21 = vld [vmem:[#allocation3 + $0x38] sm:$0xff] }
 0x380   : > { %8447 = vmatmul.msk.f32.gmra.mxu1 %vm470_vm2, %v4694_v40  ;;  %v5089_v38 = vld [vmem:[#allocation3 + $0x35] sm:$0xff]  ;;  %v4023_v40 = vadd.f32 %v11122_v31, %v11014_v8 }
 0x381   : > { %8476 = vmatmul.msk.f32.vlgmr.msrb.gmra.mxu3 %vm470_vm2, %v4934_v39 }
 0x382   : > { %8497 = vmatmul.msk.f32.gmra.mxu0 %vm470_vm2, %v5085_v3  ;;  %v11187_v3 = vld [vmem:[#allocation3 + $0x2a] sm:$0xff] }
 0x383   : > { %8459 = vmatmul.msk.f32.gmra.mxu2 %vm470_vm2, %v4670_v19 }
 0x384   : > { %v3762_v41 = vpop.f32.mrf.mxu3 }
 0x385   : > { %v3781_v48 = vadd.f32 %v3762_v41, %v3656_v14  ;;  %v11155_v63 = vpop.f32.mrf.mxu1 }
 0x386   : > { %v4107_v24 = vpop.f32.mrf.mxu2 }
 0x387   : > { %v11136_v5 = vadd.f32 %v3887_v49, %v3781_v48  ;;  %v3893_v22 = vpop.f32.mrf.mxu0  ;;  %v4146_v6 = vadd.f32 %v4107_v24, %v4021_v46  ;;  %v11174_v49 = vld [vmem:[#allocation3 + $0x22] sm:$0xff]  ;;  %v4025_v46 = vadd.f32 %v11142_v36, %v11042_v51 }
 0x388   : > { %8448 = vmatmul.msk.f32.gmra.mxu1 %vm470_vm2, %v4695_v11  ;;  %v5090_v11 = vld [vmem:[#allocation3 + $0x3d] sm:$0xff] }
 0x389   : > { %8477 = vmatmul.msk.f32.gmra.mxu3 %vm470_vm2, %v4935_v59  ;;  %v4675_v59 = vld [vmem:[#allocation3 + $0x40] sm:$0xff] }
 0x38a   : > { %8498 = vmatmul.msk.f32.gmra.mxu0 %vm470_vm2, %v5086_v10 }
 0x38b   : > { %8460 = vmatmul.msk.f32.gmra.mxu2 %vm470_vm2, %v4671_v0 }
 0x38c   : > { %v3765_v34 = vpop.f32.mrf.mxu3 }
 0x38d   : > { %v3782_v13 = vadd.f32 %v3765_v34, %v3657_v28  ;;  %v4022_v28 = vadd.f32 %v11095_v29, %v10999_v60  ;;  %v11176_v61 = vpop.f32.mrf.mxu1  ;;  %v11200_v34 = vld [vmem:[%s12467_s3 + $0x88] sm:$0xff] }
 0x38e   : > { %v4110_v27 = vpop.f32.mrf.mxu2  ;;  %5317 = vmatpush.msra.mxu1 %v11200_v34 }
 0x38f   : > { %v11147_v23 = vadd.f32 %v3890_v55, %v3782_v13  ;;  %v4357_v35 = vpop.f32.mrf.mxu0  ;;  %v4147_v42 = vadd.f32 %v4110_v27, %v4022_v28  ;;  %v4699_v55 = vld [vmem:[#allocation3 + $0x61] sm:$0xff]  ;;  %v4024_v13 = vadd.f32 %v11133_v44, %v11029_v25  ;;  %v5092_v28 = vld [vmem:[#allocation3 + $0x4d] sm:$0xff] }
 0x390   : > { %8449 = vmatmul.msk.f32.gmra.mxu1 %vm470_vm2, %v4696_v52 }
 0x391   : > { %8478 = vmatmul.msk.f32.gmra.mxu3 %vm470_vm2, %v4936_v47  ;;  %v11205_v47 = vld [vmem:[#allocation3 + $0x32] sm:$0xff] }
 0x392   : > { %8499 = vmatmul.msk.f32.gmra.mxu0 %vm470_vm2, %v5087_v2  ;;  %v5091_v2 = vld [vmem:[#allocation3 + $0x45] sm:$0xff] }
 0x393   : > { %8461 = vmatmul.msk.f32.gmra.mxu2 %vm470_vm2, %v4672_v26  ;;  %v4676_v26 = vld [vmem:[#allocation3 + $0x48] sm:$0xff] }
 0x394   : > { %v3768_v15 = vpop.f32.mrf.mxu3 }
 0x395   : > { %v3783_v32 = vadd.f32 %v3768_v15, %v3658_v43 }
 0x396   : > { %v4113_v14 = vpop.f32.mrf.mxu2 }
 0x397   : > { %v11157_v58 = vadd.f32 %v3893_v22, %v3783_v32  ;;  %v4360_v4 = vpop.f32.mrf.mxu0  ;;  %v4148_v48 = vadd.f32 %v4113_v14, %v4023_v40  ;;  %v11193_v22 = vpop.f32.mrf.mxu1 }
 0x398   : > { %8450 = vmatmul.msk.f32.gmra.mxu1 %vm470_vm2, %v4697_v16 }
 0x399   : > { %8479 = vmatmul.msk.f32.gmra.mxu3 %vm470_vm2, %v11160_v54 }
 0x39a   : > { %8500 = vmatmul.msk.f32.gmra.mxu0 %vm470_vm2, %v5088_v50 }
 0x39b   : > { %8462 = vmatmul.msk.f32.gmra.mxu2 %vm470_vm2, %v4673_v18 }
 0x39c   : > { %v4232_v53 = vpop.f32.mrf.mxu3 }
 0x39d   : > { %v4271_v1 = vadd.f32 %v4232_v53, %v4146_v6  ;;  %v4677_v53 = vld [vmem:[#allocation3 + $0x50] sm:$0xff] }
 0x39e   : > { %v4116_v20 = vpop.f32.mrf.mxu2 }
 0x39f   : > { %v4396_v17 = vadd.f32 %v4357_v35, %v4271_v1  ;;  %v4363_v30 = vpop.f32.mrf.mxu0  ;;  %v4149_v52 = vadd.f32 %v4116_v20, %v4024_v13  ;;  %v11212_v14 = vpop.f32.mrf.mxu1  ;;  %v4596_v1 = vld [vmem:[#allocation6 + $0xf0] ss:$2 sm:$0xff] }
 0x3a0   : > { %8451 = vmatmul.msk.f32.gmra.mxu1 %vm470_vm2, %v4698_v9  ;;  %v4600_v9 = vld [vmem:[#allocation6 + $0xf1] ss:$2 sm:$0xff] }
 0x3a1   : > { %8480 = vmatmul.msk.f32.gmra.mxu3 %vm470_vm2, %v11174_v49  ;;  %v4413_v57 = vadd.f32 %v11169_v7, %v4396_v17 }
 0x3a2   : > { %8501 = vmatmul.msk.f32.gmra.mxu0 %vm470_vm2, %v5089_v38 }
 0x3a3   : > { %8463 = vmatmul.msk.f32.gmra.mxu2 %vm470_vm2, %v4674_v21  ;;  %v4426_v60 = vmax.f32 %v4413_v57, 0.0 }
 0x3a4   : > { %v4235_v29 = vpop.f32.mrf.mxu3 }
 0x3a5   : > { %v4272_v39 = vadd.f32 %v4235_v29, %v4147_v42  ;;  %4439 = vst.msk [vmem:[#allocation6 + $0x100] sm:$0xff] %vm470_vm2, %v4426_v60  ;;  %v4611_v29 = vmax.f32 %v4596_v1, %v4600_v9  ;;  %v11260_v1 = vld [vmem:[#allocation3 + $0x52] sm:$0xff] }
 0x3a6   : > { %v4119_v43 = vpop.f32.mrf.mxu2 }
 0x3a7   : > { %v4397_v19 = vadd.f32 %v4360_v4, %v4272_v39  ;;  %v4366_v41 = vpop.f32.mrf.mxu0  ;;  %v11217_v4 = vld [vmem:[#allocation3 + $0x3a] sm:$0xff]  ;;  %v4150_v18 = vadd.f32 %v4119_v43, %v4025_v46 }
 0x3a8   : > { %8452 = vmatmul.msk.f32.gmra.mxu1 %vm470_vm2, %v4699_v55  ;;  %v4026_v55 = vadd.f32 %v11155_v63, %v11054_v33  ;;  %v5093_v33 = vld [vmem:[#allocation3 + $0x55] sm:$0xff] }
 0x3a9   : > { %8481 = vmatmul.msk.f32.gmra.mxu3 %vm470_vm2, %v11187_v3  ;;  %v4414_v24 = vadd.f32 %v11169_v7, %v4397_v19  ;;  %v11227_v19 = vpop.f32.mrf.mxu1 }
 0x3aa   : > { %8502 = vmatmul.msk.f32.gmra.mxu0 %vm470_vm2, %v5090_v11 }
 0x3ab   : > { %8464 = vmatmul.msk.f32.gmra.mxu2 %vm470_vm2, %v4675_v59  ;;  %v4427_v8 = vmax.f32 %v4414_v24, 0.0  ;;  %v11229_v24 = vld [vmem:[#allocation3 + $0x42] sm:$0xff] }
 0x3ac   : > { %v4238_v31 = vpop.f32.mrf.mxu3  ;;  %v4598_v20 = vld [vmem:[#allocation6 + $0x100] ss:$2 sm:$0x1]  ;;  %v4602_v17 = vld [vmem:[#allocation6 + $0x101] ss:$2 sm:$0x1] }
 0x3ad   : > { %v4273_v0 = vadd.f32 %v4238_v31, %v4148_v48  ;;  %4440 = vst.msk [vmem:[#allocation6 + $0x108] sm:$0xff] %vm470_vm2, %v4427_v8  ;;  %v4612_v39 = vmax.f32 %v4598_v20, %v4602_v17 }
 0x3ae   : > { %v4122_v10 = vpop.f32.mrf.mxu2 }
 0x3af   : > { %v4398_v27 = vadd.f32 %v4363_v30, %v4273_v0  ;;  %v4369_v56 = vpop.f32.mrf.mxu0  ;;  %v4151_v8 = vadd.f32 %v4122_v10, %v4026_v55  ;;  %v4678_v0 = vld [vmem:[#allocation3 + $0x58] sm:$0xff]  ;;  %v4027_v10 = vadd.f32 %v11176_v61, %v11082_v62 }
 0x3b1   : > { %8482 = vmatmul.msk.f32.gmra.mxu3 %vm470_vm2, %v11205_v47  ;;  %v4415_v35 = vadd.f32 %v11169_v7, %v4398_v27 }
 0x3b2   : > { %8503 = vmatmul.msk.f32.gmra.mxu0 %vm470_vm2, %v5091_v2 }
 0x3b3   : > { %8465 = vmatmul.msk.f32.gmra.mxu2 %vm470_vm2, %v4676_v26  ;;  %v4428_v15 = vmax.f32 %v4415_v35, 0.0  ;;  %v11241_v35 = vld [vmem:[#allocation3 + $0x4a] sm:$0xff]  ;;  %v11243_v26 = vpop.f32.mrf.mxu1 }
 0x3b4   : > { %v4241_v32 = vpop.f32.mrf.mxu3 }
 0x3b5   : > { %v4274_v25 = vadd.f32 %v4241_v32, %v4149_v52  ;;  %4441 = vst.msk [vmem:[#allocation6 + $0x110] sm:$0xff] %vm470_vm2, %v4428_v15 }
 0x3b6   : > { %v4125_v44 = vpop.f32.mrf.mxu2 }
 0x3b7   : > { %v4399_v16 = vadd.f32 %v4366_v41, %v4274_v25  ;;  %v4372_v6 = vpop.f32.mrf.mxu0  ;;  %v4152_v2 = vadd.f32 %v4125_v44, %v4027_v10  ;;  %v4679_v25 = vld [vmem:[#allocation3 + $0x60] sm:$0xff]  ;;  %v11255_v44 = vld [vmem:[%s12467_s3 + $0x80] sm:$0xff] }
 0x3b8   : > { %5318 = vmatpush.msra.mxu1 %v11255_v44 }
 0x3b9   : > { %8483 = vmatmul.msk.f32.gmra.mxu3 %vm470_vm2, %v11217_v4  ;;  %v4416_v50 = vadd.f32 %v11169_v7, %v4399_v16  ;;  %v5094_v16 = vld [vmem:[#allocation3 + $0x5d] sm:$0xff] }
 0x3ba   : > { %8504 = vmatmul.msk.f32.gmra.mxu0 %vm470_vm2, %v5092_v28 }
 0x3bb   : > { %8466 = vmatmul.msk.f32.gmra.mxu2 %vm470_vm2, %v4677_v53  ;;  %v4429_v30 = vmax.f32 %v4416_v50, 0.0  ;;  %v4028_v50 = vadd.f32 %v11193_v22, %v11097_v45 }
 0x3bc   : > { %v4604_v51 = vld [vmem:[#allocation6 + $0x104] ss:$2 sm:$0xff]  ;;  %v4606_v36 = vld [vmem:[#allocation6 + $0x114] ss:$2 sm:$0x1]  ;;  %v4244_v42 = vpop.f32.mrf.mxu3 }
 0x3bd   : > { %v4608_v57 = vld [vmem:[#allocation6 + $0x105] ss:$2 sm:$0xff]  ;;  %v4610_v21 = vld [vmem:[#allocation6 + $0x115] ss:$2 sm:$0x1]  ;;  %v4275_v38 = vadd.f32 %v4244_v42, %v4150_v18  ;;  %4442 = vst.msk [vmem:[#allocation6 + $0x118] sm:$0xff] %vm470_vm2, %v4429_v30  ;;  %v11266_v30 = vpop.f32.mrf.mxu1 }
 0x3be   : > { %v4128_v60 = vpop.f32.mrf.mxu2  ;;  %v4613_v43 = vmax.f32 %v4604_v51, %v4608_v57  ;;  %v4614_v40 = vmax.f32 %v4606_v36, %v4610_v21  ;;  %v4029_v57 = vadd.f32 %v11212_v14, %v11116_v37 }
 0x3bf   : > { %v4400_v41 = vadd.f32 %v4369_v56, %v4275_v38  ;;  %v4375_v59 = vpop.f32.mrf.mxu0  ;;  %v4153_v20 = vadd.f32 %v4128_v60, %v4028_v50  ;;  %v11272_v38 = vld [vmem:[#allocation3 + $0x5a] sm:$0xff] }
 0x3c0   : > { %v4615_v48 = vmax.f32 %v4611_v29, %v4613_v43  ;;  %v4616_v11 = vmax.f32 %v4612_v39, %v4614_v40 }
 0x3c1   : > { %8484 = vmatmul.msk.f32.gmra.mxu3 %vm470_vm2, %v11229_v24  ;;  %v4417_v31 = vadd.f32 %v11169_v7, %v4400_v41 }
 0x3c2   : > { %4617 = vst.msk [vmem:[#allocation3 + $0x6a] sm:$0xff] %vm470_vm2, %v4615_v48  ;;  %8505 = vmatmul.msk.f32.gmra.mxu0 %vm470_vm2, %v5093_v33  ;;  %v4030_v48 = vadd.f32 %v11227_v19, %v11128_v12 }
 0x3c3   : > { %8467 = vmatmul.msk.f32.gmra.mxu2 %vm470_vm2, %v4678_v0  ;;  %v4430_v63 = vmax.f32 %v4417_v31, 0.0  ;;  %4618 = vst.msk [vmem:[#allocation3 + $0x72] sm:$0x1] %vm493_vm3, %v4616_v11  ;;  %v11283_v11 = vld [vmem:[#allocation3 + $0x62] sm:$0xff] }
 0x3c4   : > { %v4247_v13 = vpop.f32.mrf.mxu3 }
 0x3c5   : > { %v4276_v27 = vadd.f32 %v4247_v13, %v4151_v8  ;;  %4443 = vst.msk [vmem:[#allocation6 + $0x120] sm:$0xff] %vm470_vm2, %v4430_v63  ;;  %v11278_v55 = vpop.f32.mrf.mxu1 }
 0x3c6   : > { %v4131_v56 = vpop.f32.mrf.mxu2 }
 0x3c7   : > { %v4401_v52 = vadd.f32 %v4372_v6, %v4276_v27  ;;  %v4378_v46 = vpop.f32.mrf.mxu0  ;;  %v4154_v60 = vadd.f32 %v4131_v56, %v4029_v57 }
 0x3c9   : > { %8485 = vmatmul.msk.f32.gmra.mxu3 %vm470_vm2, %v11241_v35  ;;  %v4418_v15 = vadd.f32 %v11169_v7, %v4401_v52  ;;  %v4700_v32 = vld [vmem:[#allocation3 + $0x69] sm:$0xff] }
 0x3ca   : > { %8453 = vmatmul.msk.f32.gmra.mxu1 %vm470_vm2, %v4700_v32  ;;  %8506 = vmatmul.msk.f32.gmra.mxu0 %vm470_vm2, %v5094_v16  ;;  %v4680_v9 = vld [vmem:[#allocation3 + $0x68] sm:$0xff] }
 0x3cb   : > { %8468 = vmatmul.msk.f32.gmra.mxu2 %vm470_vm2, %v4679_v25  ;;  %v4431_v62 = vmax.f32 %v4418_v15, 0.0  ;;  %v5095_v17 = vld [vmem:[#allocation3 + $0x65] sm:$0xff]  ;;  %v5096_v39 = vld [vmem:[#allocation3 + $0x6d] sm:$0xff] }
 0x3cc   : > { %v4250_v61 = vpop.f32.mrf.mxu3  ;;  %v4620_v0 = vld [vmem:[#allocation6 + $0x118] ss:$2 sm:$0xff]  ;;  %v4624_v63 = vld [vmem:[#allocation6 + $0x119] ss:$2 sm:$0xff] }
 0x3cd   : > { %v4277_v6 = vadd.f32 %v4250_v61, %v4152_v2  ;;  %4444 = vst.msk [vmem:[#allocation6 + $0x128] sm:$0xff] %vm470_vm2, %v4431_v62  ;;  %v4635_v32 = vmax.f32 %v4620_v0, %v4624_v63  ;;  %v11294_v62 = vld [vmem:[%s12467_s3 + $0xb8] sm:$0xff]  ;;  %v11308_v50 = vpop.f32.mrf.mxu1  ;;  %v11363_v0 = vld [vmem:[%s12467_s3 + $0xa0] sm:$0xff] }
 0x3ce   : > { %v4134_v18 = vpop.f32.mrf.mxu2  ;;  %v11299_v61 = vld [vmem:[%s12467_s3 + $0xd8] sm:$0xff]  ;;  %5465 = vmatpush.msra.mxu2 %v11294_v62 }
 0x3cf   : > { %v4402_v53 = vadd.f32 %v4375_v59, %v4277_v6  ;;  %v4381_v45 = vpop.f32.mrf.mxu0  ;;  %v4155_v8 = vadd.f32 %v4134_v18, %v4030_v48  ;;  %v11304_v6 = vld [vmem:[%s12467_s3 + $0xb0] sm:$0xff]  ;;  %v4031_v18 = vadd.f32 %v11243_v26, %v11136_v5  ;;  %5615 = vmatpush.msra.mxu3 %v11299_v61 }
 0x3d0   : > { %5466 = vmatpush.msra.mxu2 %v11304_v6 }
 0x3d1   : > { %8486 = vmatmul.msk.f32.gmra.mxu3 %vm470_vm2, %v11260_v1  ;;  %v4419_v28 = vadd.f32 %v11169_v7, %v4402_v53 }
 0x3d2   : > { %8507 = vmatmul.msk.f32.gmra.mxu0 %vm470_vm2, %v5095_v17 }
 0x3d3   : > { %8469 = vmatmul.msk.f32.gmra.mxu2 %vm470_vm2, %v4680_v9  ;;  %v4432_v51 = vmax.f32 %v4419_v28, 0.0  ;;  %v11317_v9 = vld [vmem:[#allocation3 + $0x6a] sm:$0xff] }
 0x3d4   : > { %v4253_v36 = vpop.f32.mrf.mxu3  ;;  %v4622_v33 = vld [vmem:[#allocation6 + $0x128] ss:$2 sm:$0x1]  ;;  %v4626_v13 = vld [vmem:[#allocation6 + $0x129] ss:$2 sm:$0x1] }
 0x3d5   : > { %v4278_v22 = vadd.f32 %v4253_v36, %v4153_v20  ;;  %4445 = vst.msk [vmem:[#allocation6 + $0x130] sm:$0xff] %vm470_vm2, %v4432_v51  ;;  %v4636_v25 = vmax.f32 %v4622_v33, %v4626_v13  ;;  %v11315_v20 = vld [vmem:[%s12467_s3 + $0xd0] sm:$0xff]  ;;  %v11368_v33 = vld [vmem:[%s12467_s3 + $0xc0] sm:$0xff]  ;;  %v11377_v13 = vld [vmem:[%s12467_s3 + $0x118] sm:$0xff] }
 0x3d6   : > { %v4137_v42 = vpop.f32.mrf.mxu2  ;;  %5616 = vmatpush.msra.mxu3 %v11315_v20  ;;  %5915 = vmatpush.msrb.mxu1 %v11377_v13 }
 0x3d7   : > { %v4403_v21 = vadd.f32 %v4378_v46, %v4278_v22  ;;  %v4384_v14 = vpop.f32.mrf.mxu0  ;;  %v4156_v5 = vadd.f32 %v4137_v42, %v4031_v18  ;;  %v4032_v42 = vadd.f32 %v11266_v30, %v11147_v23  ;;  %v11344_v23 = vld [vmem:[%s12467_s3 + $0xa8] sm:$0xff] }
 0x3d8   : > { %v11349_v30 = vld [vmem:[%s12467_s3 + $0xc8] sm:$0xff]  ;;  %5467 = vmatpush.msra.mxu2 %v11344_v23 }
 0x3d9   : > { %8487 = vmatmul.msk.f32.gmra.mxu3 %vm470_vm2, %v11272_v38  ;;  %v4420_v29 = vadd.f32 %v11169_v7, %v4403_v21  ;;  %v5384_v18 = vld [vmem:[#allocation3 + $0xf] sm:$0xff] }
 0x3da   : > { %8508 = vmatmul.msk.f32.gmra.mxu0 %vm470_vm2, %v5096_v39  ;;  %5617 = vmatpush.msra.mxu3 %v11349_v30 }
 0x3db   : > { %v4433_v43 = vmax.f32 %v4420_v29, 0.0  ;;  %5468 = vmatpush.msra.mxu2 %v11363_v0 }
 0x3dc   : > { %v4256_v40 = vpop.f32.mrf.mxu3  ;;  %5618 = vmatpush.msra.mxu3 %v11368_v33 }
 0x3dd   : > { %v4279_v41 = vadd.f32 %v4256_v40, %v4154_v60  ;;  %4446 = vst.msk [vmem:[#allocation6 + $0x138] sm:$0xff] %vm470_vm2, %v4433_v43  ;;  %v11331_v60 = vpop.f32.mrf.mxu1 }
 0x3de   : > { %v4140_v37 = vpop.f32.mrf.mxu2 }
 0x3df   : > { %v4404_v59 = vadd.f32 %v4381_v45, %v4279_v41  ;;  %v4387_v17 = vpop.f32.mrf.mxu0  ;;  %v4157_v29 = vadd.f32 %v4140_v37, %v4032_v42 }
 0x3e1   : > { %8488 = vmatmul.msk.f32.gmra.mxu3 %vm470_vm2, %v11283_v11  ;;  %v4421_v31 = vadd.f32 %v11169_v7, %v4404_v59 }
 0x3e3   : > { %v4434_v27 = vmax.f32 %v4421_v31, 0.0 }
 0x3e4   : > { %v4628_v56 = vld [vmem:[#allocation6 + $0x12c] ss:$2 sm:$0xff]  ;;  %v4630_v10 = vld [vmem:[#allocation6 + $0x13c] ss:$2 sm:$0x1]  ;;  %v4259_v52 = vpop.f32.mrf.mxu3 }
 0x3e5   : > { %v4632_v2 = vld [vmem:[#allocation6 + $0x12d] ss:$2 sm:$0xff]  ;;  %v4634_v15 = vld [vmem:[#allocation6 + $0x13d] ss:$2 sm:$0x1]  ;;  %v4280_v12 = vadd.f32 %v4259_v52, %v4155_v8  ;;  %4447 = vst.msk [vmem:[#allocation6 + $0x140] sm:$0xff] %vm470_vm2, %v4434_v27  ;;  %v4033_v27 = vadd.f32 %v11278_v55, %v11157_v58 }
 0x3e6   : > { %v11289_v19 = vpop.f32.mrf.mxu2  ;;  %v4637_v46 = vmax.f32 %v4628_v56, %v4632_v2  ;;  %v4638_v16 = vmax.f32 %v4630_v10, %v4634_v15  ;;  %v11356_v8 = vld [vmem:[%s12467_s3 + $0xf8] sm:$0xff] }
 0x3e7   : > { %v4405_v53 = vadd.f32 %v4384_v14, %v4280_v12  ;;  %v4390_v48 = vpop.f32.mrf.mxu0  ;;  %5765 = vmatpush.msra.mxu0 %v11356_v8  ;;  %v4158_v10 = vadd.f32 %v11289_v19, %v4033_v27  ;;  %v11430_v27 = vld [vmem:[%s12467_s3 + $0xe0] sm:$0xff] }
 0x3e8   : > { %v4639_v28 = vmax.f32 %v4635_v32, %v4637_v46  ;;  %v4640_v51 = vmax.f32 %v4636_v25, %v4638_v16  ;;  %v11388_v32 = vpop.f32.mrf.mxu1  ;;  %v5234_v16 = vld [vmem:[#allocation3 + $0xe] sm:$0xff] }
 0x3e9   : > { %8489 = vmatmul.msk.f32.gmra.mxu3 %vm470_vm2, %v11317_v9  ;;  %v4422_v26 = vadd.f32 %v11169_v7, %v4405_v53 }
 0x3ea   : > { %4641 = vst.msk [vmem:[#allocation3 + $0x77] sm:$0xff] %vm470_vm2, %v4639_v28 }
 0x3eb   : > { %v4435_v36 = vmax.f32 %v4422_v26, 0.0  ;;  %4642 = vst.msk [vmem:[#allocation3 + $0x7f] sm:$0x1] %vm493_vm3, %v4640_v51  ;;  %v5235_v26 = vld [vmem:[#allocation3 + $0x16] sm:$0xff] }
 0x3ec   : > { %v4262_v45 = vpop.f32.mrf.mxu3 }
 0x3ed   : > { %v4281_v22 = vadd.f32 %v4262_v45, %v4156_v5  ;;  %4448 = vst.msk [vmem:[#allocation6 + $0x148] sm:$0xff] %vm470_vm2, %v4435_v36  ;;  %v11406_v5 = vld [vmem:[%s12467_s3 + $0xf0] sm:$0xff] }
 0x3ee   : > { %v11327_v57 = vpop.f32.mrf.mxu2  ;;  %5766 = vmatpush.msra.mxu0 %v11406_v5 }
 0x3ef   : > { %v4406_v21 = vadd.f32 %v4387_v17, %v4281_v22  ;;  %v4393_v55 = vpop.f32.mrf.mxu0 }
 0x3f0   : > { %v11400_v51 = vpop.f32.mrf.mxu1 }
 0x3f1   : > { %v4423_v39 = vadd.f32 %v11169_v7, %v4406_v21  ;;  %v4701_v43 = vld [vmem:[#allocation3 + $0x71] sm:$0xff] }
 0x3f2   : > { %v4681_v40 = vld [vmem:[#allocation3 + $0x70] sm:$0xff]  ;;  %8454 = vmatmul.msk.f32.gmra.mxu1 %vm470_vm2, %v4701_v43  ;;  %v4702_v2 = vld [vmem:[#allocation3 + $0x79] sm:$0xff] }
 0x3f3   : > { %v11334_v41 = vld [vmem:[#allocation3 + $0x72] sm:$0xff]  ;;  %8470 = vmatmul.msk.f32.gmra.mxu2 %vm470_vm2, %v4681_v40  ;;  %v4436_v59 = vmax.f32 %v4423_v39, 0.0  ;;  %v11386_v12 = vld [vmem:[#allocation3 + $0x7a] sm:$0xff] }
 0x3f4   : > { %v5097_v14 = vld [vmem:[#allocation3 + $0x75] sm:$0xff]  ;;  %8490 = vmatmul.msk.f32.gmra.mxu3 %vm470_vm2, %v11334_v41  ;;  %v4265_v37 = vpop.f32.mrf.mxu3 }
 0x3f5   : > { %8509 = vmatmul.msk.f32.gmra.mxu0 %vm470_vm2, %v5097_v14  ;;  %v4282_v31 = vadd.f32 %v4265_v37, %v4157_v29  ;;  %4449 = vst.msk [vmem:[#allocation6 + $0x150] sm:$0xff] %vm470_vm2, %v4436_v59  ;;  %v4682_v15 = vld [vmem:[#allocation3 + $0x78] sm:$0xff]  ;;  %v11424_v14 = vld [vmem:[%s12467_s3 + $0xe8] sm:$0xff] }
 0x3f6   : > { %v11370_v63 = vpop.f32.mrf.mxu2  ;;  %v4644_v45 = vld [vmem:[#allocation6 + $0x140] ss:$2 sm:$0xff]  ;;  %v4648_v22 = vld [vmem:[#allocation6 + $0x141] ss:$2 sm:$0xff]  ;;  %5767 = vmatpush.msra.mxu0 %v11424_v14 }
 0x3f7   : > { %v4407_v56 = vadd.f32 %v4390_v48, %v4282_v31  ;;  %v4659_v48 = vmax.f32 %v4644_v45, %v4648_v22  ;;  %v5239_v22 = vld [vmem:[#allocation3 + $0x36] sm:$0xff] }
 0x3f8   : > { %5768 = vmatpush.msra.mxu0 %v11430_v27 }
 0x3f9   : > { %v4424_v52 = vadd.f32 %v11169_v7, %v4407_v56 }
 0x3fa   : > { %8455 = vmatmul.msk.f32.gmra.mxu1 %vm470_vm2, %v4702_v2  ;;  %v5386_v2 = vld [vmem:[#allocation3 + $0x1f] sm:$0xff] }
 0x3fb   : > { %8471 = vmatmul.msk.f32.gmra.mxu2 %vm470_vm2, %v4682_v15  ;;  %v4437_v25 = vmax.f32 %v4424_v52, 0.0  ;;  %v5236_v52 = vld [vmem:[#allocation3 + $0x1e] sm:$0xff] }
 0x3fc   : > { %8491 = vmatmul.msk.f32.gmra.mxu3 %vm470_vm2, %v11386_v12  ;;  %v4268_v58 = vpop.f32.mrf.mxu3  ;;  %v4646_v42 = vld [vmem:[#allocation6 + $0x150] ss:$2 sm:$0x1]  ;;  %v4650_v21 = vld [vmem:[#allocation6 + $0x151] ss:$2 sm:$0x1] }
 0x3fd   : > { %v4283_v46 = vadd.f32 %v4268_v58, %v4158_v10  ;;  %4450 = vst.msk [vmem:[#allocation6 + $0x158] sm:$0xff] %vm470_vm2, %v4437_v25  ;;  %v4660_v59 = vmax.f32 %v4646_v42, %v4650_v21  ;;  %v5684_v42 = vld [vmem:[#allocation3 + $0x1b] sm:$0xff] }
 0x3fe   : > { %v11393_v53 = vpop.f32.mrf.mxu2  ;;  %v5389_v21 = vld [vmem:[#allocation3 + $0x37] sm:$0xff] }
 0x3ff   : > { %v4408_v19 = vadd.f32 %v4393_v55, %v4283_v46  ;;  %v5237_v46 = vld [vmem:[#allocation3 + $0x26] sm:$0xff] }
 0x401   : > { %v4425_v28 = vadd.f32 %v11169_v7, %v4408_v19  ;;  %v11411_v7 = vld [vmem:[%s12467_s3 + $0x110] sm:$0xff]  ;;  %v5387_v19 = vld [vmem:[#allocation3 + $0x27] sm:$0xff] }
 0x402   : > { %8516 = vmatmul.msk.f32.vlgmr.msra.gmra.mxu1 %vm470_vm2, %v5234_v16 }
 0x403   : > { %8536 = vmatmul.msk.f32.vlgmr.msra.gmra.mxu2 %vm470_vm2, %v5384_v18  ;;  %v4438_v17 = vmax.f32 %v4425_v28, 0.0  ;;  %5916 = vmatpush.msrb.mxu1 %v11411_v7  ;;  %v5238_v28 = vld [vmem:[#allocation3 + $0x2e] sm:$0xff] }
 0x404   : > { %8556 = vmatmul.msk.f32.vlgmr.msra.gmra.mxu3 %vm470_vm2, %v11160_v54  ;;  %v5385_v54 = vld [vmem:[#allocation3 + $0x17] sm:$0xff]  ;;  %v11438_v15 = vpop.f32.mrf.mxu3 }
 0x405   : > { %4451 = vst.msk [vmem:[#allocation6 + $0x160] sm:$0xff] %vm470_vm2, %v4438_v17  ;;  %v5388_v17 = vld [vmem:[#allocation3 + $0x2f] sm:$0xff] }
 0x406   : > { %v11415_v36 = vpop.f32.mrf.mxu2 }
 0x40a   : > { %8517 = vmatmul.msk.f32.gmra.mxu1 %vm470_vm2, %v5235_v26 }
 0x40b   : > { %8537 = vmatmul.msk.f32.gmra.mxu2 %vm470_vm2, %v5385_v54 }
 0x40c   : > { %8557 = vmatmul.msk.f32.gmra.mxu3 %vm470_vm2, %v11174_v49  ;;  %v4652_v29 = vld [vmem:[#allocation6 + $0x154] ss:$2 sm:$0xff]  ;;  %v4654_v39 = vld [vmem:[#allocation6 + $0x164] ss:$2 sm:$0x1]  ;;  %v11432_v49 = vpop.f32.mrf.mxu1  ;;  %v11452_v16 = vpop.f32.mrf.mxu3 }
 0x40d   : > { %v4656_v43 = vld [vmem:[#allocation6 + $0x155] ss:$2 sm:$0xff]  ;;  %v4658_v40 = vld [vmem:[#allocation6 + $0x165] ss:$2 sm:$0x1] }
 0x40e   : > { %v4661_v37 = vmax.f32 %v4652_v29, %v4656_v43  ;;  %v4662_v31 = vmax.f32 %v4654_v39, %v4658_v40  ;;  %v11442_v25 = vpop.f32.mrf.mxu2  ;;  %v5240_v39 = vld [vmem:[#allocation3 + $0x3e] sm:$0xff] }
 0x40f   : > { %v5685_v43 = vld [vmem:[#allocation3 + $0x23] sm:$0xff] }
 0x410   : > { %v4663_v56 = vmax.f32 %v4659_v48, %v4661_v37  ;;  %v4664_v10 = vmax.f32 %v4660_v59, %v4662_v31  ;;  %v11481_v48 = vpop.f32.mrf.mxu0  ;;  %v5390_v59 = vld [vmem:[#allocation3 + $0x3f] sm:$0xff]  ;;  %v5686_v31 = vld [vmem:[#allocation3 + $0x2b] sm:$0xff] }
 0x411   : > { %v5241_v37 = vld [vmem:[#allocation3 + $0x46] sm:$0xff] }
 0x412   : > { %4665 = vst.msk [vmem:[#allocation3 + $0x84] sm:$0xff] %vm470_vm2, %v4663_v56  ;;  %8518 = vmatmul.msk.f32.gmra.mxu1 %vm470_vm2, %v5236_v52  ;;  %v5391_v56 = vld [vmem:[#allocation3 + $0x47] sm:$0xff] }
 0x413   : > { %8538 = vmatmul.msk.f32.gmra.mxu2 %vm470_vm2, %v5386_v2  ;;  %4666 = vst.msk [vmem:[#allocation3 + $0x8c] sm:$0x1] %vm493_vm3, %v4664_v10 }
 0x414   : > { %8558 = vmatmul.msk.f32.gmra.mxu3 %vm470_vm2, %v11187_v3  ;;  %v11445_v58 = vpop.f32.mrf.mxu1  ;;  %v11466_v54 = vpop.f32.mrf.mxu3 }
 0x416   : > { %v11454_v3 = vpop.f32.mrf.mxu2 }
 0x418   : > { %v11499_v2 = vpop.f32.mrf.mxu0 }
 0x419   : > { %v5098_v55 = vld [vmem:[#allocation3 + $0x7d] sm:$0xff] }
 0x41a   : > { %8510 = vmatmul.msk.f32.gmra.mxu0 %vm470_vm2, %v5098_v55  ;;  %8519 = vmatmul.msk.f32.gmra.mxu1 %vm470_vm2, %v5237_v46  ;;  %v5099_v18 = vld [vmem:[#allocation3 + $0x85] sm:$0xff]  ;;  %v5242_v55 = vld [vmem:[#allocation3 + $0x4e] sm:$0xff] }
 0x41b   : > { %8539 = vmatmul.msk.f32.gmra.mxu2 %vm470_vm2, %v5387_v19  ;;  %v5687_v46 = vld [vmem:[#allocation3 + $0x33] sm:$0xff] }
 0x41c   : > { %8559 = vmatmul.msk.f32.gmra.mxu3 %vm470_vm2, %v11205_v47  ;;  %v11458_v26 = vpop.f32.mrf.mxu1  ;;  %v8593_v47 = vld [vmem:[%s12467_s3 + $0x108] sm:$0xff]  ;;  %v11477_v29 = vpop.f32.mrf.mxu3 }
 0x41d   : > { %5917 = vmatpush.msrb.mxu1 %v8593_v47  ;;  %v5392_v19 = vld [vmem:[#allocation3 + $0x4f] sm:$0xff] }
 0x41e   : > { %v11468_v45 = vpop.f32.mrf.mxu2 }
 0x422   : > { %8511 = vmatmul.msk.f32.gmra.mxu0 %vm470_vm2, %v5099_v18  ;;  %8520 = vmatmul.msk.f32.gmra.mxu1 %vm470_vm2, %v5238_v28  ;;  %v8592_v28 = vld [vmem:[%s12467_s3 + $0x100] sm:$0xff] }
 0x423   : > { %8540 = vmatmul.msk.f32.gmra.mxu2 %vm470_vm2, %v5388_v17  ;;  %v11515_v17 = vpop.f32.mrf.mxu0  ;;  %5918 = vmatpush.msrb.mxu1 %v8592_v28 }
 0x424   : > { %8560 = vmatmul.msk.f32.gmra.mxu3 %vm470_vm2, %v11217_v4  ;;  %v11475_v4 = vpop.f32.mrf.mxu1  ;;  %v11492_v10 = vpop.f32.mrf.mxu3 }
 0x425   : > { %6352 = vmatpush.msra.mxu1 %v11377_v13 }
 0x426   : > { %v11479_v40 = vpop.f32.mrf.mxu2 }
 0x427   : > { %6353 = vmatpush.msra.mxu1 %v11411_v7  ;;  %v5244_v7 = vld [vmem:[#allocation3 + $0x5e] sm:$0xff] }
 0x429   : > { %6354 = vmatpush.msra.mxu1 %v8593_v47 }
 0x42a   : > { %8521 = vmatmul.msk.f32.gmra.mxu1 %vm470_vm2, %v5239_v22  ;;  %8576 = vmatmul.msk.f32.vlgmr.msra.gmra.mxu0 %vm470_vm2, %v5684_v42  ;;  %v5243_v22 = vld [vmem:[#allocation3 + $0x56] sm:$0xff] }
 0x42b   : > { %8541 = vmatmul.msk.f32.gmra.mxu2 %vm470_vm2, %v5389_v21  ;;  %v5688_v42 = vld [vmem:[#allocation3 + $0x3b] sm:$0xff]  ;;  %6355 = vmatpush.msra.mxu1 %v8592_v28 }
 0x42c   : > { %8561 = vmatmul.msk.f32.gmra.mxu3 %vm470_vm2, %v11229_v24  ;;  %v11488_v24 = vpop.f32.mrf.mxu1  ;;  %v11508_v18 = vpop.f32.mrf.mxu3  ;;  %v6041_v28 = vld [vmem:[%s12467_s3 + $0x18] sm:$0xff] }
 0x42d   : > { %12504 = vst [vmem:[#allocation23_spill] sm:$0xff] %v11488_v24  ;;  %6095 = vmatpush.msrb.mxu3 %v6041_v28  ;;  %v6038_v28 = vld [vmem:[%s12467_s3] sm:$0xff] }
 0x42e   : > { %v11497_v52 = vpop.f32.mrf.mxu2  ;;  %v5848_v24 = vld [vmem:[#allocation3 + $0x8c] sm:$0xff] }
 0x42f   : > { %12505 = vst [vmem:[#allocation20_spill] sm:$0xff] %v11497_v52 }
 0x432   : > { %8522 = vmatmul.msk.f32.gmra.mxu1 %vm470_vm2, %v5240_v39  ;;  %8577 = vmatmul.msk.f32.gmra.mxu0 %vm470_vm2, %v5685_v43  ;;  %v11530_v43 = vpop.f32.mrf.mxu0 }
 0x433   : > { %8542 = vmatmul.msk.f32.gmra.mxu2 %vm470_vm2, %v5390_v59  ;;  %v5689_v59 = vld [vmem:[#allocation3 + $0x43] sm:$0xff] }
 0x434   : > { %8562 = vmatmul.msk.f32.gmra.mxu3 %vm470_vm2, %v11241_v35  ;;  %v11501_v35 = vpop.f32.mrf.mxu1  ;;  %v11526_v39 = vpop.f32.mrf.mxu3 }
 0x435   : > { %12506 = vst [vmem:[#allocation24_spill] sm:$0xff] %v11501_v35 }
 0x43a   : > { %8523 = vmatmul.msk.f32.gmra.mxu1 %vm470_vm2, %v5241_v37  ;;  %8578 = vmatmul.msk.f32.gmra.mxu0 %vm470_vm2, %v5686_v31  ;;  %v5394_v37 = vld [vmem:[#allocation3 + $0x5f] sm:$0xff] }
 0x43b   : > { %8543 = vmatmul.msk.f32.gmra.mxu2 %vm470_vm2, %v5391_v56  ;;  %v5245_v56 = vld [vmem:[#allocation3 + $0x66] sm:$0xff] }
 0x43c   : > { %8563 = vmatmul.msk.f32.gmra.mxu3 %vm470_vm2, %v11260_v1  ;;  %v11510_v1 = vpop.f32.mrf.mxu2  ;;  %v11521_v21 = vpop.f32.mrf.mxu1 }
 0x43d   : > { %12507 = vst [vmem:[#allocation18_spill] sm:$0xff] %v11510_v1  ;;  %v11539_v47 = vpop.f32.mrf.mxu3 }
 0x43e   : > { %12508 = vst [vmem:[#allocation25_spill] sm:$0xff] %v11521_v21  ;;  %v5549_v21 = vld [vmem:[#allocation3 + $0x92] sm:$0xff] }
 0x442   : > { %8524 = vmatmul.msk.f32.gmra.mxu1 %vm470_vm2, %v5242_v55  ;;  %8579 = vmatmul.msk.f32.gmra.mxu0 %vm470_vm2, %v5687_v46  ;;  %v5690_v55 = vld [vmem:[#allocation3 + $0x4b] sm:$0xff]  ;;  %v11543_v46 = vpop.f32.mrf.mxu0 }
 0x443   : > { %8544 = vmatmul.msk.f32.gmra.mxu2 %vm470_vm2, %v5392_v19  ;;  %v5395_v19 = vld [vmem:[#allocation3 + $0x67] sm:$0xff] }
 0x444   : > { %8564 = vmatmul.msk.f32.gmra.mxu3 %vm470_vm2, %v11272_v38  ;;  %v5393_v38 = vld [vmem:[#allocation3 + $0x57] sm:$0xff]  ;;  %v11528_v13 = vpop.f32.mrf.mxu2 }
 0x445   : > { %12509 = vst [vmem:[#allocation21_spill] sm:$0xff] %v11528_v13 }
 0x44a   : > { %8525 = vmatmul.msk.f32.gmra.mxu1 %vm470_vm2, %v5243_v22  ;;  %8580 = vmatmul.msk.f32.gmra.mxu0 %vm470_vm2, %v5688_v42  ;;  %v5691_v42 = vld [vmem:[#allocation3 + $0x53] sm:$0xff] }
 0x44b   : > { %8545 = vmatmul.msk.f32.gmra.mxu2 %vm470_vm2, %v5393_v38  ;;  %v8614_v38 = vld [vmem:[%s12467_s3 + $0x30] sm:$0xff] }
 0x44c   : > { %8565 = vmatmul.msk.f32.gmra.mxu3 %vm470_vm2, %v11283_v11  ;;  %v11537_v11 = vpop.f32.mrf.mxu1  ;;  %v11541_v31 = vpop.f32.mrf.mxu2 }
 0x44d   : > { %12510 = vst [vmem:[#allocation26_spill] sm:$0xff] %v11537_v11 }
 0x44e   : > { %12511 = vst [vmem:[#allocation19_spill] sm:$0xff] %v11541_v31  ;;  %v5548_v31 = vld [vmem:[#allocation3 + $0x8a] sm:$0xff] }
 0x452   : > { %8526 = vmatmul.msk.f32.gmra.mxu1 %vm470_vm2, %v5244_v7  ;;  %8581 = vmatmul.msk.f32.gmra.mxu0 %vm470_vm2, %v5689_v59  ;;  %v5246_v7 = vld [vmem:[#allocation3 + $0x6e] sm:$0xff] }
 0x453   : > { %8546 = vmatmul.msk.f32.gmra.mxu2 %vm470_vm2, %v5394_v37  ;;  %v8613_v59 = vld [vmem:[%s12467_s3 + $0x28] sm:$0xff] }
 0x454   : > { %8566 = vmatmul.msk.f32.gmra.mxu3 %vm470_vm2, %v11317_v9  ;;  %v8615_v9 = vld [vmem:[%s12467_s3 + $0x38] sm:$0xff]  ;;  %v11556_v22 = vpop.f32.mrf.mxu1  ;;  %v6039_v37 = vld [vmem:[%s12467_s3 + $0x8] sm:$0xff] }
 0x455   : > { %6066 = vmatpush.msrb.mxu2 %v8615_v9  ;;  %12512 = vst [vmem:[#allocation22_spill] sm:$0xff] %v11556_v22  ;;  %v8612_v9 = vld [vmem:[%s12467_s3 + $0x20] sm:$0xff]  ;;  %v5398_v22 = vld [vmem:[#allocation3 + $0x7f] sm:$0xff] }
 0x457   : > { %6067 = vmatpush.msrb.mxu2 %v8614_v38  ;;  %v11585_v38 = vpop.f32.mrf.mxu0 }
 0x459   : > { %6068 = vmatpush.msrb.mxu2 %v8613_v59  ;;  %v8623_v59 = vld [vmem:[%s12467_s3 + $0x58] sm:$0xff] }
 0x45a   : > { %8527 = vmatmul.msk.f32.gmra.mxu1 %vm470_vm2, %v5245_v56  ;;  %8582 = vmatmul.msk.f32.gmra.mxu0 %vm470_vm2, %v5690_v55  ;;  %v5396_v56 = vld [vmem:[#allocation3 + $0x6f] sm:$0xff]  ;;  %v11572_v55 = vpop.f32.mrf.mxu3 }
 0x45b   : > { %8547 = vmatmul.msk.f32.gmra.mxu2 %vm470_vm2, %v5395_v19  ;;  %12513 = vst [vmem:[#allocation27_spill] sm:$0xff] %v11572_v55  ;;  %v11574_v19 = vpop.f32.mrf.mxu2  ;;  %v5847_v55 = vld [vmem:[#allocation3 + $0x84] sm:$0xff] }
 0x45c   : > { %8567 = vmatmul.msk.f32.gmra.mxu3 %vm470_vm2, %v11334_v41  ;;  %v6040_v41 = vld [vmem:[%s12467_s3 + $0x10] sm:$0xff]  ;;  %12514 = vst [vmem:[#allocation28_spill] sm:$0xff] %v11574_v19  ;;  %6069 = vmatpush.msrb.mxu2 %v8612_v9 }
 0x45d   : > { %6096 = vmatpush.msrb.mxu3 %v6040_v41  ;;  %v5247_v41 = vld [vmem:[#allocation3 + $0x76] sm:$0xff]  ;;  %v5248_v19 = vld [vmem:[#allocation3 + $0x7e] sm:$0xff] }
 0x45e   : > { %6130 = vmatpush.msra.mxu2 %v8623_v59  ;;  %v8621_v59 = vld [vmem:[%s12467_s3 + $0x48] sm:$0xff] }
 0x45f   : > { %6097 = vmatpush.msrb.mxu3 %v6039_v37 }
 0x461   : > { %6098 = vmatpush.msrb.mxu3 %v6038_v28  ;;  %v11603_v28 = vpop.f32.mrf.mxu0 }
 0x462   : > { %8528 = vmatmul.msk.f32.gmra.mxu1 %vm470_vm2, %v5246_v7  ;;  %8583 = vmatmul.msk.f32.gmra.mxu0 %vm470_vm2, %v5691_v42  ;;  %v11587_v42 = vpop.f32.mrf.mxu1  ;;  %v5692_v7 = vld [vmem:[#allocation3 + $0x5b] sm:$0xff]  ;;  %v11599_v37 = vpop.f32.mrf.mxu3 }
 0x463   : > { %8548 = vmatmul.msk.f32.gmra.mxu2 %vm470_vm2, %v5396_v56  ;;  %12515 = vst [vmem:[#allocation29_spill] sm:$0xff] %v11587_v42  ;;  %v11590_v56 = vld [vmem:[#allocation3 + $0x82] sm:$0xff]  ;;  %v11601_v9 = vpop.f32.mrf.mxu2 }
 0x464   : > { %8568 = vmatmul.msk.f32.gmra.mxu3 %vm470_vm2, %v11386_v12  ;;  %v5397_v12 = vld [vmem:[#allocation3 + $0x77] sm:$0xff]  ;;  %12516 = vst [vmem:[#allocation30_spill] sm:$0xff] %v11599_v37  ;;  %v5693_v42 = vld [vmem:[#allocation3 + $0x63] sm:$0xff] }
 0x465   : > { %12517 = vst [vmem:[#allocation31_spill] sm:$0xff] %v11601_v9  ;;  %v8628_v9 = vld [vmem:[%s12467_s3 + $0x70] sm:$0xff]  ;;  %v5249_v37 = vld [vmem:[#allocation3 + $0x86] sm:$0xff] }
 0x469   : > { %v11636_v13 = vpop.f32.mrf.mxu0 }
 0x46a   : > { %8529 = vmatmul.msk.f32.gmra.mxu1 %vm470_vm2, %v5247_v41  ;;  %8584 = vmatmul.msk.f32.gmra.mxu0 %vm470_vm2, %v5692_v7  ;;  %v8622_v7 = vld [vmem:[%s12467_s3 + $0x50] sm:$0xff]  ;;  %12521 = vst [vmem:[#allocation35_spill] sm:$0xff] %v11636_v13 }
 0x46b   : > { %8549 = vmatmul.msk.f32.gmra.mxu2 %vm470_vm2, %v5397_v12  ;;  %v8629_v12 = vld [vmem:[%s12467_s3 + $0x78] sm:$0xff] }
 0x46c   : > { %8569 = vmatmul.msk.f32.gmra.mxu3 %vm470_vm2, %v11590_v56  ;;  %6131 = vmatpush.msra.mxu2 %v8622_v7  ;;  %v8620_v7 = vld [vmem:[%s12467_s3 + $0x40] sm:$0xff] }
 0x46d   : > { %6167 = vmatpush.msra.mxu3 %v8629_v12  ;;  %v8627_v12 = vld [vmem:[%s12467_s3 + $0x68] sm:$0xff] }
 0x46e   : > { %6132 = vmatpush.msra.mxu2 %v8621_v59  ;;  %v5694_v59 = vld [vmem:[#allocation3 + $0x6b] sm:$0xff] }
 0x46f   : > { %v4815_v41 = vpop.f32.mrf.mxu1  ;;  %6168 = vmatpush.msra.mxu3 %v8628_v9  ;;  %v5399_v9 = vld [vmem:[#allocation3 + $0x87] sm:$0xff] }
 0x470   : > { %6133 = vmatpush.msra.mxu2 %v8620_v7 }
 0x471   : > { %6169 = vmatpush.msra.mxu3 %v8627_v12  ;;  %v5695_v12 = vld [vmem:[#allocation3 + $0x73] sm:$0xff] }
 0x472   : > { %8530 = vmatmul.msk.f32.gmra.mxu1 %vm470_vm2, %v5248_v19  ;;  %8585 = vmatmul.msk.f32.gmra.mxu0 %vm470_vm2, %v5693_v42  ;;  %v8626_v19 = vld [vmem:[%s12467_s3 + $0x60] sm:$0xff] }
 0x473   : > { %8550 = vmatmul.msk.f32.gmra.mxu2 %vm470_vm2, %v5398_v22  ;;  %6170 = vmatpush.msra.mxu3 %v8626_v19  ;;  %v5834_v19 = vld [vmem:[#allocation3 + $0x1c] sm:$0xff] }
 0x474   : > { %8570 = vmatmul.msk.f32.gmra.mxu3 %vm470_vm2, %v5548_v31  ;;  %v11632_v31 = vpop.f32.mrf.mxu3 }
 0x475   : > { %12519 = vst [vmem:[#allocation33_spill] sm:$0xff] %v11632_v31 }
 0x476   : > { %v4928_v11 = vpop.f32.mrf.mxu2 }
 0x477   : > { %v11630_v42 = vadd.f32 %v4928_v11, %v4815_v41  ;;  %v11634_v22 = vpop.f32.mrf.mxu1  ;;  %v8635_v11 = vld [vmem:[%s12467_s3 + $0x98] sm:$0xff] }
 0x478   : > { %12520 = vst [vmem:[#allocation34_spill] sm:$0xff] %v11634_v22  ;;  %6204 = vmatpush.msrb.mxu0 %v8635_v11  ;;  %v11649_v22 = vpop.f32.mrf.mxu0 }
 0x479   : > { %12518 = vst [vmem:[#allocation32_spill] sm:$0xff] %v11630_v42 }
 0x47a   : > { %8531 = vmatmul.msk.f32.gmra.mxu1 %vm470_vm2, %v5249_v37  ;;  %8586 = vmatmul.msk.f32.gmra.mxu0 %vm470_vm2, %v5694_v59  ;;  %12523 = vst [vmem:[#allocation37_spill] sm:$0xff] %v11649_v22  ;;  %v6042_v37 = vld [vmem:[#allocation3 + $0x81] sm:$0xff] }
 0x47b   : > { %8551 = vmatmul.msk.f32.gmra.mxu2 %vm470_vm2, %v5399_v9  ;;  %v6036_v59 = vld [vmem:[#allocation3 + $0x80] sm:$0xff] }
 0x47c   : > { %8571 = vmatmul.msk.f32.gmra.mxu3 %vm470_vm2, %v5549_v21  ;;  %v11647_v7 = vpop.f32.mrf.mxu3  ;;  %v8634_v21 = vld [vmem:[%s12467_s3 + $0x90] sm:$0xff] }
 0x47d   : > { %12522 = vst [vmem:[#allocation36_spill] sm:$0xff] %v11647_v7  ;;  %6205 = vmatpush.msrb.mxu0 %v8634_v21 }
 0x47f   : > { %v11645_v41 = vpop.f32.mrf.mxu1  ;;  %6206 = vmatpush.msrb.mxu0 %v11200_v34 }
 0x481   : > { %6207 = vmatpush.msrb.mxu0 %v11255_v44 }
 0x482   : > { %8587 = vmatmul.msk.f32.gmra.mxu0 %vm470_vm2, %v5695_v12  ;;  %8596 = vmatmul.msk.f32.vlgmr.msrb.gmra.mxu1 %vm470_vm2, %v5834_v19  ;;  %v5696_v12 = vld [vmem:[#allocation3 + $0x7b] sm:$0xff]  ;;  %v5835_v19 = vld [vmem:[#allocation3 + $0x24] sm:$0xff] }
 0x483   : > { %8616 = vmatmul.msk.f32.vlgmr.msrb.gmra.mxu2 %vm470_vm2, %v6042_v37  ;;  %6315 = vmatpush.msra.mxu0 %v11356_v8  ;;  %v5697_v8 = vld [vmem:[#allocation3 + $0x83] sm:$0xff] }
 0x484   : > { %8618 = vmatmul.msk.f32.vlgmr.msrb.gmra.mxu3 %vm470_vm2, %v6036_v59  ;;  %8816 = vmatpush.msrb.mxu2 %v8635_v11  ;;  %v6037_v11 = vld [vmem:[#allocation3 + $0x88] sm:$0x7f]  ;;  %v11669_v37 = vpop.f32.mrf.mxu3 }
 0x485   : > { %6278 = vmatpush.msrb.mxu3 %v11299_v61  ;;  %v6043_v61 = vld [vmem:[#allocation3 + $0x89] sm:$0x7f]  ;;  %12524 = vst [vmem:[#allocation38_spill] sm:$0xff] %v11669_v37  ;;  %6316 = vmatpush.msra.mxu0 %v11406_v5  ;;  %v5842_v37 = vld [vmem:[#allocation3 + $0x5c] sm:$0xff] }
 0x486   : > { %8817 = vmatpush.msrb.mxu2 %v8634_v21  ;;  %v5836_v59 = vld [vmem:[#allocation3 + $0x2c] sm:$0xff] }
 0x487   : > { %v11660_v9 = vpop.f32.mrf.mxu1  ;;  %6279 = vmatpush.msrb.mxu3 %v11315_v20  ;;  %6317 = vmatpush.msra.mxu0 %v11424_v14  ;;  %v5698_v21 = vld [vmem:[#allocation3 + $0x8b] sm:$0xff] }
 0x488   : > { %8818 = vmatpush.msrb.mxu2 %v11200_v34  ;;  %v11673_v34 = vpop.f32.mrf.mxu0 }
 0x489   : > { %6280 = vmatpush.msrb.mxu3 %v11349_v30  ;;  %12525 = vst [vmem:[#allocation39_spill] sm:$0xff] %v11673_v34  ;;  %v6143_v30 = vld [vmem:[#allocation3 + $0x8d] sm:$0xff]  ;;  %6318 = vmatpush.msra.mxu0 %v11430_v27  ;;  %v6144_v27 = vld [vmem:[#allocation3 + $0x95] sm:$0x7f] }
 0x48a   : > { %8588 = vmatmul.msk.f32.gmra.mxu0 %vm470_vm2, %v5696_v12  ;;  %8597 = vmatmul.msk.f32.gmra.mxu1 %vm470_vm2, %v5835_v19  ;;  %v5837_v12 = vld [vmem:[#allocation3 + $0x34] sm:$0xff]  ;;  %v5844_v34 = vld [vmem:[#allocation3 + $0x6c] sm:$0xff] }
 0x48b   : > { %8617 = vmatmul.msk.f32.gmra.mxu2 %vm470_vm2, %v6043_v61  ;;  %6281 = vmatpush.msrb.mxu3 %v11368_v33  ;;  %v11690_v33 = vpop.f32.mrf.mxu2 }
 0x48c   : > { %8619 = vmatmul.msk.f32.gmra.mxu3 %vm470_vm2, %v6037_v11  ;;  %8819 = vmatpush.msrb.mxu2 %v11255_v44  ;;  %v11688_v44 = vpop.f32.mrf.mxu3  ;;  %12527 = vst [vmem:[#allocation41_spill] sm:$0xff] %v11690_v33  ;;  %v6181_v11 = vld [vmem:[#allocation3 + $0x96] sm:$0x7f]  ;;  %v5839_v33 = vld [vmem:[#allocation3 + $0x44] sm:$0xff] }
 0x48d   : > { %12526 = vst [vmem:[#allocation40_spill] sm:$0xff] %v11688_v44 }
 0x48f   : > { %v11678_v20 = vpop.f32.mrf.mxu1 }
 0x490   : > { %v11692_v5 = vpop.f32.mrf.mxu0 }
 0x491   : > { %12528 = vst [vmem:[#allocation42_spill] sm:$0xff] %v11692_v5 }
 0x492   : > { %8589 = vmatmul.msk.f32.gmra.mxu0 %vm470_vm2, %v5697_v8  ;;  %8598 = vmatmul.msk.f32.gmra.mxu1 %vm470_vm2, %v5836_v59  ;;  %v5838_v8 = vld [vmem:[#allocation3 + $0x3c] sm:$0xff] }
 0x493   : > { %8624 = vmatmul.msk.f32.vlgmr.msra.gmra.mxu2 %vm470_vm2, %v11590_v56 }
 0x494   : > { %8630 = vmatmul.msk.f32.vlgmr.msra.gmra.mxu3 %vm470_vm2, %v6143_v30  ;;  %6241 = vmatpush.msra.mxu2 %v11294_v62  ;;  %v6107_v62 = vld [vmem:[#allocation3 + $0x8a] sm:$0x7f]  ;;  %v11703_v56 = vpop.f32.mrf.mxu3  ;;  %v6254_v30 = vld [vmem:[#allocation3 + $0x9a] sm:$0xff] }
 0x495   : > { %12529 = vst [vmem:[#allocation43_spill] sm:$0xff] %v11703_v56 }
 0x496   : > { %6242 = vmatpush.msra.mxu2 %v11304_v6  ;;  %v11705_v6 = vpop.f32.mrf.mxu2 }
 0x497   : > { %v11695_v14 = vpop.f32.mrf.mxu1 }
 0x498   : > { %6243 = vmatpush.msra.mxu2 %v11344_v23  ;;  %v5699_v23 = vld [vmem:[#allocation3 + $0x93] sm:$0xff]  ;;  %v11709_v61 = vpop.f32.mrf.mxu0 }
 0x499   : > { %12530 = vst [vmem:[#allocation44_spill] sm:$0xff] %v11709_v61 }
 0x49a   : > { %8590 = vmatmul.msk.f32.gmra.mxu0 %vm470_vm2, %v5698_v21  ;;  %8599 = vmatmul.msk.f32.gmra.mxu1 %vm470_vm2, %v5837_v12  ;;  %v6217_v21 = vld [vmem:[#allocation3 + $0x8f] sm:$0xff]  ;;  %v6255_v12 = vld [vmem:[#allocation3 + $0xa2] sm:$0x7f] }
 0x49b   : > { %8625 = vmatmul.msk.f32.gmra.mxu2 %vm470_vm2, %v6107_v62 }
 0x49c   : > { %8631 = vmatmul.msk.f32.gmra.mxu3 %vm470_vm2, %v6144_v27  ;;  %6244 = vmatpush.msra.mxu2 %v11363_v0  ;;  %v11715_v0 = vpop.f32.mrf.mxu3  ;;  %v6180_v27 = vld [vmem:[#allocation3 + $0x8e] sm:$0xff] }
 0x49d   : > { %12531 = vst [vmem:[#allocation45_spill] sm:$0xff] %v11715_v0  ;;  %v5840_v0 = vld [vmem:[#allocation3 + $0x4c] sm:$0xff] }
 0x49e   : > { %v11719_v62 = vpop.f32.mrf.mxu2 }
 0x49f   : > { %v11707_v19 = vpop.f32.mrf.mxu1 }
 0x4a0   : > { %v11721_v56 = vpop.f32.mrf.mxu0 }
 0x4a1   : > { %12532 = vst [vmem:[#allocation46_spill] sm:$0xff] %v11721_v56 }
 0x4a2   : > { %8591 = vmatmul.msk.f32.gmra.mxu0 %vm470_vm2, %v5699_v23  ;;  %8600 = vmatmul.msk.f32.gmra.mxu1 %vm470_vm2, %v5838_v8 }
 0x4a3   : > { %8637 = vmatmul.msk.f32.vlgmr.msrb.gmra.mxu2 %vm470_vm2, %v6181_v11  ;;  %v6291_v11 = vld [vmem:[#allocation3 + $0x9b] sm:$0xff] }
 0x4a4   : > { %8648 = vmatmul.msk.f32.vlgmr.msrb.gmra.mxu3 %vm470_vm2, %v6254_v30  ;;  %v6218_v30 = vld [vmem:[#allocation3 + $0x97] sm:$0x7f]  ;;  %v11729_v8 = vpop.f32.mrf.mxu3 }
 0x4a6   : > { %v11733_v42 = vpop.f32.mrf.mxu2 }
 0x4a7   : > { %v11717_v59 = vpop.f32.mrf.mxu1 }
 0x4aa   : > { %8601 = vmatmul.msk.f32.gmra.mxu1 %vm470_vm2, %v5839_v33  ;;  %8636 = vmatmul.msk.f32.vlgmr.msrb.gmra.mxu0 %vm470_vm2, %v6180_v27  ;;  %v11736_v33 = vpop.f32.mrf.mxu0 }
 0x4ab   : > { %8642 = vmatmul.msk.f32.vlgmr.msra.gmra.mxu2 %vm470_vm2, %v6217_v21  ;;  %12533 = vst [vmem:[#allocation47_spill] sm:$0xff] %v11736_v33  ;;  %v6292_v21 = vld [vmem:[#allocation3 + $0xa3] sm:$0x7f] }
 0x4ac   : > { %8649 = vmatmul.msk.f32.gmra.mxu3 %vm470_vm2, %v6255_v12  ;;  %v5841_v12 = vld [vmem:[#allocation3 + $0x54] sm:$0xff]  ;;  %v11742_v44 = vpop.f32.mrf.mxu3 }
 0x4af   : > { %v11727_v23 = vpop.f32.mrf.mxu1 }
 0x4b2   : > { %8602 = vmatmul.msk.f32.gmra.mxu1 %vm470_vm2, %v5840_v0  ;;  %8654 = vmatmul.msk.f32.vlgmr.msra.gmra.mxu0 %vm470_vm2, %v6291_v11  ;;  %v11744_v56 = vpop.f32.mrf.mxu0  ;;  %v11746_v0 = vpop.f32.mrf.mxu2 }
 0x4b3   : > { %8643 = vmatmul.msk.f32.gmra.mxu2 %vm470_vm2, %v6218_v30  ;;  %12535 = vst [vmem:[#allocation49_spill] sm:$0xff] %v11744_v56 }
 0x4b4   : > { %v11751_v30 = vpop.f32.mrf.mxu3 }
 0x4b7   : > { %v11738_v27 = vpop.f32.mrf.mxu1 }
 0x4b8   : > { %12534 = vst [vmem:[#allocation48_spill] sm:$0xff] %v11738_v27 }
 0x4ba   : > { %8603 = vmatmul.msk.f32.gmra.mxu1 %vm470_vm2, %v5841_v12  ;;  %8655 = vmatmul.msk.f32.gmra.mxu0 %vm470_vm2, %v6292_v21  ;;  %v11753_v33 = vpop.f32.mrf.mxu0  ;;  %v11755_v61 = vpop.f32.mrf.mxu2  ;;  %v5843_v21 = vld [vmem:[#allocation3 + $0x64] sm:$0xff] }
 0x4bb   : > { %12537 = vst [vmem:[#allocation51_spill] sm:$0xff] %v11753_v33 }
 0x4bc   : > { %v11760_v7 = vpop.f32.mrf.mxu3 }
 0x4bf   : > { %v11748_v11 = vpop.f32.mrf.mxu1 }
 0x4c0   : > { %12536 = vst [vmem:[#allocation50_spill] sm:$0xff] %v11748_v11  ;;  %v5845_v11 = vld [vmem:[#allocation3 + $0x74] sm:$0xff] }
 0x4c2   : > { %8604 = vmatmul.msk.f32.gmra.mxu1 %vm470_vm2, %v5842_v37  ;;  %v5770_v5 = vpop.f32.mrf.mxu0  ;;  %v11764_v31 = vpop.f32.mrf.mxu2 }
 0x4c4   : > { %v11769_v33 = vpop.f32.mrf.mxu3 }
 0x4c7   : > { %v11757_v12 = vpop.f32.mrf.mxu1 }
 0x4c8   : > { %12538 = vst [vmem:[#allocation52_spill] sm:$0xff] %v11757_v12 }
 0x4ca   : > { %8605 = vmatmul.msk.f32.gmra.mxu1 %vm470_vm2, %v5843_v21  ;;  %v11771_v1 = vpop.f32.mrf.mxu0  ;;  %v11774_v21 = vpop.f32.mrf.mxu2 }
 0x4cc   : > { %v11779_v35 = vpop.f32.mrf.mxu3 }
 0x4cf   : > { %v11762_v56 = vpop.f32.mrf.mxu1 }
 0x4d0   : > { %12539 = vst [vmem:[#allocation53_spill] sm:$0xff] %v11762_v56  ;;  %v5846_v56 = vld [vmem:[#allocation3 + $0x7c] sm:$0xff] }
 0x4d2   : > { %8606 = vmatmul.msk.f32.gmra.mxu1 %vm470_vm2, %v5844_v34  ;;  %v11781_v22 = vpop.f32.mrf.mxu0  ;;  %v11783_v34 = vpop.f32.mrf.mxu2 }
 0x4d3   : > { %12542 = vst [vmem:[#allocation56_spill] sm:$0xff] %v11783_v34 }
 0x4d4   : > { %v11788_v27 = vpop.f32.mrf.mxu3 }
 0x4d7   : > { %v11767_v37 = vpop.f32.mrf.mxu1 }
 0x4d8   : > { %12540 = vst [vmem:[#allocation54_spill] sm:$0xff] %v11767_v37 }
 0x4da   : > { %8607 = vmatmul.msk.f32.gmra.mxu1 %vm470_vm2, %v5845_v11  ;;  %v4887_v11 = vadd.f32 %v11327_v57, %v11308_v50  ;;  %v11794_v52 = vpop.f32.mrf.mxu2  ;;  %v8665_v50 = vld [vmem:[%s12469_s5 + $0x38] sm:$0xff] }
 0x4db   : > { %12544 = vst [vmem:[#allocation58_spill] sm:$0xff] %v11794_v52  ;;  %v6444_v57 = vld [vmem:[%s12469_s5 + $0x18] sm:$0xff]  ;;  %6494 = vmatpush.msrb.mxu2 %v8665_v50  ;;  %v6442_v50 = vld [vmem:[%s12469_s5 + $0x8] sm:$0xff] }
 0x4dc   : > { %v5068_v13 = vadd.f32 %v11438_v15, %v4887_v11  ;;  %v8664_v15 = vld [vmem:[%s12469_s5 + $0x30] sm:$0xff]  ;;  %6559 = vmatpush.msra.mxu3 %v6444_v57  ;;  %v8663_v11 = vld [vmem:[%s12469_s5 + $0x28] sm:$0xff] }
 0x4dd   : > { %v8684_v57 = vld [vmem:[%s12469_s5 + $0x50] sm:$0xff]  ;;  %6495 = vmatpush.msrb.mxu2 %v8664_v15  ;;  %v4893_v15 = vadd.f32 %v11393_v53, %v11388_v32  ;;  %v8682_v53 = vld [vmem:[%s12469_s5 + $0x40] sm:$0xff] }
 0x4de   : > { %v6328_v52 = vld [vmem:[#allocation3 + $0x9c] sm:$0xff] }
 0x4df   : > { %v11776_v12 = vpop.f32.mrf.mxu1  ;;  %6496 = vmatpush.msrb.mxu2 %v8663_v11  ;;  %v6433_v32 = vld [vmem:[#allocation4] sm:$0xff] }
 0x4e0   : > { %12541 = vst [vmem:[#allocation55_spill] sm:$0xff] %v11776_v12  ;;  %v11792_v12 = vpop.f32.mrf.mxu0  ;;  %v6588_v11 = vld [vmem:[#allocation4 + $0x2] sm:$0xff] }
 0x4e2   : > { %8608 = vmatmul.msk.f32.gmra.mxu1 %vm470_vm2, %v5846_v56 }
 0x4e7   : > { %v11785_v37 = vpop.f32.mrf.mxu1 }
 0x4e8   : > { %12543 = vst [vmem:[#allocation57_spill] sm:$0xff] %v11785_v37  ;;  %v5218_v37 = vadd.f32 %v11481_v48, %v5068_v13  ;;  %v5849_v13 = vld [vmem:[#allocation3 + $0x94] sm:$0xff] }
 0x4ea   : > { %8609 = vmatmul.msk.f32.gmra.mxu1 %vm470_vm2, %v5847_v55  ;;  %v4890_v55 = vadd.f32 %v11370_v63, %v11331_v60  ;;  %v5368_v34 = vadd.f32 %v11645_v41, %v5218_v37  ;;  %v6443_v60 = vld [vmem:[%s12469_s5 + $0x10] sm:$0xff]  ;;  %v8685_v63 = vld [vmem:[%s12469_s5 + $0x58] sm:$0xff]  ;;  %v11824_v37 = vpop.f32.mrf.mxu0 }
 0x4eb   : > { %6637 = vmatpush.msrb.mxu0 %v8685_v63  ;;  %6560 = vmatpush.msra.mxu3 %v6443_v60 }
 0x4ec   : > { %v5518_v41 = vadd.f32 %v11705_v6, %v5368_v34  ;;  %v5069_v6 = vadd.f32 %v11452_v16, %v4890_v55 }
 0x4ed   : > { %6638 = vmatpush.msrb.mxu0 %v8684_v57  ;;  %6561 = vmatpush.msra.mxu3 %v6442_v50  ;;  %v8697_v50 = vld [vmem:[%s12469_s5 + $0x78] sm:$0xff]  ;;  %v8696_v57 = vld [vmem:[%s12469_s5 + $0x70] sm:$0xff] }
 0x4ee   : > { %v5219_v34 = vadd.f32 %v11499_v2, %v5069_v6  ;;  %v5668_v63 = vadd.f32 %v11729_v8, %v5518_v41  ;;  %v6441_v2 = vld [vmem:[%s12469_s5] sm:$0xff]  ;;  %v8683_v8 = vld [vmem:[%s12469_s5 + $0x48] sm:$0xff]  ;;  %v6445_v41 = vld [vmem:[#allocation4 + $0x1] sm:$0xff]  ;;  %6723 = vmatpush.msrb.mxu1 %v8697_v50 }
 0x4ef   : > { %v11796_v56 = vpop.f32.mrf.mxu1  ;;  %6562 = vmatpush.msra.mxu3 %v6441_v2  ;;  %6639 = vmatpush.msrb.mxu0 %v8683_v8 }
 0x4f0   : > { %12545 = vst [vmem:[#allocation59_spill] sm:$0xff] %v11796_v56  ;;  %v11844_v56 = vld [vmem:[%s12468_s4] ss:$0 sm:$0xff]  ;;  %v5369_v16 = vadd.f32 %v11660_v9, %v5219_v34  ;;  %v5818_v55 = vadd.f32 %v5770_v5, %v5668_v63  ;;  %8674 = vmatmul.msk.f32.vlgmr.msra.gmra.mxu3 %vm470_vm2, %v6433_v32  ;;  %6724 = vmatpush.msrb.mxu1 %v8696_v57 }
 0x4f1   : > { %6640 = vmatpush.msrb.mxu0 %v8682_v53 }
 0x4f2   : > { %8610 = vmatmul.msk.f32.gmra.mxu1 %vm470_vm2, %v5848_v24  ;;  %v11813_v24 = vpop.f32.mrf.mxu3  ;;  %v5519_v9 = vadd.f32 %v11719_v62, %v5369_v16  ;;  %v5070_v62 = vadd.f32 %v11466_v54, %v4893_v15  ;;  %v11873_v34 = vpop.f32.mrf.mxu0  ;;  %8686 = vmatmul.msk.f32.vlgmr.msrb.gmra.mxu0 %vm470_vm2, %v6588_v11  ;;  %v4896_v54 = vadd.f32 %v11415_v36, %v11400_v51 }
 0x4f7   : > { %v11815_v48 = vpop.f32.mrf.mxu1 }
 0x4f8   : > { %12546 = vst [vmem:[#allocation60_spill] sm:$0xff] %v11815_v48  ;;  %v11835_v48 = vpop.f32.mrf.mxu2 }
 0x4fa   : > { %8611 = vmatmul.msk.f32.gmra.mxu1 %vm470_vm2, %v5849_v13  ;;  %v8662_v13 = vld [vmem:[%s12469_s5 + $0x20] sm:$0xff]  ;;  %v11869_v6 = vpop.f32.mrf.mxu3  ;;  %v11907_v11 = vpop.f32.mrf.mxu0 }
 0x4fb   : > { %6497 = vmatpush.msrb.mxu2 %v8662_v13  ;;  %v5669_v13 = vadd.f32 %v11742_v44, %v5519_v9  ;;  %v8694_v44 = vld [vmem:[%s12469_s5 + $0x60] sm:$0xff] }
 0x4fc   : > { %8666 = vmatmul.msk.f32.vlgmr.msrb.gmra.mxu2 %vm470_vm2, %v6445_v41  ;;  %v6434_v41 = vld [vmem:[#allocation4 + $0x8] sm:$0xff] }
 0x4fd   : > { %v5819_v8 = vadd.f32 %v11771_v1, %v5669_v13  ;;  %v11895_v1 = vld [vmem:[#allocation4 + $0xa] sm:$0xff]  ;;  %8675 = vmatmul.msk.f32.gmra.mxu3 %vm470_vm2, %v6434_v41 }
 0x4fe   : > { %8687 = vmatmul.msk.f32.gmra.mxu0 %vm470_vm2, %v11895_v1 }
 0x4ff   : > { %v5920_v60 = vpop.f32.mrf.mxu1 }
 0x500   : > { %v5968_v5 = vadd.f32 %v5920_v60, %v5818_v55  ;;  %v11877_v16 = vpop.f32.mrf.mxu2  ;;  %v5220_v55 = vadd.f32 %v11515_v17, %v5070_v62  ;;  %v6446_v60 = vld [vmem:[#allocation4 + $0x9] sm:$0xff] }
 0x501   : > { %v6329_v17 = vld [vmem:[#allocation3 + $0xa4] sm:$0x7f] }
 0x502   : > { %v5988_v63 = vadd.f32 %v11844_v56, %v5968_v5  ;;  %8660 = vmatmul.msk.f32.vlgmr.msra.gmra.mxu1 %vm470_vm2, %v6328_v52  ;;  %v5370_v15 = vadd.f32 %v11678_v20, %v5220_v55  ;;  %v8695_v52 = vld [vmem:[%s12469_s5 + $0x68] sm:$0xff]  ;;  %v5071_v20 = vadd.f32 %v11477_v29, %v4896_v54  ;;  %v11901_v9 = vpop.f32.mrf.mxu3  ;;  %v4899_v29 = vadd.f32 %v11442_v25, %v11432_v49 }
 0x503   : > { %6725 = vmatpush.msrb.mxu1 %v8695_v52 }
 0x504   : > { %v6004_v2 = vmax.f32 %v5988_v63, 0.0  ;;  %v5520_v51 = vadd.f32 %v11733_v42, %v5370_v15  ;;  %8667 = vmatmul.msk.f32.gmra.mxu2 %vm470_vm2, %v6446_v60  ;;  %v5221_v42 = vadd.f32 %v11530_v43, %v5071_v20 }
 0x505   : > { %6726 = vmatpush.msrb.mxu1 %v8694_v44 }
 0x506   : > { %6020 = vst.msk [vmem:[#allocation6] sm:$0xff] %vm470_vm2, %v6004_v2  ;;  %v5670_v5 = vadd.f32 %v11751_v30, %v5520_v51  ;;  %v5371_v62 = vadd.f32 %v11695_v14, %v5221_v42  ;;  %v5072_v30 = vadd.f32 %v11492_v10, %v4899_v29 }
 0x507   : > { %v5923_v32 = vpop.f32.mrf.mxu1 }
 0x508   : > { %v5969_v36 = vadd.f32 %v5923_v32, %v5819_v8  ;;  %v11909_v57 = vpop.f32.mrf.mxu2  ;;  %v5820_v63 = vadd.f32 %v11781_v22, %v5670_v5  ;;  %v5521_v13 = vadd.f32 %v11746_v0, %v5371_v62  ;;  %v5222_v54 = vadd.f32 %v11543_v46, %v5072_v30  ;;  %v11928_v8 = vpop.f32.mrf.mxu0 }
 0x509   : > { %v4902_v22 = vadd.f32 %v11454_v3, %v11445_v58 }
 0x50a   : > { %v5989_v53 = vadd.f32 %v11844_v56, %v5969_v36  ;;  %8661 = vmatmul.msk.f32.gmra.mxu1 %vm470_vm2, %v6329_v17  ;;  %v5671_v49 = vadd.f32 %v11760_v7, %v5521_v13  ;;  %v11922_v14 = vpop.f32.mrf.mxu3  ;;  %v5372_v15 = vadd.f32 %v11707_v19, %v5222_v54  ;;  %v4905_v17 = vadd.f32 %v11468_v45, %v11458_v26 }
 0x50c   : > { %v6005_v50 = vmax.f32 %v5989_v53, 0.0  ;;  %v5821_v0 = vadd.f32 %v11792_v12, %v5671_v49  ;;  %v5522_v46 = vadd.f32 %v11755_v61, %v5372_v15 }
 0x50e   : > { %6021 = vst.msk [vmem:[#allocation6 + $0x8] sm:$0xff] %vm470_vm2, %v6005_v50  ;;  %v5672_v19 = vadd.f32 %v11769_v33, %v5522_v46 }
 0x50f   : > { %v5926_v55 = vpop.f32.mrf.mxu1 }
 0x510   : > { %v5970_v43 = vadd.f32 %v5926_v55, %v5820_v63  ;;  %v11931_v10 = vpop.f32.mrf.mxu2  ;;  %v5822_v61 = vadd.f32 %v11824_v37, %v5672_v19  ;;  %v11946_v33 = vpop.f32.mrf.mxu0 }
 0x512   : > { %v5990_v2 = vadd.f32 %v11844_v56, %v5970_v43  ;;  %8698 = vmatmul.msk.f32.vlgmr.msrb.gmra.mxu1 %vm470_vm2, %v6446_v60  ;;  %v5073_v60 = vadd.f32 %v11508_v18, %v4902_v22  ;;  %v11943_v53 = vpop.f32.mrf.mxu3  ;;  %v12549_v22 = vld [vmem:[#allocation20_spill] sm:$0xff] }
 0x514   : > { %v6006_v25 = vmax.f32 %v5990_v2, 0.0  ;;  %v5223_v3 = vadd.f32 %v11585_v38, %v5073_v60  ;;  %v12551_v60 = vld [vmem:[#allocation56_spill] sm:$0xff] }
 0x515   : > { %v6377_v32 = vld [vmem:[#allocation6 + $0x1] ss:$2 sm:$0x1f]  ;;  %v6376_v58 = vld [vmem:[#allocation6] ss:$2 sm:$0x1f] }
 0x516   : > { %6022 = vst.msk [vmem:[#allocation6 + $0x10] sm:$0xff] %vm470_vm2, %v6006_v25  ;;  %v5373_v36 = vadd.f32 %v11717_v59, %v5223_v3  ;;  %v6382_v18 = vmax.f32 %v6376_v58, %v6377_v32  ;;  %v5074_v59 = vadd.f32 %v11526_v39, %v4905_v17  ;;  %v12552_v58 = vld [vmem:[#allocation27_spill] sm:$0xff] }
 0x517   : > { %v5929_v52 = vpop.f32.mrf.mxu1 }
 0x518   : > { %v5971_v7 = vadd.f32 %v5929_v52, %v5821_v0  ;;  %v5523_v38 = vadd.f32 %v11764_v31, %v5373_v36  ;;  %v11948_v45 = vpop.f32.mrf.mxu2  ;;  %v5224_v50 = vadd.f32 %v11603_v28, %v5074_v59  ;;  %v4908_v31 = vadd.f32 %v11479_v40, %v11475_v4  ;;  %v5797_v49 = vpop.f32.mrf.mxu0  ;;  %v12550_v0 = vld [vmem:[#allocation48_spill] sm:$0xff]  ;;  %v12557_v59 = vld [vmem:[#allocation58_spill] sm:$0xff] }
 0x51a   : > { %v5991_v41 = vadd.f32 %v11844_v56, %v5971_v7  ;;  %v5673_v29 = vadd.f32 %v11779_v35, %v5523_v38  ;;  %v5374_v63 = vadd.f32 %v11727_v23, %v5224_v50  ;;  %v11961_v30 = vpop.f32.mrf.mxu3  ;;  %v5075_v35 = vadd.f32 %v11539_v47, %v4908_v31  ;;  %v12547_v23 = vld [vmem:[#allocation35_spill] sm:$0xff] }
 0x51b   : > { %v12548_v47 = vld [vmem:[#allocation23_spill] sm:$0xff] }
 0x51c   : > { %v6007_v12 = vmax.f32 %v5991_v41, 0.0  ;;  %v5823_v55 = vadd.f32 %v11873_v34, %v5673_v29  ;;  %v5524_v39 = vadd.f32 %v11774_v21, %v5374_v63  ;;  %v5225_v21 = vadd.f32 %v12547_v23, %v5075_v35  ;;  %v12558_v29 = vld [vmem:[#allocation30_spill] sm:$0xff] }
 0x51d   : > { %v6379_v44 = vld [vmem:[#allocation6 + $0xd] ss:$2 sm:$0x1f]  ;;  %v6381_v51 = vld [vmem:[#allocation6 + $0xe] ss:$2 sm:$0x1f]  ;;  %v4911_v15 = vadd.f32 %v12549_v22, %v12548_v47 }
 0x51e   : > { %6023 = vst.msk [vmem:[#allocation6 + $0x18] sm:$0xff] %vm470_vm2, %v6007_v12  ;;  %v6383_v20 = vmax.f32 %v6379_v44, %v6381_v51  ;;  %v5674_v34 = vadd.f32 %v11788_v27, %v5524_v39  ;;  %v5375_v52 = vadd.f32 %v12550_v0, %v5225_v21  ;;  %v12553_v27 = vld [vmem:[#allocation37_spill] sm:$0xff]  ;;  %v12562_v21 = vld [vmem:[#allocation52_spill] sm:$0xff] }
 0x51f   : > { %v5932_v42 = vpop.f32.mrf.mxu1  ;;  %v5076_v3 = vadd.f32 %v12552_v58, %v4911_v15  ;;  %v12564_v58 = vld [vmem:[#allocation42_spill] sm:$0xff] }
 0x520   : > { %v5972_v5 = vadd.f32 %v5932_v42, %v5822_v61  ;;  %v6384_v26 = vmax.f32 %v6382_v18, %v6383_v20  ;;  %v11969_v40 = vpop.f32.mrf.mxu2  ;;  %v5824_v46 = vadd.f32 %v11907_v11, %v5674_v34  ;;  %v5525_v41 = vadd.f32 %v12551_v60, %v5375_v52  ;;  %v11988_v51 = vpop.f32.mrf.mxu0  ;;  %v12554_v61 = vld [vmem:[#allocation24_spill] sm:$0xff]  ;;  %v12555_v18 = vld [vmem:[#allocation18_spill] sm:$0xff]  ;;  %v12563_v60 = vld [vmem:[#allocation33_spill] sm:$0xff] }
 0x521   : > { %v5226_v17 = vadd.f32 %v12553_v27, %v5076_v3  ;;  %v4914_v20 = vadd.f32 %v12555_v18, %v12554_v61  ;;  %v12556_v42 = vld [vmem:[#allocation50_spill] sm:$0xff] }
 0x522   : > { %v5992_v37 = vadd.f32 %v11844_v56, %v5972_v5  ;;  %6386 = vst.msk [vmem:[#allocation4 + $0x14] sm:$0x1f] %vm6385_vm4, %v6384_v26  ;;  %v11984_v12 = vpop.f32.mrf.mxu3  ;;  %v5675_v44 = vadd.f32 %v11813_v24, %v5525_v41  ;;  %v12565_v27 = vld [vmem:[#allocation26_spill] sm:$0xff] }
 0x523   : > { %v5376_v38 = vadd.f32 %v12556_v42, %v5226_v17  ;;  %v5077_v24 = vadd.f32 %v12558_v29, %v4914_v20  ;;  %v12566_v17 = vld [vmem:[#allocation19_spill] sm:$0xff] }
 0x524   : > { %v6008_v62 = vmax.f32 %v5992_v37, 0.0  ;;  %v5825_v5 = vadd.f32 %v11928_v8, %v5675_v44  ;;  %v4920_v44 = vadd.f32 %v12566_v17, %v12565_v27 }
 0x525   : > { %v5526_v37 = vadd.f32 %v12557_v59, %v5376_v38 }
 0x526   : > { %6024 = vst.msk [vmem:[#allocation6 + $0x20] sm:$0xff] %vm470_vm2, %v6008_v62 }
 0x527   : > { %v5935_v13 = vpop.f32.mrf.mxu1  ;;  %v5676_v39 = vadd.f32 %v11869_v6, %v5526_v37 }
 0x528   : > { %v5973_v43 = vadd.f32 %v5935_v13, %v5823_v55  ;;  %v11990_v11 = vpop.f32.mrf.mxu2  ;;  %v12559_v55 = vld [vmem:[#allocation39_spill] sm:$0xff]  ;;  %v5803_v47 = vpop.f32.mrf.mxu0 }
 0x529   : > { %v6447_v2 = vld [vmem:[#allocation4 + $0x11] sm:$0xff]  ;;  %v5227_v13 = vadd.f32 %v12559_v55, %v5077_v24 }
 0x52a   : > { %v6435_v28 = vld [vmem:[#allocation4 + $0x10] sm:$0xff]  ;;  %v5993_v4 = vadd.f32 %v11844_v56, %v5973_v43  ;;  %8668 = vmatmul.msk.f32.gmra.mxu2 %vm470_vm2, %v6447_v2  ;;  %8699 = vmatmul.msk.f32.gmra.mxu1 %vm470_vm2, %v6447_v2  ;;  %v12560_v2 = vld [vmem:[#allocation25_spill] sm:$0xff]  ;;  %v12004_v35 = vpop.f32.mrf.mxu3 }
 0x52b   : > { %v11963_v54 = vld [vmem:[#allocation4 + $0x12] sm:$0xff]  ;;  %8676 = vmatmul.msk.f32.gmra.mxu3 %vm470_vm2, %v6435_v28  ;;  %v12561_v28 = vld [vmem:[#allocation21_spill] sm:$0xff]  ;;  %v5377_v34 = vadd.f32 %v12562_v21, %v5227_v13  ;;  %v12570_v55 = vld [vmem:[#allocation22_spill] sm:$0xff] }
 0x52c   : > { %8688 = vmatmul.msk.f32.gmra.mxu0 %vm470_vm2, %v11963_v54  ;;  %v6009_v25 = vmax.f32 %v5993_v4, 0.0  ;;  %v4917_v8 = vadd.f32 %v12561_v28, %v12560_v2  ;;  %v12571_v13 = vld [vmem:[#allocation28_spill] sm:$0xff] }
 0x52d   : > { %v6388_v31 = vld [vmem:[#allocation6 + $0x1a] ss:$2 sm:$0x1f]  ;;  %v6390_v63 = vld [vmem:[#allocation6 + $0x1b] ss:$2 sm:$0x1f]  ;;  %v5527_v52 = vadd.f32 %v11835_v48, %v5377_v34 }
 0x52e   : > { %6025 = vst.msk [vmem:[#allocation6 + $0x28] sm:$0xff] %vm470_vm2, %v6009_v25  ;;  %v5826_v25 = vadd.f32 %v11946_v33, %v5676_v39  ;;  %v6394_v22 = vmax.f32 %v6388_v31, %v6390_v63  ;;  %v5078_v41 = vadd.f32 %v12563_v60, %v4917_v8  ;;  %v8709_v48 = vld [vmem:[%s12469_s5 + $0x98] sm:$0xff]  ;;  %v4923_v39 = vadd.f32 %v12571_v13, %v12570_v55 }
 0x52f   : > { %v5938_v7 = vpop.f32.mrf.mxu1  ;;  %v5677_v3 = vadd.f32 %v11901_v9, %v5527_v52  ;;  %6809 = vmatpush.msra.mxu2 %v8709_v48  ;;  %v12573_v34 = vld [vmem:[#allocation38_spill] sm:$0xff] }
 0x530   : > { %v5974_v32 = vadd.f32 %v5938_v7, %v5824_v46  ;;  %v12009_v0 = vpop.f32.mrf.mxu2  ;;  %v5228_v33 = vadd.f32 %v12564_v58, %v5078_v41  ;;  %v5806_v9 = vpop.f32.mrf.mxu0  ;;  %v12575_v41 = vld [vmem:[#allocation29_spill] sm:$0xff] }
 0x531   : > { %v5827_v18 = vadd.f32 %v5797_v49, %v5677_v3  ;;  %v12568_v49 = vld [vmem:[#allocation36_spill] sm:$0xff]  ;;  %v12577_v3 = vld [vmem:[#allocation55_spill] sm:$0xff] }
 0x532   : > { %v5994_v19 = vadd.f32 %v11844_v56, %v5974_v32  ;;  %v12024_v20 = vpop.f32.mrf.mxu3  ;;  %v5079_v29 = vadd.f32 %v12568_v49, %v4920_v44 }
 0x534   : > { %v6010_v36 = vmax.f32 %v5994_v19, 0.0 }
 0x535   : > { %v6392_v4 = vld [vmem:[#allocation6 + $0x27] ss:$2 sm:$0x1f] }
 0x536   : > { %6026 = vst.msk [vmem:[#allocation6 + $0x30] sm:$0xff] %vm470_vm2, %v6010_v36  ;;  %v12567_v36 = vld [vmem:[#allocation53_spill] sm:$0xff] }
 0x537   : > { %v5941_v26 = vpop.f32.mrf.mxu1  ;;  %v5378_v61 = vadd.f32 %v12567_v36, %v5228_v33  ;;  %v8708_v36 = vld [vmem:[%s12469_s5 + $0x90] sm:$0xff] }
 0x538   : > { %v5975_v50 = vadd.f32 %v5941_v26, %v5825_v5  ;;  %v12027_v26 = vpop.f32.mrf.mxu2  ;;  %6810 = vmatpush.msra.mxu2 %v8708_v36 }
 0x539   : > { %v5528_v38 = vadd.f32 %v11877_v16, %v5378_v61  ;;  %v12569_v16 = vld [vmem:[#allocation44_spill] sm:$0xff] }
 0x53a   : > { %v5995_v62 = vadd.f32 %v11844_v56, %v5975_v50  ;;  %v12046_v21 = vpop.f32.mrf.mxu3 }
 0x53b   : > { %v5678_v31 = vadd.f32 %v11922_v14, %v5528_v38 }
 0x53c   : > { %v6011_v43 = vmax.f32 %v5995_v62, 0.0  ;;  %v5229_v62 = vadd.f32 %v12569_v16, %v5079_v29 }
 0x53d   : > { %v6393_v23 = vld [vmem:[#allocation6 + $0x28] ss:$2 sm:$0x1f]  ;;  %v5828_v28 = vadd.f32 %v11988_v51, %v5678_v31 }
 0x53e   : > { %6027 = vst.msk [vmem:[#allocation6 + $0x38] sm:$0xff] %vm470_vm2, %v6011_v43  ;;  %v6395_v15 = vmax.f32 %v6392_v4, %v6393_v23  ;;  %v12572_v43 = vld [vmem:[#allocation54_spill] sm:$0xff] }
 0x53f   : > { %v5944_v6 = vpop.f32.mrf.mxu1  ;;  %v5379_v2 = vadd.f32 %v12572_v43, %v5229_v62  ;;  %v12580_v62 = vld [vmem:[#allocation57_spill] sm:$0xff] }
 0x540   : > { %v5976_v46 = vadd.f32 %v5944_v6, %v5826_v25  ;;  %v6396_v7 = vmax.f32 %v6394_v22, %v6395_v15  ;;  %v5080_v25 = vadd.f32 %v12573_v34, %v4923_v39  ;;  %v5809_v22 = vpop.f32.mrf.mxu0  ;;  %v12050_v15 = vpop.f32.mrf.mxu2 }
 0x541   : > { %v5529_v4 = vadd.f32 %v11909_v57, %v5379_v2 }
 0x542   : > { %v5996_v32 = vadd.f32 %v11844_v56, %v5976_v46  ;;  %6397 = vst.msk [vmem:[#allocation4 + $0x1d] sm:$0x1f] %vm6385_vm4, %v6396_v7  ;;  %v12574_v46 = vld [vmem:[#allocation46_spill] sm:$0xff] }
 0x543   : > { %v5230_v7 = vadd.f32 %v12574_v46, %v5080_v25  ;;  %v5679_v51 = vadd.f32 %v11943_v53, %v5529_v4  ;;  %v12586_v46 = vld [vmem:[#allocation59_spill] sm:$0xff] }
 0x544   : > { %v6012_v19 = vmax.f32 %v5996_v32, 0.0  ;;  %v12576_v32 = vld [vmem:[#allocation31_spill] sm:$0xff] }
 0x545   : > { %v6399_v6 = vld [vmem:[#allocation6 + $0x34] ss:$2 sm:$0x1f]  ;;  %v6401_v52 = vld [vmem:[#allocation6 + $0x35] ss:$2 sm:$0x1f]  ;;  %v4926_v57 = vadd.f32 %v12576_v32, %v12575_v41  ;;  %v5829_v27 = vadd.f32 %v5803_v47, %v5679_v51  ;;  %v12065_v47 = vpop.f32.mrf.mxu3 }
 0x546   : > { %6028 = vst.msk [vmem:[#allocation6 + $0x40] sm:$0xff] %vm470_vm2, %v6012_v19  ;;  %v5380_v19 = vadd.f32 %v12577_v3, %v5230_v7  ;;  %v6406_v17 = vmax.f32 %v6399_v6, %v6401_v52  ;;  %v12585_v6 = vld [vmem:[#allocation41_spill] sm:$0xff]  ;;  %v8707_v41 = vld [vmem:[%s12469_s5 + $0x88] sm:$0xff] }
 0x547   : > { %v5947_v42 = vpop.f32.mrf.mxu1  ;;  %6811 = vmatpush.msra.mxu2 %v8707_v41 }
 0x548   : > { %v5977_v5 = vadd.f32 %v5947_v42, %v5827_v18  ;;  %v5530_v53 = vadd.f32 %v11931_v10, %v5380_v19  ;;  %v12578_v42 = vld [vmem:[#allocation40_spill] sm:$0xff]  ;;  %v5812_v29 = vpop.f32.mrf.mxu0  ;;  %v12069_v16 = vpop.f32.mrf.mxu2 }
 0x549   : > { %v6448_v59 = vld [vmem:[#allocation4 + $0x19] sm:$0xff]  ;;  %v5081_v38 = vadd.f32 %v12578_v42, %v4926_v57 }
 0x54a   : > { %v6436_v37 = vld [vmem:[#allocation4 + $0x18] sm:$0xff]  ;;  %v5997_v24 = vadd.f32 %v11844_v56, %v5977_v5  ;;  %8669 = vmatmul.msk.f32.gmra.mxu2 %vm470_vm2, %v6448_v59  ;;  %8700 = vmatmul.msk.f32.gmra.mxu1 %vm470_vm2, %v6448_v59  ;;  %v5680_v49 = vadd.f32 %v11961_v30, %v5530_v53 }
 0x54b   : > { %v12029_v50 = vld [vmem:[#allocation4 + $0x1a] sm:$0xff]  ;;  %8677 = vmatmul.msk.f32.gmra.mxu3 %vm470_vm2, %v6436_v37  ;;  %v12579_v59 = vld [vmem:[#allocation47_spill] sm:$0xff] }
 0x54c   : > { %8689 = vmatmul.msk.f32.gmra.mxu0 %vm470_vm2, %v12029_v50  ;;  %v6013_v63 = vmax.f32 %v5997_v24, 0.0  ;;  %v5231_v37 = vadd.f32 %v12579_v59, %v5081_v38  ;;  %v5830_v31 = vadd.f32 %v5806_v9, %v5680_v49 }
 0x54d   : > { %v6172_v9 = vpop.f32.mrf.mxu3 }
 0x54e   : > { %6029 = vst.msk [vmem:[#allocation6 + $0x48] sm:$0xff] %vm470_vm2, %v6013_v63  ;;  %v5381_v10 = vadd.f32 %v12580_v62, %v5231_v37 }
 0x54f   : > { %v5950_v8 = vpop.f32.mrf.mxu1 }
 0x550   : > { %v5978_v23 = vadd.f32 %v5950_v8, %v5828_v28  ;;  %v5531_v55 = vadd.f32 %v11948_v45, %v5381_v10  ;;  %v12581_v28 = vld [vmem:[#allocation32_spill] sm:$0xff]  ;;  %v12582_v8 = vld [vmem:[#allocation43_spill] sm:$0xff]  ;;  %v12583_v45 = vld [vmem:[#allocation49_spill] sm:$0xff]  ;;  %v12093_v32 = vpop.f32.mrf.mxu2 }
 0x551   : > { %v5082_v30 = vadd.f32 %v12582_v8, %v12581_v28  ;;  %v8719_v8 = vld [vmem:[%s12469_s5 + $0xa8] sm:$0xff] }
 0x552   : > { %v5998_v14 = vadd.f32 %v11844_v56, %v5978_v23  ;;  %v5681_v34 = vadd.f32 %v11984_v12, %v5531_v55 }
 0x553   : > { %v5232_v23 = vadd.f32 %v12583_v45, %v5082_v30 }
 0x554   : > { %v6014_v60 = vmax.f32 %v5998_v14, 0.0  ;;  %v12584_v14 = vld [vmem:[#allocation34_spill] sm:$0xff]  ;;  %v5831_v51 = vadd.f32 %v5809_v22, %v5681_v34 }
 0x555   : > { %v6403_v58 = vld [vmem:[#allocation6 + $0x41] ss:$2 sm:$0x1f]  ;;  %v6405_v33 = vld [vmem:[#allocation6 + $0x42] ss:$2 sm:$0x1f]  ;;  %v4932_v52 = vadd.f32 %v12585_v6, %v12584_v14  ;;  %v5382_v7 = vadd.f32 %v12586_v46, %v5232_v23  ;;  %v6175_v42 = vpop.f32.mrf.mxu3 }
 0x556   : > { %6030 = vst.msk [vmem:[#allocation6 + $0x50] sm:$0xff] %vm470_vm2, %v6014_v60  ;;  %v6407_v44 = vmax.f32 %v6403_v58, %v6405_v33  ;;  %v5815_v60 = vpop.f32.mrf.mxu0  ;;  %v12587_v33 = vld [vmem:[#allocation45_spill] sm:$0xff] }
 0x557   : > { %v5953_v61 = vpop.f32.mrf.mxu1  ;;  %v5532_v12 = vadd.f32 %v11969_v40, %v5382_v7  ;;  %v5083_v3 = vadd.f32 %v12587_v33, %v4932_v52  ;;  %v8733_v46 = vld [vmem:[%s12469_s5 + $0xd8] sm:$0xff]  ;;  %v8732_v7 = vld [vmem:[%s12469_s5 + $0xd0] sm:$0xff] }
 0x558   : > { %v5979_v18 = vadd.f32 %v5953_v61, %v5829_v27  ;;  %v6408_v48 = vmax.f32 %v6406_v17, %v6407_v44  ;;  %v12588_v27 = vld [vmem:[#allocation51_spill] sm:$0xff]  ;;  %v6101_v61 = vadd.f32 %v12046_v21, %v12009_v0  ;;  %v6246_v0 = vpop.f32.mrf.mxu2  ;;  %6981 = vmatpush.msra.mxu0 %v8733_v46 }
 0x559   : > { %v5233_v22 = vadd.f32 %v12588_v27, %v5083_v3  ;;  %v5682_v36 = vadd.f32 %v12004_v35, %v5532_v12  ;;  %v8887_v12 = vld [vmem:[%s12468_s4] ss:$0 sm:$0xff] }
 0x55a   : > { %v5999_v5 = vadd.f32 %v11844_v56, %v5979_v18  ;;  %6409 = vst.msk [vmem:[#allocation4 + $0x26] sm:$0x1f] %vm6385_vm4, %v6408_v48  ;;  %v12589_v18 = vld [vmem:[#allocation60_spill] sm:$0xff]  ;;  %6982 = vmatpush.msra.mxu0 %v8732_v7 }
 0x55b   : > { %v5383_v48 = vadd.f32 %v12589_v18, %v5233_v22  ;;  %v5832_v59 = vadd.f32 %v5812_v29, %v5682_v36  ;;  %v8721_v29 = vld [vmem:[%s12469_s5 + $0xb8] sm:$0xff]  ;;  %v8744_v18 = vld [vmem:[%s12469_s5 + $0xf0] sm:$0xff] }
 0x55c   : > { %v6015_v24 = vmax.f32 %v5999_v5, 0.0  ;;  %v6141_v5 = vadd.f32 %v12050_v15, %v6101_v61  ;;  %v8706_v15 = vld [vmem:[%s12469_s5 + $0x80] sm:$0xff]  ;;  %6895 = vmatpush.msrb.mxu3 %v8721_v29  ;;  %v8757_v61 = vld [vmem:[%s12469_s5 + $0x118] sm:$0xff] }
 0x55d   : > { %v6411_v17 = vld [vmem:[#allocation6 + $0x4e] ss:$2 sm:$0x1f]  ;;  %v6413_v44 = vld [vmem:[#allocation6 + $0x4f] ss:$2 sm:$0x1f]  ;;  %v5533_v62 = vadd.f32 %v11990_v11, %v5383_v48  ;;  %6812 = vmatpush.msra.mxu2 %v8706_v15  ;;  %v6283_v28 = vpop.f32.mrf.mxu3 }
 0x55e   : > { %6031 = vst.msk [vmem:[#allocation6 + $0x58] sm:$0xff] %vm470_vm2, %v6015_v24  ;;  %v6418_v37 = vmax.f32 %v6411_v17, %v6413_v44  ;;  %v6178_v21 = vadd.f32 %v6172_v9, %v6141_v5  ;;  %v8720_v11 = vld [vmem:[%s12469_s5 + $0xb0] sm:$0xff]  ;;  %v6846_v29 = vld [vmem:[#allocation4 + $0xb] sm:$0xff] }
 0x55f   : > { %v5956_v63 = vpop.f32.mrf.mxu1  ;;  %v5683_v55 = vadd.f32 %v12024_v20, %v5533_v62  ;;  %6896 = vmatpush.msrb.mxu3 %v8720_v11  ;;  %7153 = vmatpush.msrb.mxu2 %v8757_v61  ;;  %v8743_v62 = vld [vmem:[%s12469_s5 + $0xe8] sm:$0xff]  ;;  %v8756_v15 = vld [vmem:[%s12469_s5 + $0x110] sm:$0xff] }
 0x560   : > { %v5980_v13 = vadd.f32 %v5956_v63, %v5830_v31  ;;  %v6209_v31 = vpop.f32.mrf.mxu0  ;;  %v6249_v52 = vpop.f32.mrf.mxu2 }
 0x561   : > { %v6449_v39 = vld [vmem:[#allocation4 + $0x21] sm:$0xff]  ;;  %6897 = vmatpush.msrb.mxu3 %v8719_v8  ;;  %7154 = vmatpush.msrb.mxu2 %v8756_v15 }
 0x562   : > { %v6437_v43 = vld [vmem:[#allocation4 + $0x20] sm:$0xff]  ;;  %v6000_v4 = vadd.f32 %v11844_v56, %v5980_v13  ;;  %8670 = vmatmul.msk.f32.gmra.mxu2 %vm470_vm2, %v6449_v39  ;;  %8701 = vmatmul.msk.f32.gmra.mxu1 %vm470_vm2, %v6449_v39  ;;  %v6104_v13 = vadd.f32 %v12065_v47, %v12027_v26  ;;  %v6215_v39 = vadd.f32 %v6209_v31, %v6178_v21  ;;  %v8718_v26 = vld [vmem:[%s12469_s5 + $0xa0] sm:$0xff] }
 0x563   : > { %v12074_v2 = vld [vmem:[#allocation4 + $0x22] sm:$0xff]  ;;  %8678 = vmatmul.msk.f32.gmra.mxu3 %vm470_vm2, %v6437_v43 }
 0x564   : > { %8690 = vmatmul.msk.f32.gmra.mxu0 %vm470_vm2, %v12074_v2  ;;  %v6016_v25 = vmax.f32 %v6000_v4, 0.0  ;;  %v6142_v30 = vadd.f32 %v12069_v16, %v6104_v13  ;;  %v5833_v4 = vadd.f32 %v5815_v60, %v5683_v55  ;;  %v6252_v9 = vadd.f32 %v6246_v0, %v6215_v39  ;;  %6898 = vmatpush.msrb.mxu3 %v8718_v26  ;;  %v8731_v60 = vld [vmem:[%s12469_s5 + $0xc8] sm:$0xff]  ;;  %v6681_v39 = vld [vmem:[#allocation4 + $0x41] sm:$0x7f] }
 0x565   : > { %6983 = vmatpush.msra.mxu0 %v8731_v60  ;;  %v6848_v8 = vld [vmem:[#allocation4 + $0x1b] sm:$0xff]  ;;  %v7024_v26 = vld [vmem:[#allocation4 + $0x43] sm:$0xff] }
 0x566   : > { %6032 = vst.msk [vmem:[#allocation6 + $0x60] sm:$0xff] %vm470_vm2, %v6016_v25  ;;  %v6179_v14 = vadd.f32 %v6175_v42, %v6142_v30  ;;  %v6289_v6 = vadd.f32 %v6283_v28, %v6252_v9  ;;  %v8755_v28 = vld [vmem:[%s12469_s5 + $0x108] sm:$0xff]  ;;  %v6853_v9 = vld [vmem:[#allocation4 + $0x43] sm:$0x7f] }
 0x567   : > { %v5959_v57 = vpop.f32.mrf.mxu1  ;;  %7155 = vmatpush.msrb.mxu2 %v8755_v28 }
 0x568   : > { %v5981_v58 = vadd.f32 %v5959_v57, %v5831_v51  ;;  %v6320_v47 = vpop.f32.mrf.mxu0 }
 0x569   : > { %v6326_v41 = vadd.f32 %v6320_v47, %v6289_v6  ;;  %v6939_v47 = vld [vmem:[#allocation4 + $0x4a] sm:$0x7f] }
 0x56a   : > { %v6001_v19 = vadd.f32 %v11844_v56, %v5981_v58  ;;  %v6286_v58 = vpop.f32.mrf.mxu3 }
 0x56c   : > { %v6017_v53 = vmax.f32 %v6001_v19, 0.0 }
 0x56d   : > { %v6415_v38 = vld [vmem:[#allocation6 + $0x5b] ss:$2 sm:$0x1f]  ;;  %v6417_v40 = vld [vmem:[#allocation6 + $0x5c] ss:$2 sm:$0x1f] }
 0x56e   : > { %6033 = vst.msk [vmem:[#allocation6 + $0x68] sm:$0xff] %vm470_vm2, %v6017_v53  ;;  %v6419_v49 = vmax.f32 %v6415_v38, %v6417_v40  ;;  %v8745_v53 = vld [vmem:[%s12469_s5 + $0xf8] sm:$0xff] }
 0x56f   : > { %v5962_v24 = vpop.f32.mrf.mxu1  ;;  %7067 = vmatpush.msra.mxu1 %v8745_v53 }
 0x570   : > { %v5982_v35 = vadd.f32 %v5962_v24, %v5832_v59  ;;  %v6420_v10 = vmax.f32 %v6418_v37, %v6419_v49  ;;  %v6323_v36 = vpop.f32.mrf.mxu0 }
 0x571   : > { %7068 = vmatpush.msra.mxu1 %v8744_v18 }
 0x572   : > { %v6002_v63 = vadd.f32 %v11844_v56, %v5982_v35  ;;  %6421 = vst.msk [vmem:[#allocation4 + $0x2f] sm:$0x1f] %vm6385_vm4, %v6420_v10  ;;  %v8742_v35 = vld [vmem:[%s12469_s5 + $0xe0] sm:$0xff] }
 0x573   : > { %7069 = vmatpush.msra.mxu1 %v8743_v62  ;;  %v6564_v60 = vpop.f32.mrf.mxu3  ;;  %v7268_v62 = vld [vmem:[#allocation7 + $0x38] sm:$0xff] }
 0x574   : > { %v6018_v43 = vmax.f32 %v6002_v63, 0.0  ;;  %7296 = vmatpush.msra.mxu3 %v7268_v62 }
 0x575   : > { %7070 = vmatpush.msra.mxu1 %v8742_v35 }
 0x576   : > { %6034 = vst.msk [vmem:[#allocation6 + $0x70] sm:$0xff] %vm470_vm2, %v6018_v43  ;;  %v6847_v43 = vld [vmem:[#allocation4 + $0x13] sm:$0xff] }
 0x577   : > { %v5965_v20 = vpop.f32.mrf.mxu1 }
 0x578   : > { %v5983_v45 = vadd.f32 %v5965_v20, %v5833_v4  ;;  %v6938_v20 = vld [vmem:[#allocation4 + $0x42] sm:$0xff] }
 0x579   : > { %v6450_v23 = vld [vmem:[#allocation4 + $0x29] sm:$0xff] }
 0x57a   : > { %v6438_v34 = vld [vmem:[#allocation4 + $0x28] sm:$0xff]  ;;  %v6003_v16 = vadd.f32 %v11844_v56, %v5983_v45  ;;  %8671 = vmatmul.msk.f32.gmra.mxu2 %vm470_vm2, %v6450_v23  ;;  %8702 = vmatmul.msk.f32.gmra.mxu1 %vm470_vm2, %v6450_v23  ;;  %v6216_v56 = vadd.f32 %v12093_v32, %v6179_v14  ;;  %v8730_v32 = vld [vmem:[%s12469_s5 + $0xc0] sm:$0xff]  ;;  %v7105_v14 = vld [vmem:[#allocation4 + $0x1c] sm:$0xff] }
 0x57b   : > { %v12128_v25 = vld [vmem:[#allocation4 + $0x2a] sm:$0xff]  ;;  %8679 = vmatmul.msk.f32.gmra.mxu3 %vm470_vm2, %v6438_v34  ;;  %6984 = vmatpush.msra.mxu0 %v8730_v32  ;;  %v6767_v45 = vld [vmem:[#allocation4 + $0x42] sm:$0x7f]  ;;  %v7104_v34 = vld [vmem:[#allocation4 + $0x14] sm:$0xff] }
 0x57c   : > { %8691 = vmatmul.msk.f32.gmra.mxu0 %vm470_vm2, %v12128_v25  ;;  %v6019_v51 = vmax.f32 %v6003_v16, 0.0  ;;  %v6253_v57 = vadd.f32 %v6249_v52, %v6216_v56  ;;  %v6439_v19 = vld [vmem:[#allocation4 + $0x30] sm:$0xff]  ;;  %v7106_v16 = vld [vmem:[#allocation4 + $0x24] sm:$0xff] }
 0x57d   : > { %v6423_v17 = vld [vmem:[#allocation6 + $0x68] ss:$2 sm:$0x1f]  ;;  %v6425_v44 = vld [vmem:[#allocation6 + $0x69] ss:$2 sm:$0x1f] }
 0x57e   : > { %6035 = vst.msk [vmem:[#allocation6 + $0x78] sm:$0xff] %vm470_vm2, %v6019_v51  ;;  %v6290_v27 = vadd.f32 %v6286_v58, %v6253_v57  ;;  %v6429_v5 = vmax.f32 %v6423_v17, %v6425_v44  ;;  %v6850_v30 = vld [vmem:[#allocation4 + $0x2b] sm:$0xff] }
 0x57f   : > { %v6357_v33 = vpop.f32.mrf.mxu1  ;;  %v7025_v23 = vld [vmem:[#allocation4 + $0x4b] sm:$0x7f] }
 0x580   : > { %v6363_v3 = vadd.f32 %v6357_v33, %v6326_v41  ;;  %v6327_v40 = vadd.f32 %v6323_v36, %v6290_v27  ;;  %v7107_v46 = vld [vmem:[#allocation4 + $0x2c] sm:$0xff]  ;;  %v6642_v41 = vpop.f32.mrf.mxu0  ;;  %v7110_v33 = vld [vmem:[#allocation4 + $0x44] sm:$0xff]  ;;  %v6567_v32 = vpop.f32.mrf.mxu3 }
 0x582   : > { %v6369_v22 = vadd.f32 %v8887_v12, %v6363_v3 }
 0x583   : > { %8680 = vmatmul.msk.f32.gmra.mxu3 %vm470_vm2, %v6439_v19 }
 0x584   : > { %v6371_v48 = vmax.f32 %v6369_v22, 0.0  ;;  %v7111_v22 = vld [vmem:[#allocation4 + $0x4c] sm:$0x7f] }
 0x585   : > { %v6426_v42 = vld [vmem:[#allocation6 + $0x75] ss:$2 sm:$0x1f]  ;;  %v6428_v38 = vld [vmem:[#allocation6 + $0x76] ss:$2 sm:$0x1f] }
 0x586   : > { %6373 = vst.msk [vmem:[#allocation6 + $0x80] sm:$0xff] %vm470_vm2, %v6371_v48  ;;  %v6430_v59 = vmax.f32 %v6426_v42, %v6428_v38 }
 0x587   : > { %v6360_v37 = vpop.f32.mrf.mxu1 }
 0x588   : > { %v6364_v49 = vadd.f32 %v6360_v37, %v6327_v40  ;;  %v6431_v24 = vmax.f32 %v6429_v5, %v6430_v59  ;;  %v6645_v3 = vpop.f32.mrf.mxu0 }
 0x58a   : > { %v6370_v10 = vadd.f32 %v8887_v12, %v6364_v49  ;;  %6432 = vst.msk [vmem:[#allocation4 + $0x38] sm:$0x1f] %vm6385_vm4, %v6431_v24 }
 0x58c   : > { %v6372_v31 = vmax.f32 %v6370_v10, 0.0 }
 0x58e   : > { %6375 = vst.msk [vmem:[#allocation6 + $0x88] sm:$0x7f] %vm6374_vm5, %v6372_v31 }
 0x58f   : > { %v6728_v12 = vpop.f32.mrf.mxu1 }
 0x591   : > { %v6451_v0 = vld [vmem:[#allocation4 + $0x31] sm:$0xff]  ;;  %v6452_v11 = vld [vmem:[#allocation4 + $0x39] sm:$0x7f] }
 0x592   : > { %v6440_v21 = vld [vmem:[#allocation4 + $0x38] sm:$0x7f]  ;;  %8672 = vmatmul.msk.f32.gmra.mxu2 %vm470_vm2, %v6451_v0  ;;  %8703 = vmatmul.msk.f32.gmra.mxu1 %vm470_vm2, %v6451_v0 }
 0x593   : > { %v6594_v63 = vld [vmem:[#allocation4 + $0x32] sm:$0xff]  ;;  %8681 = vmatmul.msk.f32.gmra.mxu3 %vm470_vm2, %v6440_v21  ;;  %v6595_v55 = vld [vmem:[#allocation4 + $0x3a] sm:$0x7f] }
 0x594   : > { %8692 = vmatmul.msk.f32.gmra.mxu0 %vm470_vm2, %v6594_v63  ;;  %v6680_v13 = vld [vmem:[#allocation4 + $0x39] sm:$0xff] }
 0x595   : > { %v6852_v4 = vld [vmem:[#allocation4 + $0x3b] sm:$0xff] }
 0x596   : > { %v7108_v56 = vld [vmem:[#allocation4 + $0x34] sm:$0xff]  ;;  %v7109_v57 = vld [vmem:[#allocation4 + $0x3c] sm:$0xff] }
 0x597   : > { %v7258_v21 = vld [vmem:[#allocation7 + $0x18] sm:$0xff] }
 0x598   : > { %7343 = vmatpush.msrb.mxu0 %v7258_v21  ;;  %v7259_v21 = vld [vmem:[#allocation5 + $0x1] sm:$0xff] }
 0x59a   : > { %8673 = vmatmul.msk.f32.gmra.mxu2 %vm470_vm2, %v6452_v11  ;;  %8704 = vmatmul.msk.f32.gmra.mxu1 %vm470_vm2, %v6680_v13  ;;  %v7267_v13 = vld [vmem:[#allocation7 + $0x30] sm:$0xff] }
 0x59b   : > { %8722 = vmatmul.msk.f32.vlgmr.msrb.gmra.mxu3 %vm470_vm2, %v6846_v29 }
 0x59c   : > { %8693 = vmatmul.msk.f32.gmra.mxu0 %vm470_vm2, %v6595_v55  ;;  %7297 = vmatpush.msra.mxu3 %v7267_v13 }
 0x5a2   : > { %8710 = vmatmul.msk.f32.vlgmr.msra.gmra.mxu2 %vm470_vm2, %v11895_v1  ;;  %8705 = vmatmul.msk.f32.gmra.mxu1 %vm470_vm2, %v6681_v39  ;;  %v6849_v1 = vld [vmem:[#allocation4 + $0x23] sm:$0xff] }
 0x5a3   : > { %8723 = vmatmul.msk.f32.gmra.mxu3 %vm470_vm2, %v6847_v43 }
 0x5a4   : > { %8734 = vmatmul.msk.f32.vlgmr.msra.gmra.mxu0 %vm470_vm2, %v11963_v54 }
 0x5a7   : > { %v6731_v27 = vpop.f32.mrf.mxu1 }
 0x5a9   : > { %v6648_v44 = vpop.f32.mrf.mxu0 }
 0x5aa   : > { %8711 = vmatmul.msk.f32.gmra.mxu2 %vm470_vm2, %v11963_v54  ;;  %8746 = vmatmul.msk.f32.vlgmr.msra.gmra.mxu1 %vm470_vm2, %v6847_v43  ;;  %v8754_v54 = vld [vmem:[%s12469_s5 + $0x100] sm:$0xff] }
 0x5ab   : > { %8724 = vmatmul.msk.f32.gmra.mxu3 %vm470_vm2, %v6848_v8  ;;  %7156 = vmatpush.msrb.mxu2 %v8754_v54  ;;  %v7257_v54 = vld [vmem:[#allocation7 + $0x10] sm:$0xff] }
 0x5ac   : > { %8735 = vmatmul.msk.f32.gmra.mxu0 %vm470_vm2, %v12029_v50 }
 0x5ad   : > { %7344 = vmatpush.msrb.mxu0 %v7257_v54 }
 0x5ae   : > { %v6570_v17 = vpop.f32.mrf.mxu3 }
 0x5b2   : > { %8712 = vmatmul.msk.f32.gmra.mxu2 %vm470_vm2, %v12029_v50  ;;  %8747 = vmatmul.msk.f32.gmra.mxu1 %vm470_vm2, %v6848_v8  ;;  %v6851_v50 = vld [vmem:[#allocation4 + $0x33] sm:$0xff] }
 0x5b3   : > { %8725 = vmatmul.msk.f32.gmra.mxu3 %vm470_vm2, %v6849_v1 }
 0x5b4   : > { %8736 = vmatmul.msk.f32.gmra.mxu0 %vm470_vm2, %v12074_v2 }
 0x5ba   : > { %8713 = vmatmul.msk.f32.gmra.mxu2 %vm470_vm2, %v12074_v2  ;;  %8748 = vmatmul.msk.f32.gmra.mxu1 %vm470_vm2, %v6849_v1  ;;  %v6937_v2 = vld [vmem:[#allocation4 + $0x3a] sm:$0xff] }
 0x5bb   : > { %8726 = vmatmul.msk.f32.gmra.mxu3 %vm470_vm2, %v6850_v30 }
 0x5bc   : > { %8737 = vmatmul.msk.f32.gmra.mxu0 %vm470_vm2, %v12128_v25 }
 0x5c2   : > { %8714 = vmatmul.msk.f32.gmra.mxu2 %vm470_vm2, %v12128_v25  ;;  %8749 = vmatmul.msk.f32.gmra.mxu1 %vm470_vm2, %v6850_v30  ;;  %v6499_v25 = vpop.f32.mrf.mxu2 }
 0x5c3   : > { %8727 = vmatmul.msk.f32.gmra.mxu3 %vm470_vm2, %v6851_v50  ;;  %v6565_v28 = vadd.f32 %v6564_v60, %v6499_v25 }
 0x5c4   : > { %8738 = vmatmul.msk.f32.gmra.mxu0 %vm470_vm2, %v6594_v63 }
 0x5c5   : > { %v6666_v1 = vadd.f32 %v6642_v41, %v6565_v28 }
 0x5c7   : > { %v12252_v61 = vpop.f32.mrf.mxu1 }
 0x5c9   : > { %v12256_v18 = vpop.f32.mrf.mxu0 }
 0x5ca   : > { %8715 = vmatmul.msk.f32.gmra.mxu2 %vm470_vm2, %v6594_v63  ;;  %8750 = vmatmul.msk.f32.gmra.mxu1 %vm470_vm2, %v6851_v50  ;;  %v12232_v6 = vpop.f32.mrf.mxu2 }
 0x5cb   : > { %8728 = vmatmul.msk.f32.gmra.mxu3 %vm470_vm2, %v6852_v4 }
 0x5cc   : > { %8739 = vmatmul.msk.f32.gmra.mxu0 %vm470_vm2, %v6937_v2 }
 0x5ce   : > { %v12254_v53 = vpop.f32.mrf.mxu3 }
 0x5d2   : > { %8716 = vmatmul.msk.f32.gmra.mxu2 %vm470_vm2, %v6937_v2  ;;  %8751 = vmatmul.msk.f32.gmra.mxu1 %vm470_vm2, %v6852_v4  ;;  %v12235_v52 = vpop.f32.mrf.mxu2  ;;  %v6752_v4 = vadd.f32 %v6728_v12, %v6666_v1  ;;  %v6568_v2 = vadd.f32 %v6567_v32, %v12232_v6 }
 0x5d3   : > { %8729 = vmatmul.msk.f32.gmra.mxu3 %vm470_vm2, %v6853_v9 }
 0x5d4   : > { %8740 = vmatmul.msk.f32.gmra.mxu0 %vm470_vm2, %v6938_v20 }
 0x5da   : > { %8717 = vmatmul.msk.f32.gmra.mxu2 %vm470_vm2, %v6767_v45  ;;  %8752 = vmatmul.msk.f32.gmra.mxu1 %vm470_vm2, %v7024_v26  ;;  %v12238_v7 = vpop.f32.mrf.mxu2  ;;  %v6667_v45 = vadd.f32 %v6645_v3, %v6568_v2  ;;  %v7370_v3 = vld [vmem:[#allocation7 + $0x48] sm:$0xff] }
 0x5db   : > { %v6574_v28 = vadd.f32 %v12254_v53, %v12238_v7  ;;  %v7250_v7 = vld [vmem:[#allocation5] sm:$0xff] }
 0x5dc   : > { %8741 = vmatmul.msk.f32.gmra.mxu0 %vm470_vm2, %v6939_v47  ;;  %v6753_v25 = vadd.f32 %v6731_v27, %v6667_v45  ;;  %v7255_v45 = vld [vmem:[#allocation7] sm:$0xff] }
 0x5dd   : > { %v6669_v2 = vadd.f32 %v12256_v18, %v6574_v28 }
 0x5df   : > { %v12258_v42 = vpop.f32.mrf.mxu1 }
 0x5e1   : > { %v12262_v40 = vpop.f32.mrf.mxu0 }
 0x5e2   : > { %8758 = vmatmul.msk.f32.vlgmr.msrb.gmra.mxu2 %vm470_vm2, %v7104_v34  ;;  %8753 = vmatmul.msk.f32.gmra.mxu1 %vm470_vm2, %v7025_v23  ;;  %v7266_v23 = vld [vmem:[#allocation7 + $0x28] sm:$0xff]  ;;  %v7372_v34 = vld [vmem:[#allocation7 + $0x58] sm:$0xff] }
 0x5e3   : > { %7298 = vmatpush.msra.mxu3 %v7266_v23  ;;  %7400 = vmatpush.msrb.mxu1 %v7372_v34 }
 0x5e5   : > { %v12241_v51 = vpop.f32.mrf.mxu2 }
 0x5e6   : > { %v12260_v38 = vpop.f32.mrf.mxu3 }
 0x5e7   : > { %v6577_v18 = vadd.f32 %v12260_v38, %v12241_v51 }
 0x5ea   : > { %8759 = vmatmul.msk.f32.gmra.mxu2 %vm470_vm2, %v7105_v14  ;;  %v7371_v14 = vld [vmem:[#allocation7 + $0x50] sm:$0xff] }
 0x5eb   : > { %7401 = vmatpush.msrb.mxu1 %v7371_v14 }
 0x5ed   : > { %7402 = vmatpush.msrb.mxu1 %v7370_v3 }
 0x5f2   : > { %8760 = vmatmul.msk.f32.gmra.mxu2 %vm470_vm2, %v7106_v16 }
 0x5f7   : > { %v12264_v59 = vpop.f32.mrf.mxu1 }
 0x5f9   : > { %v12268_v49 = vpop.f32.mrf.mxu0 }
 0x5fa   : > { %8761 = vmatmul.msk.f32.gmra.mxu2 %vm470_vm2, %v7107_v46 }
 0x5fd   : > { %v12244_v58 = vpop.f32.mrf.mxu2 }
 0x5fe   : > { %v12266_v37 = vpop.f32.mrf.mxu3 }
 0x5ff   : > { %v6580_v38 = vadd.f32 %v12266_v37, %v12244_v58  ;;  %v7434_v58 = vld [vmem:[#allocation7 + $0x78] sm:$0xff] }
 0x602   : > { %8762 = vmatmul.msk.f32.gmra.mxu2 %vm470_vm2, %v7108_v56  ;;  %v6571_v56 = vadd.f32 %v6570_v17, %v12235_v52  ;;  %v7256_v52 = vld [vmem:[#allocation7 + $0x8] sm:$0xff]  ;;  %v7363_v17 = vld [vmem:[#allocation5 + $0x2] sm:$0xff] }
 0x603   : > { %7345 = vmatpush.msrb.mxu0 %v7256_v52  ;;  %v6671_v52 = vadd.f32 %v12268_v49, %v6580_v38 }
 0x604   : > { %v6668_v12 = vadd.f32 %v6648_v44, %v6571_v56  ;;  %v7619_v44 = vld [vmem:[#allocation7 + $0xd0] sm:$0xff] }
 0x605   : > { %7346 = vmatpush.msrb.mxu0 %v7255_v45 }
 0x606   : > { %v12274_v10 = vpop.f32.mrf.mxu3  ;;  %8771 = vmatmul.msk.f32.vlgmr.msrb.gmra.mxu0 %vm470_vm2, %v7250_v7 }
 0x60a   : > { %8763 = vmatmul.msk.f32.gmra.mxu2 %vm470_vm2, %v7109_v57  ;;  %v12301_v57 = vld [vmem:[%s12470_s6] ss:$0 sm:$0xff] }
 0x60f   : > { %v12272_v35 = vpop.f32.mrf.mxu1 }
 0x611   : > { %v12276_v31 = vpop.f32.mrf.mxu0 }
 0x612   : > { %8764 = vmatmul.msk.f32.gmra.mxu2 %vm470_vm2, %v7110_v33 }
 0x615   : > { %v12247_v19 = vpop.f32.mrf.mxu2 }
 0x616   : > { %v12282_v15 = vpop.f32.mrf.mxu3 }
 0x617   : > { %v12280_v63 = vpop.f32.mrf.mxu1 }
 0x619   : > { %v12286_v11 = vpop.f32.mrf.mxu0 }
 0x61a   : > { %8765 = vmatmul.msk.f32.gmra.mxu2 %vm470_vm2, %v7111_v22  ;;  %v7265_v22 = vld [vmem:[#allocation7 + $0x20] sm:$0xff] }
 0x61b   : > { %7299 = vmatpush.msra.mxu3 %v7265_v22 }
 0x61c   : > { %8766 = vmatmul.msk.f32.vlgmr.msra.gmra.mxu3 %vm470_vm2, %v7259_v21 }
 0x61d   : > { %v12250_v36 = vpop.f32.mrf.mxu2  ;;  %7462 = vmatpush.msrb.mxu3 %v7434_v58 }
 0x61e   : > { %v6900_v39 = vpop.f32.mrf.mxu3 }
 0x61f   : > { %v12288_v55 = vpop.f32.mrf.mxu1 }
 0x621   : > { %v6986_v8 = vpop.f32.mrf.mxu0 }
 0x625   : > { %v6814_v48 = vpop.f32.mrf.mxu2 }
 0x626   : > { %v6903_v9 = vpop.f32.mrf.mxu3  ;;  %v6838_v20 = vadd.f32 %v6814_v48, %v6752_v4  ;;  %v7369_v48 = vld [vmem:[#allocation7 + $0x40] sm:$0xff] }
 0x627   : > { %v7072_v30 = vpop.f32.mrf.mxu1  ;;  %7403 = vmatpush.msrb.mxu1 %v7369_v48 }
 0x628   : > { %v6924_v47 = vadd.f32 %v6900_v39, %v6838_v20  ;;  %v7620_v39 = vld [vmem:[#allocation7 + $0xd8] sm:$0xff]  ;;  %8776 = vmatmul.msk.f32.vlgmr.msrb.gmra.mxu1 %vm470_vm2, %v7363_v17 }
 0x629   : > { %v6989_v26 = vpop.f32.mrf.mxu0  ;;  %7648 = vmatpush.msra.mxu2 %v7620_v39 }
 0x62a   : > { %v7010_v60 = vadd.f32 %v6986_v8, %v6924_v47  ;;  %v7618_v47 = vld [vmem:[#allocation7 + $0xc8] sm:$0xff] }
 0x62b   : > { %7649 = vmatpush.msra.mxu2 %v7619_v44 }
 0x62c   : > { %v7096_v33 = vadd.f32 %v7072_v30, %v7010_v60 }
 0x62d   : > { %v6817_v5 = vpop.f32.mrf.mxu2  ;;  %7650 = vmatpush.msra.mxu2 %v7618_v47 }
 0x62e   : > { %v6839_v41 = vadd.f32 %v6817_v5, %v6753_v25  ;;  %v6906_v6 = vpop.f32.mrf.mxu3  ;;  %v6754_v5 = vadd.f32 %v12252_v61, %v6668_v12 }
 0x62f   : > { %v7075_v46 = vpop.f32.mrf.mxu1 }
 0x630   : > { %v6925_v32 = vadd.f32 %v6903_v9, %v6839_v41  ;;  %v6670_v41 = vadd.f32 %v12262_v40, %v6577_v18 }
 0x631   : > { %v6992_v62 = vpop.f32.mrf.mxu0 }
 0x632   : > { %v7011_v8 = vadd.f32 %v6989_v26, %v6925_v32  ;;  %v6755_v26 = vadd.f32 %v12258_v42, %v6669_v2  ;;  %v12320_v42 = vld [vmem:[#allocation5 + $0x8] sm:$0xff]  ;;  %v6756_v3 = vadd.f32 %v12264_v59, %v6670_v41 }
 0x633   : > { %8772 = vmatmul.msk.f32.gmra.mxu0 %vm470_vm2, %v12320_v42 }
 0x634   : > { %v7097_v9 = vadd.f32 %v7075_v46, %v7011_v8  ;;  %v6583_v8 = vadd.f32 %v12274_v10, %v12247_v19  ;;  %v7433_v19 = vld [vmem:[#allocation7 + $0x70] sm:$0xff] }
 0x635   : > { %v12270_v24 = vpop.f32.mrf.mxu2  ;;  %v7495_v10 = vld [vmem:[#allocation7 + $0x90] sm:$0xff]  ;;  %7463 = vmatpush.msrb.mxu3 %v7433_v19  ;;  %v7682_v19 = vld [vmem:[#allocation7 + $0xf8] sm:$0xff] }
 0x636   : > { %v6840_v1 = vadd.f32 %v12270_v24, %v6754_v5  ;;  %v6909_v4 = vpop.f32.mrf.mxu3  ;;  %v7617_v24 = vld [vmem:[#allocation7 + $0xc0] sm:$0xff]  ;;  %v6672_v2 = vadd.f32 %v12276_v31, %v6583_v8 }
 0x637   : > { %v7078_v30 = vpop.f32.mrf.mxu1  ;;  %7651 = vmatpush.msra.mxu2 %v7617_v24  ;;  %v6586_v24 = vadd.f32 %v12282_v15, %v12250_v36  ;;  %v7493_v8 = vld [vmem:[#allocation7 + $0x80] sm:$0xff] }
 0x638   : > { %v6926_v20 = vadd.f32 %v6906_v6, %v6840_v1 }
 0x639   : > { %v6995_v34 = vpop.f32.mrf.mxu0  ;;  %v6673_v36 = vadd.f32 %v12286_v11, %v6586_v24  ;;  %v7494_v11 = vld [vmem:[#allocation7 + $0x88] sm:$0xff] }
 0x63a   : > { %v7012_v14 = vadd.f32 %v6992_v62, %v6926_v20 }
 0x63c   : > { %v7098_v6 = vadd.f32 %v7078_v30, %v7012_v14 }
 0x63d   : > { %v12278_v0 = vpop.f32.mrf.mxu2 }
 0x63e   : > { %v6841_v25 = vadd.f32 %v12278_v0, %v6755_v26 }
 0x63f   : > { %v7081_v60 = vpop.f32.mrf.mxu1 }
 0x640   : > { %v6927_v12 = vadd.f32 %v6909_v4, %v6841_v25 }
 0x641   : > { %v6998_v48 = vpop.f32.mrf.mxu0 }
 0x642   : > { %v7013_v0 = vadd.f32 %v6995_v34, %v6927_v12 }
 0x644   : > { %v7099_v5 = vadd.f32 %v7081_v60, %v7013_v0 }
 0x645   : > { %v12284_v29 = vpop.f32.mrf.mxu2 }
 0x646   : > { %v6842_v40 = vadd.f32 %v12284_v29, %v6756_v3  ;;  %v6757_v29 = vadd.f32 %v12272_v35, %v6671_v52  ;;  %v7496_v35 = vld [vmem:[#allocation7 + $0x98] sm:$0xff] }
 0x647   : > { %v7084_v37 = vpop.f32.mrf.mxu1  ;;  %7524 = vmatpush.msra.mxu0 %v7496_v35 }
 0x649   : > { %v7001_v20 = vpop.f32.mrf.mxu0  ;;  %7525 = vmatpush.msra.mxu0 %v7495_v10 }
 0x64b   : > { %7526 = vmatpush.msra.mxu0 %v7494_v11 }
 0x64d   : > { %v12290_v43 = vpop.f32.mrf.mxu2  ;;  %7527 = vmatpush.msra.mxu0 %v7493_v8 }
 0x64f   : > { %v7087_v31 = vpop.f32.mrf.mxu1 }
 0x655   : > { %v12292_v50 = vpop.f32.mrf.mxu2 }
 0x65d   : > { %v12295_v16 = vpop.f32.mrf.mxu2 }
 0x665   : > { %v7158_v27 = vpop.f32.mrf.mxu2 }
 0x666   : > { %v7182_v13 = vadd.f32 %v7158_v27, %v7096_v33  ;;  %v6912_v33 = vpop.f32.mrf.mxu3 }
 0x668   : > { %v7194_v54 = vadd.f32 %v12301_v57, %v7182_v13  ;;  %v6928_v13 = vadd.f32 %v6912_v33, %v6842_v40  ;;  %v7090_v33 = vpop.f32.mrf.mxu1 }
 0x66a   : > { %v7202_v61 = vmax.f32 %v7194_v54, 0.0  ;;  %v7014_v30 = vadd.f32 %v6998_v48, %v6928_v13 }
 0x66c   : > { %7210 = vst.msk [vmem:[#allocation6] sm:$0xff] %vm470_vm2, %v7202_v61  ;;  %v6843_v61 = vadd.f32 %v12290_v43, %v6757_v29  ;;  %v7100_v45 = vadd.f32 %v7084_v37, %v7014_v30  ;;  %v6758_v43 = vadd.f32 %v12280_v63, %v6672_v2  ;;  %v7558_v37 = vld [vmem:[#allocation7 + $0xb8] sm:$0xff] }
 0x66d   : > { %v7161_v53 = vpop.f32.mrf.mxu2  ;;  %7586 = vmatpush.msra.mxu1 %v7558_v37 }
 0x66e   : > { %v7183_v23 = vadd.f32 %v7161_v53, %v7097_v9  ;;  %v6915_v54 = vpop.f32.mrf.mxu3  ;;  %v7432_v53 = vld [vmem:[#allocation7 + $0x68] sm:$0xff]  ;;  %v6844_v25 = vadd.f32 %v12292_v50, %v6758_v43  ;;  %v6759_v50 = vadd.f32 %v12288_v55, %v6673_v36  ;;  %v7263_v36 = vld [vmem:[#allocation5 + $0x21] sm:$0x7] }
 0x66f   : > { %v6929_v47 = vadd.f32 %v6915_v54, %v6843_v61  ;;  %7464 = vmatpush.msrb.mxu3 %v7432_v53  ;;  %v7555_v61 = vld [vmem:[#allocation7 + $0xa0] sm:$0xff] }
 0x670   : > { %v7195_v46 = vadd.f32 %v12301_v57, %v7183_v23  ;;  %v6845_v3 = vadd.f32 %v12295_v16, %v6759_v50  ;;  %v7093_v58 = vpop.f32.mrf.mxu1  ;;  %v7425_v50 = vld [vmem:[#allocation5 + $0x7] sm:$0xff] }
 0x671   : > { %v7015_v14 = vadd.f32 %v7001_v20, %v6929_v47 }
 0x672   : > { %v7203_v56 = vmax.f32 %v7195_v46, 0.0 }
 0x673   : > { %v7218_v62 = vld [vmem:[#allocation6] ss:$2 sm:$0x7]  ;;  %v7219_v27 = vld [vmem:[#allocation6 + $0x1] ss:$2 sm:$0x7]  ;;  %v7101_v60 = vadd.f32 %v7087_v31, %v7015_v14 }
 0x674   : > { %7211 = vst.msk [vmem:[#allocation6 + $0x8] sm:$0xff] %vm470_vm2, %v7203_v56  ;;  %v7224_v39 = vmax.f32 %v7218_v62, %v7219_v27  ;;  %v7004_v56 = vpop.f32.mrf.mxu0  ;;  %v7681_v31 = vld [vmem:[#allocation7 + $0xf0] sm:$0xff] }
 0x675   : > { %v7164_v32 = vpop.f32.mrf.mxu2 }
 0x676   : > { %v7184_v51 = vadd.f32 %v7164_v32, %v7098_v6  ;;  %v6918_v63 = vpop.f32.mrf.mxu3 }
 0x677   : > { %v6930_v41 = vadd.f32 %v6918_v63, %v6844_v25  ;;  %v7680_v63 = vld [vmem:[#allocation7 + $0xe8] sm:$0xff] }
 0x678   : > { %v7196_v22 = vadd.f32 %v12301_v57, %v7184_v51 }
 0x679   : > { %v7016_v32 = vadd.f32 %v7004_v56, %v6930_v41  ;;  %v7614_v41 = vld [vmem:[#allocation5 + $0x26] sm:$0xff] }
 0x67a   : > { %v7204_v21 = vmax.f32 %v7196_v22, 0.0  ;;  %v7431_v22 = vld [vmem:[#allocation7 + $0x60] sm:$0xff] }
 0x67b   : > { %v7221_v17 = vld [vmem:[#allocation6 + $0x9] ss:$2 sm:$0x7]  ;;  %v7223_v59 = vld [vmem:[#allocation6 + $0xa] ss:$2 sm:$0x7]  ;;  %7465 = vmatpush.msrb.mxu3 %v7431_v22 }
 0x67c   : > { %7212 = vst.msk [vmem:[#allocation6 + $0x10] sm:$0xff] %vm470_vm2, %v7204_v21  ;;  %v7225_v44 = vmax.f32 %v7221_v17, %v7223_v59  ;;  %v7102_v21 = vadd.f32 %v7090_v33, %v7016_v32  ;;  %v7007_v59 = vpop.f32.mrf.mxu0  ;;  %v7741_v33 = vld [vmem:[#allocation7 + $0x100] sm:$0xff] }
 0x67d   : > { %v7167_v28 = vpop.f32.mrf.mxu2  ;;  %7710 = vmatpush.msra.mxu3 %v7682_v19 }
 0x67e   : > { %v7185_v1 = vadd.f32 %v7167_v28, %v7099_v5  ;;  %v7226_v49 = vmax.f32 %v7224_v39, %v7225_v44  ;;  %v6921_v0 = vpop.f32.mrf.mxu3  ;;  %v7557_v28 = vld [vmem:[#allocation7 + $0xb0] sm:$0xff] }
 0x67f   : > { %v6931_v52 = vadd.f32 %v6921_v0, %v6845_v3  ;;  %7587 = vmatpush.msra.mxu1 %v7557_v28  ;;  %7711 = vmatpush.msra.mxu3 %v7681_v31  ;;  %v7491_v0 = vld [vmem:[#allocation5 + $0x28] sm:$0x7] }
 0x680   : > { %v7197_v4 = vadd.f32 %v12301_v57, %v7185_v1  ;;  %7228 = vst.msk [vmem:[#allocation5 + $0x10] sm:$0x7] %vm7227_vm6, %v7226_v49  ;;  %v7556_v1 = vld [vmem:[#allocation7 + $0xa8] sm:$0xff] }
 0x681   : > { %v7017_v39 = vadd.f32 %v7007_v59, %v6931_v52  ;;  %7588 = vmatpush.msra.mxu1 %v7556_v1  ;;  %7712 = vmatpush.msra.mxu3 %v7680_v63  ;;  %v7739_v52 = vld [vmem:[#allocation5 + $0x30] sm:$0x7] }
 0x682   : > { %v7205_v9 = vmax.f32 %v7197_v4, 0.0 }
 0x683   : > { %v7230_v38 = vld [vmem:[#allocation6 + $0x12] ss:$2 sm:$0x7]  ;;  %v7232_v40 = vld [vmem:[#allocation6 + $0x13] ss:$2 sm:$0x7]  ;;  %v7103_v49 = vadd.f32 %v7093_v58, %v7017_v39  ;;  %7589 = vmatpush.msra.mxu1 %v7555_v61 }
 0x684   : > { %7213 = vst.msk [vmem:[#allocation6 + $0x18] sm:$0xff] %vm470_vm2, %v7205_v9  ;;  %v7236_v55 = vmax.f32 %v7230_v38, %v7232_v40  ;;  %v7429_v38 = vld [vmem:[#allocation5 + $0x27] sm:$0x7]  ;;  %v7348_v22 = vpop.f32.mrf.mxu0 }
 0x685   : > { %v7170_v7 = vpop.f32.mrf.mxu2  ;;  %v7553_v40 = vld [vmem:[#allocation5 + $0x29] sm:$0x7] }
 0x686   : > { %v7186_v26 = vadd.f32 %v7170_v7, %v7100_v45 }
 0x687   : > { %v12342_v23 = vld [vmem:[#allocation5 + $0x9] sm:$0xff] }
 0x688   : > { %v7364_v34 = vld [vmem:[#allocation5 + $0xa] sm:$0xff]  ;;  %v7198_v46 = vadd.f32 %v12301_v57, %v7186_v26  ;;  %8767 = vmatmul.msk.f32.gmra.mxu3 %vm470_vm2, %v12342_v23  ;;  %v7744_v26 = vld [vmem:[#allocation7 + $0x118] sm:$0xff] }
 0x689   : > { %v7611_v18 = vld [vmem:[#allocation5 + $0xe] sm:$0xff]  ;;  %8777 = vmatmul.msk.f32.gmra.mxu1 %vm470_vm2, %v7364_v34  ;;  %7772 = vmatpush.msrb.mxu0 %v7744_v26  ;;  %v7853_v26 = vld [vmem:[#allocation10 + $0x18] sm:$0xff] }
 0x68a   : > { %8796 = vmatmul.msk.f32.vlgmr.msra.gmra.mxu2 %vm470_vm2, %v7611_v18  ;;  %v7206_v15 = vmax.f32 %v7198_v46, 0.0  ;;  %v7743_v46 = vld [vmem:[#allocation7 + $0x110] sm:$0xff]  ;;  %v7426_v32 = vld [vmem:[#allocation5 + $0xf] sm:$0xff]  ;;  %7870 = vmatpush.msrb.mxu1 %v7853_v26 }
 0x68b   : > { %v7233_v62 = vld [vmem:[#allocation6 + $0x1b] ss:$2 sm:$0x7]  ;;  %7773 = vmatpush.msrb.mxu0 %v7743_v46 }
 0x68c   : > { %7214 = vst.msk [vmem:[#allocation6 + $0x20] sm:$0xff] %vm470_vm2, %v7206_v15  ;;  %v7367_v15 = vld [vmem:[#allocation5 + $0x22] sm:$0x7] }
 0x68d   : > { %v7173_v6 = vpop.f32.mrf.mxu2 }
 0x68e   : > { %v7187_v12 = vadd.f32 %v7173_v6, %v7101_v60  ;;  %v7742_v60 = vld [vmem:[#allocation7 + $0x108] sm:$0xff]  ;;  %v7679_v6 = vld [vmem:[#allocation7 + $0xe0] sm:$0xff] }
 0x68f   : > { %7774 = vmatpush.msrb.mxu0 %v7742_v60  ;;  %7713 = vmatpush.msra.mxu3 %v7679_v6  ;;  %v12412_v60 = vld [vmem:[%s12472_s8] ss:$0 sm:$0xff] }
 0x690   : > { %v7199_v51 = vadd.f32 %v12301_v57, %v7187_v12  ;;  %v7615_v12 = vld [vmem:[#allocation5 + $0x2e] sm:$0x7] }
 0x691   : > { %7775 = vmatpush.msrb.mxu0 %v7741_v33 }
 0x692   : > { %v7207_v48 = vmax.f32 %v7199_v51, 0.0 }
 0x693   : > { %v7235_v27 = vld [vmem:[#allocation6 + $0x1c] ss:$2 sm:$0x7] }
 0x694   : > { %7215 = vst.msk [vmem:[#allocation6 + $0x28] sm:$0xff] %vm470_vm2, %v7207_v48  ;;  %v7237_v17 = vmax.f32 %v7233_v62, %v7235_v27  ;;  %v7676_v62 = vld [vmem:[#allocation5 + $0x27] sm:$0xff] }
 0x695   : > { %v7176_v16 = vpop.f32.mrf.mxu2  ;;  %v7738_v27 = vld [vmem:[#allocation5 + $0x28] sm:$0xff] }
 0x696   : > { %v7188_v5 = vadd.f32 %v7176_v16, %v7102_v21  ;;  %v7238_v13 = vmax.f32 %v7236_v55, %v7237_v17  ;;  %v7677_v21 = vld [vmem:[#allocation5 + $0x2f] sm:$0x7] }
 0x698   : > { %v7200_v44 = vadd.f32 %v12301_v57, %v7188_v5  ;;  %7239 = vst.msk [vmem:[#allocation5 + $0x17] sm:$0x7] %vm7227_vm6, %v7238_v13 }
 0x69a   : > { %v7208_v29 = vmax.f32 %v7200_v44, 0.0 }
 0x69b   : > { %v7240_v47 = vld [vmem:[#allocation6 + $0x24] ss:$2 sm:$0x7]  ;;  %v7241_v35 = vld [vmem:[#allocation6 + $0x25] ss:$2 sm:$0x7] }
 0x69c   : > { %7216 = vst.msk [vmem:[#allocation6 + $0x30] sm:$0xff] %vm470_vm2, %v7208_v29 }
 0x69d   : > { %v7179_v54 = vpop.f32.mrf.mxu2 }
 0x69e   : > { %v7189_v30 = vadd.f32 %v7179_v54, %v7103_v49 }
 0x69f   : > { %v7261_v4 = vld [vmem:[#allocation5 + $0x11] sm:$0xff]  ;;  %v7301_v11 = vpop.f32.mrf.mxu3 }
 0x6a0   : > { %v12359_v2 = vld [vmem:[#allocation5 + $0x10] sm:$0xff]  ;;  %v7201_v20 = vadd.f32 %v12301_v57, %v7189_v30  ;;  %8768 = vmatmul.msk.f32.gmra.mxu3 %vm470_vm2, %v7261_v4  ;;  %v7246_v57 = vmax.f32 %v7240_v47, %v7241_v35  ;;  %v7349_v48 = vadd.f32 %v7348_v22, %v7301_v11 }
 0x6a1   : > { %v7365_v9 = vld [vmem:[#allocation5 + $0x12] sm:$0xff]  ;;  %8773 = vmatmul.msk.f32.gmra.mxu0 %vm470_vm2, %v12359_v2 }
 0x6a2   : > { %v7612_v45 = vld [vmem:[#allocation5 + $0x16] sm:$0xff]  ;;  %8778 = vmatmul.msk.f32.gmra.mxu1 %vm470_vm2, %v7365_v9  ;;  %v7209_v10 = vmax.f32 %v7201_v20, 0.0 }
 0x6a3   : > { %8797 = vmatmul.msk.f32.gmra.mxu2 %vm470_vm2, %v7612_v45  ;;  %v7243_v7 = vld [vmem:[#allocation6 + $0x2d] ss:$2 sm:$0x7]  ;;  %v7245_v53 = vld [vmem:[#allocation6 + $0x2e] ss:$2 sm:$0x7] }
 0x6a4   : > { %7217 = vst.msk [vmem:[#allocation6 + $0x38] sm:$0x7f] %vm6374_vm5, %v7209_v10  ;;  %v7247_v43 = vmax.f32 %v7243_v7, %v7245_v53  ;;  %v7851_v22 = vld [vmem:[#allocation10 + $0x8] sm:$0xff] }
 0x6a5   : > { %v7405_v44 = vpop.f32.mrf.mxu1 }
 0x6a6   : > { %v7248_v24 = vmax.f32 %v7246_v57, %v7247_v43  ;;  %v7420_v19 = vadd.f32 %v7405_v44, %v7349_v48  ;;  %v7850_v48 = vld [vmem:[#allocation10] sm:$0xff] }
 0x6a8   : > { %7249 = vst.msk [vmem:[#allocation5 + $0x1e] sm:$0x7] %vm7227_vm6, %v7248_v24 }
 0x6af   : > { %v7262_v34 = vld [vmem:[#allocation5 + $0x19] sm:$0xff] }
 0x6b0   : > { %v7253_v18 = vld [vmem:[#allocation5 + $0x18] sm:$0xff]  ;;  %8769 = vmatmul.msk.f32.gmra.mxu3 %vm470_vm2, %v7262_v34  ;;  %v7254_v56 = vld [vmem:[#allocation5 + $0x20] sm:$0x7]  ;;  %v7351_v55 = vpop.f32.mrf.mxu0 }
 0x6b1   : > { %v7366_v14 = vld [vmem:[#allocation5 + $0x1a] sm:$0xff]  ;;  %8774 = vmatmul.msk.f32.gmra.mxu0 %vm470_vm2, %v7253_v18 }
 0x6b2   : > { %v7613_v25 = vld [vmem:[#allocation5 + $0x1e] sm:$0xff]  ;;  %8779 = vmatmul.msk.f32.gmra.mxu1 %vm470_vm2, %v7366_v14 }
 0x6b3   : > { %8798 = vmatmul.msk.f32.gmra.mxu2 %vm470_vm2, %v7613_v25  ;;  %v7427_v3 = vld [vmem:[#allocation5 + $0x17] sm:$0xff]  ;;  %v7490_v51 = vld [vmem:[#allocation5 + $0x20] sm:$0xff] }
 0x6b8   : > { %8770 = vmatmul.msk.f32.gmra.mxu3 %vm470_vm2, %v7263_v36 }
 0x6b9   : > { %8775 = vmatmul.msk.f32.gmra.mxu0 %vm470_vm2, %v7254_v56 }
 0x6ba   : > { %8780 = vmatmul.msk.f32.gmra.mxu1 %vm470_vm2, %v7367_v15 }
 0x6bb   : > { %8799 = vmatmul.msk.f32.gmra.mxu2 %vm470_vm2, %v7614_v41  ;;  %v7852_v41 = vld [vmem:[#allocation10 + $0x10] sm:$0xff] }
 0x6bc   : > { %7871 = vmatpush.msrb.mxu1 %v7852_v41 }
 0x6be   : > { %7872 = vmatpush.msrb.mxu1 %v7851_v22 }
 0x6c0   : > { %8781 = vmatmul.msk.f32.vlgmr.msrb.gmra.mxu3 %vm470_vm2, %v7425_v50  ;;  %7873 = vmatpush.msrb.mxu1 %v7850_v48 }
 0x6c1   : > { %8786 = vmatmul.msk.f32.vlgmr.msra.gmra.mxu0 %vm470_vm2, %v12320_v42  ;;  %v7552_v42 = vld [vmem:[#allocation5 + $0x21] sm:$0xff] }
 0x6c2   : > { %8791 = vmatmul.msk.f32.vlgmr.msra.gmra.mxu1 %vm470_vm2, %v12342_v23  ;;  %v7428_v23 = vld [vmem:[#allocation5 + $0x1f] sm:$0xff] }
 0x6c3   : > { %8800 = vmatmul.msk.f32.gmra.mxu2 %vm470_vm2, %v7615_v12 }
 0x6c8   : > { %8782 = vmatmul.msk.f32.gmra.mxu3 %vm470_vm2, %v7426_v32 }
 0x6c9   : > { %8787 = vmatmul.msk.f32.gmra.mxu0 %vm470_vm2, %v12359_v2 }
 0x6ca   : > { %8792 = vmatmul.msk.f32.gmra.mxu1 %vm470_vm2, %v7261_v4 }
 0x6d0   : > { %8783 = vmatmul.msk.f32.gmra.mxu3 %vm470_vm2, %v7427_v3 }
 0x6d1   : > { %8788 = vmatmul.msk.f32.gmra.mxu0 %vm470_vm2, %v7253_v18 }
 0x6d2   : > { %8793 = vmatmul.msk.f32.gmra.mxu1 %vm470_vm2, %v7262_v34 }
 0x6d8   : > { %8784 = vmatmul.msk.f32.gmra.mxu3 %vm470_vm2, %v7428_v23 }
 0x6d9   : > { %8789 = vmatmul.msk.f32.gmra.mxu0 %vm470_vm2, %v7490_v51 }
 0x6da   : > { %8794 = vmatmul.msk.f32.gmra.mxu1 %vm470_vm2, %v7552_v42 }
 0x6e0   : > { %8785 = vmatmul.msk.f32.gmra.mxu3 %vm470_vm2, %v7429_v38 }
 0x6e1   : > { %8790 = vmatmul.msk.f32.gmra.mxu0 %vm470_vm2, %v7491_v0 }
 0x6e2   : > { %8795 = vmatmul.msk.f32.gmra.mxu1 %vm470_vm2, %v7553_v40 }
 0x6e8   : > { %8801 = vmatmul.msk.f32.vlgmr.msra.gmra.mxu3 %vm470_vm2, %v7426_v32 }
 0x6e9   : > { %8806 = vmatmul.msk.f32.vlgmr.msrb.gmra.mxu0 %vm470_vm2, %v12359_v2 }
 0x6f0   : > { %8802 = vmatmul.msk.f32.gmra.mxu3 %vm470_vm2, %v7427_v3 }
 0x6f1   : > { %8807 = vmatmul.msk.f32.gmra.mxu0 %vm470_vm2, %v7253_v18 }
 0x6f8   : > { %8803 = vmatmul.msk.f32.gmra.mxu3 %vm470_vm2, %v7428_v23 }
 0x6f9   : > { %8808 = vmatmul.msk.f32.gmra.mxu0 %vm470_vm2, %v7490_v51 }
 0x700   : > { %8804 = vmatmul.msk.f32.gmra.mxu3 %vm470_vm2, %v7676_v62 }
 0x701   : > { %8809 = vmatmul.msk.f32.gmra.mxu0 %vm470_vm2, %v7738_v27 }
 0x706   : > { %v7408_v29 = vpop.f32.mrf.mxu1 }
 0x708   : > { %8805 = vmatmul.msk.f32.gmra.mxu3 %vm470_vm2, %v7677_v21 }
 0x709   : > { %8810 = vmatmul.msk.f32.gmra.mxu0 %vm470_vm2, %v7739_v52 }
 0x70b   : > { %v7304_v17 = vpop.f32.mrf.mxu3 }
 0x70c   : > { %v7352_v59 = vadd.f32 %v7351_v55, %v7304_v17 }
 0x70d   : > { %v7653_v31 = vpop.f32.mrf.mxu2 }
 0x70e   : > { %v7421_v24 = vadd.f32 %v7408_v29, %v7352_v59 }
 0x71e   : > { %v7354_v16 = vpop.f32.mrf.mxu0 }
 0x71f   : > { %v7411_v54 = vpop.f32.mrf.mxu1 }
 0x723   : > { %v7307_v5 = vpop.f32.mrf.mxu3 }
 0x724   : > { %v7355_v13 = vadd.f32 %v7354_v16, %v7307_v5 }
 0x726   : > { %v7422_v15 = vadd.f32 %v7411_v54, %v7355_v13  ;;  %v7656_v6 = vpop.f32.mrf.mxu2 }
 0x72e   : > { %v7357_v39 = vpop.f32.mrf.mxu0 }
 0x72f   : > { %v7414_v4 = vpop.f32.mrf.mxu1 }
 0x733   : > { %v7310_v58 = vpop.f32.mrf.mxu3 }
 0x734   : > { %v7358_v37 = vadd.f32 %v7357_v39, %v7310_v58 }
 0x736   : > { %v7360_v28 = vpop.f32.mrf.mxu0  ;;  %v7423_v40 = vadd.f32 %v7414_v4, %v7358_v37  ;;  %v7659_v62 = vpop.f32.mrf.mxu2 }
 0x737   : > { %v7417_v20 = vpop.f32.mrf.mxu1 }
 0x73b   : > { %v7313_v8 = vpop.f32.mrf.mxu3 }
 0x73c   : > { %v12407_v1 = vadd.f32 %v7360_v28, %v7313_v8 }
 0x73e   : > { %v7529_v49 = vpop.f32.mrf.mxu0  ;;  %v7424_v44 = vadd.f32 %v7417_v20, %v12407_v1  ;;  %v7662_v37 = vpop.f32.mrf.mxu2 }
 0x73f   : > { %v7591_v10 = vpop.f32.mrf.mxu1 }
 0x743   : > { %v7467_v30 = vpop.f32.mrf.mxu3 }
 0x744   : > { %v7482_v53 = vadd.f32 %v7467_v30, %v7420_v19 }
 0x746   : > { %v7532_v61 = vpop.f32.mrf.mxu0  ;;  %v7544_v57 = vadd.f32 %v7529_v49, %v7482_v53 }
 0x747   : > { %v7594_v25 = vpop.f32.mrf.mxu1 }
 0x748   : > { %v7606_v14 = vadd.f32 %v7591_v10, %v7544_v57 }
 0x74a   : > { %v7668_v63 = vadd.f32 %v7653_v31, %v7606_v14 }
 0x74b   : > { %v7470_v2 = vpop.f32.mrf.mxu3 }
 0x74c   : > { %v7483_v18 = vadd.f32 %v7470_v2, %v7421_v24 }
 0x74e   : > { %v7535_v9 = vpop.f32.mrf.mxu0  ;;  %v7545_v46 = vadd.f32 %v7532_v61, %v7483_v18 }
 0x74f   : > { %v7597_v42 = vpop.f32.mrf.mxu1 }
 0x750   : > { %v7607_v33 = vadd.f32 %v7594_v25, %v7545_v46 }
 0x752   : > { %v7669_v38 = vadd.f32 %v7656_v6, %v7607_v33 }
 0x753   : > { %v7473_v45 = vpop.f32.mrf.mxu3 }
 0x754   : > { %v7484_v50 = vadd.f32 %v7473_v45, %v7422_v15 }
 0x756   : > { %v7538_v47 = vpop.f32.mrf.mxu0  ;;  %v7546_v23 = vadd.f32 %v7535_v9, %v7484_v50 }
 0x757   : > { %v7600_v17 = vpop.f32.mrf.mxu1 }
 0x758   : > { %v7608_v52 = vadd.f32 %v7597_v42, %v7546_v23 }
 0x75a   : > { %v7670_v13 = vadd.f32 %v7659_v62, %v7608_v52 }
 0x75b   : > { %v7476_v35 = vpop.f32.mrf.mxu3 }
 0x75c   : > { %v7485_v27 = vadd.f32 %v7476_v35, %v7423_v40 }
 0x75e   : > { %v7541_v7 = vpop.f32.mrf.mxu0  ;;  %v7547_v16 = vadd.f32 %v7538_v47, %v7485_v27 }
 0x75f   : > { %v7603_v45 = vpop.f32.mrf.mxu1 }
 0x760   : > { %v7609_v28 = vadd.f32 %v7600_v17, %v7547_v16 }
 0x762   : > { %v7671_v61 = vadd.f32 %v7662_v37, %v7609_v28 }
 0x763   : > { %v7479_v43 = vpop.f32.mrf.mxu3 }
 0x764   : > { %v7486_v29 = vadd.f32 %v7479_v43, %v7424_v44  ;;  %v7665_v43 = vpop.f32.mrf.mxu2 }
 0x766   : > { %v7777_v34 = vpop.f32.mrf.mxu0  ;;  %v7548_v4 = vadd.f32 %v7541_v7, %v7486_v29 }
 0x768   : > { %v7610_v10 = vadd.f32 %v7603_v45, %v7548_v4 }
 0x76a   : > { %v7672_v31 = vadd.f32 %v7665_v43, %v7610_v10 }
 0x76b   : > { %v7715_v36 = vpop.f32.mrf.mxu3 }
 0x76c   : > { %v7730_v56 = vadd.f32 %v7715_v36, %v7668_v63 }
 0x76e   : > { %v7792_v12 = vadd.f32 %v7777_v34, %v7730_v56  ;;  %v7780_v32 = vpop.f32.mrf.mxu0 }
 0x770   : > { %v7801_v3 = vadd.f32 %v12412_v60, %v7792_v12 }
 0x772   : > { %v7806_v51 = vmax.f32 %v7801_v3, 0.0 }
 0x773   : > { %v7718_v0 = vpop.f32.mrf.mxu3 }
 0x774   : > { %7811 = vst.msk [vmem:[#allocation6] sm:$0xff] %vm470_vm2, %v7806_v51  ;;  %v7731_v11 = vadd.f32 %v7718_v0, %v7669_v38 }
 0x776   : > { %v7793_v21 = vadd.f32 %v7780_v32, %v7731_v11  ;;  %v7783_v59 = vpop.f32.mrf.mxu0 }
 0x778   : > { %v7802_v55 = vadd.f32 %v12412_v60, %v7793_v21  ;;  %v7854_v21 = vld [vmem:[%s12474_s10] sm:$0x1] }
 0x77a   : > { %v7807_v5 = vmax.f32 %v7802_v55, 0.0 }
 0x77b   : > { %v7721_v39 = vpop.f32.mrf.mxu3  ;;  %v7816_v30 = vld [vmem:[#allocation6] ss:$2 sm:$0x3]  ;;  %v7817_v9 = vld [vmem:[#allocation6 + $0x1] ss:$2 sm:$0x3] }
 0x77c   : > { %7812 = vst.msk [vmem:[#allocation6 + $0x8] sm:$0xff] %vm470_vm2, %v7807_v5  ;;  %v7732_v58 = vadd.f32 %v7721_v39, %v7670_v13  ;;  %v7822_v57 = vmax.f32 %v7816_v30, %v7817_v9 }
 0x77e   : > { %v7794_v8 = vadd.f32 %v7783_v59, %v7732_v58  ;;  %v7786_v54 = vpop.f32.mrf.mxu0 }
 0x780   : > { %v7803_v49 = vadd.f32 %v12412_v60, %v7794_v8 }
 0x782   : > { %v7808_v2 = vmax.f32 %v7803_v49, 0.0 }
 0x783   : > { %v7724_v47 = vpop.f32.mrf.mxu3  ;;  %v7819_v35 = vld [vmem:[#allocation6 + $0x7] ss:$2 sm:$0x3]  ;;  %v7821_v19 = vld [vmem:[#allocation6 + $0x8] ss:$2 sm:$0x3] }
 0x784   : > { %7813 = vst.msk [vmem:[#allocation6 + $0x10] sm:$0xff] %vm470_vm2, %v7808_v2  ;;  %v7733_v1 = vadd.f32 %v7724_v47, %v7671_v61  ;;  %v7823_v20 = vmax.f32 %v7819_v35, %v7821_v19 }
 0x786   : > { %v7795_v53 = vadd.f32 %v7786_v54, %v7733_v1  ;;  %v7824_v26 = vmax.f32 %v7822_v57, %v7823_v20  ;;  %v7789_v18 = vpop.f32.mrf.mxu0 }
 0x788   : > { %v7804_v24 = vadd.f32 %v12412_v60, %v7795_v53  ;;  %v7826_v25 = vsel %vm7825_vm7, %v7824_v26, -inf }
 0x789   : > { %v7827_v63 = vrot.slane %v7826_v25, 4 }
 0x78a   : > { %v7809_v7 = vmax.f32 %v7804_v24, 0.0 }
 0x78b   : > { %v7727_v34 = vpop.f32.mrf.mxu3  ;;  %v7833_v15 = vld [vmem:[#allocation6 + $0xe] ss:$2 sm:$0x3]  ;;  %v7835_v56 = vld [vmem:[#allocation6 + $0xf] ss:$2 sm:$0x3]  ;;  %v7828_v6 = vmax.f32 %v7826_v25, %v7827_v63 }
 0x78c   : > { %7814 = vst.msk [vmem:[#allocation6 + $0x18] sm:$0xff] %vm470_vm2, %v7809_v7  ;;  %v7734_v14 = vadd.f32 %v7727_v34, %v7672_v31  ;;  %v7836_v50 = vld [vmem:[#allocation6 + $0x15] ss:$2 sm:$0x3]  ;;  %v7839_v33 = vmax.f32 %v7833_v15, %v7835_v56 }
 0x78d   : > { %v7829_v42 = vrot.slane %v7828_v6, 2 }
 0x78e   : > { %v7796_v46 = vadd.f32 %v7789_v18, %v7734_v14 }
 0x78f   : > { %v7830_v38 = vmax.f32 %v7828_v6, %v7829_v42 }
 0x790   : > { %v7805_v36 = vadd.f32 %v12412_v60, %v7796_v46 }
 0x791   : > { %v7831_v40 = vrot.slane %v7830_v38, 1 }
 0x792   : > { %v7810_v41 = vmax.f32 %v7805_v36, 0.0 }
 0x793   : > { %v7838_v12 = vld [vmem:[#allocation6 + $0x16] ss:$2 sm:$0x3]  ;;  %v7832_v48 = vmax.f32 %v7830_v38, %v7831_v40 }
 0x794   : > { %7815 = vst.msk [vmem:[#allocation6 + $0x20] sm:$0x7] %vm7227_vm6, %v7810_v41  ;;  %v7840_v32 = vmax.f32 %v7836_v50, %v7838_v12 }
 0x796   : > { %v7841_v3 = vmax.f32 %v7839_v33, %v7840_v32 }
 0x798   : > { %v7842_v23 = vsel %vm7825_vm7, %v7841_v3, -inf }
 0x799   : > { %v7843_v51 = vrot.slane %v7842_v23, 4 }
 0x79b   : > { %v7844_v0 = vmax.f32 %v7842_v23, %v7843_v51 }
 0x79d   : > { %v7845_v60 = vrot.slane %v7844_v0, 2 }
 0x79f   : > { %v7846_v11 = vmax.f32 %v7844_v0, %v7845_v60 }
 0x7a1   : > { %v7847_v22 = vrot.slane %v7846_v11, 1 }
 0x7a3   : > { %v7848_v62 = vmax.f32 %v7846_v11, %v7847_v22 }
 0x7a5   : > { %v7849_v27 = vmax.f32 %v7832_v48, %v7848_v62 }
 0x7a7   : > { %8811 = vmatmul.msk.f32.vlgmr.msrb.gmra.mxu1 %vm470_vm2, %v7849_v27 }
 0x824   : > { %v7875_v52 = vpop.f32.mrf.mxu1 }
 0x825   : > { %v7876_v55 = vadd.f32 %v7875_v52, %v7854_v21 }
 0x827   : > { %8890 = vtanh.f32 %v7876_v55 }
 0x82d   : > { %v8891_v17 = vpop.eup %8890 }
 0x82e   : > { %7879 = vst.msk [vmem:[%s412_s24] sm:$0x1] %vm493_vm3, %v8891_v17 }
 0x82f   : > { %8979 = shalt.err (!%p8976_p8)
}
 0x830   : > { %8828 = dma.vmem_to_hbm [thread:$0]  (%p9127_p5), %s7892_s25, 16, %s7894_s30, %s7881_s19  }
 0x831 PF: > { %p8845_p9 = scmp.ge.s32.totalorder %s9022_s20, 2  ;;  %s7905_s14 = sand.u32 1, %s9010_s17  }
 0x832   : > { %s7906_s22 = scalar_lea.sflag [#allocation9], %s7905_s14 }
 0x833   : > { %p8838_p10 = pnand %p8845_p9, %p9131_p6 }
 0x835   : > { %p8839_p11 = pneg %p8838_p10 }
 0x837   : > { %9005 = dma.done.wait (%p8839_p11), %s7906_s22, 16  }
 0x838   : > { %9007 = vsyncadd (%p8839_p11), %s7906_s22, 4294967280  ;;  %s12590_s24 = sld [smem:[#allocation16_spill]]  ;;  %p23_p12 = scmp.ge.s32.totalorder %s9114_s23, 4  }
 0x839   : > { %s12591_s19 = sld [smem:[#allocation17_spill]]  ;;  %s12592_s17 = smov %s9014_s18 }
 0x83a   : > { %s12594_s20 = smov %s9114_s23  ;;  %25 = sbr.rel (!%p23_p12) target bundleno = 5 (0x5), region = 238 }
 0x83e   : > { %s12593_s18 = smov %s12590_s24 }
 0x83f   :  { %7911 = vsyncpa [#allocation8], 1 }
 0x840   :  { %7913 = vsyncpa [#allocation8 + $0x1], 1 }
 0x841   :  { %7914 = vsyncpa [#allocation11], 1 }
 0x842   :  { %7915 = vsyncpa [#allocation9], 1 }
 0x843   :  { %7917 = vsyncpa [#allocation9 + $0x1], 1 }

</bundles_post_ra>
